<compile_context>
chip_gen: v5e
topology: v5e:2x2
jax: 0.10.0
libtpu: 0.0.40
codegen_flags: <defaults>
</compile_context>

<pallas_src>
import jax
import jax.numpy as jnp
from jax.experimental import pallas as pl
from jax.experimental.pallas import tpu as pltpu


# ----------------------------------------------------------------------------
# Fused Pallas kernel (one batch image per grid step)
# ----------------------------------------------------------------------------
def _inception_fused_kernel(
        x_ref,                      # (1, Hf, Wf, Cin)  zero-padded input frame
        w1_ref, b1_ref,             # (Cin, Ctot), (1, Ctot)        p1_1
        w2a_ref, b2a_ref,           # (Cin, C2a), (1, C2a)          p2_1
        w2b_ref, b2_ref,            # (3, 3, C2a, Ctot), (1, Ctot)  p2_2
        w3a_ref, b3a_ref,           # (Cin, C3a), (1, C3a)          p3_1
        w3b_ref, b3_ref,            # (5, 5, C3a, Ctot), (1, Ctot)  p3_2
        w4_ref, b4_ref,             # (Cin, Ctot), (1, Ctot)        p4_2
        o_ref,                      # (1, H, W, Ctot)
        s2_ref, s3_ref, s4_ref):    # VMEM frames: t2 / t3 / maxpool input
    Cin = x_ref.shape[3]
    H, W, Ctot = o_ref.shape[1], o_ref.shape[2], o_ref.shape[3]
    P = 2  # real HxW data lives at offset (P, P) inside the (Hf, Wf) frame

    # Interior pixels of the frame, flattened so channel contractions hit MXU.
    x_int = x_ref[0, P:P + H, P:P + W, :]          # (H, W, Cin)
    x_c = x_int.reshape(H * W, Cin)                # (H*W, Cin)

    # ---- 1x1 stages of branches 2/3: zero-fill the padded frame, compute the
    #      interior only, store it back at offset (P, P).  The 3x3/5x5 taps
    #      then read exact zero padding straight from VMEM.
    s2_ref[...] = jnp.zeros_like(s2_ref)
    t2 = jnp.maximum(
        jnp.dot(x_c, w2a_ref[...], preferred_element_type=jnp.float32)
        + b2a_ref[...], 0.0)
    s2_ref[P:P + H, P:P + W, :] = t2.reshape(H, W, -1)

    s3_ref[...] = jnp.zeros_like(s3_ref)
    t3 = jnp.maximum(
        jnp.dot(x_c, w3a_ref[...], preferred_element_type=jnp.float32)
        + b3a_ref[...], 0.0)
    s3_ref[P:P + H, P:P + W, :] = t3.reshape(H, W, -1)

    # ---- maxpool input: real values inside, -inf halo (PyTorch semantics).
    s4_ref[...] = jnp.full(s4_ref.shape, -jnp.inf, s4_ref.dtype)
    s4_ref[P:P + H, P:P + W, :] = x_int

    # ---- branch 1: 1x1 conv + ReLU (weights pre-padded to full Ctot width).
    out = jnp.maximum(
        jnp.dot(x_c, w1_ref[...], preferred_element_type=jnp.float32)
        + b1_ref[...], 0.0)

    # ---- branch 2: 3x3 conv (pad 1) on t2, shift-and-matmul taps.
    acc2 = jnp.zeros((H * W, Ctot), jnp.float32)
    for dy in range(3):
        for dx in range(3):
            tap = s2_ref[1 + dy:1 + dy + H, 1 + dx:1 + dx + W, :]
            acc2 = acc2 + jnp.dot(tap.reshape(H * W, -1), w2b_ref[dy, dx],
                                  preferred_element_type=jnp.float32)
    out = out + jnp.maximum(acc2 + b2_ref[...], 0.0)

    # ---- branch 3: 5x5 conv (pad 2) on t3.
    acc3 = jnp.zeros((H * W, Ctot), jnp.float32)
    for dy in range(5):
        for dx in range(5):
            tap = s3_ref[dy:dy + H, dx:dx + W, :]
            acc3 = acc3 + jnp.dot(tap.reshape(H * W, -1), w3b_ref[dy, dx],
                                  preferred_element_type=jnp.float32)
    out = out + jnp.maximum(acc3 + b3_ref[...], 0.0)

    # ---- branch 4: 3x3 maxpool (stride 1, pad 1) then 1x1 conv + ReLU.
    pooled = s4_ref[P:P + H, P:P + W, :]           # center tap = real pixel
    for dy in range(3):
        for dx in range(3):
            if (dy, dx) != (1, 1):
                pooled = jnp.maximum(
                    pooled, s4_ref[1 + dy:1 + dy + H, 1 + dx:1 + dx + W, :])
    out = out + jnp.maximum(
        jnp.dot(pooled.reshape(H * W, Cin), w4_ref[...],
                preferred_element_type=jnp.float32) + b4_ref[...], 0.0)

    # Single dense store of the already-concatenated block.
    o_ref[0] = out.reshape(H, W, Ctot).astype(o_ref.dtype)


# ----------------------------------------------------------------------------
# Wrapper: parameter fusion + pallas_call plumbing
# ----------------------------------------------------------------------------
def _round_up(v, m):
    return (v + m - 1) // m * m


def _pad_cout(w, b, off, ctot):
    """Zero-pad the output-channel dim so this branch lands at channel offset
    `off` of the fused Ctot-wide output (sum of branch ReLUs == concat)."""
    cout = w.shape[-1]
    wf = jnp.pad(w, [(0, 0)] * (w.ndim - 1) + [(off, ctot - off - cout)])
    bf = jnp.pad(b, (off, ctot - off - cout)).reshape(1, ctot)
    return wf, bf


def _fuse_params(params):
    w1, b1 = params["p1_1"]          # (1,1,Cin,c1)
    w2a, b2a = params["p2_1"]        # (1,1,Cin,c2_0)
    w2b, b2b = params["p2_2"]        # (3,3,c2_0,c2_1)
    w3a, b3a = params["p3_1"]        # (1,1,Cin,c3_0)
    w3b, b3b = params["p3_2"]        # (5,5,c3_0,c3_1)
    w4, b4 = params["p4_2"]          # (1,1,Cin,c4)

    c1, c2_1, c3_1, c4 = (w1.shape[-1], w2b.shape[-1],
                          w3b.shape[-1], w4.shape[-1])
    ctot = c1 + c2_1 + c3_1 + c4
    o2, o3, o4 = c1, c1 + c2_1, c1 + c2_1 + c3_1

    w1f, b1f = _pad_cout(w1[0, 0], b1, 0, ctot)
    w2bf, b2f = _pad_cout(w2b, b2b, o2, ctot)
    w3bf, b3f = _pad_cout(w3b, b3b, o3, ctot)
    w4f, b4f = _pad_cout(w4[0, 0], b4, o4, ctot)

    return dict(w1=w1f, b1=b1f,
                w2a=w2a[0, 0], b2a=b2a.reshape(1, -1), w2b=w2bf, b2=b2f,
                w3a=w3a[0, 0], b3a=b3a.reshape(1, -1), w3b=w3bf, b3=b3f,
                w4=w4f, b4=b4f)


def inception_fused_nhwc(x, f):
    """x: (N, H, W, Cin) f32; f: fused params -> (N, H, W, Ctot)."""
    N, H, W, Cin = x.shape
    Ctot = f["w1"].shape[-1]
    C2a = f["w2a"].shape[-1]
    C3a = f["w3a"].shape[-1]
    P = 2
    Hf = H + 2 * P
    Wf = _round_up(W + 2 * P, 8)       # sublane-friendly frame width
    xf = jnp.pad(x, ((0, 0), (P, P), (P, Wf - W - P), (0, 0)))

    full2 = lambda n: (0, 0)
    full4 = lambda n: (0, 0, 0, 0)

    return pl.pallas_call(
        _inception_fused_kernel,
        out_shape=jax.ShapeDtypeStruct((N, H, W, Ctot), x.dtype),
        grid_spec=pltpu.PrefetchScalarGridSpec(
            num_scalar_prefetch=0,
            grid=(N,),
            in_specs=[
                pl.BlockSpec((1, Hf, Wf, Cin), lambda n: (n, 0, 0, 0)),
                pl.BlockSpec((Cin, Ctot), full2), pl.BlockSpec((1, Ctot), full2),
                pl.BlockSpec((Cin, C2a), full2), pl.BlockSpec((1, C2a), full2),
                pl.BlockSpec((3, 3, C2a, Ctot), full4),
                pl.BlockSpec((1, Ctot), full2),
                pl.BlockSpec((Cin, C3a), full2), pl.BlockSpec((1, C3a), full2),
                pl.BlockSpec((5, 5, C3a, Ctot), full4),
                pl.BlockSpec((1, Ctot), full2),
                pl.BlockSpec((Cin, Ctot), full2), pl.BlockSpec((1, Ctot), full2),
            ],
            out_specs=pl.BlockSpec((1, H, W, Ctot), lambda n: (n, 0, 0, 0)),
            scratch_shapes=[
                pltpu.VMEM((Hf, Wf, C2a), jnp.float32),
                pltpu.VMEM((Hf, Wf, C3a), jnp.float32),
                pltpu.VMEM((Hf, Wf, Cin), jnp.float32),
            ],
        ),
        compiler_params=pltpu.CompilerParams(
            dimension_semantics=("parallel",)),
    )(xf, f["w1"], f["b1"], f["w2a"], f["b2a"], f["w2b"], f["b2"],
      f["w3a"], f["b3a"], f["w3b"], f["b3"], f["w4"], f["b4"])


@jax.jit
def inception_forward(x_nchw, params):
    """x_nchw: (N, Cin, H, W) -> (N, c1+c2[1]+c3[1]+c4, H, W), like PyTorch."""
    x = jnp.transpose(x_nchw, (0, 2, 3, 1))           # NCHW -> NHWC
    out = inception_fused_nhwc(x, _fuse_params(params))
    return jnp.transpose(out, (0, 3, 1, 2))           # NHWC -> NCHW


# ----------------------------------------------------------------------------
# Parameter construction (matches nn.Conv2d shapes, stored as HWIO)
# ----------------------------------------------------------------------------
def init_inception_params(key, in_channels, c1, c2, c3, c4):
    def conv_params(key, k, cin, cout):
        kw, kb = jax.random.split(key)
        w = jax.random.normal(kw, (k, k, cin, cout), jnp.float32) * 0.1
        b = jax.random.normal(kb, (cout,), jnp.float32) * 0.1
        return w, b

    keys = jax.random.split(key, 6)
    return {
        "p1_1": conv_params(keys[0], 1, in_channels, c1),
        "p2_1": conv_params(keys[1], 1, in_channels, c2[0]),
        "p2_2": conv_params(keys[2], 3, c2[0], c2[1]),
        "p3_1": conv_params(keys[3], 1, in_channels, c3[0]),
        "p3_2": conv_params(keys[4], 5, c3[0], c3[1]),
        "p4_2": conv_params(keys[5], 1, in_channels, c4),
    }


# ----------------------------------------------------------------------------
# Pure-JAX reference (correctness check)
# ----------------------------------------------------------------------------
def _ref_conv_relu(x, w, b, pad):
    y = jax.lax.conv_general_dilated(
        x, w, window_strides=(1, 1), padding=[(pad, pad), (pad, pad)],
        dimension_numbers=("NHWC", "HWIO", "NHWC"))
    return jax.nn.relu(y + b)


def inception_forward_ref(x_nchw, params):
    x = jnp.transpose(x_nchw, (0, 2, 3, 1))
    p1 = _ref_conv_relu(x, *params["p1_1"], 0)
    p2 = _ref_conv_relu(_ref_conv_relu(x, *params["p2_1"], 0),
                        *params["p2_2"], 1)
    p3 = _ref_conv_relu(_ref_conv_relu(x, *params["p3_1"], 0),
                        *params["p3_2"], 2)
    pooled = jax.lax.reduce_window(
        x, -jnp.inf, jax.lax.max, (1, 3, 3, 1), (1, 1, 1, 1),
        [(0, 0), (1, 1), (1, 1), (0, 0)])
    p4 = _ref_conv_relu(pooled, *params["p4_2"], 0)
    out = jnp.concatenate([p1, p2, p3, p4], axis=-1)
    return jnp.transpose(out, (0, 3, 1, 2))


if __name__ == "__main__":
    key = jax.random.PRNGKey(0)
    k_x, k_p = jax.random.split(key)

    # Small shapes consistent with the module: batch=2, in_channels=4, 16x16.
    in_channels, c1, c2, c3, c4 = 4, 8, (4, 8), (4, 8), 8
    x = jax.random.normal(k_x, (2, in_channels, 16, 16), jnp.float32)
    params = init_inception_params(k_p, in_channels, c1, c2, c3, c4)

    out = jax.block_until_ready(inception_forward(x, params))
    ref = jax.block_until_ready(inception_forward_ref(x, params))

    assert out.shape == (2, c1 + c2[1] + c3[1] + c4, 16, 16), out.shape
    assert jnp.allclose(out, ref, atol=1e-4, rtol=1e-4), \
        float(jnp.max(jnp.abs(out - ref)))

    print("KERNEL_OK")
</pallas_src>

<mosaic_0001>
module attributes {stable_mosaic.version = 11 : i64} {
  func.func @_inception_fused_kernel(%arg0: i32, %arg1: memref<1x20x24x4xf32, #tpu.memory_space<vmem>>, %arg2: memref<4x32xf32, #tpu.memory_space<vmem>>, %arg3: memref<1x32xf32, #tpu.memory_space<vmem>>, %arg4: memref<4x4xf32, #tpu.memory_space<vmem>>, %arg5: memref<1x4xf32, #tpu.memory_space<vmem>>, %arg6: memref<3x3x4x32xf32, #tpu.memory_space<vmem>>, %arg7: memref<1x32xf32, #tpu.memory_space<vmem>>, %arg8: memref<4x4xf32, #tpu.memory_space<vmem>>, %arg9: memref<1x4xf32, #tpu.memory_space<vmem>>, %arg10: memref<5x5x4x32xf32, #tpu.memory_space<vmem>>, %arg11: memref<1x32xf32, #tpu.memory_space<vmem>>, %arg12: memref<4x32xf32, #tpu.memory_space<vmem>>, %arg13: memref<1x32xf32, #tpu.memory_space<vmem>>, %arg14: memref<1x16x16x32xf32, #tpu.memory_space<vmem>>, %arg15: memref<20x24x4xf32, #tpu.memory_space<vmem>>, %arg16: memref<20x24x4xf32, #tpu.memory_space<vmem>>, %arg17: memref<20x24x4xf32, #tpu.memory_space<vmem>>) attributes {dimension_semantics = [#tpu.dimension_semantics<parallel>], iteration_bounds = array<i64: 2>, scalar_prefetch = 0 : i64, scratch_operands = 3 : i64, tpu.core_type = #tpu.core_type<tc>, window_params = [{transform_indices = @transform_0, window_bounds = array<i64: 1, 20, 24, 4>}, {pipeline_mode = #tpu.pipeline_mode<synchronous>, transform_indices = @transform_1, window_bounds = array<i64: 4, 32>}, {pipeline_mode = #tpu.pipeline_mode<synchronous>, transform_indices = @transform_2, window_bounds = array<i64: 1, 32>}, {pipeline_mode = #tpu.pipeline_mode<synchronous>, transform_indices = @transform_3, window_bounds = array<i64: 4, 4>}, {pipeline_mode = #tpu.pipeline_mode<synchronous>, transform_indices = @transform_4, window_bounds = array<i64: 1, 4>}, {pipeline_mode = #tpu.pipeline_mode<synchronous>, transform_indices = @transform_5, window_bounds = array<i64: 3, 3, 4, 32>}, {pipeline_mode = #tpu.pipeline_mode<synchronous>, transform_indices = @transform_6, window_bounds = array<i64: 1, 32>}, {pipeline_mode = #tpu.pipeline_mode<synchronous>, transform_indices = @transform_7, window_bounds = array<i64: 4, 4>}, {pipeline_mode = #tpu.pipeline_mode<synchronous>, transform_indices = @transform_8, window_bounds = array<i64: 1, 4>}, {pipeline_mode = #tpu.pipeline_mode<synchronous>, transform_indices = @transform_9, window_bounds = array<i64: 5, 5, 4, 32>}, {pipeline_mode = #tpu.pipeline_mode<synchronous>, transform_indices = @transform_10, window_bounds = array<i64: 1, 32>}, {pipeline_mode = #tpu.pipeline_mode<synchronous>, transform_indices = @transform_11, window_bounds = array<i64: 4, 32>}, {pipeline_mode = #tpu.pipeline_mode<synchronous>, transform_indices = @transform_12, window_bounds = array<i64: 1, 32>}, {transform_indices = @transform_13, window_bounds = array<i64: 1, 16, 16, 32>}]} {
    %c0 = arith.constant 0 : index
    %c2 = arith.constant 2 : index
    %c2_0 = arith.constant 2 : index
    %c0_1 = arith.constant 0 : index
    %0 = vector.load %arg1[%c0, %c2, %c2_0, %c0_1] : memref<1x20x24x4xf32, #tpu.memory_space<vmem>>, vector<1x16x16x4xf32>
    %1 = vector.shape_cast %0 : vector<1x16x16x4xf32> to vector<16x16x4xf32>
    %2 = vector.shape_cast %1 : vector<16x16x4xf32> to vector<256x4xf32>
    %cst = arith.constant 0.000000e+00 : f32
    %3 = vector.broadcast %cst : f32 to vector<20x24x4xf32>
    %c0_2 = arith.constant 0 : index
    %c0_3 = arith.constant 0 : index
    %c0_4 = arith.constant 0 : index
    %4 = vector.load %arg15[%c0_2, %c0_3, %c0_4] : memref<20x24x4xf32, #tpu.memory_space<vmem>>, vector<20x24x4xf32>
    tpu.vector_store %arg15[%c0_2, %c0_3, %c0_4], %3 {strides = array<i32>} : memref<20x24x4xf32, #tpu.memory_space<vmem>>, vector<20x24x4xf32>,
    %c0_5 = arith.constant 0 : index
    %c0_6 = arith.constant 0 : index
    %5 = vector.load %arg4[%c0_5, %c0_6] : memref<4x4xf32, #tpu.memory_space<vmem>>, vector<4x4xf32>
    %cst_7 = arith.constant dense<0.000000e+00> : vector<256x4xf32>
    %6 = tpu.matmul %2, %5, %cst_7 {dimension_numbers = #tpu.dot_dimension_numbers<[1], [0], [0], [1], [0, 0, 1, 1], [], []>} : vector<256x4xf32>, vector<4x4xf32>, vector<256x4xf32> -> vector<256x4xf32>
    %c0_8 = arith.constant 0 : index
    %c0_9 = arith.constant 0 : index
    %7 = vector.load %arg5[%c0_8, %c0_9] : memref<1x4xf32, #tpu.memory_space<vmem>>, vector<1x4xf32>
    %8 = vector.broadcast %7 : vector<1x4xf32> to vector<256x4xf32>
    %9 = arith.addf %6, %8 : vector<256x4xf32>
    %cst_10 = arith.constant 0.000000e+00 : f32
    %10 = vector.broadcast %cst_10 : f32 to vector<256x4xf32>
    %11 = arith.maximumf %9, %10 : vector<256x4xf32>
    %12 = vector.shape_cast %11 : vector<256x4xf32> to vector<16x16x4xf32>
    %c2_11 = arith.constant 2 : index
    %c2_12 = arith.constant 2 : index
    %c0_13 = arith.constant 0 : index
    %13 = vector.load %arg15[%c2_11, %c2_12, %c0_13] : memref<20x24x4xf32, #tpu.memory_space<vmem>>, vector<16x16x4xf32>
    tpu.vector_store %arg15[%c2_11, %c2_12, %c0_13], %12 {strides = array<i32>} : memref<20x24x4xf32, #tpu.memory_space<vmem>>, vector<16x16x4xf32>,
    %cst_14 = arith.constant 0.000000e+00 : f32
    %14 = vector.broadcast %cst_14 : f32 to vector<20x24x4xf32>
    %c0_15 = arith.constant 0 : index
    %c0_16 = arith.constant 0 : index
    %c0_17 = arith.constant 0 : index
    %15 = vector.load %arg16[%c0_15, %c0_16, %c0_17] : memref<20x24x4xf32, #tpu.memory_space<vmem>>, vector<20x24x4xf32>
    tpu.vector_store %arg16[%c0_15, %c0_16, %c0_17], %14 {strides = array<i32>} : memref<20x24x4xf32, #tpu.memory_space<vmem>>, vector<20x24x4xf32>,
    %c0_18 = arith.constant 0 : index
    %c0_19 = arith.constant 0 : index
    %16 = vector.load %arg8[%c0_18, %c0_19] : memref<4x4xf32, #tpu.memory_space<vmem>>, vector<4x4xf32>
    %cst_20 = arith.constant dense<0.000000e+00> : vector<256x4xf32>
    %17 = tpu.matmul %2, %16, %cst_20 {dimension_numbers = #tpu.dot_dimension_numbers<[1], [0], [0], [1], [0, 0, 1, 1], [], []>} : vector<256x4xf32>, vector<4x4xf32>, vector<256x4xf32> -> vector<256x4xf32>
    %c0_21 = arith.constant 0 : index
    %c0_22 = arith.constant 0 : index
    %18 = vector.load %arg9[%c0_21, %c0_22] : memref<1x4xf32, #tpu.memory_space<vmem>>, vector<1x4xf32>
    %19 = vector.broadcast %18 : vector<1x4xf32> to vector<256x4xf32>
    %20 = arith.addf %17, %19 : vector<256x4xf32>
    %cst_23 = arith.constant 0.000000e+00 : f32
    %21 = vector.broadcast %cst_23 : f32 to vector<256x4xf32>
    %22 = arith.maximumf %20, %21 : vector<256x4xf32>
    %23 = vector.shape_cast %22 : vector<256x4xf32> to vector<16x16x4xf32>
    %c2_24 = arith.constant 2 : index
    %c2_25 = arith.constant 2 : index
    %c0_26 = arith.constant 0 : index
    %24 = vector.load %arg16[%c2_24, %c2_25, %c0_26] : memref<20x24x4xf32, #tpu.memory_space<vmem>>, vector<16x16x4xf32>
    tpu.vector_store %arg16[%c2_24, %c2_25, %c0_26], %23 {strides = array<i32>} : memref<20x24x4xf32, #tpu.memory_space<vmem>>, vector<16x16x4xf32>,
    %cst_27 = arith.constant 0xFF800000 : f32
    %25 = vector.broadcast %cst_27 : f32 to vector<20x24x4xf32>
    %c0_28 = arith.constant 0 : index
    %c0_29 = arith.constant 0 : index
    %c0_30 = arith.constant 0 : index
    %26 = vector.load %arg17[%c0_28, %c0_29, %c0_30] : memref<20x24x4xf32, #tpu.memory_space<vmem>>, vector<20x24x4xf32>
    tpu.vector_store %arg17[%c0_28, %c0_29, %c0_30], %25 {strides = array<i32>} : memref<20x24x4xf32, #tpu.memory_space<vmem>>, vector<20x24x4xf32>,
    %c2_31 = arith.constant 2 : index
    %c2_32 = arith.constant 2 : index
    %c0_33 = arith.constant 0 : index
    %27 = vector.load %arg17[%c2_31, %c2_32, %c0_33] : memref<20x24x4xf32, #tpu.memory_space<vmem>>, vector<16x16x4xf32>
    tpu.vector_store %arg17[%c2_31, %c2_32, %c0_33], %1 {strides = array<i32>} : memref<20x24x4xf32, #tpu.memory_space<vmem>>, vector<16x16x4xf32>,
    %c0_34 = arith.constant 0 : index
    %c0_35 = arith.constant 0 : index
    %28 = vector.load %arg2[%c0_34, %c0_35] : memref<4x32xf32, #tpu.memory_space<vmem>>, vector<4x32xf32>
    %cst_36 = arith.constant dense<0.000000e+00> : vector<256x32xf32>
    %29 = tpu.matmul %2, %28, %cst_36 {dimension_numbers = #tpu.dot_dimension_numbers<[1], [0], [0], [1], [0, 0, 1, 1], [], []>} : vector<256x4xf32>, vector<4x32xf32>, vector<256x32xf32> -> vector<256x32xf32>
    %c0_37 = arith.constant 0 : index
    %c0_38 = arith.constant 0 : index
    %30 = vector.load %arg3[%c0_37, %c0_38] : memref<1x32xf32, #tpu.memory_space<vmem>>, vector<1x32xf32>
    %31 = vector.broadcast %30 : vector<1x32xf32> to vector<256x32xf32>
    %32 = arith.addf %29, %31 : vector<256x32xf32>
    %cst_39 = arith.constant 0.000000e+00 : f32
    %33 = vector.broadcast %cst_39 : f32 to vector<256x32xf32>
    %34 = arith.maximumf %32, %33 : vector<256x32xf32>
    %cst_40 = arith.constant 0.000000e+00 : f32
    %35 = vector.broadcast %cst_40 : f32 to vector<256x32xf32>
    %c1 = arith.constant 1 : index
    %c1_41 = arith.constant 1 : index
    %c0_42 = arith.constant 0 : index
    %36 = vector.load %arg15[%c1, %c1_41, %c0_42] : memref<20x24x4xf32, #tpu.memory_space<vmem>>, vector<16x16x4xf32>
    %37 = vector.shape_cast %36 : vector<16x16x4xf32> to vector<256x4xf32>
    %c0_43 = arith.constant 0 : index
    %c0_44 = arith.constant 0 : index
    %c0_45 = arith.constant 0 : index
    %c0_46 = arith.constant 0 : index
    %38 = vector.load %arg6[%c0_43, %c0_44, %c0_45, %c0_46] : memref<3x3x4x32xf32, #tpu.memory_space<vmem>>, vector<1x1x4x32xf32>
    %39 = vector.shape_cast %38 : vector<1x1x4x32xf32> to vector<4x32xf32>
    %cst_47 = arith.constant dense<0.000000e+00> : vector<256x32xf32>
    %40 = tpu.matmul %37, %39, %cst_47 {dimension_numbers = #tpu.dot_dimension_numbers<[1], [0], [0], [1], [0, 0, 1, 1], [], []>} : vector<256x4xf32>, vector<4x32xf32>, vector<256x32xf32> -> vector<256x32xf32>
    %41 = arith.addf %35, %40 : vector<256x32xf32>
    %c1_48 = arith.constant 1 : index
    %c2_49 = arith.constant 2 : index
    %c0_50 = arith.constant 0 : index
    %42 = vector.load %arg15[%c1_48, %c2_49, %c0_50] : memref<20x24x4xf32, #tpu.memory_space<vmem>>, vector<16x16x4xf32>
    %43 = vector.shape_cast %42 : vector<16x16x4xf32> to vector<256x4xf32>
    %c0_51 = arith.constant 0 : index
    %c1_52 = arith.constant 1 : index
    %c0_53 = arith.constant 0 : index
    %c0_54 = arith.constant 0 : index
    %44 = vector.load %arg6[%c0_51, %c1_52, %c0_53, %c0_54] : memref<3x3x4x32xf32, #tpu.memory_space<vmem>>, vector<1x1x4x32xf32>
    %45 = vector.shape_cast %44 : vector<1x1x4x32xf32> to vector<4x32xf32>
    %cst_55 = arith.constant dense<0.000000e+00> : vector<256x32xf32>
    %46 = tpu.matmul %43, %45, %cst_55 {dimension_numbers = #tpu.dot_dimension_numbers<[1], [0], [0], [1], [0, 0, 1, 1], [], []>} : vector<256x4xf32>, vector<4x32xf32>, vector<256x32xf32> -> vector<256x32xf32>
    %47 = arith.addf %41, %46 : vector<256x32xf32>
    %c1_56 = arith.constant 1 : index
    %c3 = arith.constant 3 : index
    %c0_57 = arith.constant 0 : index
    %48 = vector.load %arg15[%c1_56, %c3, %c0_57] : memref<20x24x4xf32, #tpu.memory_space<vmem>>, vector<16x16x4xf32>
    %49 = vector.shape_cast %48 : vector<16x16x4xf32> to vector<256x4xf32>
    %c0_58 = arith.constant 0 : index
    %c2_59 = arith.constant 2 : index
    %c0_60 = arith.constant 0 : index
    %c0_61 = arith.constant 0 : index
    %50 = vector.load %arg6[%c0_58, %c2_59, %c0_60, %c0_61] : memref<3x3x4x32xf32, #tpu.memory_space<vmem>>, vector<1x1x4x32xf32>
    %51 = vector.shape_cast %50 : vector<1x1x4x32xf32> to vector<4x32xf32>
    %cst_62 = arith.constant dense<0.000000e+00> : vector<256x32xf32>
    %52 = tpu.matmul %49, %51, %cst_62 {dimension_numbers = #tpu.dot_dimension_numbers<[1], [0], [0], [1], [0, 0, 1, 1], [], []>} : vector<256x4xf32>, vector<4x32xf32>, vector<256x32xf32> -> vector<256x32xf32>
    %53 = arith.addf %47, %52 : vector<256x32xf32>
    %c2_63 = arith.constant 2 : index
    %c1_64 = arith.constant 1 : index
    %c0_65 = arith.constant 0 : index
    %54 = vector.load %arg15[%c2_63, %c1_64, %c0_65] : memref<20x24x4xf32, #tpu.memory_space<vmem>>, vector<16x16x4xf32>
    %55 = vector.shape_cast %54 : vector<16x16x4xf32> to vector<256x4xf32>
    %c1_66 = arith.constant 1 : index
    %c0_67 = arith.constant 0 : index
    %c0_68 = arith.constant 0 : index
    %c0_69 = arith.constant 0 : index
    %56 = vector.load %arg6[%c1_66, %c0_67, %c0_68, %c0_69] : memref<3x3x4x32xf32, #tpu.memory_space<vmem>>, vector<1x1x4x32xf32>
    %57 = vector.shape_cast %56 : vector<1x1x4x32xf32> to vector<4x32xf32>
    %cst_70 = arith.constant dense<0.000000e+00> : vector<256x32xf32>
    %58 = tpu.matmul %55, %57, %cst_70 {dimension_numbers = #tpu.dot_dimension_numbers<[1], [0], [0], [1], [0, 0, 1, 1], [], []>} : vector<256x4xf32>, vector<4x32xf32>, vector<256x32xf32> -> vector<256x32xf32>
    %59 = arith.addf %53, %58 : vector<256x32xf32>
    %c2_71 = arith.constant 2 : index
    %c2_72 = arith.constant 2 : index
    %c0_73 = arith.constant 0 : index
    %60 = vector.load %arg15[%c2_71, %c2_72, %c0_73] : memref<20x24x4xf32, #tpu.memory_space<vmem>>, vector<16x16x4xf32>
    %61 = vector.shape_cast %60 : vector<16x16x4xf32> to vector<256x4xf32>
    %c1_74 = arith.constant 1 : index
    %c1_75 = arith.constant 1 : index
    %c0_76 = arith.constant 0 : index
    %c0_77 = arith.constant 0 : index
    %62 = vector.load %arg6[%c1_74, %c1_75, %c0_76, %c0_77] : memref<3x3x4x32xf32, #tpu.memory_space<vmem>>, vector<1x1x4x32xf32>
    %63 = vector.shape_cast %62 : vector<1x1x4x32xf32> to vector<4x32xf32>
    %cst_78 = arith.constant dense<0.000000e+00> : vector<256x32xf32>
    %64 = tpu.matmul %61, %63, %cst_78 {dimension_numbers = #tpu.dot_dimension_numbers<[1], [0], [0], [1], [0, 0, 1, 1], [], []>} : vector<256x4xf32>, vector<4x32xf32>, vector<256x32xf32> -> vector<256x32xf32>
    %65 = arith.addf %59, %64 : vector<256x32xf32>
    %c2_79 = arith.constant 2 : index
    %c3_80 = arith.constant 3 : index
    %c0_81 = arith.constant 0 : index
    %66 = vector.load %arg15[%c2_79, %c3_80, %c0_81] : memref<20x24x4xf32, #tpu.memory_space<vmem>>, vector<16x16x4xf32>
    %67 = vector.shape_cast %66 : vector<16x16x4xf32> to vector<256x4xf32>
    %c1_82 = arith.constant 1 : index
    %c2_83 = arith.constant 2 : index
    %c0_84 = arith.constant 0 : index
    %c0_85 = arith.constant 0 : index
    %68 = vector.load %arg6[%c1_82, %c2_83, %c0_84, %c0_85] : memref<3x3x4x32xf32, #tpu.memory_space<vmem>>, vector<1x1x4x32xf32>
    %69 = vector.shape_cast %68 : vector<1x1x4x32xf32> to vector<4x32xf32>
    %cst_86 = arith.constant dense<0.000000e+00> : vector<256x32xf32>
    %70 = tpu.matmul %67, %69, %cst_86 {dimension_numbers = #tpu.dot_dimension_numbers<[1], [0], [0], [1], [0, 0, 1, 1], [], []>} : vector<256x4xf32>, vector<4x32xf32>, vector<256x32xf32> -> vector<256x32xf32>
    %71 = arith.addf %65, %70 : vector<256x32xf32>
    %c3_87 = arith.constant 3 : index
    %c1_88 = arith.constant 1 : index
    %c0_89 = arith.constant 0 : index
    %72 = vector.load %arg15[%c3_87, %c1_88, %c0_89] : memref<20x24x4xf32, #tpu.memory_space<vmem>>, vector<16x16x4xf32>
    %73 = vector.shape_cast %72 : vector<16x16x4xf32> to vector<256x4xf32>
    %c2_90 = arith.constant 2 : index
    %c0_91 = arith.constant 0 : index
    %c0_92 = arith.constant 0 : index
    %c0_93 = arith.constant 0 : index
    %74 = vector.load %arg6[%c2_90, %c0_91, %c0_92, %c0_93] : memref<3x3x4x32xf32, #tpu.memory_space<vmem>>, vector<1x1x4x32xf32>
    %75 = vector.shape_cast %74 : vector<1x1x4x32xf32> to vector<4x32xf32>
    %cst_94 = arith.constant dense<0.000000e+00> : vector<256x32xf32>
    %76 = tpu.matmul %73, %75, %cst_94 {dimension_numbers = #tpu.dot_dimension_numbers<[1], [0], [0], [1], [0, 0, 1, 1], [], []>} : vector<256x4xf32>, vector<4x32xf32>, vector<256x32xf32> -> vector<256x32xf32>
    %77 = arith.addf %71, %76 : vector<256x32xf32>
    %c3_95 = arith.constant 3 : index
    %c2_96 = arith.constant 2 : index
    %c0_97 = arith.constant 0 : index
    %78 = vector.load %arg15[%c3_95, %c2_96, %c0_97] : memref<20x24x4xf32, #tpu.memory_space<vmem>>, vector<16x16x4xf32>
    %79 = vector.shape_cast %78 : vector<16x16x4xf32> to vector<256x4xf32>
    %c2_98 = arith.constant 2 : index
    %c1_99 = arith.constant 1 : index
    %c0_100 = arith.constant 0 : index
    %c0_101 = arith.constant 0 : index
    %80 = vector.load %arg6[%c2_98, %c1_99, %c0_100, %c0_101] : memref<3x3x4x32xf32, #tpu.memory_space<vmem>>, vector<1x1x4x32xf32>
    %81 = vector.shape_cast %80 : vector<1x1x4x32xf32> to vector<4x32xf32>
    %cst_102 = arith.constant dense<0.000000e+00> : vector<256x32xf32>
    %82 = tpu.matmul %79, %81, %cst_102 {dimension_numbers = #tpu.dot_dimension_numbers<[1], [0], [0], [1], [0, 0, 1, 1], [], []>} : vector<256x4xf32>, vector<4x32xf32>, vector<256x32xf32> -> vector<256x32xf32>
    %83 = arith.addf %77, %82 : vector<256x32xf32>
    %c3_103 = arith.constant 3 : index
    %c3_104 = arith.constant 3 : index
    %c0_105 = arith.constant 0 : index
    %84 = vector.load %arg15[%c3_103, %c3_104, %c0_105] : memref<20x24x4xf32, #tpu.memory_space<vmem>>, vector<16x16x4xf32>
    %85 = vector.shape_cast %84 : vector<16x16x4xf32> to vector<256x4xf32>
    %c2_106 = arith.constant 2 : index
    %c2_107 = arith.constant 2 : index
    %c0_108 = arith.constant 0 : index
    %c0_109 = arith.constant 0 : index
    %86 = vector.load %arg6[%c2_106, %c2_107, %c0_108, %c0_109] : memref<3x3x4x32xf32, #tpu.memory_space<vmem>>, vector<1x1x4x32xf32>
    %87 = vector.shape_cast %86 : vector<1x1x4x32xf32> to vector<4x32xf32>
    %cst_110 = arith.constant dense<0.000000e+00> : vector<256x32xf32>
    %88 = tpu.matmul %85, %87, %cst_110 {dimension_numbers = #tpu.dot_dimension_numbers<[1], [0], [0], [1], [0, 0, 1, 1], [], []>} : vector<256x4xf32>, vector<4x32xf32>, vector<256x32xf32> -> vector<256x32xf32>
    %89 = arith.addf %83, %88 : vector<256x32xf32>
    %c0_111 = arith.constant 0 : index
    %c0_112 = arith.constant 0 : index
    %90 = vector.load %arg7[%c0_111, %c0_112] : memref<1x32xf32, #tpu.memory_space<vmem>>, vector<1x32xf32>
    %91 = vector.broadcast %90 : vector<1x32xf32> to vector<256x32xf32>
    %92 = arith.addf %89, %91 : vector<256x32xf32>
    %cst_113 = arith.constant 0.000000e+00 : f32
    %93 = vector.broadcast %cst_113 : f32 to vector<256x32xf32>
    %94 = arith.maximumf %92, %93 : vector<256x32xf32>
    %95 = arith.addf %34, %94 : vector<256x32xf32>
    %cst_114 = arith.constant 0.000000e+00 : f32
    %96 = vector.broadcast %cst_114 : f32 to vector<256x32xf32>
    %c0_115 = arith.constant 0 : index
    %c0_116 = arith.constant 0 : index
    %c0_117 = arith.constant 0 : index
    %97 = vector.load %arg16[%c0_115, %c0_116, %c0_117] : memref<20x24x4xf32, #tpu.memory_space<vmem>>, vector<16x16x4xf32>
    %98 = vector.shape_cast %97 : vector<16x16x4xf32> to vector<256x4xf32>
    %c0_118 = arith.constant 0 : index
    %c0_119 = arith.constant 0 : index
    %c0_120 = arith.constant 0 : index
    %c0_121 = arith.constant 0 : index
    %99 = vector.load %arg10[%c0_118, %c0_119, %c0_120, %c0_121] : memref<5x5x4x32xf32, #tpu.memory_space<vmem>>, vector<1x1x4x32xf32>
    %100 = vector.shape_cast %99 : vector<1x1x4x32xf32> to vector<4x32xf32>
    %cst_122 = arith.constant dense<0.000000e+00> : vector<256x32xf32>
    %101 = tpu.matmul %98, %100, %cst_122 {dimension_numbers = #tpu.dot_dimension_numbers<[1], [0], [0], [1], [0, 0, 1, 1], [], []>} : vector<256x4xf32>, vector<4x32xf32>, vector<256x32xf32> -> vector<256x32xf32>
    %102 = arith.addf %96, %101 : vector<256x32xf32>
    %c0_123 = arith.constant 0 : index
    %c1_124 = arith.constant 1 : index
    %c0_125 = arith.constant 0 : index
    %103 = vector.load %arg16[%c0_123, %c1_124, %c0_125] : memref<20x24x4xf32, #tpu.memory_space<vmem>>, vector<16x16x4xf32>
    %104 = vector.shape_cast %103 : vector<16x16x4xf32> to vector<256x4xf32>
    %c0_126 = arith.constant 0 : index
    %c1_127 = arith.constant 1 : index
    %c0_128 = arith.constant 0 : index
    %c0_129 = arith.constant 0 : index
    %105 = vector.load %arg10[%c0_126, %c1_127, %c0_128, %c0_129] : memref<5x5x4x32xf32, #tpu.memory_space<vmem>>, vector<1x1x4x32xf32>
    %106 = vector.shape_cast %105 : vector<1x1x4x32xf32> to vector<4x32xf32>
    %cst_130 = arith.constant dense<0.000000e+00> : vector<256x32xf32>
    %107 = tpu.matmul %104, %106, %cst_130 {dimension_numbers = #tpu.dot_dimension_numbers<[1], [0], [0], [1], [0, 0, 1, 1], [], []>} : vector<256x4xf32>, vector<4x32xf32>, vector<256x32xf32> -> vector<256x32xf32>
    %108 = arith.addf %102, %107 : vector<256x32xf32>
    %c0_131 = arith.constant 0 : index
    %c2_132 = arith.constant 2 : index
    %c0_133 = arith.constant 0 : index
    %109 = vector.load %arg16[%c0_131, %c2_132, %c0_133] : memref<20x24x4xf32, #tpu.memory_space<vmem>>, vector<16x16x4xf32>
    %110 = vector.shape_cast %109 : vector<16x16x4xf32> to vector<256x4xf32>
    %c0_134 = arith.constant 0 : index
    %c2_135 = arith.constant 2 : index
    %c0_136 = arith.constant 0 : index
    %c0_137 = arith.constant 0 : index
    %111 = vector.load %arg10[%c0_134, %c2_135, %c0_136, %c0_137] : memref<5x5x4x32xf32, #tpu.memory_space<vmem>>, vector<1x1x4x32xf32>
    %112 = vector.shape_cast %111 : vector<1x1x4x32xf32> to vector<4x32xf32>
    %cst_138 = arith.constant dense<0.000000e+00> : vector<256x32xf32>
    %113 = tpu.matmul %110, %112, %cst_138 {dimension_numbers = #tpu.dot_dimension_numbers<[1], [0], [0], [1], [0, 0, 1, 1], [], []>} : vector<256x4xf32>, vector<4x32xf32>, vector<256x32xf32> -> vector<256x32xf32>
    %114 = arith.addf %108, %113 : vector<256x32xf32>
    %c0_139 = arith.constant 0 : index
    %c3_140 = arith.constant 3 : index
    %c0_141 = arith.constant 0 : index
    %115 = vector.load %arg16[%c0_139, %c3_140, %c0_141] : memref<20x24x4xf32, #tpu.memory_space<vmem>>, vector<16x16x4xf32>
    %116 = vector.shape_cast %115 : vector<16x16x4xf32> to vector<256x4xf32>
    %c0_142 = arith.constant 0 : index
    %c3_143 = arith.constant 3 : index
    %c0_144 = arith.constant 0 : index
    %c0_145 = arith.constant 0 : index
    %117 = vector.load %arg10[%c0_142, %c3_143, %c0_144, %c0_145] : memref<5x5x4x32xf32, #tpu.memory_space<vmem>>, vector<1x1x4x32xf32>
    %118 = vector.shape_cast %117 : vector<1x1x4x32xf32> to vector<4x32xf32>
    %cst_146 = arith.constant dense<0.000000e+00> : vector<256x32xf32>
    %119 = tpu.matmul %116, %118, %cst_146 {dimension_numbers = #tpu.dot_dimension_numbers<[1], [0], [0], [1], [0, 0, 1, 1], [], []>} : vector<256x4xf32>, vector<4x32xf32>, vector<256x32xf32> -> vector<256x32xf32>
    %120 = arith.addf %114, %119 : vector<256x32xf32>
    %c0_147 = arith.constant 0 : index
    %c4 = arith.constant 4 : index
    %c0_148 = arith.constant 0 : index
    %121 = vector.load %arg16[%c0_147, %c4, %c0_148] : memref<20x24x4xf32, #tpu.memory_space<vmem>>, vector<16x16x4xf32>
    %122 = vector.shape_cast %121 : vector<16x16x4xf32> to vector<256x4xf32>
    %c0_149 = arith.constant 0 : index
    %c4_150 = arith.constant 4 : index
    %c0_151 = arith.constant 0 : index
    %c0_152 = arith.constant 0 : index
    %123 = vector.load %arg10[%c0_149, %c4_150, %c0_151, %c0_152] : memref<5x5x4x32xf32, #tpu.memory_space<vmem>>, vector<1x1x4x32xf32>
    %124 = vector.shape_cast %123 : vector<1x1x4x32xf32> to vector<4x32xf32>
    %cst_153 = arith.constant dense<0.000000e+00> : vector<256x32xf32>
    %125 = tpu.matmul %122, %124, %cst_153 {dimension_numbers = #tpu.dot_dimension_numbers<[1], [0], [0], [1], [0, 0, 1, 1], [], []>} : vector<256x4xf32>, vector<4x32xf32>, vector<256x32xf32> -> vector<256x32xf32>
    %126 = arith.addf %120, %125 : vector<256x32xf32>
    %c1_154 = arith.constant 1 : index
    %c0_155 = arith.constant 0 : index
    %c0_156 = arith.constant 0 : index
    %127 = vector.load %arg16[%c1_154, %c0_155, %c0_156] : memref<20x24x4xf32, #tpu.memory_space<vmem>>, vector<16x16x4xf32>
    %128 = vector.shape_cast %127 : vector<16x16x4xf32> to vector<256x4xf32>
    %c1_157 = arith.constant 1 : index
    %c0_158 = arith.constant 0 : index
    %c0_159 = arith.constant 0 : index
    %c0_160 = arith.constant 0 : index
    %129 = vector.load %arg10[%c1_157, %c0_158, %c0_159, %c0_160] : memref<5x5x4x32xf32, #tpu.memory_space<vmem>>, vector<1x1x4x32xf32>
    %130 = vector.shape_cast %129 : vector<1x1x4x32xf32> to vector<4x32xf32>
    %cst_161 = arith.constant dense<0.000000e+00> : vector<256x32xf32>
    %131 = tpu.matmul %128, %130, %cst_161 {dimension_numbers = #tpu.dot_dimension_numbers<[1], [0], [0], [1], [0, 0, 1, 1], [], []>} : vector<256x4xf32>, vector<4x32xf32>, vector<256x32xf32> -> vector<256x32xf32>
    %132 = arith.addf %126, %131 : vector<256x32xf32>
    %c1_162 = arith.constant 1 : index
    %c1_163 = arith.constant 1 : index
    %c0_164 = arith.constant 0 : index
    %133 = vector.load %arg16[%c1_162, %c1_163, %c0_164] : memref<20x24x4xf32, #tpu.memory_space<vmem>>, vector<16x16x4xf32>
    %134 = vector.shape_cast %133 : vector<16x16x4xf32> to vector<256x4xf32>
    %c1_165 = arith.constant 1 : index
    %c1_166 = arith.constant 1 : index
    %c0_167 = arith.constant 0 : index
    %c0_168 = arith.constant 0 : index
    %135 = vector.load %arg10[%c1_165, %c1_166, %c0_167, %c0_168] : memref<5x5x4x32xf32, #tpu.memory_space<vmem>>, vector<1x1x4x32xf32>
    %136 = vector.shape_cast %135 : vector<1x1x4x32xf32> to vector<4x32xf32>
    %cst_169 = arith.constant dense<0.000000e+00> : vector<256x32xf32>
    %137 = tpu.matmul %134, %136, %cst_169 {dimension_numbers = #tpu.dot_dimension_numbers<[1], [0], [0], [1], [0, 0, 1, 1], [], []>} : vector<256x4xf32>, vector<4x32xf32>, vector<256x32xf32> -> vector<256x32xf32>
    %138 = arith.addf %132, %137 : vector<256x32xf32>
    %c1_170 = arith.constant 1 : index
    %c2_171 = arith.constant 2 : index
    %c0_172 = arith.constant 0 : index
    %139 = vector.load %arg16[%c1_170, %c2_171, %c0_172] : memref<20x24x4xf32, #tpu.memory_space<vmem>>, vector<16x16x4xf32>
    %140 = vector.shape_cast %139 : vector<16x16x4xf32> to vector<256x4xf32>
    %c1_173 = arith.constant 1 : index
    %c2_174 = arith.constant 2 : index
    %c0_175 = arith.constant 0 : index
    %c0_176 = arith.constant 0 : index
    %141 = vector.load %arg10[%c1_173, %c2_174, %c0_175, %c0_176] : memref<5x5x4x32xf32, #tpu.memory_space<vmem>>, vector<1x1x4x32xf32>
    %142 = vector.shape_cast %141 : vector<1x1x4x32xf32> to vector<4x32xf32>
    %cst_177 = arith.constant dense<0.000000e+00> : vector<256x32xf32>
    %143 = tpu.matmul %140, %142, %cst_177 {dimension_numbers = #tpu.dot_dimension_numbers<[1], [0], [0], [1], [0, 0, 1, 1], [], []>} : vector<256x4xf32>, vector<4x32xf32>, vector<256x32xf32> -> vector<256x32xf32>
    %144 = arith.addf %138, %143 : vector<256x32xf32>
    %c1_178 = arith.constant 1 : index
    %c3_179 = arith.constant 3 : index
    %c0_180 = arith.constant 0 : index
    %145 = vector.load %arg16[%c1_178, %c3_179, %c0_180] : memref<20x24x4xf32, #tpu.memory_space<vmem>>, vector<16x16x4xf32>
    %146 = vector.shape_cast %145 : vector<16x16x4xf32> to vector<256x4xf32>
    %c1_181 = arith.constant 1 : index
    %c3_182 = arith.constant 3 : index
    %c0_183 = arith.constant 0 : index
    %c0_184 = arith.constant 0 : index
    %147 = vector.load %arg10[%c1_181, %c3_182, %c0_183, %c0_184] : memref<5x5x4x32xf32, #tpu.memory_space<vmem>>, vector<1x1x4x32xf32>
    %148 = vector.shape_cast %147 : vector<1x1x4x32xf32> to vector<4x32xf32>
    %cst_185 = arith.constant dense<0.000000e+00> : vector<256x32xf32>
    %149 = tpu.matmul %146, %148, %cst_185 {dimension_numbers = #tpu.dot_dimension_numbers<[1], [0], [0], [1], [0, 0, 1, 1], [], []>} : vector<256x4xf32>, vector<4x32xf32>, vector<256x32xf32> -> vector<256x32xf32>
    %150 = arith.addf %144, %149 : vector<256x32xf32>
    %c1_186 = arith.constant 1 : index
    %c4_187 = arith.constant 4 : index
    %c0_188 = arith.constant 0 : index
    %151 = vector.load %arg16[%c1_186, %c4_187, %c0_188] : memref<20x24x4xf32, #tpu.memory_space<vmem>>, vector<16x16x4xf32>
    %152 = vector.shape_cast %151 : vector<16x16x4xf32> to vector<256x4xf32>
    %c1_189 = arith.constant 1 : index
    %c4_190 = arith.constant 4 : index
    %c0_191 = arith.constant 0 : index
    %c0_192 = arith.constant 0 : index
    %153 = vector.load %arg10[%c1_189, %c4_190, %c0_191, %c0_192] : memref<5x5x4x32xf32, #tpu.memory_space<vmem>>, vector<1x1x4x32xf32>
    %154 = vector.shape_cast %153 : vector<1x1x4x32xf32> to vector<4x32xf32>
    %cst_193 = arith.constant dense<0.000000e+00> : vector<256x32xf32>
    %155 = tpu.matmul %152, %154, %cst_193 {dimension_numbers = #tpu.dot_dimension_numbers<[1], [0], [0], [1], [0, 0, 1, 1], [], []>} : vector<256x4xf32>, vector<4x32xf32>, vector<256x32xf32> -> vector<256x32xf32>
    %156 = arith.addf %150, %155 : vector<256x32xf32>
    %c2_194 = arith.constant 2 : index
    %c0_195 = arith.constant 0 : index
    %c0_196 = arith.constant 0 : index
    %157 = vector.load %arg16[%c2_194, %c0_195, %c0_196] : memref<20x24x4xf32, #tpu.memory_space<vmem>>, vector<16x16x4xf32>
    %158 = vector.shape_cast %157 : vector<16x16x4xf32> to vector<256x4xf32>
    %c2_197 = arith.constant 2 : index
    %c0_198 = arith.constant 0 : index
    %c0_199 = arith.constant 0 : index
    %c0_200 = arith.constant 0 : index
    %159 = vector.load %arg10[%c2_197, %c0_198, %c0_199, %c0_200] : memref<5x5x4x32xf32, #tpu.memory_space<vmem>>, vector<1x1x4x32xf32>
    %160 = vector.shape_cast %159 : vector<1x1x4x32xf32> to vector<4x32xf32>
    %cst_201 = arith.constant dense<0.000000e+00> : vector<256x32xf32>
    %161 = tpu.matmul %158, %160, %cst_201 {dimension_numbers = #tpu.dot_dimension_numbers<[1], [0], [0], [1], [0, 0, 1, 1], [], []>} : vector<256x4xf32>, vector<4x32xf32>, vector<256x32xf32> -> vector<256x32xf32>
    %162 = arith.addf %156, %161 : vector<256x32xf32>
    %c2_202 = arith.constant 2 : index
    %c1_203 = arith.constant 1 : index
    %c0_204 = arith.constant 0 : index
    %163 = vector.load %arg16[%c2_202, %c1_203, %c0_204] : memref<20x24x4xf32, #tpu.memory_space<vmem>>, vector<16x16x4xf32>
    %164 = vector.shape_cast %163 : vector<16x16x4xf32> to vector<256x4xf32>
    %c2_205 = arith.constant 2 : index
    %c1_206 = arith.constant 1 : index
    %c0_207 = arith.constant 0 : index
    %c0_208 = arith.constant 0 : index
    %165 = vector.load %arg10[%c2_205, %c1_206, %c0_207, %c0_208] : memref<5x5x4x32xf32, #tpu.memory_space<vmem>>, vector<1x1x4x32xf32>
    %166 = vector.shape_cast %165 : vector<1x1x4x32xf32> to vector<4x32xf32>
    %cst_209 = arith.constant dense<0.000000e+00> : vector<256x32xf32>
    %167 = tpu.matmul %164, %166, %cst_209 {dimension_numbers = #tpu.dot_dimension_numbers<[1], [0], [0], [1], [0, 0, 1, 1], [], []>} : vector<256x4xf32>, vector<4x32xf32>, vector<256x32xf32> -> vector<256x32xf32>
    %168 = arith.addf %162, %167 : vector<256x32xf32>
    %c2_210 = arith.constant 2 : index
    %c2_211 = arith.constant 2 : index
    %c0_212 = arith.constant 0 : index
    %169 = vector.load %arg16[%c2_210, %c2_211, %c0_212] : memref<20x24x4xf32, #tpu.memory_space<vmem>>, vector<16x16x4xf32>
    %170 = vector.shape_cast %169 : vector<16x16x4xf32> to vector<256x4xf32>
    %c2_213 = arith.constant 2 : index
    %c2_214 = arith.constant 2 : index
    %c0_215 = arith.constant 0 : index
    %c0_216 = arith.constant 0 : index
    %171 = vector.load %arg10[%c2_213, %c2_214, %c0_215, %c0_216] : memref<5x5x4x32xf32, #tpu.memory_space<vmem>>, vector<1x1x4x32xf32>
    %172 = vector.shape_cast %171 : vector<1x1x4x32xf32> to vector<4x32xf32>
    %cst_217 = arith.constant dense<0.000000e+00> : vector<256x32xf32>
    %173 = tpu.matmul %170, %172, %cst_217 {dimension_numbers = #tpu.dot_dimension_numbers<[1], [0], [0], [1], [0, 0, 1, 1], [], []>} : vector<256x4xf32>, vector<4x32xf32>, vector<256x32xf32> -> vector<256x32xf32>
    %174 = arith.addf %168, %173 : vector<256x32xf32>
    %c2_218 = arith.constant 2 : index
    %c3_219 = arith.constant 3 : index
    %c0_220 = arith.constant 0 : index
    %175 = vector.load %arg16[%c2_218, %c3_219, %c0_220] : memref<20x24x4xf32, #tpu.memory_space<vmem>>, vector<16x16x4xf32>
    %176 = vector.shape_cast %175 : vector<16x16x4xf32> to vector<256x4xf32>
    %c2_221 = arith.constant 2 : index
    %c3_222 = arith.constant 3 : index
    %c0_223 = arith.constant 0 : index
    %c0_224 = arith.constant 0 : index
    %177 = vector.load %arg10[%c2_221, %c3_222, %c0_223, %c0_224] : memref<5x5x4x32xf32, #tpu.memory_space<vmem>>, vector<1x1x4x32xf32>
    %178 = vector.shape_cast %177 : vector<1x1x4x32xf32> to vector<4x32xf32>
    %cst_225 = arith.constant dense<0.000000e+00> : vector<256x32xf32>
    %179 = tpu.matmul %176, %178, %cst_225 {dimension_numbers = #tpu.dot_dimension_numbers<[1], [0], [0], [1], [0, 0, 1, 1], [], []>} : vector<256x4xf32>, vector<4x32xf32>, vector<256x32xf32> -> vector<256x32xf32>
    %180 = arith.addf %174, %179 : vector<256x32xf32>
    %c2_226 = arith.constant 2 : index
    %c4_227 = arith.constant 4 : index
    %c0_228 = arith.constant 0 : index
    %181 = vector.load %arg16[%c2_226, %c4_227, %c0_228] : memref<20x24x4xf32, #tpu.memory_space<vmem>>, vector<16x16x4xf32>
    %182 = vector.shape_cast %181 : vector<16x16x4xf32> to vector<256x4xf32>
    %c2_229 = arith.constant 2 : index
    %c4_230 = arith.constant 4 : index
    %c0_231 = arith.constant 0 : index
    %c0_232 = arith.constant 0 : index
    %183 = vector.load %arg10[%c2_229, %c4_230, %c0_231, %c0_232] : memref<5x5x4x32xf32, #tpu.memory_space<vmem>>, vector<1x1x4x32xf32>
    %184 = vector.shape_cast %183 : vector<1x1x4x32xf32> to vector<4x32xf32>
    %cst_233 = arith.constant dense<0.000000e+00> : vector<256x32xf32>
    %185 = tpu.matmul %182, %184, %cst_233 {dimension_numbers = #tpu.dot_dimension_numbers<[1], [0], [0], [1], [0, 0, 1, 1], [], []>} : vector<256x4xf32>, vector<4x32xf32>, vector<256x32xf32> -> vector<256x32xf32>
    %186 = arith.addf %180, %185 : vector<256x32xf32>
    %c3_234 = arith.constant 3 : index
    %c0_235 = arith.constant 0 : index
    %c0_236 = arith.constant 0 : index
    %187 = vector.load %arg16[%c3_234, %c0_235, %c0_236] : memref<20x24x4xf32, #tpu.memory_space<vmem>>, vector<16x16x4xf32>
    %188 = vector.shape_cast %187 : vector<16x16x4xf32> to vector<256x4xf32>
    %c3_237 = arith.constant 3 : index
    %c0_238 = arith.constant 0 : index
    %c0_239 = arith.constant 0 : index
    %c0_240 = arith.constant 0 : index
    %189 = vector.load %arg10[%c3_237, %c0_238, %c0_239, %c0_240] : memref<5x5x4x32xf32, #tpu.memory_space<vmem>>, vector<1x1x4x32xf32>
    %190 = vector.shape_cast %189 : vector<1x1x4x32xf32> to vector<4x32xf32>
    %cst_241 = arith.constant dense<0.000000e+00> : vector<256x32xf32>
    %191 = tpu.matmul %188, %190, %cst_241 {dimension_numbers = #tpu.dot_dimension_numbers<[1], [0], [0], [1], [0, 0, 1, 1], [], []>} : vector<256x4xf32>, vector<4x32xf32>, vector<256x32xf32> -> vector<256x32xf32>
    %192 = arith.addf %186, %191 : vector<256x32xf32>
    %c3_242 = arith.constant 3 : index
    %c1_243 = arith.constant 1 : index
    %c0_244 = arith.constant 0 : index
    %193 = vector.load %arg16[%c3_242, %c1_243, %c0_244] : memref<20x24x4xf32, #tpu.memory_space<vmem>>, vector<16x16x4xf32>
    %194 = vector.shape_cast %193 : vector<16x16x4xf32> to vector<256x4xf32>
    %c3_245 = arith.constant 3 : index
    %c1_246 = arith.constant 1 : index
    %c0_247 = arith.constant 0 : index
    %c0_248 = arith.constant 0 : index
    %195 = vector.load %arg10[%c3_245, %c1_246, %c0_247, %c0_248] : memref<5x5x4x32xf32, #tpu.memory_space<vmem>>, vector<1x1x4x32xf32>
    %196 = vector.shape_cast %195 : vector<1x1x4x32xf32> to vector<4x32xf32>
    %cst_249 = arith.constant dense<0.000000e+00> : vector<256x32xf32>
    %197 = tpu.matmul %194, %196, %cst_249 {dimension_numbers = #tpu.dot_dimension_numbers<[1], [0], [0], [1], [0, 0, 1, 1], [], []>} : vector<256x4xf32>, vector<4x32xf32>, vector<256x32xf32> -> vector<256x32xf32>
    %198 = arith.addf %192, %197 : vector<256x32xf32>
    %c3_250 = arith.constant 3 : index
    %c2_251 = arith.constant 2 : index
    %c0_252 = arith.constant 0 : index
    %199 = vector.load %arg16[%c3_250, %c2_251, %c0_252] : memref<20x24x4xf32, #tpu.memory_space<vmem>>, vector<16x16x4xf32>
    %200 = vector.shape_cast %199 : vector<16x16x4xf32> to vector<256x4xf32>
    %c3_253 = arith.constant 3 : index
    %c2_254 = arith.constant 2 : index
    %c0_255 = arith.constant 0 : index
    %c0_256 = arith.constant 0 : index
    %201 = vector.load %arg10[%c3_253, %c2_254, %c0_255, %c0_256] : memref<5x5x4x32xf32, #tpu.memory_space<vmem>>, vector<1x1x4x32xf32>
    %202 = vector.shape_cast %201 : vector<1x1x4x32xf32> to vector<4x32xf32>
    %cst_257 = arith.constant dense<0.000000e+00> : vector<256x32xf32>
    %203 = tpu.matmul %200, %202, %cst_257 {dimension_numbers = #tpu.dot_dimension_numbers<[1], [0], [0], [1], [0, 0, 1, 1], [], []>} : vector<256x4xf32>, vector<4x32xf32>, vector<256x32xf32> -> vector<256x32xf32>
    %204 = arith.addf %198, %203 : vector<256x32xf32>
    %c3_258 = arith.constant 3 : index
    %c3_259 = arith.constant 3 : index
    %c0_260 = arith.constant 0 : index
    %205 = vector.load %arg16[%c3_258, %c3_259, %c0_260] : memref<20x24x4xf32, #tpu.memory_space<vmem>>, vector<16x16x4xf32>
    %206 = vector.shape_cast %205 : vector<16x16x4xf32> to vector<256x4xf32>
    %c3_261 = arith.constant 3 : index
    %c3_262 = arith.constant 3 : index
    %c0_263 = arith.constant 0 : index
    %c0_264 = arith.constant 0 : index
    %207 = vector.load %arg10[%c3_261, %c3_262, %c0_263, %c0_264] : memref<5x5x4x32xf32, #tpu.memory_space<vmem>>, vector<1x1x4x32xf32>
    %208 = vector.shape_cast %207 : vector<1x1x4x32xf32> to vector<4x32xf32>
    %cst_265 = arith.constant dense<0.000000e+00> : vector<256x32xf32>
    %209 = tpu.matmul %206, %208, %cst_265 {dimension_numbers = #tpu.dot_dimension_numbers<[1], [0], [0], [1], [0, 0, 1, 1], [], []>} : vector<256x4xf32>, vector<4x32xf32>, vector<256x32xf32> -> vector<256x32xf32>
    %210 = arith.addf %204, %209 : vector<256x32xf32>
    %c3_266 = arith.constant 3 : index
    %c4_267 = arith.constant 4 : index
    %c0_268 = arith.constant 0 : index
    %211 = vector.load %arg16[%c3_266, %c4_267, %c0_268] : memref<20x24x4xf32, #tpu.memory_space<vmem>>, vector<16x16x4xf32>
    %212 = vector.shape_cast %211 : vector<16x16x4xf32> to vector<256x4xf32>
    %c3_269 = arith.constant 3 : index
    %c4_270 = arith.constant 4 : index
    %c0_271 = arith.constant 0 : index
    %c0_272 = arith.constant 0 : index
    %213 = vector.load %arg10[%c3_269, %c4_270, %c0_271, %c0_272] : memref<5x5x4x32xf32, #tpu.memory_space<vmem>>, vector<1x1x4x32xf32>
    %214 = vector.shape_cast %213 : vector<1x1x4x32xf32> to vector<4x32xf32>
    %cst_273 = arith.constant dense<0.000000e+00> : vector<256x32xf32>
    %215 = tpu.matmul %212, %214, %cst_273 {dimension_numbers = #tpu.dot_dimension_numbers<[1], [0], [0], [1], [0, 0, 1, 1], [], []>} : vector<256x4xf32>, vector<4x32xf32>, vector<256x32xf32> -> vector<256x32xf32>
    %216 = arith.addf %210, %215 : vector<256x32xf32>
    %c4_274 = arith.constant 4 : index
    %c0_275 = arith.constant 0 : index
    %c0_276 = arith.constant 0 : index
    %217 = vector.load %arg16[%c4_274, %c0_275, %c0_276] : memref<20x24x4xf32, #tpu.memory_space<vmem>>, vector<16x16x4xf32>
    %218 = vector.shape_cast %217 : vector<16x16x4xf32> to vector<256x4xf32>
    %c4_277 = arith.constant 4 : index
    %c0_278 = arith.constant 0 : index
    %c0_279 = arith.constant 0 : index
    %c0_280 = arith.constant 0 : index
    %219 = vector.load %arg10[%c4_277, %c0_278, %c0_279, %c0_280] : memref<5x5x4x32xf32, #tpu.memory_space<vmem>>, vector<1x1x4x32xf32>
    %220 = vector.shape_cast %219 : vector<1x1x4x32xf32> to vector<4x32xf32>
    %cst_281 = arith.constant dense<0.000000e+00> : vector<256x32xf32>
    %221 = tpu.matmul %218, %220, %cst_281 {dimension_numbers = #tpu.dot_dimension_numbers<[1], [0], [0], [1], [0, 0, 1, 1], [], []>} : vector<256x4xf32>, vector<4x32xf32>, vector<256x32xf32> -> vector<256x32xf32>
    %222 = arith.addf %216, %221 : vector<256x32xf32>
    %c4_282 = arith.constant 4 : index
    %c1_283 = arith.constant 1 : index
    %c0_284 = arith.constant 0 : index
    %223 = vector.load %arg16[%c4_282, %c1_283, %c0_284] : memref<20x24x4xf32, #tpu.memory_space<vmem>>, vector<16x16x4xf32>
    %224 = vector.shape_cast %223 : vector<16x16x4xf32> to vector<256x4xf32>
    %c4_285 = arith.constant 4 : index
    %c1_286 = arith.constant 1 : index
    %c0_287 = arith.constant 0 : index
    %c0_288 = arith.constant 0 : index
    %225 = vector.load %arg10[%c4_285, %c1_286, %c0_287, %c0_288] : memref<5x5x4x32xf32, #tpu.memory_space<vmem>>, vector<1x1x4x32xf32>
    %226 = vector.shape_cast %225 : vector<1x1x4x32xf32> to vector<4x32xf32>
    %cst_289 = arith.constant dense<0.000000e+00> : vector<256x32xf32>
    %227 = tpu.matmul %224, %226, %cst_289 {dimension_numbers = #tpu.dot_dimension_numbers<[1], [0], [0], [1], [0, 0, 1, 1], [], []>} : vector<256x4xf32>, vector<4x32xf32>, vector<256x32xf32> -> vector<256x32xf32>
    %228 = arith.addf %222, %227 : vector<256x32xf32>
    %c4_290 = arith.constant 4 : index
    %c2_291 = arith.constant 2 : index
    %c0_292 = arith.constant 0 : index
    %229 = vector.load %arg16[%c4_290, %c2_291, %c0_292] : memref<20x24x4xf32, #tpu.memory_space<vmem>>, vector<16x16x4xf32>
    %230 = vector.shape_cast %229 : vector<16x16x4xf32> to vector<256x4xf32>
    %c4_293 = arith.constant 4 : index
    %c2_294 = arith.constant 2 : index
    %c0_295 = arith.constant 0 : index
    %c0_296 = arith.constant 0 : index
    %231 = vector.load %arg10[%c4_293, %c2_294, %c0_295, %c0_296] : memref<5x5x4x32xf32, #tpu.memory_space<vmem>>, vector<1x1x4x32xf32>
    %232 = vector.shape_cast %231 : vector<1x1x4x32xf32> to vector<4x32xf32>
    %cst_297 = arith.constant dense<0.000000e+00> : vector<256x32xf32>
    %233 = tpu.matmul %230, %232, %cst_297 {dimension_numbers = #tpu.dot_dimension_numbers<[1], [0], [0], [1], [0, 0, 1, 1], [], []>} : vector<256x4xf32>, vector<4x32xf32>, vector<256x32xf32> -> vector<256x32xf32>
    %234 = arith.addf %228, %233 : vector<256x32xf32>
    %c4_298 = arith.constant 4 : index
    %c3_299 = arith.constant 3 : index
    %c0_300 = arith.constant 0 : index
    %235 = vector.load %arg16[%c4_298, %c3_299, %c0_300] : memref<20x24x4xf32, #tpu.memory_space<vmem>>, vector<16x16x4xf32>
    %236 = vector.shape_cast %235 : vector<16x16x4xf32> to vector<256x4xf32>
    %c4_301 = arith.constant 4 : index
    %c3_302 = arith.constant 3 : index
    %c0_303 = arith.constant 0 : index
    %c0_304 = arith.constant 0 : index
    %237 = vector.load %arg10[%c4_301, %c3_302, %c0_303, %c0_304] : memref<5x5x4x32xf32, #tpu.memory_space<vmem>>, vector<1x1x4x32xf32>
    %238 = vector.shape_cast %237 : vector<1x1x4x32xf32> to vector<4x32xf32>
    %cst_305 = arith.constant dense<0.000000e+00> : vector<256x32xf32>
    %239 = tpu.matmul %236, %238, %cst_305 {dimension_numbers = #tpu.dot_dimension_numbers<[1], [0], [0], [1], [0, 0, 1, 1], [], []>} : vector<256x4xf32>, vector<4x32xf32>, vector<256x32xf32> -> vector<256x32xf32>
    %240 = arith.addf %234, %239 : vector<256x32xf32>
    %c4_306 = arith.constant 4 : index
    %c4_307 = arith.constant 4 : index
    %c0_308 = arith.constant 0 : index
    %241 = vector.load %arg16[%c4_306, %c4_307, %c0_308] : memref<20x24x4xf32, #tpu.memory_space<vmem>>, vector<16x16x4xf32>
    %242 = vector.shape_cast %241 : vector<16x16x4xf32> to vector<256x4xf32>
    %c4_309 = arith.constant 4 : index
    %c4_310 = arith.constant 4 : index
    %c0_311 = arith.constant 0 : index
    %c0_312 = arith.constant 0 : index
    %243 = vector.load %arg10[%c4_309, %c4_310, %c0_311, %c0_312] : memref<5x5x4x32xf32, #tpu.memory_space<vmem>>, vector<1x1x4x32xf32>
    %244 = vector.shape_cast %243 : vector<1x1x4x32xf32> to vector<4x32xf32>
    %cst_313 = arith.constant dense<0.000000e+00> : vector<256x32xf32>
    %245 = tpu.matmul %242, %244, %cst_313 {dimension_numbers = #tpu.dot_dimension_numbers<[1], [0], [0], [1], [0, 0, 1, 1], [], []>} : vector<256x4xf32>, vector<4x32xf32>, vector<256x32xf32> -> vector<256x32xf32>
    %246 = arith.addf %240, %245 : vector<256x32xf32>
    %c0_314 = arith.constant 0 : index
    %c0_315 = arith.constant 0 : index
    %247 = vector.load %arg11[%c0_314, %c0_315] : memref<1x32xf32, #tpu.memory_space<vmem>>, vector<1x32xf32>
    %248 = vector.broadcast %247 : vector<1x32xf32> to vector<256x32xf32>
    %249 = arith.addf %246, %248 : vector<256x32xf32>
    %cst_316 = arith.constant 0.000000e+00 : f32
    %250 = vector.broadcast %cst_316 : f32 to vector<256x32xf32>
    %251 = arith.maximumf %249, %250 : vector<256x32xf32>
    %252 = arith.addf %95, %251 : vector<256x32xf32>
    %c2_317 = arith.constant 2 : index
    %c2_318 = arith.constant 2 : index
    %c0_319 = arith.constant 0 : index
    %253 = vector.load %arg17[%c2_317, %c2_318, %c0_319] : memref<20x24x4xf32, #tpu.memory_space<vmem>>, vector<16x16x4xf32>
    %c1_320 = arith.constant 1 : index
    %c1_321 = arith.constant 1 : index
    %c0_322 = arith.constant 0 : index
    %254 = vector.load %arg17[%c1_320, %c1_321, %c0_322] : memref<20x24x4xf32, #tpu.memory_space<vmem>>, vector<16x16x4xf32>
    %255 = arith.maximumf %253, %254 : vector<16x16x4xf32>
    %c1_323 = arith.constant 1 : index
    %c2_324 = arith.constant 2 : index
    %c0_325 = arith.constant 0 : index
    %256 = vector.load %arg17[%c1_323, %c2_324, %c0_325] : memref<20x24x4xf32, #tpu.memory_space<vmem>>, vector<16x16x4xf32>
    %257 = arith.maximumf %255, %256 : vector<16x16x4xf32>
    %c1_326 = arith.constant 1 : index
    %c3_327 = arith.constant 3 : index
    %c0_328 = arith.constant 0 : index
    %258 = vector.load %arg17[%c1_326, %c3_327, %c0_328] : memref<20x24x4xf32, #tpu.memory_space<vmem>>, vector<16x16x4xf32>
    %259 = arith.maximumf %257, %258 : vector<16x16x4xf32>
    %c2_329 = arith.constant 2 : index
    %c1_330 = arith.constant 1 : index
    %c0_331 = arith.constant 0 : index
    %260 = vector.load %arg17[%c2_329, %c1_330, %c0_331] : memref<20x24x4xf32, #tpu.memory_space<vmem>>, vector<16x16x4xf32>
    %261 = arith.maximumf %259, %260 : vector<16x16x4xf32>
    %c2_332 = arith.constant 2 : index
    %c3_333 = arith.constant 3 : index
    %c0_334 = arith.constant 0 : index
    %262 = vector.load %arg17[%c2_332, %c3_333, %c0_334] : memref<20x24x4xf32, #tpu.memory_space<vmem>>, vector<16x16x4xf32>
    %263 = arith.maximumf %261, %262 : vector<16x16x4xf32>
    %c3_335 = arith.constant 3 : index
    %c1_336 = arith.constant 1 : index
    %c0_337 = arith.constant 0 : index
    %264 = vector.load %arg17[%c3_335, %c1_336, %c0_337] : memref<20x24x4xf32, #tpu.memory_space<vmem>>, vector<16x16x4xf32>
    %265 = arith.maximumf %263, %264 : vector<16x16x4xf32>
    %c3_338 = arith.constant 3 : index
    %c2_339 = arith.constant 2 : index
    %c0_340 = arith.constant 0 : index
    %266 = vector.load %arg17[%c3_338, %c2_339, %c0_340] : memref<20x24x4xf32, #tpu.memory_space<vmem>>, vector<16x16x4xf32>
    %267 = arith.maximumf %265, %266 : vector<16x16x4xf32>
    %c3_341 = arith.constant 3 : index
    %c3_342 = arith.constant 3 : index
    %c0_343 = arith.constant 0 : index
    %268 = vector.load %arg17[%c3_341, %c3_342, %c0_343] : memref<20x24x4xf32, #tpu.memory_space<vmem>>, vector<16x16x4xf32>
    %269 = arith.maximumf %267, %268 : vector<16x16x4xf32>
    %270 = vector.shape_cast %269 : vector<16x16x4xf32> to vector<256x4xf32>
    %c0_344 = arith.constant 0 : index
    %c0_345 = arith.constant 0 : index
    %271 = vector.load %arg12[%c0_344, %c0_345] : memref<4x32xf32, #tpu.memory_space<vmem>>, vector<4x32xf32>
    %cst_346 = arith.constant dense<0.000000e+00> : vector<256x32xf32>
    %272 = tpu.matmul %270, %271, %cst_346 {dimension_numbers = #tpu.dot_dimension_numbers<[1], [0], [0], [1], [0, 0, 1, 1], [], []>} : vector<256x4xf32>, vector<4x32xf32>, vector<256x32xf32> -> vector<256x32xf32>
    %c0_347 = arith.constant 0 : index
    %c0_348 = arith.constant 0 : index
    %273 = vector.load %arg13[%c0_347, %c0_348] : memref<1x32xf32, #tpu.memory_space<vmem>>, vector<1x32xf32>
    %274 = vector.broadcast %273 : vector<1x32xf32> to vector<256x32xf32>
    %275 = arith.addf %272, %274 : vector<256x32xf32>
    %cst_349 = arith.constant 0.000000e+00 : f32
    %276 = vector.broadcast %cst_349 : f32 to vector<256x32xf32>
    %277 = arith.maximumf %275, %276 : vector<256x32xf32>
    %278 = arith.addf %252, %277 : vector<256x32xf32>
    %279 = vector.shape_cast %278 : vector<256x32xf32> to vector<16x16x32xf32>
    %c0_350 = arith.constant 0 : index
    %c0_351 = arith.constant 0 : index
    %c0_352 = arith.constant 0 : index
    %c0_353 = arith.constant 0 : index
    %280 = vector.load %arg14[%c0_350, %c0_351, %c0_352, %c0_353] : memref<1x16x16x32xf32, #tpu.memory_space<vmem>>, vector<1x16x16x32xf32>
    %281 = vector.shape_cast %280 : vector<1x16x16x32xf32> to vector<16x16x32xf32>
    %282 = vector.shape_cast %279 : vector<16x16x32xf32> to vector<1x16x16x32xf32>
    tpu.vector_store %arg14[%c0_350, %c0_351, %c0_352, %c0_353], %282 {strides = array<i32>} : memref<1x16x16x32xf32, #tpu.memory_space<vmem>>, vector<1x16x16x32xf32>,
    return
  }
  func.func @transform_0(%arg0: i32) -> (i32, i32, i32, i32) {
    %c0_i32 = arith.constant 0 : i32
    %c0_i32_0 = arith.constant 0 : i32
    %c0_i32_1 = arith.constant 0 : i32
    %c0_i32_2 = arith.constant 0 : i32
    return %arg0, %c0_i32, %c0_i32_0, %c0_i32_1 : i32, i32, i32, i32
  }
  func.func @transform_1(%arg0: i32) -> (i32, i32) {
    %c0_i32 = arith.constant 0 : i32
    %c0_i32_0 = arith.constant 0 : i32
    %c0_i32_1 = arith.constant 0 : i32
    return %c0_i32, %c0_i32_0 : i32, i32
  }
  func.func @transform_2(%arg0: i32) -> (i32, i32) {
    %c0_i32 = arith.constant 0 : i32
    %c0_i32_0 = arith.constant 0 : i32
    %c0_i32_1 = arith.constant 0 : i32
    return %c0_i32, %c0_i32_0 : i32, i32
  }
  func.func @transform_3(%arg0: i32) -> (i32, i32) {
    %c0_i32 = arith.constant 0 : i32
    %c0_i32_0 = arith.constant 0 : i32
    %c0_i32_1 = arith.constant 0 : i32
    return %c0_i32, %c0_i32_0 : i32, i32
  }
  func.func @transform_4(%arg0: i32) -> (i32, i32) {
    %c0_i32 = arith.constant 0 : i32
    %c0_i32_0 = arith.constant 0 : i32
    %c0_i32_1 = arith.constant 0 : i32
    return %c0_i32, %c0_i32_0 : i32, i32
  }
  func.func @transform_5(%arg0: i32) -> (i32, i32, i32, i32) {
    %c0_i32 = arith.constant 0 : i32
    %c0_i32_0 = arith.constant 0 : i32
    %c0_i32_1 = arith.constant 0 : i32
    %c0_i32_2 = arith.constant 0 : i32
    %c0_i32_3 = arith.constant 0 : i32
    return %c0_i32, %c0_i32_0, %c0_i32_1, %c0_i32_2 : i32, i32, i32, i32
  }
  func.func @transform_6(%arg0: i32) -> (i32, i32) {
    %c0_i32 = arith.constant 0 : i32
    %c0_i32_0 = arith.constant 0 : i32
    %c0_i32_1 = arith.constant 0 : i32
    return %c0_i32, %c0_i32_0 : i32, i32
  }
  func.func @transform_7(%arg0: i32) -> (i32, i32) {
    %c0_i32 = arith.constant 0 : i32
    %c0_i32_0 = arith.constant 0 : i32
    %c0_i32_1 = arith.constant 0 : i32
    return %c0_i32, %c0_i32_0 : i32, i32
  }
  func.func @transform_8(%arg0: i32) -> (i32, i32) {
    %c0_i32 = arith.constant 0 : i32
    %c0_i32_0 = arith.constant 0 : i32
    %c0_i32_1 = arith.constant 0 : i32
    return %c0_i32, %c0_i32_0 : i32, i32
  }
  func.func @transform_9(%arg0: i32) -> (i32, i32, i32, i32) {
    %c0_i32 = arith.constant 0 : i32
    %c0_i32_0 = arith.constant 0 : i32
    %c0_i32_1 = arith.constant 0 : i32
    %c0_i32_2 = arith.constant 0 : i32
    %c0_i32_3 = arith.constant 0 : i32
    return %c0_i32, %c0_i32_0, %c0_i32_1, %c0_i32_2 : i32, i32, i32, i32
  }
  func.func @transform_10(%arg0: i32) -> (i32, i32) {
    %c0_i32 = arith.constant 0 : i32
    %c0_i32_0 = arith.constant 0 : i32
    %c0_i32_1 = arith.constant 0 : i32
    return %c0_i32, %c0_i32_0 : i32, i32
  }
  func.func @transform_11(%arg0: i32) -> (i32, i32) {
    %c0_i32 = arith.constant 0 : i32
    %c0_i32_0 = arith.constant 0 : i32
    %c0_i32_1 = arith.constant 0 : i32
    return %c0_i32, %c0_i32_0 : i32, i32
  }
  func.func @transform_12(%arg0: i32) -> (i32, i32) {
    %c0_i32 = arith.constant 0 : i32
    %c0_i32_0 = arith.constant 0 : i32
    %c0_i32_1 = arith.constant 0 : i32
    return %c0_i32, %c0_i32_0 : i32, i32
  }
  func.func @transform_13(%arg0: i32) -> (i32, i32, i32, i32) {
    %c0_i32 = arith.constant 0 : i32
    %c0_i32_0 = arith.constant 0 : i32
    %c0_i32_1 = arith.constant 0 : i32
    %c0_i32_2 = arith.constant 0 : i32
    return %arg0, %c0_i32, %c0_i32_0, %c0_i32_1 : i32, i32, i32, i32
  }
}

</mosaic_0001>

<bundles_post_ra>
// kernel: inception_forward.1
= control target key start
LH: loop header
LB: loop body
LE: loop exit
PB: predicated region body
PF: predicated region fallthrough
CT: control target
= control target key end

     0   :  { %s19185_s0 = inlined_call_operand.vmem [shape: f32[2,20,24,4], index: 0, kind: input, shape index: {}]   ;;  %s19186_s1 = inlined_call_operand.vmem [shape: f32[4,32], index: 1, kind: input, shape index: {}]   ;;  %s19187_s2 = inlined_call_operand.vmem [shape: f32[1,32], index: 2, kind: input, shape index: {}]   ;;  %s19188_s3 = inlined_call_operand.vmem [shape: f32[4,4], index: 3, kind: input, shape index: {}]   ;;  %s19189_s4 = inlined_call_operand.vmem [shape: f32[1,4], index: 4, kind: input, shape index: {}]   ;;  %s19190_s5 = inlined_call_operand.vmem [shape: f32[3,3,4,32], index: 5, kind: input, shape index: {}]   ;;  %s19191_s6 = inlined_call_operand.vmem [shape: f32[1,32], index: 6, kind: input, shape index: {}]   ;;  %s19192_s7 = inlined_call_operand.vmem [shape: f32[4,4], index: 7, kind: input, shape index: {}]   ;;  %s19193_s8 = inlined_call_operand.vmem [shape: f32[1,4], index: 8, kind: input, shape index: {}]   ;;  %s19194_s9 = inlined_call_operand.vmem [shape: f32[5,5,4,32], index: 9, kind: input, shape index: {}]   ;;  %s19195_s10 = inlined_call_operand.vmem [shape: f32[1,32], index: 10, kind: input, shape index: {}]   ;;  %s19196_s11 = inlined_call_operand.vmem [shape: f32[4,32], index: 11, kind: input, shape index: {}]   ;;  %s19197_s12 = inlined_call_operand.vmem [shape: f32[1,32], index: 12, kind: input, shape index: {}]   ;;  %s19198_s13 = inlined_call_operand.hbm [shape: f32[2,16,16,32], index: 13, kind: output, shape index: {}]  }
   0x1   :  { %19437 = sst [smem:[#allocation120_spill]] %s19185_s0 }
   0x2   :  { %19438 = sst [smem:[#allocation121_spill]] %s19186_s1 }
   0x3   :  { %19439 = sst [smem:[#allocation122_spill]] %s19187_s2 }
   0x4   :  { %18 = vsyncpa [#allocation6], 0 }
   0x5   :  { %20 = vsyncpa [#allocation6 + $0x1], 0  ;;  %s13326_s25 = smov 0   ;;  %s13328_s26 = smov 0  }
   0x6   :  { %s13330_s27 = smov 0   ;;  %s13332_s28 = smov 0  }
   0x7 LB: > { %s13347_s29 = sadd.s32 4294967295, %s13250_s28   ;;  %s11773_s30 = sadd.s32 4294967294, %s13250_s28   ;;  %s13250_s28 = sphi %s13332_s28, %s20312_s28   ;;  %s13246_s27 = sphi %s13330_s27, %s20311_s27   ;;  %s13242_s26 = sphi %s13328_s26, %s20310_s26   ;;  %s13238_s25 = sphi %s13326_s25, %s20309_s25  }
   0x8   : > { %s13351_s14 = sadd.s32 1, %s13250_s28   ;;  %s311_s15 = sadd.s32 1, %s13246_s27 }
   0x9   : > { %s308_s16 = ssub.s32 %s13250_s28, %s13351_s14  ;;  %p321_p0 = scmp.ne.s32.totalorder %s13246_s27, %s13242_s26 }
   0xa   : > { %p309_p1 = scmp.eq.s32.totalorder %s308_s16, 0  ;;  %p322_p2 = scmp.eq.s32.totalorder %s13347_s29, 1 }
   0xb   : > { %p327_p3 = scmp.ne.s32.totalorder %s13242_s26, %s13238_s25  ;;  %p328_p4 = scmp.eq.s32.totalorder %s11773_s30, 1 }
   0xc   : > { %s13362_s17 = scalar_select %p309_p1, %s13246_s27, %s311_s15  }
   0xd   : > { %p13364_p5 = por %p322_p2, %p321_p0  ;;  %p13368_p6 = por %p328_p4, %p327_p3 }
   0xe   : > { %p11776_p7 = scmp.ge.s32.totalorder %s13250_s28, 1  ;;  %p390_p8 = scmp.lt.s32.totalorder %s13250_s28, 3 }
  0x10   : > { %p391_p9 = pnand %p11776_p7, %p390_p8 }
  0x12   : > { %394 = sbr.rel (%p391_p9) target bundleno = 2666 (0xa6a), region = 72 }
  0x17   : > { %v533_v0 = vld [vmem:[%s19188_s3] sm:$0xf]  ;;  %vm634_vm0 = vcmask 1043456   ;;  %p434_p10 = scmp.lt.s32.totalorder %s13347_s29, 1  ;;  %vm472_vm1 = vcmask 31744   ;;  %v13252_v2 = vmov -inf  }
  0x18   : > { %v876_v1 = vld [vmem:[%s19192_s7] sm:$0xf]  ;;  %11811 = vmatpush.msk.msra.mxu0 %vm634_vm0, %v533_v0  ;;  %13103 = vmatpush.msk.msra.mxu2 %vm634_vm0, %v533_v0  ;;  %1068 = vst.msk [vmem:[#allocation4 + $0x30] sm:$0xff] %vm472_vm1, %v13252_v2  ;;  %s19442_s0 = sld [smem:[#allocation120_spill]]  ;;  %v11910_v12 = vld [vmem:[%s19190_s5 + $0x4] sm:$0xf] }
  0x19   : > { %13104 = vmatpush.msk.msra.mxu3 %vm634_vm0, %v876_v1  ;;  %s435_s24 = scalar_select %p434_p10, %s13347_s29, 1  ;;  %11844 = vmatpush.msk.msra.mxu1 %vm634_vm0, %v876_v1  ;;  %1069 = vst.msk [vmem:[#allocation4 + $0x38] sm:$0xff] %vm472_vm1, %v13252_v2  ;;  %v1341_v13 = vld [vmem:[%s19190_s5] sm:$0xf]  ;;  %v11977_v14 = vld [vmem:[%s19190_s5 + $0x8] sm:$0xf] }
  0x1a   : > { %1065 = vst.msk [vmem:[#allocation4 + $0x18] sm:$0xff] %vm472_vm1, %v13252_v2  ;;  %s19443_s1 = sld [smem:[#allocation121_spill]]  ;;  %11944 = vmatpush.msk.msrb.mxu0 %vm634_vm0, %v1341_v13  ;;  %v13253_v39 = vmov 0.0   ;;  %v13852_v40 = vld [vmem:[%s19189_s4] ss:$0 sm:$0xff]  ;;  %vm11662_vm2 = vcmask 261120  }
  0x1b   : > { %s13105_s30 = smul.u32 480, %s435_s24  ;;  %1066 = vst.msk [vmem:[#allocation4 + $0x20] sm:$0xff] %vm472_vm1, %v13252_v2  ;;  %11911 = vmatpush.msk.msrb.mxu3 %vm634_vm0, %v11910_v12  ;;  %11978 = vmatpush.msk.msrb.mxu1 %vm634_vm0, %v11977_v14  ;;  %v12011_v51 = vld [vmem:[%s19190_s5 + $0xc] sm:$0xf]  ;;  %v12045_v52 = vld [vmem:[%s19190_s5 + $0x10] sm:$0xf] }
  0x1c   : > { %1067 = vst.msk [vmem:[#allocation4 + $0x28] sm:$0xff] %vm472_vm1, %v13252_v2  ;;  %v12079_v57 = vld [vmem:[%s19190_s5 + $0x14] sm:$0xf]  ;;  %v12113_v61 = vld [vmem:[%s19190_s5 + $0x18] sm:$0xf]  ;;  %s19609_s2 = sld [smem:[#allocation122_spill]] }
  0x1d   : > { %1070 = vst.msk [vmem:[#allocation4 + $0x40] sm:$0xff] %vm472_vm1, %v13252_v2  ;;  %s13102_s21 = sshll.u32 %s13347_s29, 8 }
  0x1e   : > { %s13393_s20 = scalar_lea.vmem %s19442_s0, %s13105_s30  ;;  %1071 = vst.msk [vmem:[#allocation4 + $0x48] sm:$0xff] %vm472_vm1, %v13252_v2  ;;  %s11707_s30 = scalar_lea.hbm %s19198_s13, %s13102_s21 }
  0x1f   : > { %v13396_v3 = vld [vmem:[%s13393_s20 + $0x32] sm:$0xff]  ;;  %1072 = vst.msk [vmem:[#allocation4 + $0x50] sm:$0xff] %vm472_vm1, %v13252_v2  ;;  %v13424_v5 = vld [vmem:[%s13393_s20 + $0x3a] sm:$0xff]  ;;  %v13454_v7 = vld [vmem:[%s13393_s20 + $0x4a] sm:$0xff]  ;;  %s11710_s29 = sshll.u32 %s11707_s30, 4  ;;  %s13208_s30 = scalar_lea.hbm %s19198_s13, 512  ;;  %s11711_s29 = int_to_ptr.hbm [resolvable:$true] %s11710_s29 }
  0x20   : > { %v13401_v4 = vld [vmem:[%s13393_s20 + $0xf2] sm:$0xff]  ;;  %11812 = vmatmul.msk.f32.vlgmr.msra.gmra.mxu0 %vm472_vm1, %v13396_v3  ;;  %1123 = vst.msk [vmem:[#allocation4 + $0x32] sm:$0xff] %vm472_vm1, %v13396_v3  ;;  %11845 = vmatmul.msk.f32.vlgmr.msra.gmra.mxu1 %vm472_vm1, %v13396_v3  ;;  %v13427_v6 = vld [vmem:[%s13393_s20 + $0xfa] sm:$0xff]  ;;  %v13457_v8 = vld [vmem:[%s13393_s20 + $0x10a] sm:$0xff] }
  0x21   : > { %11828 = vmatmul.msk.f32.vlgmr.msra.gmra.mxu2 %vm472_vm1, %v13401_v4  ;;  %11861 = vmatmul.msk.f32.vlgmr.msra.gmra.mxu3 %vm472_vm1, %v13401_v4  ;;  %1073 = vst.msk [vmem:[#allocation4 + $0x58] sm:$0xff] %vm472_vm1, %v13252_v2  ;;  %v13486_v9 = vld [vmem:[%s13393_s20 + $0x52] sm:$0xff]  ;;  %v1155_v11 = vld [vmem:[%s19443_s1] sm:$0xf]  ;;  %v13562_v17 = vld [vmem:[%s13393_s20 + $0x6a] sm:$0xff] }
  0x22   : > { %1074 = vst.msk [vmem:[#allocation4 + $0x60] sm:$0xff] %vm472_vm1, %v13252_v2  ;;  %v13489_v10 = vld [vmem:[%s13393_s20 + $0x112] sm:$0xff]  ;;  %11877 = vmatpush.msk.msrb.mxu2 %vm634_vm0, %v1155_v11  ;;  %v13532_v15 = vld [vmem:[%s13393_s20 + $0x62] sm:$0xff]  ;;  %v13565_v18 = vld [vmem:[%s13393_s20 + $0x12a] sm:$0xff]  ;;  %12046 = vmatpush.msk.msra.mxu3 %vm634_vm0, %v12045_v52 }
  0x23   : > { %1075 = vst.msk [vmem:[#allocation4 + $0x68] sm:$0xff] %vm472_vm1, %v13252_v2  ;;  %v13535_v16 = vld [vmem:[%s13393_s20 + $0x122] sm:$0xff]  ;;  %v13592_v19 = vld [vmem:[%s13393_s20 + $0x7a] sm:$0xff]  ;;  %v13646_v23 = vld [vmem:[%s13393_s20 + $0x92] sm:$0xff]  ;;  %12080 = vmatpush.msk.msra.mxu0 %vm634_vm0, %v12079_v57  ;;  %12114 = vmatpush.msk.msra.mxu1 %vm634_vm0, %v12113_v61 }
  0x24   : > { %1076 = vst.msk [vmem:[#allocation4 + $0x70] sm:$0xff] %vm472_vm1, %v13252_v2  ;;  %v13595_v20 = vld [vmem:[%s13393_s20 + $0x13a] sm:$0xff]  ;;  %v13616_v21 = vld [vmem:[%s13393_s20 + $0x82] sm:$0xff]  ;;  %v13649_v24 = vld [vmem:[%s13393_s20 + $0x152] sm:$0xff]  ;;  %12012 = vmatpush.msk.msra.mxu2 %vm634_vm0, %v12011_v51 }
  0x25   : > { %1077 = vst.msk [vmem:[#allocation4 + $0x78] sm:$0xff] %vm472_vm1, %v13252_v2  ;;  %v13619_v22 = vld [vmem:[%s13393_s20 + $0x142] sm:$0xff]  ;;  %v13676_v25 = vld [vmem:[%s13393_s20 + $0x9a] sm:$0xff]  ;;  %v13692_v27 = vld [vmem:[%s13393_s20 + $0xaa] sm:$0xff] }
  0x26   : > { %1078 = vst.msk [vmem:[#allocation4 + $0x80] sm:$0xff] %vm472_vm1, %v13252_v2  ;;  %v13679_v26 = vld [vmem:[%s13393_s20 + $0x15a] sm:$0xff]  ;;  %v13697_v28 = vld [vmem:[%s13393_s20 + $0x16a] sm:$0xff]  ;;  %v13706_v29 = vld [vmem:[%s13393_s20 + $0xb2] sm:$0xff] }
  0x27   : > { %1079 = vst.msk [vmem:[#allocation4 + $0x88] sm:$0xff] %vm472_vm1, %v13252_v2  ;;  %v13711_v30 = vld [vmem:[%s13393_s20 + $0x172] sm:$0xff]  ;;  %v13716_v31 = vld [vmem:[%s13393_s20 + $0xc2] sm:$0xff]  ;;  %v13726_v33 = vld [vmem:[%s13393_s20 + $0xca] sm:$0xff] }
  0x28   : > { %11813 = vmatmul.msk.f32.gmra.mxu0 %vm472_vm1, %v13424_v5  ;;  %11846 = vmatmul.msk.f32.gmra.mxu1 %vm472_vm1, %v13424_v5  ;;  %1080 = vst.msk [vmem:[#allocation4 + $0x90] sm:$0xff] %vm472_vm1, %v13252_v2  ;;  %v13721_v32 = vld [vmem:[%s13393_s20 + $0x182] sm:$0xff]  ;;  %v13731_v34 = vld [vmem:[%s13393_s20 + $0x18a] sm:$0xff]  ;;  %v13740_v35 = vld [vmem:[%s13393_s20 + $0xda] sm:$0xff] }
  0x29   : > { %11829 = vmatmul.msk.f32.gmra.mxu2 %vm472_vm1, %v13427_v6  ;;  %11862 = vmatmul.msk.f32.gmra.mxu3 %vm472_vm1, %v13427_v6  ;;  %1081 = vst.msk [vmem:[#allocation4 + $0x98] sm:$0xff] %vm472_vm1, %v13252_v2  ;;  %v13745_v36 = vld [vmem:[%s13393_s20 + $0x19a] sm:$0xff]  ;;  %v13754_v37 = vld [vmem:[%s13393_s20 + $0xe2] sm:$0xff] }
  0x2a   : > { %1082 = vst.msk [vmem:[#allocation4 + $0xa0] sm:$0xff] %vm472_vm1, %v13252_v2  ;;  %v13763_v38 = vld [vmem:[%s13393_s20 + $0x1a2] sm:$0xff]  ;;  %v14077_v11 = vld [vmem:[%s19193_s8] ss:$0 sm:$0xff]  ;;  %s431_s20 = sand.u32 1, %s13242_s26  }
  0x2b   : > { %1083 = vst.msk [vmem:[#allocation4 + $0xa8] sm:$0xff] %vm472_vm1, %v13252_v2  ;;  %s11777_s22 = sshll.u32 %s431_s20, 8  ;;  %s11696_s16 = scalar_lea.sflag [#allocation6], %s431_s20 }
  0x2c   : > { %1084 = vst.msk [vmem:[#allocation4 + $0xb0] sm:$0xff] %vm472_vm1, %v13252_v2  ;;  %s18685_s23 = scalar_lea.vmem [#allocation5], %s11777_s22  ;;  %s13202_s22 = sshra.s32 %s11711_s29, 4  ;;  %s13203_s22 = int_to_ptr.hbm [resolvable:$true] %s13202_s22 }
  0x2d   : > { %1085 = vst.msk [vmem:[#allocation4 + $0xb8] sm:$0xff] %vm472_vm1, %v13252_v2  ;;  %s11708_s15 = sshll.u32 %s18685_s23, 4  ;;  %s13204_s21 = scalar_lea.hbm %s13203_s22, 256  ;;  %s11709_s15 = int_to_ptr.vmem [resolvable:$true] %s11708_s15 }
  0x2e   : > { %1086 = vst.msk [vmem:[#allocation4 + $0xc0] sm:$0xff] %vm472_vm1, %v13252_v2  ;;  %p13205_p11 = scmp.ne.s32.totalorder %s13203_s22, %s13204_s21  ;;  %p13209_p0 = scmp.lt.s32.totalorder %s13203_s22, %s19198_s13 }
  0x2f   : > { %1087 = vst.msk [vmem:[#allocation4 + $0xc8] sm:$0xff] %vm472_vm1, %v13252_v2  ;;  %p13210_p1 = scmp.lt.s32.totalorder %s13208_s30, %s13204_s21 }
  0x30   : > { %11814 = vmatmul.msk.f32.gmra.mxu0 %vm472_vm1, %v13454_v7  ;;  %11847 = vmatmul.msk.f32.gmra.mxu1 %vm472_vm1, %v13454_v7  ;;  %1088 = vst.msk [vmem:[#allocation4 + $0xd0] sm:$0xff] %vm472_vm1, %v13252_v2  ;;  %p13206_p12 = pnand %p13205_p11, %p13364_p5 }
  0x31   : > { %11830 = vmatmul.msk.f32.gmra.mxu2 %vm472_vm1, %v13457_v8  ;;  %11863 = vmatmul.msk.f32.gmra.mxu3 %vm472_vm1, %v13457_v8  ;;  %1089 = vst.msk [vmem:[#allocation4 + $0xd8] sm:$0xff] %vm472_vm1, %v13252_v2  ;;  %p13211_p2 = por %p13210_p1, %p13209_p0 }
  0x32   : > { %1090 = vst.msk [vmem:[#allocation4 + $0xe0] sm:$0xff] %vm472_vm1, %v13252_v2  ;;  %p13207_p13 = pneg %p13206_p12 }
  0x33   : > { %1091 = vst.msk [vmem:[#allocation4 + $0xe8] sm:$0xff] %vm472_vm1, %v13252_v2 }
  0x34   : > { %1092 = vst.msk [vmem:[#allocation4 + $0xf0] sm:$0xff] %vm472_vm1, %v13252_v2  ;;  %p13212_p3 = pnand %p13211_p2, %p13207_p13 }
  0x35   : > { %1093 = vst.msk [vmem:[#allocation4 + $0xf8] sm:$0xff] %vm472_vm1, %v13252_v2 }
  0x36   : > { %1094 = vst.msk [vmem:[#allocation4 + $0x100] sm:$0xff] %vm472_vm1, %v13252_v2 }
  0x37   : > { %1095 = vst.msk [vmem:[#allocation4 + $0x108] sm:$0xff] %vm472_vm1, %v13252_v2 }
  0x38   : > { %11815 = vmatmul.msk.f32.gmra.mxu0 %vm472_vm1, %v13486_v9  ;;  %11848 = vmatmul.msk.f32.gmra.mxu1 %vm472_vm1, %v13486_v9  ;;  %1096 = vst.msk [vmem:[#allocation4 + $0x110] sm:$0xff] %vm472_vm1, %v13252_v2 }
  0x39   : > { %11831 = vmatmul.msk.f32.gmra.mxu2 %vm472_vm1, %v13489_v10  ;;  %11864 = vmatmul.msk.f32.gmra.mxu3 %vm472_vm1, %v13489_v10  ;;  %1097 = vst.msk [vmem:[#allocation4 + $0x118] sm:$0xff] %vm472_vm1, %v13252_v2 }
  0x3a   : > { %1098 = vst.msk [vmem:[#allocation4 + $0x120] sm:$0xff] %vm472_vm1, %v13252_v2 }
  0x3b   : > { %1099 = vst.msk [vmem:[#allocation4 + $0x128] sm:$0xff] %vm472_vm1, %v13252_v2 }
  0x3c   : > { %1100 = vst.msk [vmem:[#allocation4 + $0x130] sm:$0xff] %vm472_vm1, %v13252_v2 }
  0x3d   : > { %1101 = vst.msk [vmem:[#allocation4 + $0x138] sm:$0xff] %vm472_vm1, %v13252_v2 }
  0x3e   : > { %1102 = vst.msk [vmem:[#allocation4 + $0x140] sm:$0xff] %vm472_vm1, %v13252_v2 }
  0x3f   : > { %1103 = vst.msk [vmem:[#allocation4 + $0x148] sm:$0xff] %vm472_vm1, %v13252_v2 }
  0x40   : > { %11816 = vmatmul.msk.f32.gmra.mxu0 %vm472_vm1, %v13532_v15  ;;  %11849 = vmatmul.msk.f32.gmra.mxu1 %vm472_vm1, %v13532_v15  ;;  %1104 = vst.msk [vmem:[#allocation4 + $0x150] sm:$0xff] %vm472_vm1, %v13252_v2 }
  0x41   : > { %11832 = vmatmul.msk.f32.gmra.mxu2 %vm472_vm1, %v13535_v16  ;;  %11865 = vmatmul.msk.f32.gmra.mxu3 %vm472_vm1, %v13535_v16  ;;  %1105 = vst.msk [vmem:[#allocation4 + $0x158] sm:$0xff] %vm472_vm1, %v13252_v2 }
  0x42   : > { %1106 = vst.msk [vmem:[#allocation4 + $0x160] sm:$0xff] %vm472_vm1, %v13252_v2 }
  0x43   : > { %1107 = vst.msk [vmem:[#allocation4 + $0x168] sm:$0xff] %vm472_vm1, %v13252_v2 }
  0x44   : > { %1108 = vst.msk [vmem:[#allocation4 + $0x170] sm:$0xff] %vm472_vm1, %v13252_v2 }
  0x45   : > { %1109 = vst.msk [vmem:[#allocation4 + $0x178] sm:$0xff] %vm472_vm1, %v13252_v2 }
  0x46   : > { %1110 = vst.msk [vmem:[#allocation4 + $0x180] sm:$0xff] %vm472_vm1, %v13252_v2 }
  0x47   : > { %1111 = vst.msk [vmem:[#allocation4 + $0x188] sm:$0xff] %vm472_vm1, %v13252_v2 }
  0x48   : > { %11817 = vmatmul.msk.f32.gmra.mxu0 %vm472_vm1, %v13562_v17  ;;  %11850 = vmatmul.msk.f32.gmra.mxu1 %vm472_vm1, %v13562_v17  ;;  %1112 = vst.msk [vmem:[#allocation4 + $0x190] sm:$0xff] %vm472_vm1, %v13252_v2 }
  0x49   : > { %11833 = vmatmul.msk.f32.gmra.mxu2 %vm472_vm1, %v13565_v18  ;;  %11866 = vmatmul.msk.f32.gmra.mxu3 %vm472_vm1, %v13565_v18  ;;  %1113 = vst.msk [vmem:[#allocation4 + $0x198] sm:$0xff] %vm472_vm1, %v13252_v2 }
  0x4a   : > { %1114 = vst.msk [vmem:[#allocation4 + $0x1a0] sm:$0xff] %vm472_vm1, %v13252_v2 }
  0x4b   : > { %1115 = vst.msk [vmem:[#allocation4 + $0x1a8] sm:$0xff] %vm472_vm1, %v13252_v2 }
  0x4c   : > { %1116 = vst.msk [vmem:[#allocation4 + $0x1b0] sm:$0xff] %vm472_vm1, %v13252_v2 }
  0x4d   : > { %1117 = vst.msk [vmem:[#allocation4 + $0x1b8] sm:$0xff] %vm472_vm1, %v13252_v2 }
  0x4e   : > { %1118 = vst.msk [vmem:[#allocation4 + $0x1c0] sm:$0xff] %vm472_vm1, %v13252_v2 }
  0x4f   : > { %1139 = vst.msk [vmem:[#allocation4 + $0xf2] sm:$0xff] %vm472_vm1, %v13401_v4 }
  0x50   : > { %11818 = vmatmul.msk.f32.gmra.mxu0 %vm472_vm1, %v13592_v19  ;;  %11851 = vmatmul.msk.f32.gmra.mxu1 %vm472_vm1, %v13592_v19  ;;  %1124 = vst.msk [vmem:[#allocation4 + $0x3a] sm:$0xff] %vm472_vm1, %v13424_v5 }
  0x51   : > { %11834 = vmatmul.msk.f32.gmra.mxu2 %vm472_vm1, %v13595_v20  ;;  %11867 = vmatmul.msk.f32.gmra.mxu3 %vm472_vm1, %v13595_v20  ;;  %1140 = vst.msk [vmem:[#allocation4 + $0xfa] sm:$0xff] %vm472_vm1, %v13427_v6 }
  0x52   : > { %1125 = vst.msk [vmem:[#allocation4 + $0x4a] sm:$0xff] %vm472_vm1, %v13454_v7 }
  0x53   : > { %1141 = vst.msk [vmem:[#allocation4 + $0x10a] sm:$0xff] %vm472_vm1, %v13457_v8 }
  0x54   : > { %1126 = vst.msk [vmem:[#allocation4 + $0x52] sm:$0xff] %vm472_vm1, %v13486_v9 }
  0x55   : > { %1142 = vst.msk [vmem:[#allocation4 + $0x112] sm:$0xff] %vm472_vm1, %v13489_v10 }
  0x56   : > { %1127 = vst.msk [vmem:[#allocation4 + $0x62] sm:$0xff] %vm472_vm1, %v13532_v15 }
  0x57   : > { %1143 = vst.msk [vmem:[#allocation4 + $0x122] sm:$0xff] %vm472_vm1, %v13535_v16 }
  0x58   : > { %11819 = vmatmul.msk.f32.gmra.mxu0 %vm472_vm1, %v13616_v21  ;;  %11852 = vmatmul.msk.f32.gmra.mxu1 %vm472_vm1, %v13616_v21  ;;  %1128 = vst.msk [vmem:[#allocation4 + $0x6a] sm:$0xff] %vm472_vm1, %v13562_v17 }
  0x59   : > { %11835 = vmatmul.msk.f32.gmra.mxu2 %vm472_vm1, %v13619_v22  ;;  %11868 = vmatmul.msk.f32.gmra.mxu3 %vm472_vm1, %v13619_v22  ;;  %1144 = vst.msk [vmem:[#allocation4 + $0x12a] sm:$0xff] %vm472_vm1, %v13565_v18 }
  0x5a   : > { %1129 = vst.msk [vmem:[#allocation4 + $0x7a] sm:$0xff] %vm472_vm1, %v13592_v19 }
  0x5b   : > { %1145 = vst.msk [vmem:[#allocation4 + $0x13a] sm:$0xff] %vm472_vm1, %v13595_v20 }
  0x5c   : > { %1130 = vst.msk [vmem:[#allocation4 + $0x82] sm:$0xff] %vm472_vm1, %v13616_v21 }
  0x5d   : > { %1146 = vst.msk [vmem:[#allocation4 + $0x142] sm:$0xff] %vm472_vm1, %v13619_v22 }
  0x5e   : > { %1131 = vst.msk [vmem:[#allocation4 + $0x92] sm:$0xff] %vm472_vm1, %v13646_v23 }
  0x5f   : > { %1147 = vst.msk [vmem:[#allocation4 + $0x152] sm:$0xff] %vm472_vm1, %v13649_v24 }
  0x60   : > { %11820 = vmatmul.msk.f32.gmra.mxu0 %vm472_vm1, %v13646_v23  ;;  %11853 = vmatmul.msk.f32.gmra.mxu1 %vm472_vm1, %v13646_v23  ;;  %1132 = vst.msk [vmem:[#allocation4 + $0x9a] sm:$0xff] %vm472_vm1, %v13676_v25 }
  0x61   : > { %11836 = vmatmul.msk.f32.gmra.mxu2 %vm472_vm1, %v13649_v24  ;;  %11869 = vmatmul.msk.f32.gmra.mxu3 %vm472_vm1, %v13649_v24  ;;  %1148 = vst.msk [vmem:[#allocation4 + $0x15a] sm:$0xff] %vm472_vm1, %v13679_v26 }
  0x62   : > { %1133 = vst.msk [vmem:[#allocation4 + $0xaa] sm:$0xff] %vm472_vm1, %v13692_v27 }
  0x63   : > { %1149 = vst.msk [vmem:[#allocation4 + $0x16a] sm:$0xff] %vm472_vm1, %v13697_v28 }
  0x64   : > { %1134 = vst.msk [vmem:[#allocation4 + $0xb2] sm:$0xff] %vm472_vm1, %v13706_v29 }
  0x65   : > { %1150 = vst.msk [vmem:[#allocation4 + $0x172] sm:$0xff] %vm472_vm1, %v13711_v30 }
  0x66   : > { %1135 = vst.msk [vmem:[#allocation4 + $0xc2] sm:$0xff] %vm472_vm1, %v13716_v31 }
  0x67   : > { %1151 = vst.msk [vmem:[#allocation4 + $0x182] sm:$0xff] %vm472_vm1, %v13721_v32 }
  0x68   : > { %11821 = vmatmul.msk.f32.gmra.mxu0 %vm472_vm1, %v13676_v25  ;;  %11854 = vmatmul.msk.f32.gmra.mxu1 %vm472_vm1, %v13676_v25  ;;  %1136 = vst.msk [vmem:[#allocation4 + $0xca] sm:$0xff] %vm472_vm1, %v13726_v33 }
  0x69   : > { %11837 = vmatmul.msk.f32.gmra.mxu2 %vm472_vm1, %v13679_v26  ;;  %11870 = vmatmul.msk.f32.gmra.mxu3 %vm472_vm1, %v13679_v26  ;;  %1152 = vst.msk [vmem:[#allocation4 + $0x18a] sm:$0xff] %vm472_vm1, %v13731_v34 }
  0x6a   : > { %1137 = vst.msk [vmem:[#allocation4 + $0xda] sm:$0xff] %vm472_vm1, %v13740_v35 }
  0x6b   : > { %1153 = vst.msk [vmem:[#allocation4 + $0x19a] sm:$0xff] %vm472_vm1, %v13745_v36 }
  0x6c   : > { %1138 = vst.msk [vmem:[#allocation4 + $0xe2] sm:$0xff] %vm472_vm1, %v13754_v37 }
  0x6d   : > { %1154 = vst.msk [vmem:[#allocation4 + $0x1a2] sm:$0xff] %vm472_vm1, %v13763_v38 }
  0x6e   : > { %479 = vst.msk [vmem:[#allocation2 + $0x30] sm:$0xff] %vm472_vm1, %v13253_v39 }
  0x6f   : > { %480 = vst.msk [vmem:[#allocation2 + $0x38] sm:$0xff] %vm472_vm1, %v13253_v39 }
  0x70   : > { %11822 = vmatmul.msk.f32.gmra.mxu0 %vm472_vm1, %v13692_v27  ;;  %11855 = vmatmul.msk.f32.gmra.mxu1 %vm472_vm1, %v13692_v27  ;;  %476 = vst.msk [vmem:[#allocation2 + $0x18] sm:$0xff] %vm472_vm1, %v13253_v39 }
  0x71   : > { %11838 = vmatmul.msk.f32.gmra.mxu2 %vm472_vm1, %v13697_v28  ;;  %11871 = vmatmul.msk.f32.gmra.mxu3 %vm472_vm1, %v13697_v28  ;;  %477 = vst.msk [vmem:[#allocation2 + $0x20] sm:$0xff] %vm472_vm1, %v13253_v39 }
  0x72   : > { %478 = vst.msk [vmem:[#allocation2 + $0x28] sm:$0xff] %vm472_vm1, %v13253_v39 }
  0x73   : > { %481 = vst.msk [vmem:[#allocation2 + $0x40] sm:$0xff] %vm472_vm1, %v13253_v39 }
  0x74   : > { %482 = vst.msk [vmem:[#allocation2 + $0x48] sm:$0xff] %vm472_vm1, %v13253_v39 }
  0x75   : > { %483 = vst.msk [vmem:[#allocation2 + $0x50] sm:$0xff] %vm472_vm1, %v13253_v39 }
  0x76   : > { %484 = vst.msk [vmem:[#allocation2 + $0x58] sm:$0xff] %vm472_vm1, %v13253_v39 }
  0x77   : > { %485 = vst.msk [vmem:[#allocation2 + $0x60] sm:$0xff] %vm472_vm1, %v13253_v39 }
  0x78   : > { %11823 = vmatmul.msk.f32.gmra.mxu0 %vm472_vm1, %v13706_v29  ;;  %11856 = vmatmul.msk.f32.gmra.mxu1 %vm472_vm1, %v13706_v29  ;;  %486 = vst.msk [vmem:[#allocation2 + $0x68] sm:$0xff] %vm472_vm1, %v13253_v39  ;;  %v1342_v44 = vld [vmem:[#allocation2 + $0x1a] sm:$0xff] }
  0x79   : > { %11839 = vmatmul.msk.f32.gmra.mxu2 %vm472_vm1, %v13711_v30  ;;  %11872 = vmatmul.msk.f32.gmra.mxu3 %vm472_vm1, %v13711_v30  ;;  %487 = vst.msk [vmem:[#allocation2 + $0x70] sm:$0xff] %vm472_vm1, %v13253_v39  ;;  %v1309_v45 = vld [vmem:[#allocation2 + $0x19] sm:$0xff]  ;;  %v1343_v54 = vld [vmem:[#allocation2 + $0x22] sm:$0xff] }
  0x7a   : > { %488 = vst.msk [vmem:[#allocation2 + $0x78] sm:$0xff] %vm472_vm1, %v13253_v39  ;;  %v1800_v46 = vld [vmem:[#allocation2 + $0x1b] sm:$0xff]  ;;  %v1801_v56 = vld [vmem:[#allocation2 + $0x23] sm:$0xff] }
  0x7b   : > { %489 = vst.msk [vmem:[#allocation2 + $0x80] sm:$0xff] %vm472_vm1, %v13253_v39  ;;  %v1310_v55 = vld [vmem:[#allocation2 + $0x21] sm:$0xff] }
  0x7c   : > { %490 = vst.msk [vmem:[#allocation2 + $0x88] sm:$0xff] %vm472_vm1, %v13253_v39 }
  0x7d   : > { %491 = vst.msk [vmem:[#allocation2 + $0x90] sm:$0xff] %vm472_vm1, %v13253_v39 }
  0x7e   : > { %492 = vst.msk [vmem:[#allocation2 + $0x98] sm:$0xff] %vm472_vm1, %v13253_v39 }
  0x7f   : > { %493 = vst.msk [vmem:[#allocation2 + $0xa0] sm:$0xff] %vm472_vm1, %v13253_v39 }
  0x80   : > { %11824 = vmatmul.msk.f32.gmra.mxu0 %vm472_vm1, %v13716_v31  ;;  %11857 = vmatmul.msk.f32.gmra.mxu1 %vm472_vm1, %v13716_v31  ;;  %494 = vst.msk [vmem:[#allocation2 + $0xa8] sm:$0xff] %vm472_vm1, %v13253_v39 }
  0x81   : > { %11840 = vmatmul.msk.f32.gmra.mxu2 %vm472_vm1, %v13721_v32  ;;  %11873 = vmatmul.msk.f32.gmra.mxu3 %vm472_vm1, %v13721_v32  ;;  %495 = vst.msk [vmem:[#allocation2 + $0xb0] sm:$0xff] %vm472_vm1, %v13253_v39 }
  0x82   : > { %496 = vst.msk [vmem:[#allocation2 + $0xb8] sm:$0xff] %vm472_vm1, %v13253_v39 }
  0x83   : > { %497 = vst.msk [vmem:[#allocation2 + $0xc0] sm:$0xff] %vm472_vm1, %v13253_v39 }
  0x84   : > { %498 = vst.msk [vmem:[#allocation2 + $0xc8] sm:$0xff] %vm472_vm1, %v13253_v39 }
  0x85   : > { %499 = vst.msk [vmem:[#allocation2 + $0xd0] sm:$0xff] %vm472_vm1, %v13253_v39 }
  0x86   : > { %500 = vst.msk [vmem:[#allocation2 + $0xd8] sm:$0xff] %vm472_vm1, %v13253_v39 }
  0x87   : > { %501 = vst.msk [vmem:[#allocation2 + $0xe0] sm:$0xff] %vm472_vm1, %v13253_v39 }
  0x88   : > { %11825 = vmatmul.msk.f32.gmra.mxu0 %vm472_vm1, %v13726_v33  ;;  %11858 = vmatmul.msk.f32.gmra.mxu1 %vm472_vm1, %v13726_v33  ;;  %502 = vst.msk [vmem:[#allocation2 + $0xe8] sm:$0xff] %vm472_vm1, %v13253_v39 }
  0x89   : > { %11841 = vmatmul.msk.f32.gmra.mxu2 %vm472_vm1, %v13731_v34  ;;  %11874 = vmatmul.msk.f32.gmra.mxu3 %vm472_vm1, %v13731_v34  ;;  %503 = vst.msk [vmem:[#allocation2 + $0xf0] sm:$0xff] %vm472_vm1, %v13253_v39 }
  0x8a   : > { %504 = vst.msk [vmem:[#allocation2 + $0xf8] sm:$0xff] %vm472_vm1, %v13253_v39 }
  0x8b   : > { %505 = vst.msk [vmem:[#allocation2 + $0x100] sm:$0xff] %vm472_vm1, %v13253_v39 }
  0x8c   : > { %506 = vst.msk [vmem:[#allocation2 + $0x108] sm:$0xff] %vm472_vm1, %v13253_v39 }
  0x8d   : > { %507 = vst.msk [vmem:[#allocation2 + $0x110] sm:$0xff] %vm472_vm1, %v13253_v39 }
  0x8e   : > { %508 = vst.msk [vmem:[#allocation2 + $0x118] sm:$0xff] %vm472_vm1, %v13253_v39 }
  0x8f   : > { %509 = vst.msk [vmem:[#allocation2 + $0x120] sm:$0xff] %vm472_vm1, %v13253_v39 }
  0x90   : > { %11826 = vmatmul.msk.f32.gmra.mxu0 %vm472_vm1, %v13740_v35  ;;  %11859 = vmatmul.msk.f32.gmra.mxu1 %vm472_vm1, %v13740_v35  ;;  %510 = vst.msk [vmem:[#allocation2 + $0x128] sm:$0xff] %vm472_vm1, %v13253_v39 }
  0x91   : > { %11842 = vmatmul.msk.f32.gmra.mxu2 %vm472_vm1, %v13745_v36  ;;  %11875 = vmatmul.msk.f32.gmra.mxu3 %vm472_vm1, %v13745_v36  ;;  %511 = vst.msk [vmem:[#allocation2 + $0x130] sm:$0xff] %vm472_vm1, %v13253_v39 }
  0x92   : > { %512 = vst.msk [vmem:[#allocation2 + $0x138] sm:$0xff] %vm472_vm1, %v13253_v39 }
  0x93   : > { %513 = vst.msk [vmem:[#allocation2 + $0x140] sm:$0xff] %vm472_vm1, %v13253_v39 }
  0x94   : > { %514 = vst.msk [vmem:[#allocation2 + $0x148] sm:$0xff] %vm472_vm1, %v13253_v39 }
  0x95   : > { %515 = vst.msk [vmem:[#allocation2 + $0x150] sm:$0xff] %vm472_vm1, %v13253_v39 }
  0x96   : > { %516 = vst.msk [vmem:[#allocation2 + $0x158] sm:$0xff] %vm472_vm1, %v13253_v39 }
  0x97   : > { %517 = vst.msk [vmem:[#allocation2 + $0x160] sm:$0xff] %vm472_vm1, %v13253_v39 }
  0x98   : > { %11827 = vmatmul.msk.f32.gmra.mxu0 %vm472_vm1, %v13754_v37  ;;  %11860 = vmatmul.msk.f32.gmra.mxu1 %vm472_vm1, %v13754_v37  ;;  %518 = vst.msk [vmem:[#allocation2 + $0x168] sm:$0xff] %vm472_vm1, %v13253_v39 }
  0x99   : > { %11843 = vmatmul.msk.f32.gmra.mxu2 %vm472_vm1, %v13763_v38  ;;  %11876 = vmatmul.msk.f32.gmra.mxu3 %vm472_vm1, %v13763_v38  ;;  %519 = vst.msk [vmem:[#allocation2 + $0x170] sm:$0xff] %vm472_vm1, %v13253_v39 }
  0x9a   : > { %520 = vst.msk [vmem:[#allocation2 + $0x178] sm:$0xff] %vm472_vm1, %v13253_v39 }
  0x9b   : > { %521 = vst.msk [vmem:[#allocation2 + $0x180] sm:$0xff] %vm472_vm1, %v13253_v39 }
  0x9c   : > { %522 = vst.msk [vmem:[#allocation2 + $0x188] sm:$0xff] %vm472_vm1, %v13253_v39 }
  0x9d   : > { %v655_v41 = vpop.f32.mrf.mxu0  ;;  %523 = vst.msk [vmem:[#allocation2 + $0x190] sm:$0xff] %vm472_vm1, %v13253_v39  ;;  %v13971_v47 = vpop.f32.mrf.mxu1 }
  0x9e   : > { %v656_v42 = vadd.f32 %v13852_v40, %v655_v41  ;;  %524 = vst.msk [vmem:[#allocation2 + $0x198] sm:$0xff] %vm472_vm1, %v13253_v39  ;;  %v902_v13 = vadd.f32 %v14077_v11, %v13971_v47 }
  0x9f   : > { %525 = vst.msk [vmem:[#allocation2 + $0x1a0] sm:$0xff] %vm472_vm1, %v13253_v39 }
  0xa0   : > { %v751_v43 = vmax.f32 %v656_v42, 0.0  ;;  %526 = vst.msk [vmem:[#allocation2 + $0x1a8] sm:$0xff] %vm472_vm1, %v13253_v39  ;;  %11945 = vmatmul.msk.f32.vlgmr.msrb.gmra.mxu0 %vm472_vm1, %v1309_v45  ;;  %11979 = vmatmul.msk.f32.vlgmr.msrb.gmra.mxu1 %vm472_vm1, %v1800_v46 }
  0xa1   : > { %11878 = vmatmul.msk.f32.vlgmr.msrb.gmra.mxu2 %vm472_vm1, %v13396_v3  ;;  %527 = vst.msk [vmem:[#allocation2 + $0x1b0] sm:$0xff] %vm472_vm1, %v13253_v39  ;;  %11912 = vmatmul.msk.f32.vlgmr.msrb.gmra.mxu3 %vm472_vm1, %v1342_v44 }
  0xa2   : > { %784 = vst.msk [vmem:[#allocation2 + $0x32] sm:$0xff] %vm472_vm1, %v751_v43 }
  0xa3   : > { %528 = vst.msk [vmem:[#allocation2 + $0x1b8] sm:$0xff] %vm472_vm1, %v13253_v39 }
  0xa4   : > { %529 = vst.msk [vmem:[#allocation2 + $0x1c0] sm:$0xff] %vm472_vm1, %v13253_v39  ;;  %v13981_v48 = vpop.f32.mrf.mxu2  ;;  %v13987_v49 = vpop.f32.mrf.mxu3 }
  0xa5   : > { %816 = vst.msk [vmem:[#allocation3] sm:$0xff] %vm472_vm1, %v13253_v39  ;;  %v13995_v50 = vpop.f32.mrf.mxu0  ;;  %v14007_v53 = vpop.f32.mrf.mxu1 }
  0xa6   : > { %817 = vst.msk [vmem:[#allocation3 + $0x8] sm:$0xff] %vm472_vm1, %v13253_v39 }
  0xa7   : > { %818 = vst.msk [vmem:[#allocation3 + $0x10] sm:$0xff] %vm472_vm1, %v13253_v39 }
  0xa8   : > { %819 = vst.msk [vmem:[#allocation3 + $0x18] sm:$0xff] %vm472_vm1, %v13253_v39  ;;  %11946 = vmatmul.msk.f32.gmra.mxu0 %vm472_vm1, %v1310_v55  ;;  %11980 = vmatmul.msk.f32.gmra.mxu1 %vm472_vm1, %v1801_v56 }
  0xa9   : > { %11879 = vmatmul.msk.f32.gmra.mxu2 %vm472_vm1, %v13424_v5  ;;  %820 = vst.msk [vmem:[#allocation3 + $0x20] sm:$0xff] %vm472_vm1, %v13253_v39  ;;  %11913 = vmatmul.msk.f32.gmra.mxu3 %vm472_vm1, %v1343_v54  ;;  %v1344_v63 = vld [vmem:[#allocation2 + $0x32] sm:$0xff] }
  0xaa   : > { %821 = vst.msk [vmem:[#allocation3 + $0x28] sm:$0xff] %vm472_vm1, %v13253_v39  ;;  %v1311_v0 = vld [vmem:[#allocation2 + $0x31] sm:$0xff] }
  0xab   : > { %822 = vst.msk [vmem:[#allocation3 + $0x30] sm:$0xff] %vm472_vm1, %v13253_v39 }
  0xac   : > { %823 = vst.msk [vmem:[#allocation3 + $0x38] sm:$0xff] %vm472_vm1, %v13253_v39  ;;  %v706_v58 = vpop.f32.mrf.mxu2  ;;  %v952_v59 = vpop.f32.mrf.mxu3 }
  0xad   : > { %824 = vst.msk [vmem:[#allocation3 + $0x40] sm:$0xff] %vm472_vm1, %v13253_v39  ;;  %v661_v60 = vpop.f32.mrf.mxu0  ;;  %v907_v62 = vpop.f32.mrf.mxu1  ;;  %v707_v43 = vadd.f32 %v13852_v40, %v706_v58  ;;  %v953_v45 = vadd.f32 %v14077_v11, %v952_v59 }
  0xae   : > { %825 = vst.msk [vmem:[#allocation3 + $0x48] sm:$0xff] %vm472_vm1, %v13253_v39 }
  0xaf   : > { %826 = vst.msk [vmem:[#allocation3 + $0x50] sm:$0xff] %vm472_vm1, %v13253_v39 }
  0xb0   : > { %827 = vst.msk [vmem:[#allocation3 + $0x58] sm:$0xff] %vm472_vm1, %v13253_v39  ;;  %11947 = vmatmul.msk.f32.gmra.mxu0 %vm472_vm1, %v1311_v0 }
  0xb1   : > { %11880 = vmatmul.msk.f32.gmra.mxu2 %vm472_vm1, %v13454_v7  ;;  %828 = vst.msk [vmem:[#allocation3 + $0x60] sm:$0xff] %vm472_vm1, %v13253_v39  ;;  %11914 = vmatmul.msk.f32.gmra.mxu3 %vm472_vm1, %v1344_v63 }
  0xb2   : > { %829 = vst.msk [vmem:[#allocation3 + $0x68] sm:$0xff] %vm472_vm1, %v13253_v39 }
  0xb3   : > { %830 = vst.msk [vmem:[#allocation3 + $0x70] sm:$0xff] %vm472_vm1, %v13253_v39 }
  0xb4   : > { %831 = vst.msk [vmem:[#allocation3 + $0x78] sm:$0xff] %vm472_vm1, %v13253_v39  ;;  %v709_v1 = vpop.f32.mrf.mxu2  ;;  %v955_v2 = vpop.f32.mrf.mxu3 }
  0xb5   : > { %832 = vst.msk [vmem:[#allocation3 + $0x80] sm:$0xff] %vm472_vm1, %v13253_v39  ;;  %v664_v3 = vpop.f32.mrf.mxu0  ;;  %v910_v5 = vpop.f32.mrf.mxu1  ;;  %v710_v52 = vadd.f32 %v13852_v40, %v709_v1  ;;  %v956_v54 = vadd.f32 %v14077_v11, %v955_v2 }
  0xb6   : > { %833 = vst.msk [vmem:[#allocation3 + $0x88] sm:$0xff] %vm472_vm1, %v13253_v39  ;;  %v665_v55 = vadd.f32 %v13852_v40, %v664_v3  ;;  %v911_v57 = vadd.f32 %v14077_v11, %v910_v5 }
  0xb7   : > { %834 = vst.msk [vmem:[#allocation3 + $0x90] sm:$0xff] %vm472_vm1, %v13253_v39 }
  0xb8   : > { %835 = vst.msk [vmem:[#allocation3 + $0x98] sm:$0xff] %vm472_vm1, %v13253_v39  ;;  %v754_v1 = vmax.f32 %v665_v55, 0.0  ;;  %v1000_v3 = vmax.f32 %v911_v57, 0.0 }
  0xb9   : > { %11881 = vmatmul.msk.f32.gmra.mxu2 %vm472_vm1, %v13486_v9  ;;  %836 = vst.msk [vmem:[#allocation3 + $0xa0] sm:$0xff] %vm472_vm1, %v13253_v39 }
  0xba   : > { %837 = vst.msk [vmem:[#allocation3 + $0xa8] sm:$0xff] %vm472_vm1, %v13253_v39 }
  0xbb   : > { %838 = vst.msk [vmem:[#allocation3 + $0xb0] sm:$0xff] %vm472_vm1, %v13253_v39 }
  0xbc   : > { %839 = vst.msk [vmem:[#allocation3 + $0xb8] sm:$0xff] %vm472_vm1, %v13253_v39  ;;  %v712_v7 = vpop.f32.mrf.mxu2  ;;  %v958_v9 = vpop.f32.mrf.mxu3 }
  0xbd   : > { %840 = vst.msk [vmem:[#allocation3 + $0xc0] sm:$0xff] %vm472_vm1, %v13253_v39  ;;  %v667_v12 = vpop.f32.mrf.mxu0  ;;  %v913_v14 = vpop.f32.mrf.mxu1  ;;  %v713_v61 = vadd.f32 %v13852_v40, %v712_v7  ;;  %v959_v63 = vadd.f32 %v14077_v11, %v958_v9 }
  0xbe   : > { %841 = vst.msk [vmem:[#allocation3 + $0xc8] sm:$0xff] %vm472_vm1, %v13253_v39  ;;  %v668_v2 = vadd.f32 %v13852_v40, %v667_v12  ;;  %v914_v5 = vadd.f32 %v14077_v11, %v913_v14 }
  0xbf   : > { %842 = vst.msk [vmem:[#allocation3 + $0xd0] sm:$0xff] %vm472_vm1, %v13253_v39 }
  0xc0   : > { %843 = vst.msk [vmem:[#allocation3 + $0xd8] sm:$0xff] %vm472_vm1, %v13253_v39  ;;  %v755_v14 = vmax.f32 %v668_v2, 0.0 }
  0xc1   : > { %11882 = vmatmul.msk.f32.gmra.mxu2 %vm472_vm1, %v13532_v15  ;;  %844 = vst.msk [vmem:[#allocation3 + $0xe0] sm:$0xff] %vm472_vm1, %v13253_v39  ;;  %v704_v15 = vadd.f32 %v13852_v40, %v13981_v48  ;;  %v662_v48 = vadd.f32 %v13852_v40, %v661_v60  ;;  %v769_v60 = vmax.f32 %v710_v52, 0.0 }
  0xc2   : > { %845 = vst.msk [vmem:[#allocation3 + $0xe8] sm:$0xff] %vm472_vm1, %v13253_v39 }
  0xc3   : > { %846 = vst.msk [vmem:[#allocation3 + $0xf0] sm:$0xff] %vm472_vm1, %v13253_v39  ;;  %v767_v42 = vmax.f32 %v704_v15, 0.0 }
  0xc4   : > { %847 = vst.msk [vmem:[#allocation3 + $0xf8] sm:$0xff] %vm472_vm1, %v13253_v39  ;;  %v961_v41 = vpop.f32.mrf.mxu3 }
  0xc5   : > { %848 = vst.msk [vmem:[#allocation3 + $0x100] sm:$0xff] %vm472_vm1, %v13253_v39  ;;  %v670_v46 = vpop.f32.mrf.mxu0  ;;  %v916_v51 = vpop.f32.mrf.mxu1 }
  0xc6   : > { %849 = vst.msk [vmem:[#allocation3 + $0x108] sm:$0xff] %vm472_vm1, %v13253_v39 }
  0xc7   : > { %850 = vst.msk [vmem:[#allocation3 + $0x110] sm:$0xff] %vm472_vm1, %v13253_v39 }
  0xc8   : > { %851 = vst.msk [vmem:[#allocation3 + $0x118] sm:$0xff] %vm472_vm1, %v13253_v39 }
  0xc9   : > { %11883 = vmatmul.msk.f32.gmra.mxu2 %vm472_vm1, %v13562_v17  ;;  %852 = vst.msk [vmem:[#allocation3 + $0x120] sm:$0xff] %vm472_vm1, %v13253_v39  ;;  %v950_v17 = vadd.f32 %v14077_v11, %v13987_v49 }
  0xca   : > { %853 = vst.msk [vmem:[#allocation3 + $0x128] sm:$0xff] %vm472_vm1, %v13253_v39 }
  0xcb   : > { %854 = vst.msk [vmem:[#allocation3 + $0x130] sm:$0xff] %vm472_vm1, %v13253_v39  ;;  %v1013_v44 = vmax.f32 %v950_v17, 0.0  ;;  %v1016_v17 = vmax.f32 %v959_v63, 0.0 }
  0xcc   : > { %855 = vst.msk [vmem:[#allocation3 + $0x138] sm:$0xff] %vm472_vm1, %v13253_v39  ;;  %v964_v59 = vpop.f32.mrf.mxu3 }
  0xcd   : > { %856 = vst.msk [vmem:[#allocation3 + $0x140] sm:$0xff] %vm472_vm1, %v13253_v39  ;;  %v673_v0 = vpop.f32.mrf.mxu0  ;;  %v919_v7 = vpop.f32.mrf.mxu1 }
  0xce   : > { %857 = vst.msk [vmem:[#allocation3 + $0x148] sm:$0xff] %vm472_vm1, %v13253_v39  ;;  %v920_v52 = vadd.f32 %v14077_v11, %v919_v7 }
  0xcf   : > { %858 = vst.msk [vmem:[#allocation3 + $0x150] sm:$0xff] %vm472_vm1, %v13253_v39 }
  0xd0   : > { %859 = vst.msk [vmem:[#allocation3 + $0x158] sm:$0xff] %vm472_vm1, %v13253_v39 }
  0xd1   : > { %11884 = vmatmul.msk.f32.gmra.mxu2 %vm472_vm1, %v13592_v19  ;;  %860 = vst.msk [vmem:[#allocation3 + $0x160] sm:$0xff] %vm472_vm1, %v13253_v39  ;;  %v659_v19 = vadd.f32 %v13852_v40, %v13995_v50  ;;  %v908_v50 = vadd.f32 %v14077_v11, %v907_v62  ;;  %v1015_v62 = vmax.f32 %v956_v54, 0.0 }
  0xd2   : > { %861 = vst.msk [vmem:[#allocation3 + $0x168] sm:$0xff] %vm472_vm1, %v13253_v39 }
  0xd3   : > { %862 = vst.msk [vmem:[#allocation3 + $0x170] sm:$0xff] %vm472_vm1, %v13253_v39  ;;  %v752_v47 = vmax.f32 %v659_v19, 0.0  ;;  %v999_v56 = vmax.f32 %v908_v50, 0.0  ;;  %v962_v19 = vadd.f32 %v14077_v11, %v961_v41 }
  0xd4   : > { %863 = vst.msk [vmem:[#allocation3 + $0x178] sm:$0xff] %vm472_vm1, %v13253_v39 }
  0xd5   : > { %864 = vst.msk [vmem:[#allocation3 + $0x180] sm:$0xff] %vm472_vm1, %v13253_v39 }
  0xd6   : > { %865 = vst.msk [vmem:[#allocation3 + $0x188] sm:$0xff] %vm472_vm1, %v13253_v39 }
  0xd7   : > { %866 = vst.msk [vmem:[#allocation3 + $0x190] sm:$0xff] %vm472_vm1, %v13253_v39 }
  0xd8   : > { %867 = vst.msk [vmem:[#allocation3 + $0x198] sm:$0xff] %vm472_vm1, %v13253_v39 }
  0xd9   : > { %11885 = vmatmul.msk.f32.gmra.mxu2 %vm472_vm1, %v13616_v21  ;;  %868 = vst.msk [vmem:[#allocation3 + $0x1a0] sm:$0xff] %vm472_vm1, %v13253_v39  ;;  %v997_v21 = vmax.f32 %v902_v13, 0.0 }
  0xda   : > { %869 = vst.msk [vmem:[#allocation3 + $0x1a8] sm:$0xff] %vm472_vm1, %v13253_v39 }
  0xdb   : > { %870 = vst.msk [vmem:[#allocation3 + $0x1b0] sm:$0xff] %vm472_vm1, %v13253_v39 }
  0xdc   : > { %871 = vst.msk [vmem:[#allocation3 + $0x1b8] sm:$0xff] %vm472_vm1, %v13253_v39 }
  0xdd   : > { %872 = vst.msk [vmem:[#allocation3 + $0x1c0] sm:$0xff] %vm472_vm1, %v13253_v39 }
  0xde   : > { %873 = vst.msk [vmem:[#allocation3 + $0x1c8] sm:$0xff] %vm472_vm1, %v13253_v39 }
  0xdf   : > { %874 = vst.msk [vmem:[#allocation3 + $0x1d0] sm:$0xff] %vm472_vm1, %v13253_v39 }
  0xe0   : > { %875 = vst.msk [vmem:[#allocation3 + $0x1d8] sm:$0xff] %vm472_vm1, %v13253_v39  ;;  %v753_v39 = vmax.f32 %v662_v48, 0.0 }
  0xe1   : > { %11886 = vmatmul.msk.f32.gmra.mxu2 %vm472_vm1, %v13646_v23  ;;  %v905_v23 = vadd.f32 %v14077_v11, %v14007_v53  ;;  %1030 = vst.msk [vmem:[#allocation3 + $0x32] sm:$0xff] %vm472_vm1, %v997_v21  ;;  %v1014_v53 = vmax.f32 %v953_v45, 0.0  ;;  %v671_v21 = vadd.f32 %v13852_v40, %v670_v46  ;;  %v1017_v45 = vmax.f32 %v962_v19, 0.0 }
  0xe2   : > { %800 = vst.msk [vmem:[#allocation2 + $0xf2] sm:$0xff] %vm472_vm1, %v767_v42  ;;  %v965_v46 = vadd.f32 %v14077_v11, %v964_v59  ;;  %v1003_v59 = vmax.f32 %v920_v52, 0.0 }
  0xe3   : > { %v998_v49 = vmax.f32 %v905_v23, 0.0  ;;  %1046 = vst.msk [vmem:[#allocation3 + $0xf2] sm:$0xff] %vm472_vm1, %v1013_v44  ;;  %v1001_v23 = vmax.f32 %v914_v5, 0.0  ;;  %v756_v48 = vmax.f32 %v671_v21, 0.0 }
  0xe4   : > { %785 = vst.msk [vmem:[#allocation2 + $0x3a] sm:$0xff] %vm472_vm1, %v752_v47  ;;  %v676_v47 = vpop.f32.mrf.mxu0  ;;  %v1018_v55 = vmax.f32 %v965_v46, 0.0 }
  0xe5   : > { %1031 = vst.msk [vmem:[#allocation3 + $0x3a] sm:$0xff] %vm472_vm1, %v998_v49  ;;  %v674_v49 = vadd.f32 %v13852_v40, %v673_v0 }
  0xe6   : > { %1047 = vst.msk [vmem:[#allocation3 + $0xfa] sm:$0xff] %vm472_vm1, %v1014_v53  ;;  %v922_v53 = vpop.f32.mrf.mxu1 }
  0xe7   : > { %786 = vst.msk [vmem:[#allocation2 + $0x4a] sm:$0xff] %vm472_vm1, %v753_v39  ;;  %v757_v57 = vmax.f32 %v674_v49, 0.0 }
  0xe8   : > { %1032 = vst.msk [vmem:[#allocation3 + $0x4a] sm:$0xff] %vm472_vm1, %v999_v56 }
  0xe9   : > { %11887 = vmatmul.msk.f32.gmra.mxu2 %vm472_vm1, %v13676_v25  ;;  %v715_v25 = vpop.f32.mrf.mxu2  ;;  %802 = vst.msk [vmem:[#allocation2 + $0x10a] sm:$0xff] %vm472_vm1, %v769_v60  ;;  %v923_v60 = vadd.f32 %v14077_v11, %v922_v53 }
  0xea   : > { %v716_v13 = vadd.f32 %v13852_v40, %v715_v25  ;;  %1048 = vst.msk [vmem:[#allocation3 + $0x10a] sm:$0xff] %vm472_vm1, %v1015_v62  ;;  %v917_v25 = vadd.f32 %v14077_v11, %v916_v51 }
  0xeb   : > { %v1802_v15 = vld [vmem:[#allocation2 + $0x33] sm:$0xff]  ;;  %787 = vst.msk [vmem:[#allocation2 + $0x52] sm:$0xff] %vm472_vm1, %v754_v1  ;;  %v1803_v50 = vld [vmem:[#allocation2 + $0x3b] sm:$0xff] }
  0xec   : > { %v1345_v9 = vld [vmem:[#allocation2 + $0x3a] sm:$0xff]  ;;  %11981 = vmatmul.msk.f32.gmra.mxu1 %vm472_vm1, %v1802_v15  ;;  %1033 = vst.msk [vmem:[#allocation3 + $0x52] sm:$0xff] %vm472_vm1, %v1000_v3  ;;  %v771_v41 = vmax.f32 %v716_v13, 0.0  ;;  %v679_v3 = vpop.f32.mrf.mxu0  ;;  %v1004_v15 = vmax.f32 %v923_v60, 0.0 }
  0xed   : > { %11915 = vmatmul.msk.f32.gmra.mxu3 %vm472_vm1, %v1345_v9  ;;  %v1312_v12 = vld [vmem:[#allocation2 + $0x39] sm:$0xff]  ;;  %1049 = vst.msk [vmem:[#allocation3 + $0x112] sm:$0xff] %vm472_vm1, %v1016_v17  ;;  %v680_v7 = vadd.f32 %v13852_v40, %v679_v3 }
  0xee   : > { %11948 = vmatmul.msk.f32.gmra.mxu0 %vm472_vm1, %v1312_v12  ;;  %788 = vst.msk [vmem:[#allocation2 + $0x62] sm:$0xff] %vm472_vm1, %v755_v14  ;;  %v1346_v51 = vld [vmem:[#allocation2 + $0x4a] sm:$0xff]  ;;  %v925_v9 = vpop.f32.mrf.mxu1 }
  0xef   : > { %1034 = vst.msk [vmem:[#allocation3 + $0x62] sm:$0xff] %vm472_vm1, %v1001_v23  ;;  %v926_v17 = vadd.f32 %v14077_v11, %v925_v9  ;;  %v759_v14 = vmax.f32 %v680_v7, 0.0 }
  0xf0   : > { %804 = vst.msk [vmem:[#allocation2 + $0x122] sm:$0xff] %vm472_vm1, %v771_v41 }
  0xf1   : > { %11888 = vmatmul.msk.f32.gmra.mxu2 %vm472_vm1, %v13692_v27  ;;  %v768_v27 = vmax.f32 %v707_v43, 0.0  ;;  %v718_v58 = vpop.f32.mrf.mxu2  ;;  %v967_v43 = vpop.f32.mrf.mxu3  ;;  %1050 = vst.msk [vmem:[#allocation3 + $0x122] sm:$0xff] %vm472_vm1, %v1017_v45  ;;  %v1005_v21 = vmax.f32 %v926_v17, 0.0 }
  0xf2   : > { %v719_v44 = vadd.f32 %v13852_v40, %v718_v58  ;;  %v968_v56 = vadd.f32 %v14077_v11, %v967_v43  ;;  %789 = vst.msk [vmem:[#allocation2 + $0x6a] sm:$0xff] %vm472_vm1, %v756_v48  ;;  %v677_v58 = vadd.f32 %v13852_v40, %v676_v47  ;;  %v1347_v13 = vld [vmem:[#allocation2 + $0x52] sm:$0xff] }
  0xf3   : > { %801 = vst.msk [vmem:[#allocation2 + $0xfa] sm:$0xff] %vm472_vm1, %v768_v27  ;;  %v1002_v27 = vmax.f32 %v917_v25, 0.0  ;;  %v14181_v12 = vld [vmem:[#allocation2 + $0x51] sm:$0xff] }
  0xf4   : > { %v772_v54 = vmax.f32 %v719_v44, 0.0  ;;  %11982 = vmatmul.msk.f32.gmra.mxu1 %vm472_vm1, %v1803_v50  ;;  %1051 = vst.msk [vmem:[#allocation3 + $0x12a] sm:$0xff] %vm472_vm1, %v1018_v55  ;;  %v1019_v1 = vmax.f32 %v968_v56, 0.0  ;;  %v758_v5 = vmax.f32 %v677_v58, 0.0  ;;  %v682_v41 = vpop.f32.mrf.mxu0  ;;  %v1805_v47 = vld [vmem:[#allocation2 + $0x53] sm:$0xff] }
  0xf5   : > { %11916 = vmatmul.msk.f32.gmra.mxu3 %vm472_vm1, %v1346_v51  ;;  %1035 = vst.msk [vmem:[#allocation3 + $0x6a] sm:$0xff] %vm472_vm1, %v1002_v27  ;;  %v683_v46 = vadd.f32 %v13852_v40, %v682_v41  ;;  %v1348_v48 = vld [vmem:[#allocation2 + $0x62] sm:$0xff] }
  0xf6   : > { %805 = vst.msk [vmem:[#allocation2 + $0x12a] sm:$0xff] %vm472_vm1, %v772_v54  ;;  %v928_v49 = vpop.f32.mrf.mxu1  ;;  %v14196_v50 = vld [vmem:[#allocation2 + $0x61] sm:$0xff] }
  0xf7   : > { %790 = vst.msk [vmem:[#allocation2 + $0x7a] sm:$0xff] %vm472_vm1, %v757_v57  ;;  %v760_v51 = vmax.f32 %v683_v46, 0.0 }
  0xf8   : > { %1036 = vst.msk [vmem:[#allocation3 + $0x7a] sm:$0xff] %vm472_vm1, %v1003_v59 }
  0xf9   : > { %11889 = vmatmul.msk.f32.gmra.mxu2 %vm472_vm1, %v13706_v29  ;;  %v770_v29 = vmax.f32 %v713_v61, 0.0  ;;  %v721_v42 = vpop.f32.mrf.mxu2  ;;  %v970_v62 = vpop.f32.mrf.mxu3  ;;  %1052 = vst.msk [vmem:[#allocation3 + $0x13a] sm:$0xff] %vm472_vm1, %v1019_v1  ;;  %v1806_v59 = vld [vmem:[#allocation2 + $0x63] sm:$0xff]  ;;  %v14231_v9 = vld [vmem:[#allocation2 + $0x6b] sm:$0xff] }
  0xfa   : > { %v722_v39 = vadd.f32 %v13852_v40, %v721_v42  ;;  %v971_v2 = vadd.f32 %v14077_v11, %v970_v62  ;;  %791 = vst.msk [vmem:[#allocation2 + $0x82] sm:$0xff] %vm472_vm1, %v758_v5  ;;  %v14212_v60 = vld [vmem:[#allocation2 + $0x6a] sm:$0xff] }
  0xfb   : > { %803 = vst.msk [vmem:[#allocation2 + $0x112] sm:$0xff] %vm472_vm1, %v770_v29  ;;  %v1804_v29 = vld [vmem:[#allocation2 + $0x4b] sm:$0xff] }
  0xfc   : > { %v773_v63 = vmax.f32 %v722_v39, 0.0  ;;  %v1020_v19 = vmax.f32 %v971_v2, 0.0  ;;  %11983 = vmatmul.msk.f32.gmra.mxu1 %vm472_vm1, %v1804_v29  ;;  %1037 = vst.msk [vmem:[#allocation3 + $0x82] sm:$0xff] %vm472_vm1, %v1004_v15  ;;  %v685_v55 = vpop.f32.mrf.mxu0 }
  0xfd   : > { %11917 = vmatmul.msk.f32.gmra.mxu3 %vm472_vm1, %v1347_v13  ;;  %792 = vst.msk [vmem:[#allocation2 + $0x92] sm:$0xff] %vm472_vm1, %v759_v14  ;;  %v686_v58 = vadd.f32 %v13852_v40, %v685_v55 }
  0xfe   : > { %806 = vst.msk [vmem:[#allocation2 + $0x13a] sm:$0xff] %vm472_vm1, %v773_v63 }
  0xff   : > { %1053 = vst.msk [vmem:[#allocation3 + $0x142] sm:$0xff] %vm472_vm1, %v1020_v19  ;;  %v761_v62 = vmax.f32 %v686_v58, 0.0  ;;  %v14235_v19 = vld [vmem:[#allocation2 + $0x79] sm:$0xff] }
 0x100   : > { %1038 = vst.msk [vmem:[#allocation3 + $0x92] sm:$0xff] %vm472_vm1, %v1005_v21 }
 0x101   : > { %11890 = vmatmul.msk.f32.gmra.mxu2 %vm472_vm1, %v13716_v31  ;;  %v14153_v31 = vld [vmem:[#allocation2 + $0x49] sm:$0xff]  ;;  %v724_v61 = vpop.f32.mrf.mxu2  ;;  %v973_v25 = vpop.f32.mrf.mxu3  ;;  %793 = vst.msk [vmem:[#allocation2 + $0x9a] sm:$0xff] %vm472_vm1, %v760_v51 }
 0x102   : > { %11949 = vmatmul.msk.f32.gmra.mxu0 %vm472_vm1, %v14153_v31  ;;  %v725_v0 = vadd.f32 %v13852_v40, %v724_v61  ;;  %v974_v43 = vadd.f32 %v14077_v11, %v973_v25  ;;  %v931_v61 = vpop.f32.mrf.mxu1  ;;  %794 = vst.msk [vmem:[#allocation2 + $0xaa] sm:$0xff] %vm472_vm1, %v761_v62 }
 0x103   : > { %v932_v63 = vadd.f32 %v14077_v11, %v931_v61 }
 0x104   : > { %v1021_v45 = vmax.f32 %v974_v43, 0.0  ;;  %11984 = vmatmul.msk.f32.gmra.mxu1 %vm472_vm1, %v1805_v47  ;;  %v688_v7 = vpop.f32.mrf.mxu0  ;;  %v14253_v47 = vld [vmem:[#allocation2 + $0x7b] sm:$0xff]  ;;  %v14277_v61 = vld [vmem:[#allocation2 + $0x92] sm:$0xff] }
 0x105   : > { %11918 = vmatmul.msk.f32.gmra.mxu3 %vm472_vm1, %v1348_v48  ;;  %v689_v15 = vadd.f32 %v13852_v40, %v688_v7  ;;  %v14255_v48 = vld [vmem:[#allocation2 + $0x82] sm:$0xff] }
 0x106   : > { %1054 = vst.msk [vmem:[#allocation3 + $0x152] sm:$0xff] %vm472_vm1, %v1021_v45 }
 0x107   : > { %v762_v14 = vmax.f32 %v689_v15, 0.0 }
 0x109   : > { %11891 = vmatmul.msk.f32.gmra.mxu2 %vm472_vm1, %v13726_v33  ;;  %v774_v33 = vmax.f32 %v725_v0, 0.0  ;;  %v727_v23 = vpop.f32.mrf.mxu2  ;;  %v976_v53 = vpop.f32.mrf.mxu3  ;;  %v1007_v0 = vmax.f32 %v932_v63, 0.0  ;;  %795 = vst.msk [vmem:[#allocation2 + $0xb2] sm:$0xff] %vm472_vm1, %v762_v14  ;;  %v14279_v63 = vld [vmem:[#allocation2 + $0x91] sm:$0xff] }
 0x10a   : > { %11950 = vmatmul.msk.f32.gmra.mxu0 %vm472_vm1, %v14181_v12  ;;  %v728_v42 = vadd.f32 %v13852_v40, %v727_v23  ;;  %v977_v39 = vadd.f32 %v14077_v11, %v976_v53  ;;  %v934_v17 = vpop.f32.mrf.mxu1  ;;  %v14297_v14 = vld [vmem:[#allocation2 + $0x93] sm:$0xff] }
 0x10b   : > { %807 = vst.msk [vmem:[#allocation2 + $0x142] sm:$0xff] %vm472_vm1, %v774_v33  ;;  %v14233_v33 = vld [vmem:[#allocation2 + $0x7a] sm:$0xff]  ;;  %v935_v21 = vadd.f32 %v14077_v11, %v934_v17 }
 0x10c   : > { %v775_v44 = vmax.f32 %v728_v42, 0.0  ;;  %v1022_v57 = vmax.f32 %v977_v39, 0.0  ;;  %11985 = vmatmul.msk.f32.gmra.mxu1 %vm472_vm1, %v1806_v59  ;;  %1040 = vst.msk [vmem:[#allocation3 + $0xaa] sm:$0xff] %vm472_vm1, %v1007_v0  ;;  %v691_v41 = vpop.f32.mrf.mxu0  ;;  %v14275_v59 = vld [vmem:[#allocation2 + $0x83] sm:$0xff] }
 0x10d   : > { %11919 = vmatmul.msk.f32.gmra.mxu3 %vm472_vm1, %v14212_v60  ;;  %v692_v46 = vadd.f32 %v13852_v40, %v691_v41 }
 0x10e   : > { %808 = vst.msk [vmem:[#allocation2 + $0x152] sm:$0xff] %vm472_vm1, %v775_v44 }
 0x10f   : > { %1055 = vst.msk [vmem:[#allocation3 + $0x15a] sm:$0xff] %vm472_vm1, %v1022_v57  ;;  %v763_v51 = vmax.f32 %v692_v46, 0.0 }
 0x111   : > { %11892 = vmatmul.msk.f32.gmra.mxu2 %vm472_vm1, %v13740_v35  ;;  %v929_v35 = vadd.f32 %v14077_v11, %v928_v49  ;;  %v730_v52 = vpop.f32.mrf.mxu2  ;;  %v979_v2 = vpop.f32.mrf.mxu3  ;;  %796 = vst.msk [vmem:[#allocation2 + $0xc2] sm:$0xff] %vm472_vm1, %v763_v51 }
 0x112   : > { %11951 = vmatmul.msk.f32.gmra.mxu0 %vm472_vm1, %v14196_v50  ;;  %v731_v54 = vadd.f32 %v13852_v40, %v730_v52  ;;  %v980_v5 = vadd.f32 %v14077_v11, %v979_v2  ;;  %v937_v49 = vpop.f32.mrf.mxu1 }
 0x113   : > { %v1006_v27 = vmax.f32 %v929_v35, 0.0  ;;  %v938_v35 = vadd.f32 %v14077_v11, %v937_v49 }
 0x114   : > { %v776_v56 = vmax.f32 %v731_v54, 0.0  ;;  %v1023_v13 = vmax.f32 %v980_v5, 0.0  ;;  %11986 = vmatmul.msk.f32.gmra.mxu1 %vm472_vm1, %v14231_v9  ;;  %v694_v55 = vpop.f32.mrf.mxu0 }
 0x115   : > { %1039 = vst.msk [vmem:[#allocation3 + $0x9a] sm:$0xff] %vm472_vm1, %v1006_v27  ;;  %11920 = vmatmul.msk.f32.gmra.mxu3 %vm472_vm1, %v14233_v33  ;;  %v1009_v27 = vmax.f32 %v938_v35, 0.0  ;;  %v695_v58 = vadd.f32 %v13852_v40, %v694_v55 }
 0x116   : > { %809 = vst.msk [vmem:[#allocation2 + $0x15a] sm:$0xff] %vm472_vm1, %v776_v56 }
 0x117   : > { %1056 = vst.msk [vmem:[#allocation3 + $0x16a] sm:$0xff] %vm472_vm1, %v1023_v13  ;;  %v764_v0 = vmax.f32 %v695_v58, 0.0 }
 0x118   : > { %1042 = vst.msk [vmem:[#allocation3 + $0xc2] sm:$0xff] %vm472_vm1, %v1009_v27  ;;  %v14319_v27 = vld [vmem:[#allocation2 + $0x9b] sm:$0xff] }
 0x119   : > { %11893 = vmatmul.msk.f32.gmra.mxu2 %vm472_vm1, %v13754_v37  ;;  %v14220_v37 = vld [vmem:[#allocation2 + $0x69] sm:$0xff]  ;;  %v733_v1 = vpop.f32.mrf.mxu2  ;;  %v982_v25 = vpop.f32.mrf.mxu3  ;;  %797 = vst.msk [vmem:[#allocation2 + $0xca] sm:$0xff] %vm472_vm1, %v764_v0 }
 0x11a   : > { %11952 = vmatmul.msk.f32.gmra.mxu0 %vm472_vm1, %v14220_v37  ;;  %v734_v3 = vadd.f32 %v13852_v40, %v733_v1  ;;  %v983_v43 = vadd.f32 %v14077_v11, %v982_v25  ;;  %v940_v62 = vpop.f32.mrf.mxu1 }
 0x11b   : > { %v941_v1 = vadd.f32 %v14077_v11, %v940_v62 }
 0x11c   : > { %v777_v29 = vmax.f32 %v734_v3, 0.0  ;;  %v1024_v45 = vmax.f32 %v983_v43, 0.0  ;;  %11987 = vmatmul.msk.f32.gmra.mxu1 %vm472_vm1, %v14253_v47 }
 0x11d   : > { %11921 = vmatmul.msk.f32.gmra.mxu3 %vm472_vm1, %v14255_v48 }
 0x11e   : > { %810 = vst.msk [vmem:[#allocation2 + $0x16a] sm:$0xff] %vm472_vm1, %v777_v29  ;;  %v697_v29 = vpop.f32.mrf.mxu0 }
 0x11f   : > { %1057 = vst.msk [vmem:[#allocation3 + $0x172] sm:$0xff] %vm472_vm1, %v1024_v45  ;;  %v698_v17 = vadd.f32 %v13852_v40, %v697_v29 }
 0x120   : > { %v14376_v29 = vld [vmem:[#allocation2 + $0xca] sm:$0xff] }
 0x121   : > { %11894 = vmatmul.msk.f32.gmra.mxu2 %vm472_vm1, %v13401_v4  ;;  %v1008_v4 = vmax.f32 %v935_v21, 0.0  ;;  %v736_v23 = vpop.f32.mrf.mxu2  ;;  %v985_v53 = vpop.f32.mrf.mxu3  ;;  %v14299_v21 = vld [vmem:[#allocation2 + $0x9a] sm:$0xff] }
 0x122   : > { %11953 = vmatmul.msk.f32.gmra.mxu0 %vm472_vm1, %v14235_v19  ;;  %v737_v42 = vadd.f32 %v13852_v40, %v736_v23  ;;  %v986_v39 = vadd.f32 %v14077_v11, %v985_v53  ;;  %v765_v23 = vmax.f32 %v698_v17, 0.0 }
 0x123   : > { %1041 = vst.msk [vmem:[#allocation3 + $0xb2] sm:$0xff] %vm472_vm1, %v1008_v4  ;;  %v943_v4 = vpop.f32.mrf.mxu1 }
 0x124   : > { %v778_v44 = vmax.f32 %v737_v42, 0.0  ;;  %v1025_v57 = vmax.f32 %v986_v39, 0.0  ;;  %11988 = vmatmul.msk.f32.gmra.mxu1 %vm472_vm1, %v14275_v59  ;;  %v944_v25 = vadd.f32 %v14077_v11, %v943_v4  ;;  %798 = vst.msk [vmem:[#allocation2 + $0xda] sm:$0xff] %vm472_vm1, %v765_v23 }
 0x125   : > { %11922 = vmatmul.msk.f32.gmra.mxu3 %vm472_vm1, %v14277_v61 }
 0x126   : > { %811 = vst.msk [vmem:[#allocation2 + $0x172] sm:$0xff] %vm472_vm1, %v778_v44  ;;  %v1011_v42 = vmax.f32 %v944_v25, 0.0  ;;  %v700_v46 = vpop.f32.mrf.mxu0 }
 0x127   : > { %1058 = vst.msk [vmem:[#allocation3 + $0x182] sm:$0xff] %vm472_vm1, %v1025_v57  ;;  %v701_v35 = vadd.f32 %v13852_v40, %v700_v46 }
 0x128   : > { %1044 = vst.msk [vmem:[#allocation3 + $0xda] sm:$0xff] %vm472_vm1, %v1011_v42 }
 0x129   : > { %11895 = vmatmul.msk.f32.gmra.mxu2 %vm472_vm1, %v13427_v6  ;;  %v14264_v6 = vld [vmem:[#allocation2 + $0x81] sm:$0xff]  ;;  %v739_v52 = vpop.f32.mrf.mxu2  ;;  %v988_v3 = vpop.f32.mrf.mxu3  ;;  %v766_v39 = vmax.f32 %v701_v35, 0.0 }
 0x12a   : > { %11954 = vmatmul.msk.f32.gmra.mxu0 %vm472_vm1, %v14264_v6  ;;  %v740_v54 = vadd.f32 %v13852_v40, %v739_v52  ;;  %v989_v7 = vadd.f32 %v14077_v11, %v988_v3  ;;  %v14321_v52 = vld [vmem:[#allocation2 + $0xaa] sm:$0xff]  ;;  %v14360_v3 = vld [vmem:[#allocation2 + $0xc2] sm:$0xff] }
 0x12b   : > { %v946_v53 = vpop.f32.mrf.mxu1  ;;  %799 = vst.msk [vmem:[#allocation2 + $0xe2] sm:$0xff] %vm472_vm1, %v766_v39  ;;  %v14394_v4 = vld [vmem:[#allocation2 + $0xda] sm:$0xff]  ;;  %v14444_v39 = vld [vmem:[#allocation2 + $0xf1] sm:$0xff] }
 0x12c   : > { %v779_v56 = vmax.f32 %v740_v54, 0.0  ;;  %v1026_v15 = vmax.f32 %v989_v7, 0.0  ;;  %11989 = vmatmul.msk.f32.gmra.mxu1 %vm472_vm1, %v14297_v14  ;;  %v14323_v54 = vld [vmem:[#allocation2 + $0xa9] sm:$0xff]  ;;  %v947_v55 = vadd.f32 %v14077_v11, %v946_v53  ;;  %v14398_v25 = vld [vmem:[#allocation2 + $0xd9] sm:$0xff] }
 0x12d   : > { %11923 = vmatmul.msk.f32.gmra.mxu3 %vm472_vm1, %v14299_v21  ;;  %v14438_v53 = vld [vmem:[#allocation2 + $0xf2] sm:$0xff] }
 0x12e   : > { %812 = vst.msk [vmem:[#allocation2 + $0x182] sm:$0xff] %vm472_vm1, %v779_v56 }
 0x12f   : > { %1059 = vst.msk [vmem:[#allocation3 + $0x18a] sm:$0xff] %vm472_vm1, %v1026_v15  ;;  %v14384_v15 = vpop.f32.mrf.mxu0 }
 0x131   : > { %11896 = vmatmul.msk.f32.gmra.mxu2 %vm472_vm1, %v13457_v8  ;;  %v1010_v8 = vmax.f32 %v941_v1, 0.0  ;;  %v742_v2 = vpop.f32.mrf.mxu2  ;;  %v991_v41 = vpop.f32.mrf.mxu3 }
 0x132   : > { %11955 = vmatmul.msk.f32.gmra.mxu0 %vm472_vm1, %v14279_v63  ;;  %v743_v5 = vadd.f32 %v13852_v40, %v742_v2  ;;  %v992_v45 = vadd.f32 %v14077_v11, %v991_v41  ;;  %v14342_v2 = vld [vmem:[#allocation2 + $0xb2] sm:$0xff]  ;;  %v14414_v41 = vld [vmem:[#allocation2 + $0xdb] sm:$0xff]  ;;  %v14436_v35 = vld [vmem:[#allocation2 + $0xe3] sm:$0xff] }
 0x133   : > { %1043 = vst.msk [vmem:[#allocation3 + $0xca] sm:$0xff] %vm472_vm1, %v1010_v8  ;;  %v14340_v8 = vld [vmem:[#allocation2 + $0xab] sm:$0xff]  ;;  %v14404_v42 = vpop.f32.mrf.mxu1  ;;  %v14424_v46 = vld [vmem:[#allocation2 + $0xe1] sm:$0xff] }
 0x134   : > { %v780_v13 = vmax.f32 %v743_v5, 0.0  ;;  %v1027_v51 = vmax.f32 %v992_v45, 0.0  ;;  %11990 = vmatmul.msk.f32.gmra.mxu1 %vm472_vm1, %v14319_v27  ;;  %v14362_v5 = vld [vmem:[#allocation2 + $0xc1] sm:$0xff] }
 0x135   : > { %11924 = vmatmul.msk.f32.gmra.mxu3 %vm472_vm1, %v14321_v52 }
 0x136   : > { %813 = vst.msk [vmem:[#allocation2 + $0x18a] sm:$0xff] %vm472_vm1, %v780_v13  ;;  %v14382_v13 = vld [vmem:[#allocation2 + $0xc9] sm:$0xff] }
 0x137   : > { %1060 = vst.msk [vmem:[#allocation3 + $0x19a] sm:$0xff] %vm472_vm1, %v1027_v51 }
 0x139   : > { %11897 = vmatmul.msk.f32.gmra.mxu2 %vm472_vm1, %v13489_v10  ;;  %v14308_v10 = vld [vmem:[#allocation2 + $0x99] sm:$0xff]  ;;  %v745_v43 = vpop.f32.mrf.mxu2  ;;  %v994_v57 = vpop.f32.mrf.mxu3 }
 0x13a   : > { %11956 = vmatmul.msk.f32.gmra.mxu0 %vm472_vm1, %v14308_v10  ;;  %v746_v44 = vadd.f32 %v13852_v40, %v745_v43  ;;  %v995_v62 = vadd.f32 %v14077_v11, %v994_v57  ;;  %v14358_v11 = vld [vmem:[#allocation2 + $0xb3] sm:$0xff]  ;;  %v14410_v43 = vpop.f32.mrf.mxu0 }
 0x13b   : > { %19448 = vst [vmem:[#allocation12_spill] sm:$0xff] %v14410_v43  ;;  %v14456_v57 = vld [vmem:[#allocation2 + $0xf3] sm:$0xff]  ;;  %v14633_v43 = vld [vmem:[#allocation2 + $0x16a] sm:$0xff] }
 0x13c   : > { %v781_v49 = vmax.f32 %v746_v44, 0.0  ;;  %v1028_v1 = vmax.f32 %v995_v62, 0.0  ;;  %11991 = vmatmul.msk.f32.gmra.mxu1 %vm472_vm1, %v14340_v8  ;;  %v14416_v44 = vld [vmem:[#allocation2 + $0xe2] sm:$0xff]  ;;  %v14464_v62 = vld [vmem:[#allocation2 + $0xf9] sm:$0xff]  ;;  %19499 = vst [vmem:[#allocation63_spill] sm:$0xff] %v14633_v43 }
 0x13d   : > { %11925 = vmatmul.msk.f32.gmra.mxu3 %vm472_vm1, %v14342_v2 }
 0x13e   : > { %814 = vst.msk [vmem:[#allocation2 + $0x19a] sm:$0xff] %vm472_vm1, %v781_v49 }
 0x13f   : > { %1061 = vst.msk [vmem:[#allocation3 + $0x1a2] sm:$0xff] %vm472_vm1, %v1028_v1 }
 0x141   : > { %11898 = vmatmul.msk.f32.gmra.mxu2 %vm472_vm1, %v13535_v16  ;;  %v1012_v16 = vmax.f32 %v947_v55, 0.0  ;;  %v748_v56 = vpop.f32.mrf.mxu2  ;;  %v14396_v23 = vpop.f32.mrf.mxu3 }
 0x142   : > { %11957 = vmatmul.msk.f32.gmra.mxu0 %vm472_vm1, %v14323_v54  ;;  %v749_v58 = vadd.f32 %v13852_v40, %v748_v56  ;;  %v14350_v40 = vld [vmem:[#allocation2 + $0xb1] sm:$0xff]  ;;  %v14434_v51 = vpop.f32.mrf.mxu0 }
 0x143   : > { %1045 = vst.msk [vmem:[#allocation3 + $0xe2] sm:$0xff] %vm472_vm1, %v1012_v16 }
 0x144   : > { %v782_v0 = vmax.f32 %v749_v58, 0.0  ;;  %11992 = vmatmul.msk.f32.gmra.mxu1 %vm472_vm1, %v14358_v11  ;;  %19451 = vst [vmem:[#allocation15_spill] sm:$0xff] %v14434_v51  ;;  %v14458_v58 = vld [vmem:[#allocation2 + $0xfa] sm:$0xff]  ;;  %v14498_v51 = vld [vmem:[#allocation2 + $0x112] sm:$0xff] }
 0x145   : > { %11926 = vmatmul.msk.f32.gmra.mxu3 %vm472_vm1, %v14360_v3  ;;  %19455 = vst [vmem:[#allocation19_spill] sm:$0xff] %v14458_v58 }
 0x146   : > { %815 = vst.msk [vmem:[#allocation2 + $0x1a2] sm:$0xff] %vm472_vm1, %v782_v0 }
 0x147   : > { %19463 = vst [vmem:[#allocation27_spill] sm:$0xff] %v14498_v51 }
 0x149   : > { %11899 = vmatmul.msk.f32.gmra.mxu2 %vm472_vm1, %v13565_v18  ;;  %v14354_v18 = vpop.f32.mrf.mxu2  ;;  %v14418_v45 = vpop.f32.mrf.mxu3 }
 0x14a   : > { %11958 = vmatmul.msk.f32.gmra.mxu0 %vm472_vm1, %v14350_v40  ;;  %19444 = vst [vmem:[#allocation8_spill] sm:$0xff] %v14354_v18 }
 0x14d   : > { %11927 = vmatmul.msk.f32.gmra.mxu3 %vm472_vm1, %v14376_v29 }
 0x151   : > { %11900 = vmatmul.msk.f32.gmra.mxu2 %vm472_vm1, %v13595_v20  ;;  %v14370_v7 = vpop.f32.mrf.mxu2  ;;  %v14374_v20 = vld [vmem:[#allocation2 + $0xc3] sm:$0xff] }
 0x152   : > { %11959 = vmatmul.msk.f32.gmra.mxu0 %vm472_vm1, %v14362_v5  ;;  %19445 = vst [vmem:[#allocation9_spill] sm:$0xff] %v14370_v7  ;;  %11993 = vmatmul.msk.f32.gmra.mxu1 %vm472_vm1, %v14374_v20 }
 0x155   : > { %11928 = vmatmul.msk.f32.gmra.mxu3 %vm472_vm1, %v14394_v4 }
 0x159   : > { %11901 = vmatmul.msk.f32.gmra.mxu2 %vm472_vm1, %v13619_v22  ;;  %v14388_v17 = vpop.f32.mrf.mxu2  ;;  %v14392_v22 = vld [vmem:[#allocation2 + $0xcb] sm:$0xff] }
 0x15a   : > { %11960 = vmatmul.msk.f32.gmra.mxu0 %vm472_vm1, %v14382_v13  ;;  %19446 = vst [vmem:[#allocation10_spill] sm:$0xff] %v14388_v17  ;;  %11994 = vmatmul.msk.f32.gmra.mxu1 %vm472_vm1, %v14392_v22  ;;  %v14478_v17 = vld [vmem:[#allocation2 + $0x10a] sm:$0xff] }
 0x15b   : > { %19458 = vst [vmem:[#allocation22_spill] sm:$0xff] %v14478_v17 }
 0x15d   : > { %11929 = vmatmul.msk.f32.gmra.mxu3 %vm472_vm1, %v14416_v44 }
 0x161   : > { %11902 = vmatmul.msk.f32.gmra.mxu2 %vm472_vm1, %v13649_v24  ;;  %v14408_v24 = vpop.f32.mrf.mxu2 }
 0x162   : > { %11961 = vmatmul.msk.f32.gmra.mxu0 %vm472_vm1, %v14398_v25  ;;  %19447 = vst [vmem:[#allocation11_spill] sm:$0xff] %v14408_v24  ;;  %11995 = vmatmul.msk.f32.gmra.mxu1 %vm472_vm1, %v14414_v41  ;;  %v14476_v24 = vld [vmem:[#allocation2 + $0xfb] sm:$0xff] }
 0x163   : > { %19457 = vst [vmem:[#allocation21_spill] sm:$0xff] %v14476_v24 }
 0x165   : > { %11930 = vmatmul.msk.f32.gmra.mxu3 %vm472_vm1, %v14438_v53 }
 0x169   : > { %11903 = vmatmul.msk.f32.gmra.mxu2 %vm472_vm1, %v13679_v26  ;;  %v14428_v49 = vpop.f32.mrf.mxu2  ;;  %v14432_v26 = vpop.f32.mrf.mxu1 }
 0x16a   : > { %11962 = vmatmul.msk.f32.gmra.mxu0 %vm472_vm1, %v14424_v46  ;;  %19449 = vst [vmem:[#allocation13_spill] sm:$0xff] %v14428_v49  ;;  %11996 = vmatmul.msk.f32.gmra.mxu1 %vm472_vm1, %v14436_v35 }
 0x16b   : > { %19450 = vst [vmem:[#allocation14_spill] sm:$0xff] %v14432_v26  ;;  %v1713_v56 = vpop.f32.mrf.mxu0  ;;  %v14614_v26 = vld [vmem:[#allocation2 + $0x15a] sm:$0xff] }
 0x16c   : > { %19493 = vst [vmem:[#allocation57_spill] sm:$0xff] %v14614_v26 }
 0x16d   : > { %11931 = vmatmul.msk.f32.gmra.mxu3 %vm472_vm1, %v14458_v58  ;;  %v14595_v58 = vld [vmem:[#allocation2 + $0x152] sm:$0xff] }
 0x16e   : > { %19488 = vst [vmem:[#allocation52_spill] sm:$0xff] %v14595_v58 }
 0x171   : > { %11904 = vmatmul.msk.f32.gmra.mxu2 %vm472_vm1, %v13697_v28  ;;  %v14448_v28 = vpop.f32.mrf.mxu3  ;;  %v14450_v55 = vpop.f32.mrf.mxu2 }
 0x172   : > { %11963 = vmatmul.msk.f32.gmra.mxu0 %vm472_vm1, %v14444_v39  ;;  %19452 = vst [vmem:[#allocation16_spill] sm:$0xff] %v14448_v28  ;;  %v14454_v16 = vpop.f32.mrf.mxu1  ;;  %11997 = vmatmul.msk.f32.gmra.mxu1 %vm472_vm1, %v14456_v57 }
 0x173   : > { %19453 = vst [vmem:[#allocation17_spill] sm:$0xff] %v14450_v55 }
 0x174   : > { %19454 = vst [vmem:[#allocation18_spill] sm:$0xff] %v14454_v16  ;;  %v14496_v16 = vld [vmem:[#allocation2 + $0x10b] sm:$0xff] }
 0x175   : > { %11932 = vmatmul.msk.f32.gmra.mxu3 %vm472_vm1, %v14478_v17  ;;  %19462 = vst [vmem:[#allocation26_spill] sm:$0xff] %v14496_v16 }
 0x179   : > { %11905 = vmatmul.msk.f32.gmra.mxu2 %vm472_vm1, %v13711_v30  ;;  %v14468_v0 = vpop.f32.mrf.mxu2  ;;  %v1501_v30 = vpop.f32.mrf.mxu3 }
 0x17a   : > { %11964 = vmatmul.msk.f32.gmra.mxu0 %vm472_vm1, %v14464_v62  ;;  %19456 = vst [vmem:[#allocation20_spill] sm:$0xff] %v14468_v0  ;;  %v14472_v1 = vadd.f32 %v1713_v56, %v1501_v30  ;;  %v14474_v55 = vpop.f32.mrf.mxu1  ;;  %11998 = vmatmul.msk.f32.gmra.mxu1 %vm472_vm1, %v14476_v24  ;;  %v14484_v0 = vld [vmem:[#allocation2 + $0x109] sm:$0xff] }
 0x17b   : > { %v14518_v24 = vld [vmem:[#allocation2 + $0x122] sm:$0xff] }
 0x17c   : > { %19468 = vst [vmem:[#allocation32_spill] sm:$0xff] %v14518_v24 }
 0x17d   : > { %11933 = vmatmul.msk.f32.gmra.mxu3 %vm472_vm1, %v14498_v51 }
 0x17f   : > { %v1716_v49 = vpop.f32.mrf.mxu0 }
 0x181   : > { %11906 = vmatmul.msk.f32.gmra.mxu2 %vm472_vm1, %v13721_v32  ;;  %v14488_v32 = vpop.f32.mrf.mxu2  ;;  %v1504_v56 = vpop.f32.mrf.mxu3 }
 0x182   : > { %11965 = vmatmul.msk.f32.gmra.mxu0 %vm472_vm1, %v14484_v0  ;;  %19459 = vst [vmem:[#allocation23_spill] sm:$0xff] %v14488_v32  ;;  %v14492_v30 = vadd.f32 %v1716_v49, %v1504_v56  ;;  %v14494_v7 = vpop.f32.mrf.mxu1  ;;  %11999 = vmatmul.msk.f32.gmra.mxu1 %vm472_vm1, %v14496_v16  ;;  %v14504_v32 = vld [vmem:[#allocation2 + $0x111] sm:$0xff] }
 0x183   : > { %19461 = vst [vmem:[#allocation25_spill] sm:$0xff] %v14494_v7  ;;  %v14516_v16 = vld [vmem:[#allocation2 + $0x113] sm:$0xff] }
 0x184   : > { %19460 = vst [vmem:[#allocation24_spill] sm:$0xff] %v14492_v30  ;;  %v14557_v7 = vld [vmem:[#allocation2 + $0x13a] sm:$0xff]  ;;  %v14576_v30 = vld [vmem:[#allocation2 + $0x142] sm:$0xff] }
 0x185   : > { %19467 = vst [vmem:[#allocation31_spill] sm:$0xff] %v14516_v16  ;;  %11934 = vmatmul.msk.f32.gmra.mxu3 %vm472_vm1, %v14518_v24 }
 0x186   : > { %19478 = vst [vmem:[#allocation42_spill] sm:$0xff] %v14557_v7 }
 0x187   : > { %v1719_v18 = vpop.f32.mrf.mxu0  ;;  %19483 = vst [vmem:[#allocation47_spill] sm:$0xff] %v14576_v30 }
 0x189   : > { %11907 = vmatmul.msk.f32.gmra.mxu2 %vm472_vm1, %v13731_v34  ;;  %v14508_v34 = vpop.f32.mrf.mxu2  ;;  %v1507_v49 = vpop.f32.mrf.mxu3 }
 0x18a   : > { %11966 = vmatmul.msk.f32.gmra.mxu0 %vm472_vm1, %v14504_v32  ;;  %19464 = vst [vmem:[#allocation28_spill] sm:$0xff] %v14508_v34  ;;  %v14512_v56 = vadd.f32 %v1719_v18, %v1507_v49  ;;  %v14514_v17 = vpop.f32.mrf.mxu1  ;;  %12000 = vmatmul.msk.f32.gmra.mxu1 %vm472_vm1, %v14516_v16  ;;  %v14524_v34 = vld [vmem:[#allocation2 + $0x121] sm:$0xff] }
 0x18b   : > { %19466 = vst [vmem:[#allocation30_spill] sm:$0xff] %v14514_v17  ;;  %v14536_v16 = vld [vmem:[#allocation2 + $0x123] sm:$0xff] }
 0x18c   : > { %19465 = vst [vmem:[#allocation29_spill] sm:$0xff] %v14512_v56  ;;  %v14538_v56 = vld [vmem:[#allocation2 + $0x12a] sm:$0xff] }
 0x18d   : > { %19472 = vst [vmem:[#allocation36_spill] sm:$0xff] %v14536_v16  ;;  %11935 = vmatmul.msk.f32.gmra.mxu3 %vm472_vm1, %v14538_v56 }
 0x18e   : > { %19473 = vst [vmem:[#allocation37_spill] sm:$0xff] %v14538_v56 }
 0x18f   : > { %v1722_v28 = vpop.f32.mrf.mxu0 }
 0x191   : > { %11908 = vmatmul.msk.f32.gmra.mxu2 %vm472_vm1, %v13745_v36  ;;  %v14528_v36 = vpop.f32.mrf.mxu2  ;;  %v1510_v18 = vpop.f32.mrf.mxu3 }
 0x192   : > { %11967 = vmatmul.msk.f32.gmra.mxu0 %vm472_vm1, %v14524_v34  ;;  %19469 = vst [vmem:[#allocation33_spill] sm:$0xff] %v14528_v36  ;;  %v14532_v49 = vadd.f32 %v1722_v28, %v1510_v18  ;;  %v14534_v51 = vpop.f32.mrf.mxu1  ;;  %12001 = vmatmul.msk.f32.gmra.mxu1 %vm472_vm1, %v14536_v16  ;;  %v14544_v36 = vld [vmem:[#allocation2 + $0x129] sm:$0xff]  ;;  %v2078_v28 = vld [vmem:[#allocation2 + $0x31] sm:$0xff] }
 0x193   : > { %19471 = vst [vmem:[#allocation35_spill] sm:$0xff] %v14534_v51  ;;  %v14555_v16 = vld [vmem:[#allocation2 + $0x12b] sm:$0xff] }
 0x194   : > { %19470 = vst [vmem:[#allocation34_spill] sm:$0xff] %v14532_v49 }
 0x195   : > { %19477 = vst [vmem:[#allocation41_spill] sm:$0xff] %v14555_v16  ;;  %11936 = vmatmul.msk.f32.gmra.mxu3 %vm472_vm1, %v14557_v7 }
 0x197   : > { %v1725_v17 = vpop.f32.mrf.mxu0 }
 0x199   : > { %11909 = vmatmul.msk.f32.gmra.mxu2 %vm472_vm1, %v13763_v38  ;;  %v14548_v38 = vpop.f32.mrf.mxu2  ;;  %v1513_v18 = vpop.f32.mrf.mxu3 }
 0x19a   : > { %11968 = vmatmul.msk.f32.gmra.mxu0 %vm472_vm1, %v14544_v36  ;;  %19474 = vst [vmem:[#allocation38_spill] sm:$0xff] %v14548_v38  ;;  %v14551_v24 = vadd.f32 %v1725_v17, %v1513_v18  ;;  %v14553_v51 = vpop.f32.mrf.mxu1  ;;  %12002 = vmatmul.msk.f32.gmra.mxu1 %vm472_vm1, %v14555_v16  ;;  %v14563_v38 = vld [vmem:[#allocation2 + $0x139] sm:$0xff] }
 0x19b   : > { %19476 = vst [vmem:[#allocation40_spill] sm:$0xff] %v14553_v51  ;;  %v14574_v16 = vld [vmem:[#allocation2 + $0x13b] sm:$0xff] }
 0x19c   : > { %19475 = vst [vmem:[#allocation39_spill] sm:$0xff] %v14551_v24 }
 0x19d   : > { %19482 = vst [vmem:[#allocation46_spill] sm:$0xff] %v14574_v16  ;;  %11937 = vmatmul.msk.f32.gmra.mxu3 %vm472_vm1, %v14576_v30 }
 0x19f   : > { %v1728_v49 = vpop.f32.mrf.mxu0 }
 0x1a1   : > { %12013 = vmatmul.msk.f32.vlgmr.msra.gmra.mxu2 %vm472_vm1, %v2078_v28  ;;  %v14567_v17 = vpop.f32.mrf.mxu2  ;;  %v2079_v28 = vld [vmem:[#allocation2 + $0x39] sm:$0xff]  ;;  %v1516_v18 = vpop.f32.mrf.mxu3 }
 0x1a2   : > { %11969 = vmatmul.msk.f32.gmra.mxu0 %vm472_vm1, %v14563_v38  ;;  %19479 = vst [vmem:[#allocation43_spill] sm:$0xff] %v14567_v17  ;;  %v14570_v56 = vadd.f32 %v1728_v49, %v1516_v18  ;;  %v14572_v51 = vpop.f32.mrf.mxu1  ;;  %12003 = vmatmul.msk.f32.gmra.mxu1 %vm472_vm1, %v14574_v16  ;;  %v14582_v17 = vld [vmem:[#allocation2 + $0x141] sm:$0xff] }
 0x1a3   : > { %19481 = vst [vmem:[#allocation45_spill] sm:$0xff] %v14572_v51  ;;  %v14593_v16 = vld [vmem:[#allocation2 + $0x143] sm:$0xff] }
 0x1a4   : > { %19480 = vst [vmem:[#allocation44_spill] sm:$0xff] %v14570_v56 }
 0x1a5   : > { %19487 = vst [vmem:[#allocation51_spill] sm:$0xff] %v14593_v16  ;;  %11938 = vmatmul.msk.f32.gmra.mxu3 %vm472_vm1, %v14595_v58 }
 0x1a7   : > { %v1731_v24 = vpop.f32.mrf.mxu0 }
 0x1a9   : > { %12014 = vmatmul.msk.f32.gmra.mxu2 %vm472_vm1, %v2079_v28  ;;  %v14586_v49 = vpop.f32.mrf.mxu2  ;;  %v2080_v28 = vld [vmem:[#allocation2 + $0x49] sm:$0xff]  ;;  %v1519_v18 = vpop.f32.mrf.mxu3 }
 0x1aa   : > { %11970 = vmatmul.msk.f32.gmra.mxu0 %vm472_vm1, %v14582_v17  ;;  %19484 = vst [vmem:[#allocation48_spill] sm:$0xff] %v14586_v49  ;;  %v14589_v7 = vadd.f32 %v1731_v24, %v1519_v18  ;;  %v14591_v51 = vpop.f32.mrf.mxu1  ;;  %12004 = vmatmul.msk.f32.gmra.mxu1 %vm472_vm1, %v14593_v16  ;;  %v14601_v49 = vld [vmem:[#allocation2 + $0x151] sm:$0xff] }
 0x1ab   : > { %19486 = vst [vmem:[#allocation50_spill] sm:$0xff] %v14591_v51  ;;  %v14612_v16 = vld [vmem:[#allocation2 + $0x153] sm:$0xff] }
 0x1ac   : > { %19485 = vst [vmem:[#allocation49_spill] sm:$0xff] %v14589_v7 }
 0x1ad   : > { %19492 = vst [vmem:[#allocation56_spill] sm:$0xff] %v14612_v16  ;;  %11939 = vmatmul.msk.f32.gmra.mxu3 %vm472_vm1, %v14614_v26 }
 0x1af   : > { %v1734_v56 = vpop.f32.mrf.mxu0 }
 0x1b1   : > { %12015 = vmatmul.msk.f32.gmra.mxu2 %vm472_vm1, %v2080_v28  ;;  %v14605_v24 = vpop.f32.mrf.mxu2  ;;  %v2081_v28 = vld [vmem:[#allocation2 + $0x51] sm:$0xff]  ;;  %v1522_v18 = vpop.f32.mrf.mxu3 }
 0x1b2   : > { %11971 = vmatmul.msk.f32.gmra.mxu0 %vm472_vm1, %v14601_v49  ;;  %19489 = vst [vmem:[#allocation53_spill] sm:$0xff] %v14605_v24  ;;  %v14608_v30 = vadd.f32 %v1734_v56, %v1522_v18  ;;  %v14610_v51 = vpop.f32.mrf.mxu1  ;;  %12005 = vmatmul.msk.f32.gmra.mxu1 %vm472_vm1, %v14612_v16  ;;  %v14620_v24 = vld [vmem:[#allocation2 + $0x159] sm:$0xff] }
 0x1b3   : > { %19491 = vst [vmem:[#allocation55_spill] sm:$0xff] %v14610_v51  ;;  %v14631_v16 = vld [vmem:[#allocation2 + $0x15b] sm:$0xff] }
 0x1b4   : > { %19490 = vst [vmem:[#allocation54_spill] sm:$0xff] %v14608_v30 }
 0x1b5   : > { %19494 = vst [vmem:[#allocation58_spill] sm:$0xff] %v14620_v24  ;;  %11940 = vmatmul.msk.f32.gmra.mxu3 %vm472_vm1, %v14633_v43 }
 0x1b6   : > { %19498 = vst [vmem:[#allocation62_spill] sm:$0xff] %v14631_v16 }
 0x1b7   : > { %v1737_v7 = vpop.f32.mrf.mxu0 }
 0x1b9   : > { %12016 = vmatmul.msk.f32.gmra.mxu2 %vm472_vm1, %v2081_v28  ;;  %v14624_v56 = vpop.f32.mrf.mxu2  ;;  %v2082_v28 = vld [vmem:[#allocation2 + $0x61] sm:$0xff]  ;;  %v1525_v18 = vpop.f32.mrf.mxu3 }
 0x1ba   : > { %11972 = vmatmul.msk.f32.gmra.mxu0 %vm472_vm1, %v14620_v24  ;;  %19495 = vst [vmem:[#allocation59_spill] sm:$0xff] %v14624_v56  ;;  %v14627_v58 = vadd.f32 %v1737_v7, %v1525_v18  ;;  %v14629_v51 = vpop.f32.mrf.mxu1  ;;  %12006 = vmatmul.msk.f32.gmra.mxu1 %vm472_vm1, %v14631_v16  ;;  %v14639_v56 = vld [vmem:[#allocation2 + $0x169] sm:$0xff]  ;;  %v12147_v16 = vld [vmem:[%s19190_s5 + $0x1c] sm:$0xf] }
 0x1bb   : > { %19497 = vst [vmem:[#allocation61_spill] sm:$0xff] %v14629_v51  ;;  %12148 = vmatpush.msk.msrb.mxu2 %vm634_vm0, %v12147_v16  ;;  %v14655_v51 = vld [vmem:[#allocation2 + $0x16b] sm:$0xff] }
 0x1bc   : > { %19496 = vst [vmem:[#allocation60_spill] sm:$0xff] %v14627_v58  ;;  %v14657_v58 = vld [vmem:[#allocation2 + $0x172] sm:$0xff]  ;;  %v14709_v24 = vld [vmem:[#allocation2 + $0x18a] sm:$0xff] }
 0x1bd   : > { %19500 = vst [vmem:[#allocation64_spill] sm:$0xff] %v14639_v56  ;;  %11941 = vmatmul.msk.f32.gmra.mxu3 %vm472_vm1, %v14657_v58 }
 0x1be   : > { %19504 = vst [vmem:[#allocation68_spill] sm:$0xff] %v14655_v51 }
 0x1bf   : > { %v1740_v30 = vpop.f32.mrf.mxu0  ;;  %19505 = vst [vmem:[#allocation69_spill] sm:$0xff] %v14657_v58 }
 0x1c0   : > { %19516 = vst [vmem:[#allocation80_spill] sm:$0xff] %v14709_v24 }
 0x1c1   : > { %12017 = vmatmul.msk.f32.gmra.mxu2 %vm472_vm1, %v2082_v28  ;;  %v14643_v7 = vpop.f32.mrf.mxu2  ;;  %v1528_v28 = vpop.f32.mrf.mxu3 }
 0x1c2   : > { %11973 = vmatmul.msk.f32.gmra.mxu0 %vm472_vm1, %v14639_v56  ;;  %19501 = vst [vmem:[#allocation65_spill] sm:$0xff] %v14643_v7  ;;  %v14647_v18 = vadd.f32 %v1740_v30, %v1528_v28  ;;  %v14649_v26 = vpop.f32.mrf.mxu1  ;;  %12007 = vmatmul.msk.f32.gmra.mxu1 %vm472_vm1, %v14655_v51  ;;  %v14663_v30 = vld [vmem:[#allocation2 + $0x171] sm:$0xff]  ;;  %v12181_v28 = vld [vmem:[%s19190_s5 + $0x20] sm:$0xf] }
 0x1c3   : > { %19503 = vst [vmem:[#allocation67_spill] sm:$0xff] %v14649_v26  ;;  %12182 = vmatpush.msk.msrb.mxu3 %vm634_vm0, %v12181_v28  ;;  %v14681_v56 = vld [vmem:[#allocation2 + $0x182] sm:$0xff] }
 0x1c4   : > { %19502 = vst [vmem:[#allocation66_spill] sm:$0xff] %v14647_v18  ;;  %v14679_v18 = vld [vmem:[#allocation2 + $0x173] sm:$0xff]  ;;  %v14687_v28 = vld [vmem:[#allocation2 + $0x181] sm:$0xff] }
 0x1c5   : > { %19506 = vst [vmem:[#allocation70_spill] sm:$0xff] %v14663_v30  ;;  %11942 = vmatmul.msk.f32.gmra.mxu3 %vm472_vm1, %v14681_v56 }
 0x1c6   : > { %19510 = vst [vmem:[#allocation74_spill] sm:$0xff] %v14679_v18 }
 0x1c7   : > { %v1743_v43 = vpop.f32.mrf.mxu0  ;;  %19511 = vst [vmem:[#allocation75_spill] sm:$0xff] %v14681_v56 }
 0x1c9   : > { %12018 = vmatmul.msk.f32.gmra.mxu2 %vm472_vm1, %v14220_v37  ;;  %v14671_v16 = vpop.f32.mrf.mxu2  ;;  %v1531_v7 = vpop.f32.mrf.mxu3 }
 0x1ca   : > { %11974 = vmatmul.msk.f32.gmra.mxu0 %vm472_vm1, %v14663_v30  ;;  %19507 = vst [vmem:[#allocation71_spill] sm:$0xff] %v14671_v16  ;;  %v14675_v51 = vadd.f32 %v1743_v43, %v1531_v7  ;;  %v14677_v58 = vpop.f32.mrf.mxu1  ;;  %12008 = vmatmul.msk.f32.gmra.mxu1 %vm472_vm1, %v14679_v18  ;;  %v12215_v43 = vld [vmem:[%s19194_s9 + $0x4] sm:$0xf]  ;;  %v3879_v7 = vld [vmem:[%s19194_s9] sm:$0xf] }
 0x1cb   : > { %19509 = vst [vmem:[#allocation73_spill] sm:$0xff] %v14677_v58  ;;  %12249 = vmatpush.msk.msrb.mxu1 %vm634_vm0, %v3879_v7  ;;  %12216 = vmatpush.msk.msrb.mxu0 %vm634_vm0, %v12215_v43  ;;  %v14707_v30 = vld [vmem:[#allocation2 + $0x183] sm:$0xff] }
 0x1cc   : > { %19508 = vst [vmem:[#allocation72_spill] sm:$0xff] %v14675_v51  ;;  %v14715_v43 = vld [vmem:[#allocation2 + $0x189] sm:$0xff] }
 0x1cd   : > { %19515 = vst [vmem:[#allocation79_spill] sm:$0xff] %v14707_v30  ;;  %11943 = vmatmul.msk.f32.gmra.mxu3 %vm472_vm1, %v14709_v24  ;;  %v2634_v24 = vld [vmem:[#allocation2 + $0x33] sm:$0xff] }
 0x1ce   : > { %19517 = vst [vmem:[#allocation81_spill] sm:$0xff] %v14715_v43 }
 0x1cf   : > { %v1746_v26 = vpop.f32.mrf.mxu0 }
 0x1d1   : > { %12019 = vmatmul.msk.f32.gmra.mxu2 %vm472_vm1, %v14235_v19  ;;  %v14697_v16 = vpop.f32.mrf.mxu2  ;;  %v1534_v56 = vpop.f32.mrf.mxu3 }
 0x1d2   : > { %11975 = vmatmul.msk.f32.gmra.mxu0 %vm472_vm1, %v14687_v28  ;;  %19512 = vst [vmem:[#allocation76_spill] sm:$0xff] %v14697_v16  ;;  %v14703_v18 = vadd.f32 %v1746_v26, %v1534_v56  ;;  %v14705_v58 = vpop.f32.mrf.mxu1  ;;  %12009 = vmatmul.msk.f32.gmra.mxu1 %vm472_vm1, %v14707_v30  ;;  %v14727_v30 = vld [vmem:[#allocation2 + $0x18b] sm:$0xff] }
 0x1d3   : > { %19514 = vst [vmem:[#allocation78_spill] sm:$0xff] %v14705_v58 }
 0x1d4   : > { %19513 = vst [vmem:[#allocation77_spill] sm:$0xff] %v14703_v18  ;;  %v2356_v18 = vld [vmem:[#allocation2 + $0x32] sm:$0xff] }
 0x1d5   : > { %19521 = vst [vmem:[#allocation85_spill] sm:$0xff] %v14727_v30  ;;  %12047 = vmatmul.msk.f32.vlgmr.msra.gmra.mxu3 %vm472_vm1, %v2356_v18  ;;  %v2635_v18 = vld [vmem:[#allocation2 + $0x3b] sm:$0xff] }
 0x1d7   : > { %v1749_v51 = vpop.f32.mrf.mxu0 }
 0x1d9   : > { %12020 = vmatmul.msk.f32.gmra.mxu2 %vm472_vm1, %v14264_v6  ;;  %v14719_v26 = vpop.f32.mrf.mxu2  ;;  %v1537_v56 = vpop.f32.mrf.mxu3 }
 0x1da   : > { %11976 = vmatmul.msk.f32.gmra.mxu0 %vm472_vm1, %v14715_v43  ;;  %19518 = vst [vmem:[#allocation82_spill] sm:$0xff] %v14719_v26  ;;  %v14723_v7 = vadd.f32 %v1749_v51, %v1537_v56  ;;  %v14725_v16 = vpop.f32.mrf.mxu1  ;;  %12010 = vmatmul.msk.f32.gmra.mxu1 %vm472_vm1, %v14727_v30  ;;  %v2357_v43 = vld [vmem:[#allocation2 + $0x3a] sm:$0xff] }
 0x1db   : > { %19520 = vst [vmem:[#allocation84_spill] sm:$0xff] %v14725_v16 }
 0x1dc   : > { %19519 = vst [vmem:[#allocation83_spill] sm:$0xff] %v14723_v7 }
 0x1dd   : > { %12048 = vmatmul.msk.f32.gmra.mxu3 %vm472_vm1, %v2357_v43 }
 0x1df   : > { %v1752_v58 = vpop.f32.mrf.mxu0 }
 0x1e1   : > { %12021 = vmatmul.msk.f32.gmra.mxu2 %vm472_vm1, %v14279_v63  ;;  %v14733_v26 = vpop.f32.mrf.mxu2  ;;  %v1540_v51 = vpop.f32.mrf.mxu3 }
 0x1e2   : > { %12081 = vmatmul.msk.f32.vlgmr.msra.gmra.mxu0 %vm472_vm1, %v2634_v24  ;;  %19522 = vst [vmem:[#allocation86_spill] sm:$0xff] %v14733_v26  ;;  %v14737_v56 = vadd.f32 %v1752_v58, %v1540_v51  ;;  %v14739_v16 = vpop.f32.mrf.mxu1  ;;  %12115 = vmatmul.msk.f32.vlgmr.msra.gmra.mxu1 %vm472_vm1, %v14153_v31  ;;  %v14759_v31 = vld [vmem:[#allocation2 + $0x4b] sm:$0xff] }
 0x1e3   : > { %19523 = vst [vmem:[#allocation87_spill] sm:$0xff] %v14739_v16  ;;  %v14753_v16 = vld [vmem:[#allocation2 + $0x4a] sm:$0xff] }
 0x1e4   : > { %19525 = vst [vmem:[#allocation89_spill] sm:$0xff] %v14759_v31 }
 0x1e5   : > { %12049 = vmatmul.msk.f32.gmra.mxu3 %vm472_vm1, %v14753_v16 }
 0x1e7   : > { %v1755_v7 = vpop.f32.mrf.mxu0 }
 0x1e9   : > { %12022 = vmatmul.msk.f32.gmra.mxu2 %vm472_vm1, %v14308_v10  ;;  %v14745_v24 = vpop.f32.mrf.mxu2  ;;  %v1543_v26 = vpop.f32.mrf.mxu3 }
 0x1ea   : > { %12082 = vmatmul.msk.f32.gmra.mxu0 %vm472_vm1, %v2635_v18  ;;  %19524 = vst [vmem:[#allocation88_spill] sm:$0xff] %v14745_v24  ;;  %v14749_v58 = vadd.f32 %v1755_v7, %v1543_v26  ;;  %v14751_v51 = vpop.f32.mrf.mxu1  ;;  %12116 = vmatmul.msk.f32.gmra.mxu1 %vm472_vm1, %v14181_v12  ;;  %v14771_v12 = vld [vmem:[#allocation2 + $0x52] sm:$0xff] }
 0x1ed   : > { %12050 = vmatmul.msk.f32.gmra.mxu3 %vm472_vm1, %v14771_v12 }
 0x1ef   : > { %v1758_v30 = vpop.f32.mrf.mxu0 }
 0x1f1   : > { %12023 = vmatmul.msk.f32.gmra.mxu2 %vm472_vm1, %v14323_v54  ;;  %v14763_v43 = vpop.f32.mrf.mxu2  ;;  %v1546_v26 = vpop.f32.mrf.mxu3 }
 0x1f2   : > { %12083 = vmatmul.msk.f32.gmra.mxu0 %vm472_vm1, %v14759_v31  ;;  %19526 = vst [vmem:[#allocation90_spill] sm:$0xff] %v14763_v43  ;;  %v14767_v7 = vadd.f32 %v1758_v30, %v1546_v26  ;;  %v14769_v18 = vpop.f32.mrf.mxu1  ;;  %12117 = vmatmul.msk.f32.gmra.mxu1 %vm472_vm1, %v14196_v50  ;;  %v14777_v31 = vld [vmem:[#allocation2 + $0x53] sm:$0xff]  ;;  %v14789_v50 = vld [vmem:[#allocation2 + $0x62] sm:$0xff] }
 0x1f3   : > { %19528 = vst [vmem:[#allocation92_spill] sm:$0xff] %v14769_v18 }
 0x1f4   : > { %19527 = vst [vmem:[#allocation91_spill] sm:$0xff] %v14767_v7 }
 0x1f5   : > { %19529 = vst [vmem:[#allocation93_spill] sm:$0xff] %v14777_v31  ;;  %12051 = vmatmul.msk.f32.gmra.mxu3 %vm472_vm1, %v14789_v50 }
 0x1f7   : > { %v1761_v24 = vpop.f32.mrf.mxu0 }
 0x1f9   : > { %12024 = vmatmul.msk.f32.gmra.mxu2 %vm472_vm1, %v14350_v40  ;;  %v14781_v43 = vpop.f32.mrf.mxu2  ;;  %v1549_v30 = vpop.f32.mrf.mxu3 }
 0x1fa   : > { %12084 = vmatmul.msk.f32.gmra.mxu0 %vm472_vm1, %v14777_v31  ;;  %19530 = vst [vmem:[#allocation94_spill] sm:$0xff] %v14781_v43  ;;  %v14785_v26 = vadd.f32 %v1761_v24, %v1549_v30  ;;  %v14787_v18 = vpop.f32.mrf.mxu1  ;;  %12118 = vmatmul.msk.f32.gmra.mxu1 %vm472_vm1, %v14220_v37  ;;  %v14795_v31 = vld [vmem:[#allocation2 + $0x63] sm:$0xff] }
 0x1fb   : > { %19532 = vst [vmem:[#allocation96_spill] sm:$0xff] %v14787_v18 }
 0x1fc   : > { %19531 = vst [vmem:[#allocation95_spill] sm:$0xff] %v14785_v26 }
 0x1fd   : > { %19533 = vst [vmem:[#allocation97_spill] sm:$0xff] %v14795_v31  ;;  %12052 = vmatmul.msk.f32.gmra.mxu3 %vm472_vm1, %v14212_v60 }
 0x1ff   : > { %v1764_v7 = vpop.f32.mrf.mxu0 }
 0x201   : > { %12025 = vmatmul.msk.f32.gmra.mxu2 %vm472_vm1, %v14362_v5  ;;  %v14799_v43 = vpop.f32.mrf.mxu2  ;;  %v1552_v24 = vpop.f32.mrf.mxu3 }
 0x202   : > { %12085 = vmatmul.msk.f32.gmra.mxu0 %vm472_vm1, %v14795_v31  ;;  %19534 = vst [vmem:[#allocation98_spill] sm:$0xff] %v14799_v43  ;;  %v14803_v30 = vadd.f32 %v1764_v7, %v1552_v24  ;;  %v14805_v18 = vpop.f32.mrf.mxu1  ;;  %12119 = vmatmul.msk.f32.gmra.mxu1 %vm472_vm1, %v14235_v19 }
 0x205   : > { %12053 = vmatmul.msk.f32.gmra.mxu3 %vm472_vm1, %v14233_v33 }
 0x207   : > { %v1767_v26 = vpop.f32.mrf.mxu0 }
 0x209   : > { %12026 = vmatmul.msk.f32.gmra.mxu2 %vm472_vm1, %v14382_v13  ;;  %v14813_v37 = vpop.f32.mrf.mxu2  ;;  %v1555_v43 = vpop.f32.mrf.mxu3 }
 0x20a   : > { %12086 = vmatmul.msk.f32.gmra.mxu0 %vm472_vm1, %v14231_v9  ;;  %v14817_v7 = vadd.f32 %v1767_v26, %v1555_v43  ;;  %v14819_v24 = vpop.f32.mrf.mxu1  ;;  %12120 = vmatmul.msk.f32.gmra.mxu1 %vm472_vm1, %v14264_v6 }
 0x20d   : > { %12054 = vmatmul.msk.f32.gmra.mxu3 %vm472_vm1, %v14255_v48 }
 0x20f   : > { %v1770_v31 = vpop.f32.mrf.mxu0 }
 0x211   : > { %12027 = vmatmul.msk.f32.gmra.mxu2 %vm472_vm1, %v14398_v25  ;;  %v14827_v60 = vpop.f32.mrf.mxu2  ;;  %v1558_v9 = vpop.f32.mrf.mxu3 }
 0x212   : > { %12087 = vmatmul.msk.f32.gmra.mxu0 %vm472_vm1, %v14253_v47  ;;  %19535 = vst [vmem:[#allocation99_spill] sm:$0xff] %v14827_v60  ;;  %v14831_v19 = vadd.f32 %v1770_v31, %v1558_v9  ;;  %v14833_v43 = vpop.f32.mrf.mxu1  ;;  %12121 = vmatmul.msk.f32.gmra.mxu1 %vm472_vm1, %v14279_v63 }
 0x215   : > { %12055 = vmatmul.msk.f32.gmra.mxu3 %vm472_vm1, %v14277_v61 }
 0x217   : > { %v1773_v26 = vpop.f32.mrf.mxu0 }
 0x219   : > { %12028 = vmatmul.msk.f32.gmra.mxu2 %vm472_vm1, %v14424_v46  ;;  %v14841_v33 = vpop.f32.mrf.mxu2  ;;  %v1561_v47 = vpop.f32.mrf.mxu3 }
 0x21a   : > { %12088 = vmatmul.msk.f32.gmra.mxu0 %vm472_vm1, %v14275_v59  ;;  %19536 = vst [vmem:[#allocation100_spill] sm:$0xff] %v14841_v33  ;;  %v14845_v6 = vadd.f32 %v1773_v26, %v1561_v47  ;;  %v14847_v31 = vpop.f32.mrf.mxu1  ;;  %12122 = vmatmul.msk.f32.gmra.mxu1 %vm472_vm1, %v14308_v10 }
 0x21d   : > { %12056 = vmatmul.msk.f32.gmra.mxu3 %vm472_vm1, %v14299_v21 }
 0x21f   : > { %v1776_v9 = vpop.f32.mrf.mxu0 }
 0x221   : > { %12029 = vmatmul.msk.f32.gmra.mxu2 %vm472_vm1, %v14444_v39  ;;  %v14855_v48 = vpop.f32.mrf.mxu2  ;;  %v1564_v59 = vpop.f32.mrf.mxu3 }
 0x222   : > { %12089 = vmatmul.msk.f32.gmra.mxu0 %vm472_vm1, %v14297_v14  ;;  %19537 = vst [vmem:[#allocation101_spill] sm:$0xff] %v14855_v48  ;;  %v14859_v63 = vadd.f32 %v1776_v9, %v1564_v59  ;;  %v14861_v26 = vpop.f32.mrf.mxu1  ;;  %12123 = vmatmul.msk.f32.gmra.mxu1 %vm472_vm1, %v14323_v54  ;;  %v19552_v48 = vld [vmem:[#allocation18_spill] sm:$0xff] }
 0x225   : > { %12057 = vmatmul.msk.f32.gmra.mxu3 %vm472_vm1, %v14321_v52 }
 0x227   : > { %v1779_v47 = vpop.f32.mrf.mxu0 }
 0x229   : > { %12030 = vmatmul.msk.f32.gmra.mxu2 %vm472_vm1, %v14464_v62  ;;  %v14869_v61 = vpop.f32.mrf.mxu2  ;;  %v1567_v14 = vpop.f32.mrf.mxu3 }
 0x22a   : > { %12090 = vmatmul.msk.f32.gmra.mxu0 %vm472_vm1, %v14319_v27  ;;  %19538 = vst [vmem:[#allocation102_spill] sm:$0xff] %v14869_v61  ;;  %v14873_v10 = vadd.f32 %v1779_v47, %v1567_v14  ;;  %v14875_v9 = vpop.f32.mrf.mxu1  ;;  %12124 = vmatmul.msk.f32.gmra.mxu1 %vm472_vm1, %v14350_v40 }
 0x22d   : > { %12058 = vmatmul.msk.f32.gmra.mxu3 %vm472_vm1, %v14342_v2 }
 0x22f   : > { %v1782_v59 = vpop.f32.mrf.mxu0 }
 0x231   : > { %12031 = vmatmul.msk.f32.gmra.mxu2 %vm472_vm1, %v14484_v0  ;;  %v14883_v21 = vpop.f32.mrf.mxu2  ;;  %v1570_v27 = vpop.f32.mrf.mxu3 }
 0x232   : > { %12091 = vmatmul.msk.f32.gmra.mxu0 %vm472_vm1, %v14340_v8  ;;  %19539 = vst [vmem:[#allocation103_spill] sm:$0xff] %v14883_v21  ;;  %v14887_v54 = vadd.f32 %v1782_v59, %v1570_v27  ;;  %v14889_v47 = vpop.f32.mrf.mxu1  ;;  %12125 = vmatmul.msk.f32.gmra.mxu1 %vm472_vm1, %v14362_v5 }
 0x235   : > { %12059 = vmatmul.msk.f32.gmra.mxu3 %vm472_vm1, %v14360_v3 }
 0x237   : > { %v1785_v14 = vpop.f32.mrf.mxu0 }
 0x239   : > { %12032 = vmatmul.msk.f32.gmra.mxu2 %vm472_vm1, %v14504_v32  ;;  %v14897_v52 = vpop.f32.mrf.mxu2  ;;  %v1573_v8 = vpop.f32.mrf.mxu3 }
 0x23a   : > { %12092 = vmatmul.msk.f32.gmra.mxu0 %vm472_vm1, %v14358_v11  ;;  %19540 = vst [vmem:[#allocation104_spill] sm:$0xff] %v14897_v52  ;;  %v14901_v40 = vadd.f32 %v1785_v14, %v1573_v8  ;;  %v14903_v59 = vpop.f32.mrf.mxu1  ;;  %12126 = vmatmul.msk.f32.gmra.mxu1 %vm472_vm1, %v14382_v13  ;;  %v19543_v52 = vld [vmem:[#allocation58_spill] sm:$0xff] }
 0x23d   : > { %12060 = vmatmul.msk.f32.gmra.mxu3 %vm472_vm1, %v14376_v29 }
 0x23f   : > { %v1788_v27 = vpop.f32.mrf.mxu0 }
 0x241   : > { %12033 = vmatmul.msk.f32.gmra.mxu2 %vm472_vm1, %v14524_v34  ;;  %v14911_v2 = vpop.f32.mrf.mxu2  ;;  %v1576_v11 = vpop.f32.mrf.mxu3 }
 0x242   : > { %12093 = vmatmul.msk.f32.gmra.mxu0 %vm472_vm1, %v14374_v20  ;;  %19541 = vst [vmem:[#allocation105_spill] sm:$0xff] %v14911_v2  ;;  %v14915_v5 = vadd.f32 %v1788_v27, %v1576_v11  ;;  %v14917_v14 = vpop.f32.mrf.mxu1  ;;  %12127 = vmatmul.msk.f32.gmra.mxu1 %vm472_vm1, %v14398_v25 }
 0x245   : > { %12061 = vmatmul.msk.f32.gmra.mxu3 %vm472_vm1, %v14394_v4 }
 0x247   : > { %v1791_v8 = vpop.f32.mrf.mxu0 }
 0x249   : > { %12034 = vmatmul.msk.f32.gmra.mxu2 %vm472_vm1, %v14544_v36  ;;  %v2228_v3 = vpop.f32.mrf.mxu2  ;;  %v1579_v20 = vpop.f32.mrf.mxu3 }
 0x24a   : > { %12094 = vmatmul.msk.f32.gmra.mxu0 %vm472_vm1, %v14392_v22  ;;  %v14927_v13 = vadd.f32 %v1791_v8, %v1579_v20  ;;  %v14929_v27 = vpop.f32.mrf.mxu1  ;;  %12128 = vmatmul.msk.f32.gmra.mxu1 %vm472_vm1, %v14424_v46 }
 0x24d   : > { %12062 = vmatmul.msk.f32.gmra.mxu3 %vm472_vm1, %v14416_v44 }
 0x24f   : > { %v1794_v11 = vpop.f32.mrf.mxu0 }
 0x251   : > { %12035 = vmatmul.msk.f32.gmra.mxu2 %vm472_vm1, %v14563_v38  ;;  %v2231_v29 = vpop.f32.mrf.mxu2  ;;  %v1582_v22 = vpop.f32.mrf.mxu3 }
 0x252   : > { %12095 = vmatmul.msk.f32.gmra.mxu0 %vm472_vm1, %v14414_v41  ;;  %v14939_v25 = vadd.f32 %v1794_v11, %v1582_v22  ;;  %v14941_v8 = vpop.f32.mrf.mxu1  ;;  %12129 = vmatmul.msk.f32.gmra.mxu1 %vm472_vm1, %v14444_v39  ;;  %v1705_v41 = vadd.f32 %v14384_v15, %v14396_v23  ;;  %v2049_v15 = vadd.f32 %v14474_v55, %v14472_v1  ;;  %v19545_v55 = vld [vmem:[#allocation19_spill] sm:$0xff]  ;;  %v19546_v1 = vld [vmem:[#allocation24_spill] sm:$0xff] }
 0x254   : > { %v2046_v39 = vadd.f32 %v14404_v42, %v1705_v41 }
 0x255   : > { %12063 = vmatmul.msk.f32.gmra.mxu3 %vm472_vm1, %v14438_v53 }
 0x256   : > { %v2324_v44 = vadd.f32 %v2228_v3, %v2046_v39  ;;  %v19544_v3 = vld [vmem:[#allocation14_spill] sm:$0xff] }
 0x257   : > { %v1797_v20 = vpop.f32.mrf.mxu0 }
 0x259   : > { %12036 = vmatmul.msk.f32.gmra.mxu2 %vm472_vm1, %v14582_v17  ;;  %v2234_v4 = vpop.f32.mrf.mxu2  ;;  %v1585_v46 = vpop.f32.mrf.mxu3 }
 0x25a   : > { %12096 = vmatmul.msk.f32.gmra.mxu0 %vm472_vm1, %v14436_v35  ;;  %v14953_v11 = vadd.f32 %v1797_v20, %v1585_v46  ;;  %v14955_v22 = vpop.f32.mrf.mxu1  ;;  %12130 = vmatmul.msk.f32.gmra.mxu1 %vm472_vm1, %v14464_v62  ;;  %v19542_v35 = vld [vmem:[#allocation12_spill] sm:$0xff] }
 0x25b   : > { %v1708_v20 = vadd.f32 %v19542_v35, %v14418_v45  ;;  %v19547_v45 = vld [vmem:[#allocation25_spill] sm:$0xff] }
 0x25c   : > { %v19548_v35 = vld [vmem:[#allocation21_spill] sm:$0xff] }
 0x25d   : > { %v2047_v39 = vadd.f32 %v19544_v3, %v1708_v20  ;;  %12064 = vmatmul.msk.f32.gmra.mxu3 %vm472_vm1, %v19545_v55  ;;  %v19551_v3 = vld [vmem:[#allocation64_spill] sm:$0xff] }
 0x25f   : > { %v2784_v2 = vpop.f32.mrf.mxu0 }
 0x261   : > { %12037 = vmatmul.msk.f32.gmra.mxu2 %vm472_vm1, %v14601_v49  ;;  %v2237_v23 = vpop.f32.mrf.mxu2  ;;  %v2506_v42 = vpop.f32.mrf.mxu3 }
 0x262   : > { %12097 = vmatmul.msk.f32.gmra.mxu0 %vm472_vm1, %v14456_v57  ;;  %v2327_v46 = vadd.f32 %v2237_v23, %v2049_v15  ;;  %v2602_v62 = vadd.f32 %v2506_v42, %v2324_v44  ;;  %v3063_v41 = vpop.f32.mrf.mxu1  ;;  %12131 = vmatmul.msk.f32.gmra.mxu1 %vm472_vm1, %v14484_v0  ;;  %v2325_v57 = vadd.f32 %v2231_v29, %v2047_v39  ;;  %v19550_v42 = vld [vmem:[#allocation15_spill] sm:$0xff] }
 0x263   : > { %v2050_v15 = vadd.f32 %v19547_v45, %v19546_v1  ;;  %v19554_v45 = vld [vmem:[#allocation29_spill] sm:$0xff] }
 0x264   : > { %v2880_v21 = vadd.f32 %v2784_v2, %v2602_v62  ;;  %v19549_v2 = vld [vmem:[#allocation16_spill] sm:$0xff] }
 0x265   : > { %v1711_v62 = vadd.f32 %v19550_v42, %v19549_v2  ;;  %v19556_v2 = vld [vmem:[#allocation26_spill] sm:$0xff] }
 0x266   : > { %v14977_v23 = vadd.f32 %v3063_v41, %v2880_v21  ;;  %v19553_v21 = vld [vmem:[#allocation22_spill] sm:$0xff] }
 0x267   : > { %v2787_v53 = vpop.f32.mrf.mxu0  ;;  %v2048_v1 = vadd.f32 %v19552_v48, %v1711_v62  ;;  %12065 = vmatmul.msk.f32.gmra.mxu3 %vm472_vm1, %v19553_v21 }
 0x269   : > { %12038 = vmatmul.msk.f32.gmra.mxu2 %vm472_vm1, %v19543_v52  ;;  %v2240_v44 = vpop.f32.mrf.mxu2  ;;  %v2509_v0 = vpop.f32.mrf.mxu3  ;;  %v2326_v41 = vadd.f32 %v2234_v4, %v2048_v1  ;;  %v19558_v4 = vld [vmem:[#allocation27_spill] sm:$0xff] }
 0x26a   : > { %12098 = vmatmul.msk.f32.gmra.mxu0 %vm472_vm1, %v19548_v35  ;;  %v2328_v20 = vadd.f32 %v2240_v44, %v2050_v15  ;;  %v2603_v61 = vadd.f32 %v2509_v0, %v2325_v57  ;;  %v3066_v55 = vpop.f32.mrf.mxu1  ;;  %12132 = vmatmul.msk.f32.gmra.mxu1 %vm472_vm1, %v14504_v32  ;;  %v19555_v35 = vld [vmem:[#allocation30_spill] sm:$0xff] }
 0x26b   : > { %v2051_v15 = vadd.f32 %v19555_v35, %v19554_v45  ;;  %v19561_v45 = vld [vmem:[#allocation31_spill] sm:$0xff] }
 0x26c   : > { %v2881_v29 = vadd.f32 %v2787_v53, %v2603_v61  ;;  %v19557_v53 = vld [vmem:[#allocation70_spill] sm:$0xff] }
 0x26e   : > { %v14992_v44 = vadd.f32 %v3066_v55, %v2881_v29  ;;  %v19559_v55 = vld [vmem:[#allocation34_spill] sm:$0xff]  ;;  %v19560_v29 = vld [vmem:[#allocation35_spill] sm:$0xff] }
 0x26f   : > { %v2790_v39 = vpop.f32.mrf.mxu0  ;;  %12066 = vmatmul.msk.f32.gmra.mxu3 %vm472_vm1, %v19558_v4  ;;  %v2052_v1 = vadd.f32 %v19560_v29, %v19559_v55  ;;  %v19565_v55 = vld [vmem:[#allocation36_spill] sm:$0xff] }
 0x271   : > { %12039 = vmatmul.msk.f32.gmra.mxu2 %vm472_vm1, %v19551_v3  ;;  %v2243_v57 = vpop.f32.mrf.mxu2  ;;  %v2512_v48 = vpop.f32.mrf.mxu3 }
 0x272   : > { %12099 = vmatmul.msk.f32.gmra.mxu0 %vm472_vm1, %v19556_v2  ;;  %v2329_v61 = vadd.f32 %v2243_v57, %v2051_v15  ;;  %v2604_v42 = vadd.f32 %v2512_v48, %v2326_v41  ;;  %v3069_v32 = vpop.f32.mrf.mxu1  ;;  %12133 = vmatmul.msk.f32.gmra.mxu1 %vm472_vm1, %v14524_v34  ;;  %v19562_v48 = vld [vmem:[#allocation32_spill] sm:$0xff] }
 0x274   : > { %v2882_v62 = vadd.f32 %v2790_v39, %v2604_v42  ;;  %v19563_v42 = vld [vmem:[#allocation39_spill] sm:$0xff] }
 0x276   : > { %v15004_v21 = vadd.f32 %v3069_v32, %v2882_v62  ;;  %v19564_v32 = vld [vmem:[#allocation40_spill] sm:$0xff] }
 0x277   : > { %v2793_v0 = vpop.f32.mrf.mxu0  ;;  %12067 = vmatmul.msk.f32.gmra.mxu3 %vm472_vm1, %v19562_v48  ;;  %v2053_v62 = vadd.f32 %v19564_v32, %v19563_v42  ;;  %v19570_v32 = vld [vmem:[#allocation41_spill] sm:$0xff] }
 0x279   : > { %12040 = vmatmul.msk.f32.gmra.mxu2 %vm472_vm1, %v19557_v53  ;;  %v2246_v35 = vpop.f32.mrf.mxu2  ;;  %v2515_v39 = vpop.f32.mrf.mxu3 }
 0x27a   : > { %12100 = vmatmul.msk.f32.gmra.mxu0 %vm472_vm1, %v19561_v45  ;;  %v2330_v15 = vadd.f32 %v2246_v35, %v2052_v1  ;;  %v2605_v41 = vadd.f32 %v2515_v39, %v2327_v46  ;;  %v3072_v2 = vpop.f32.mrf.mxu1  ;;  %12134 = vmatmul.msk.f32.gmra.mxu1 %vm472_vm1, %v14544_v36  ;;  %v19566_v46 = vld [vmem:[#allocation81_spill] sm:$0xff] }
 0x27c   : > { %v2883_v34 = vadd.f32 %v2793_v0, %v2605_v41  ;;  %v19567_v41 = vld [vmem:[#allocation37_spill] sm:$0xff] }
 0x27e   : > { %v15016_v4 = vadd.f32 %v3072_v2, %v2883_v34  ;;  %v19568_v2 = vld [vmem:[#allocation44_spill] sm:$0xff]  ;;  %v19569_v34 = vld [vmem:[#allocation45_spill] sm:$0xff] }
 0x27f   : > { %v2796_v57 = vpop.f32.mrf.mxu0  ;;  %12068 = vmatmul.msk.f32.gmra.mxu3 %vm472_vm1, %v19567_v41  ;;  %v2054_v48 = vadd.f32 %v19569_v34, %v19568_v2  ;;  %v19573_v41 = vld [vmem:[#allocation50_spill] sm:$0xff] }
 0x280   : > { %v19574_v34 = vld [vmem:[#allocation46_spill] sm:$0xff] }
 0x281   : > { %12041 = vmatmul.msk.f32.gmra.mxu2 %vm472_vm1, %v14687_v28  ;;  %v2249_v29 = vpop.f32.mrf.mxu2  ;;  %v2518_v0 = vpop.f32.mrf.mxu3 }
 0x282   : > { %12101 = vmatmul.msk.f32.gmra.mxu0 %vm472_vm1, %v19565_v55  ;;  %v2331_v1 = vadd.f32 %v2249_v29, %v2053_v62  ;;  %v2606_v45 = vadd.f32 %v2518_v0, %v2328_v20  ;;  %v3075_v35 = vpop.f32.mrf.mxu1  ;;  %12135 = vmatmul.msk.f32.gmra.mxu1 %vm472_vm1, %v14563_v38  ;;  %v15032_v55 = vld [vmem:[#allocation2 + $0x199] sm:$0xff] }
 0x284   : > { %v2884_v36 = vadd.f32 %v2796_v57, %v2606_v45 }
 0x286   : > { %v15028_v42 = vadd.f32 %v3075_v35, %v2884_v36  ;;  %v19571_v35 = vld [vmem:[#allocation42_spill] sm:$0xff]  ;;  %v19572_v36 = vld [vmem:[#allocation49_spill] sm:$0xff] }
 0x287   : > { %v2799_v39 = vpop.f32.mrf.mxu0  ;;  %12069 = vmatmul.msk.f32.gmra.mxu3 %vm472_vm1, %v19571_v35  ;;  %v2055_v2 = vadd.f32 %v19573_v41, %v19572_v36  ;;  %v19575_v36 = vld [vmem:[#allocation47_spill] sm:$0xff]  ;;  %v19576_v41 = vld [vmem:[#allocation54_spill] sm:$0xff] }
 0x289   : > { %12042 = vmatmul.msk.f32.gmra.mxu2 %vm472_vm1, %v19566_v46  ;;  %v2252_v62 = vpop.f32.mrf.mxu2  ;;  %v2521_v57 = vpop.f32.mrf.mxu3 }
 0x28a   : > { %12102 = vmatmul.msk.f32.gmra.mxu0 %vm472_vm1, %v19570_v32  ;;  %v2332_v20 = vadd.f32 %v2252_v62, %v2054_v48  ;;  %v2607_v38 = vadd.f32 %v2521_v57, %v2329_v61  ;;  %v3078_v29 = vpop.f32.mrf.mxu1  ;;  %12136 = vmatmul.msk.f32.gmra.mxu1 %vm472_vm1, %v14582_v17  ;;  %v15044_v32 = vld [vmem:[#allocation2 + $0x1a1] sm:$0xff] }
 0x28c   : > { %v2885_v0 = vadd.f32 %v2799_v39, %v2607_v38 }
 0x28e   : > { %v15048_v57 = vadd.f32 %v3078_v29, %v2885_v0 }
 0x28f   : > { %v2802_v45 = vpop.f32.mrf.mxu0  ;;  %12070 = vmatmul.msk.f32.gmra.mxu3 %vm472_vm1, %v19575_v36  ;;  %v19580_v36 = vld [vmem:[#allocation60_spill] sm:$0xff] }
 0x291   : > { %12043 = vmatmul.msk.f32.gmra.mxu2 %vm472_vm1, %v15032_v55  ;;  %v2255_v48 = vpop.f32.mrf.mxu2  ;;  %v2524_v61 = vpop.f32.mrf.mxu3 }
 0x292   : > { %12103 = vmatmul.msk.f32.gmra.mxu0 %vm472_vm1, %v19574_v34  ;;  %v2333_v62 = vadd.f32 %v2255_v48, %v2055_v2  ;;  %v2608_v39 = vadd.f32 %v2524_v61, %v2330_v15  ;;  %v3081_v17 = vpop.f32.mrf.mxu1  ;;  %12137 = vmatmul.msk.f32.gmra.mxu1 %vm472_vm1, %v14601_v49  ;;  %v19577_v34 = vld [vmem:[#allocation55_spill] sm:$0xff] }
 0x293   : > { %v2056_v33 = vadd.f32 %v19577_v34, %v19576_v41  ;;  %v19578_v2 = vld [vmem:[#allocation51_spill] sm:$0xff]  ;;  %v19581_v41 = vld [vmem:[#allocation61_spill] sm:$0xff] }
 0x294   : > { %v2886_v38 = vadd.f32 %v2802_v45, %v2608_v39  ;;  %v19579_v39 = vld [vmem:[#allocation52_spill] sm:$0xff]  ;;  %v2057_v34 = vadd.f32 %v19581_v41, %v19580_v36  ;;  %v19586_v41 = vld [vmem:[#allocation62_spill] sm:$0xff] }
 0x296   : > { %v15060_v0 = vadd.f32 %v3081_v17, %v2886_v38 }
 0x297   : > { %v2805_v35 = vpop.f32.mrf.mxu0  ;;  %12071 = vmatmul.msk.f32.gmra.mxu3 %vm472_vm1, %v19579_v39  ;;  %v19585_v39 = vld [vmem:[#allocation67_spill] sm:$0xff] }
 0x299   : > { %12044 = vmatmul.msk.f32.gmra.mxu2 %vm472_vm1, %v15044_v32  ;;  %v2258_v48 = vpop.f32.mrf.mxu2  ;;  %v2527_v15 = vpop.f32.mrf.mxu3 }
 0x29a   : > { %12104 = vmatmul.msk.f32.gmra.mxu0 %vm472_vm1, %v19578_v2  ;;  %v2334_v60 = vadd.f32 %v2258_v48, %v2056_v33  ;;  %v2609_v29 = vadd.f32 %v2527_v15, %v2331_v1  ;;  %v3084_v45 = vpop.f32.mrf.mxu1  ;;  %12138 = vmatmul.msk.f32.gmra.mxu1 %vm472_vm1, %v19543_v52  ;;  %v19582_v33 = vld [vmem:[#allocation56_spill] sm:$0xff]  ;;  %v19583_v15 = vld [vmem:[#allocation57_spill] sm:$0xff] }
 0x29c   : > { %v2887_v49 = vadd.f32 %v2805_v35, %v2609_v29  ;;  %v19584_v29 = vld [vmem:[#allocation66_spill] sm:$0xff] }
 0x29d   : > { %v2058_v36 = vadd.f32 %v19585_v39, %v19584_v29  ;;  %v19590_v29 = vld [vmem:[#allocation68_spill] sm:$0xff]  ;;  %v3194_v39 = vld [vmem:[#allocation2 + $0x6a] sm:$0xff] }
 0x29e   : > { %v15072_v38 = vadd.f32 %v3084_v45, %v2887_v49 }
 0x29f   : > { %v2808_v61 = vpop.f32.mrf.mxu0  ;;  %12072 = vmatmul.msk.f32.gmra.mxu3 %vm472_vm1, %v19583_v15 }
 0x2a1   : > { %12149 = vmatmul.msk.f32.vlgmr.msrb.gmra.mxu2 %vm472_vm1, %v14753_v16  ;;  %v2261_v16 = vpop.f32.mrf.mxu2  ;;  %v2530_v1 = vpop.f32.mrf.mxu3 }
 0x2a2   : > { %12105 = vmatmul.msk.f32.gmra.mxu0 %vm472_vm1, %v19582_v33  ;;  %v2335_v2 = vadd.f32 %v2261_v16, %v2057_v34  ;;  %v2610_v17 = vadd.f32 %v2530_v1, %v2332_v20  ;;  %v3087_v35 = vpop.f32.mrf.mxu1  ;;  %12139 = vmatmul.msk.f32.gmra.mxu1 %vm472_vm1, %v19551_v3  ;;  %v19587_v16 = vld [vmem:[#allocation63_spill] sm:$0xff]  ;;  %v19588_v1 = vld [vmem:[#allocation72_spill] sm:$0xff] }
 0x2a4   : > { %v2888_v52 = vadd.f32 %v2808_v61, %v2610_v17  ;;  %v19589_v17 = vld [vmem:[#allocation73_spill] sm:$0xff] }
 0x2a5   : > { %v2059_v15 = vadd.f32 %v19589_v17, %v19588_v1  ;;  %v19594_v1 = vld [vmem:[#allocation74_spill] sm:$0xff] }
 0x2a6   : > { %v15084_v49 = vadd.f32 %v3087_v35, %v2888_v52 }
 0x2a7   : > { %v2811_v48 = vpop.f32.mrf.mxu0  ;;  %12073 = vmatmul.msk.f32.gmra.mxu3 %vm472_vm1, %v19587_v16 }
 0x2a9   : > { %12150 = vmatmul.msk.f32.gmra.mxu2 %vm472_vm1, %v14771_v12  ;;  %v2264_v12 = vpop.f32.mrf.mxu2  ;;  %v2533_v20 = vpop.f32.mrf.mxu3 }
 0x2aa   : > { %12106 = vmatmul.msk.f32.gmra.mxu0 %vm472_vm1, %v19586_v41  ;;  %v2336_v34 = vadd.f32 %v2264_v12, %v2058_v36  ;;  %v2611_v45 = vadd.f32 %v2533_v20, %v2333_v62  ;;  %v3090_v61 = vpop.f32.mrf.mxu1  ;;  %12140 = vmatmul.msk.f32.gmra.mxu1 %vm472_vm1, %v19557_v53  ;;  %v19591_v12 = vld [vmem:[#allocation69_spill] sm:$0xff] }
 0x2ab   : > { %v19592_v20 = vld [vmem:[#allocation77_spill] sm:$0xff] }
 0x2ac   : > { %v2889_v3 = vadd.f32 %v2811_v48, %v2611_v45  ;;  %v19593_v45 = vld [vmem:[#allocation78_spill] sm:$0xff] }
 0x2ad   : > { %v2060_v16 = vadd.f32 %v19593_v45, %v19592_v20  ;;  %v19598_v20 = vld [vmem:[#allocation79_spill] sm:$0xff] }
 0x2ae   : > { %v15095_v48 = vadd.f32 %v3090_v61, %v2889_v3 }
 0x2af   : > { %v2814_v33 = vpop.f32.mrf.mxu0  ;;  %12074 = vmatmul.msk.f32.gmra.mxu3 %vm472_vm1, %v19591_v12 }
 0x2b1   : > { %12151 = vmatmul.msk.f32.gmra.mxu2 %vm472_vm1, %v14789_v50  ;;  %v2267_v50 = vpop.f32.mrf.mxu2  ;;  %v2536_v35 = vpop.f32.mrf.mxu3 }
 0x2b2   : > { %12107 = vmatmul.msk.f32.gmra.mxu0 %vm472_vm1, %v19590_v29  ;;  %v2337_v62 = vadd.f32 %v2267_v50, %v2059_v15  ;;  %v2612_v52 = vadd.f32 %v2536_v35, %v2334_v60  ;;  %v3093_v36 = vpop.f32.mrf.mxu1  ;;  %12141 = vmatmul.msk.f32.gmra.mxu1 %vm472_vm1, %v14687_v28  ;;  %v3195_v15 = vld [vmem:[#allocation2 + $0x7a] sm:$0xff] }
 0x2b3   : > { %v19596_v35 = vld [vmem:[#allocation83_spill] sm:$0xff] }
 0x2b4   : > { %v2890_v53 = vadd.f32 %v2814_v33, %v2612_v52  ;;  %v19597_v52 = vld [vmem:[#allocation84_spill] sm:$0xff] }
 0x2b5   : > { %v2061_v12 = vadd.f32 %v19597_v52, %v19596_v35 }
 0x2b6   : > { %v15106_v33 = vadd.f32 %v3093_v36, %v2890_v53 }
 0x2b7   : > { %v2817_v41 = vpop.f32.mrf.mxu0 }
 0x2b9   : > { %12152 = vmatmul.msk.f32.gmra.mxu2 %vm472_vm1, %v3194_v39  ;;  %v2270_v17 = vpop.f32.mrf.mxu2  ;;  %v2539_v61 = vpop.f32.mrf.mxu3  ;;  %v19595_v39 = vld [vmem:[#allocation75_spill] sm:$0xff] }
 0x2ba   : > { %12108 = vmatmul.msk.f32.gmra.mxu0 %vm472_vm1, %v19594_v1  ;;  %v2338_v60 = vadd.f32 %v2270_v17, %v2060_v16  ;;  %v2613_v3 = vadd.f32 %v2539_v61, %v2335_v2  ;;  %v3096_v29 = vpop.f32.mrf.mxu1  ;;  %12142 = vmatmul.msk.f32.gmra.mxu1 %vm472_vm1, %v19566_v46  ;;  %v3196_v16 = vld [vmem:[#allocation2 + $0x82] sm:$0xff] }
 0x2bb   : > { %12075 = vmatmul.msk.f32.gmra.mxu3 %vm472_vm1, %v19595_v39  ;;  %v12282_v46 = vld [vmem:[%s19194_s9 + $0x8] sm:$0xf]  ;;  %v19599_v61 = vld [vmem:[#allocation80_spill] sm:$0xff]  ;;  %v3197_v39 = vld [vmem:[#allocation2 + $0x92] sm:$0xff] }
 0x2bc   : > { %v2891_v28 = vadd.f32 %v2817_v41, %v2613_v3  ;;  %12283 = vmatpush.msk.msra.mxu2 %vm634_vm0, %v12282_v46  ;;  %v19600_v3 = vld [vmem:[#allocation87_spill] sm:$0xff]  ;;  %v2063_v46 = vadd.f32 %v14751_v51, %v14749_v58 }
 0x2bd   : > { %v2943_v51 = vld [vmem:[#allocation2 + $0x1b1] sm:$0xff] }
 0x2be   : > { %v15117_v41 = vadd.f32 %v3096_v29, %v2891_v28  ;;  %v2062_v29 = vadd.f32 %v19600_v3, %v14737_v56  ;;  %v19601_v28 = vld [vmem:[#allocation85_spill] sm:$0xff]  ;;  %v2664_v56 = vld [vmem:[#allocation2 + $0x19b] sm:$0xff] }
 0x2bf   : > { %v2820_v50 = vpop.f32.mrf.mxu0 }
 0x2c1   : > { %12153 = vmatmul.msk.f32.gmra.mxu2 %vm472_vm1, %v3195_v15  ;;  %v2273_v45 = vpop.f32.mrf.mxu2  ;;  %v2542_v36 = vpop.f32.mrf.mxu3 }
 0x2c2   : > { %12109 = vmatmul.msk.f32.gmra.mxu0 %vm472_vm1, %v19598_v20  ;;  %v2339_v2 = vadd.f32 %v2273_v45, %v2061_v12  ;;  %v2614_v53 = vadd.f32 %v2542_v36, %v2336_v34  ;;  %v3099_v1 = vpop.f32.mrf.mxu1  ;;  %12143 = vmatmul.msk.f32.gmra.mxu1 %vm472_vm1, %v15032_v55  ;;  %v12316_v34 = vld [vmem:[%s19194_s9 + $0xc] sm:$0xf]  ;;  %v2386_v36 = vld [vmem:[#allocation2 + $0x19a] sm:$0xff] }
 0x2c3   : > { %12076 = vmatmul.msk.f32.gmra.mxu3 %vm472_vm1, %v19599_v61 }
 0x2c4   : > { %v2892_v17 = vadd.f32 %v2820_v50, %v2614_v53  ;;  %12317 = vmatpush.msk.msra.mxu3 %vm634_vm0, %v12316_v34  ;;  %v12350_v53 = vld [vmem:[%s19194_s9 + $0x10] sm:$0xf] }
 0x2c5   : > { %12351 = vmatpush.msk.msra.mxu0 %vm634_vm0, %v12350_v53 }
 0x2c6   : > { %v15136_v12 = vadd.f32 %v3099_v1, %v2892_v17 }
 0x2c7   : > { %v2823_v15 = vpop.f32.mrf.mxu0 }
 0x2c9   : > { %12154 = vmatmul.msk.f32.gmra.mxu2 %vm472_vm1, %v3196_v16  ;;  %v2276_v50 = vpop.f32.mrf.mxu2  ;;  %v2545_v55 = vpop.f32.mrf.mxu3 }
 0x2ca   : > { %12110 = vmatmul.msk.f32.gmra.mxu0 %vm472_vm1, %v19601_v28  ;;  %v2340_v35 = vadd.f32 %v2276_v50, %v2062_v29  ;;  %v2615_v52 = vadd.f32 %v2545_v55, %v2337_v62  ;;  %v3102_v20 = vpop.f32.mrf.mxu1  ;;  %12144 = vmatmul.msk.f32.gmra.mxu1 %vm472_vm1, %v15044_v32  ;;  %v12384_v62 = vld [vmem:[%s19194_s9 + $0x14] sm:$0xf]  ;;  %v3198_v32 = vld [vmem:[#allocation2 + $0x9a] sm:$0xff]  ;;  %v2387_v28 = vld [vmem:[#allocation2 + $0x1a2] sm:$0xff] }
 0x2cb   : > { %12077 = vmatmul.msk.f32.gmra.mxu3 %vm472_vm1, %v2386_v36  ;;  %12385 = vmatpush.msk.msra.mxu1 %vm634_vm0, %v12384_v62  ;;  %v2665_v50 = vld [vmem:[#allocation2 + $0x1a3] sm:$0xff] }
 0x2cc   : > { %v2893_v45 = vadd.f32 %v2823_v15, %v2615_v52  ;;  %v19603_v55 = vld [vmem:[#allocation92_spill] sm:$0xff] }
 0x2ce   : > { %v15153_v34 = vadd.f32 %v3102_v20, %v2893_v45 }
 0x2cf   : > { %v2826_v16 = vpop.f32.mrf.mxu0 }
 0x2d1   : > { %12155 = vmatmul.msk.f32.gmra.mxu2 %vm472_vm1, %v3197_v39  ;;  %v2279_v1 = vpop.f32.mrf.mxu2  ;;  %v2548_v15 = vpop.f32.mrf.mxu3  ;;  %v19602_v39 = vld [vmem:[#allocation91_spill] sm:$0xff] }
 0x2d2   : > { %12111 = vmatmul.msk.f32.gmra.mxu0 %vm472_vm1, %v2664_v56  ;;  %v2341_v17 = vadd.f32 %v2279_v1, %v2063_v46  ;;  %v2616_v61 = vadd.f32 %v2548_v15, %v2338_v60  ;;  %v3105_v58 = vpop.f32.mrf.mxu1  ;;  %12145 = vmatmul.msk.f32.gmra.mxu1 %vm472_vm1, %v2943_v51  ;;  %v2064_v52 = vadd.f32 %v19603_v55, %v19602_v39  ;;  %v3199_v56 = vld [vmem:[#allocation2 + $0xaa] sm:$0xff]  ;;  %v2944_v46 = vld [vmem:[#allocation2 + $0x1b9] sm:$0xff] }
 0x2d3   : > { %12078 = vmatmul.msk.f32.gmra.mxu3 %vm472_vm1, %v2387_v28  ;;  %v19604_v15 = vld [vmem:[#allocation89_spill] sm:$0xff]  ;;  %v19606_v51 = vld [vmem:[#allocation96_spill] sm:$0xff]  ;;  %v3200_v39 = vld [vmem:[#allocation2 + $0xb2] sm:$0xff] }
 0x2d4   : > { %v2894_v3 = vadd.f32 %v2826_v16, %v2616_v61  ;;  %v19605_v61 = vld [vmem:[#allocation95_spill] sm:$0xff] }
 0x2d5   : > { %v2065_v28 = vadd.f32 %v19606_v51, %v19605_v61  ;;  %v3848_v51 = vld [vmem:[#allocation3 + $0x8] sm:$0xff] }
 0x2d6   : > { %v15161_v16 = vadd.f32 %v3105_v58, %v2894_v3 }
 0x2d7   : > { %v2829_v29 = vpop.f32.mrf.mxu0 }
 0x2d9   : > { %12156 = vmatmul.msk.f32.gmra.mxu2 %vm472_vm1, %v3198_v32  ;;  %v2282_v36 = vpop.f32.mrf.mxu2  ;;  %v2551_v20 = vpop.f32.mrf.mxu3  ;;  %v3880_v32 = vld [vmem:[#allocation3 + $0x1] sm:$0xff] }
 0x2da   : > { %12112 = vmatmul.msk.f32.gmra.mxu0 %vm472_vm1, %v2665_v50  ;;  %v2342_v60 = vadd.f32 %v2282_v36, %v2064_v52  ;;  %v2617_v45 = vadd.f32 %v2551_v20, %v2339_v2  ;;  %v3108_v53 = vpop.f32.mrf.mxu1  ;;  %12146 = vmatmul.msk.f32.gmra.mxu1 %vm472_vm1, %v2944_v46  ;;  %v3847_v52 = vld [vmem:[#allocation3] sm:$0xff]  ;;  %v3881_v20 = vld [vmem:[#allocation3 + $0x9] sm:$0xff]  ;;  %v2066_v46 = vadd.f32 %v14805_v18, %v14803_v30 }
 0x2db   : > { %12183 = vmatmul.msk.f32.vlgmr.msrb.gmra.mxu3 %vm472_vm1, %v19604_v15  ;;  %v3201_v15 = vld [vmem:[#allocation2 + $0xc2] sm:$0xff]  ;;  %v2067_v18 = vadd.f32 %v14819_v24, %v14817_v7  ;;  %v2068_v7 = vadd.f32 %v14833_v43, %v14831_v19  ;;  %v3884_v19 = vld [vmem:[#allocation3 + $0x31] sm:$0xff]  ;;  %v2069_v43 = vadd.f32 %v14847_v31, %v14845_v6  ;;  %v3885_v6 = vld [vmem:[#allocation3 + $0x39] sm:$0xff]  ;;  %v2070_v31 = vadd.f32 %v14861_v26, %v14859_v63 }
 0x2dc   : > { %v2895_v62 = vadd.f32 %v2829_v29, %v2617_v45  ;;  %v19607_v45 = vld [vmem:[#allocation93_spill] sm:$0xff]  ;;  %v2071_v63 = vadd.f32 %v14875_v9, %v14873_v10  ;;  %v3887_v10 = vld [vmem:[#allocation3 + $0x51] sm:$0xff]  ;;  %v2072_v9 = vadd.f32 %v14889_v47, %v14887_v54  ;;  %v2073_v47 = vadd.f32 %v14903_v59, %v14901_v40 }
 0x2dd   : > { %v3888_v54 = vld [vmem:[#allocation3 + $0x61] sm:$0xff]  ;;  %v3889_v40 = vld [vmem:[#allocation3 + $0x69] sm:$0xff]  ;;  %v2074_v59 = vadd.f32 %v14917_v14, %v14915_v5  ;;  %v3890_v5 = vld [vmem:[#allocation3 + $0x79] sm:$0xff]  ;;  %v2075_v14 = vadd.f32 %v14929_v27, %v14927_v13  ;;  %v2076_v27 = vadd.f32 %v14941_v8, %v14939_v25  ;;  %v2077_v8 = vadd.f32 %v14955_v22, %v14953_v11 }
 0x2de   : > { %v15170_v29 = vadd.f32 %v3108_v53, %v2895_v62  ;;  %v3891_v13 = vld [vmem:[#allocation3 + $0x81] sm:$0xff]  ;;  %v3892_v25 = vld [vmem:[#allocation3 + $0x91] sm:$0xff]  ;;  %v3893_v11 = vld [vmem:[#allocation3 + $0x99] sm:$0xff] }
 0x2df   : > { %v2832_v1 = vpop.f32.mrf.mxu0 }
 0x2e1   : > { %12157 = vmatmul.msk.f32.gmra.mxu2 %vm472_vm1, %v3199_v56  ;;  %v2285_v50 = vpop.f32.mrf.mxu2  ;;  %v2554_v58 = vpop.f32.mrf.mxu3 }
 0x2e2   : > { %12217 = vmatmul.msk.f32.vlgmr.msrb.gmra.mxu0 %vm472_vm1, %v3880_v32  ;;  %v2343_v2 = vadd.f32 %v2285_v50, %v2065_v28  ;;  %v2618_v3 = vadd.f32 %v2554_v58, %v2340_v35  ;;  %v3111_v55 = vpop.f32.mrf.mxu1  ;;  %12250 = vmatmul.msk.f32.vlgmr.msrb.gmra.mxu1 %vm472_vm1, %v3847_v52  ;;  %v19608_v58 = vld [vmem:[#allocation97_spill] sm:$0xff] }
 0x2e3   : > { %12184 = vmatmul.msk.f32.gmra.mxu3 %vm472_vm1, %v19607_v45 }
 0x2e4   : > { %v2896_v36 = vadd.f32 %v2832_v1, %v2618_v3  ;;  %v3202_v3 = vld [vmem:[#allocation2 + $0xca] sm:$0xff] }
 0x2e6   : > { %v15179_v1 = vadd.f32 %v3111_v55, %v2896_v36 }
 0x2e7   : > { %v2835_v56 = vpop.f32.mrf.mxu0 }
 0x2e9   : > { %12158 = vmatmul.msk.f32.gmra.mxu2 %vm472_vm1, %v3200_v39  ;;  %v2288_v32 = vpop.f32.mrf.mxu2  ;;  %v2557_v53 = vpop.f32.mrf.mxu3  ;;  %v3882_v39 = vld [vmem:[#allocation3 + $0x19] sm:$0xff] }
 0x2ea   : > { %12218 = vmatmul.msk.f32.gmra.mxu0 %vm472_vm1, %v3881_v20  ;;  %v2344_v35 = vadd.f32 %v2288_v32, %v2066_v46  ;;  %v2619_v62 = vadd.f32 %v2557_v53, %v2341_v17  ;;  %v3114_v61 = vpop.f32.mrf.mxu1  ;;  %12251 = vmatmul.msk.f32.gmra.mxu1 %vm472_vm1, %v3848_v51  ;;  %v3849_v20 = vld [vmem:[#allocation3 + $0x18] sm:$0xff]  ;;  %v3883_v32 = vld [vmem:[#allocation3 + $0x21] sm:$0xff] }
 0x2eb   : > { %12185 = vmatmul.msk.f32.gmra.mxu3 %vm472_vm1, %v19608_v58  ;;  %v3203_v53 = vld [vmem:[#allocation2 + $0xda] sm:$0xff] }
 0x2ec   : > { %v2897_v28 = vadd.f32 %v2835_v56, %v2619_v62  ;;  %v3473_v58 = vld [vmem:[#allocation2 + $0x7b] sm:$0xff] }
 0x2ee   : > { %v15188_v36 = vadd.f32 %v3114_v61, %v2897_v28  ;;  %v3850_v28 = vld [vmem:[#allocation3 + $0x20] sm:$0xff] }
 0x2ef   : > { %v2838_v50 = vpop.f32.mrf.mxu0 }
 0x2f1   : > { %12159 = vmatmul.msk.f32.gmra.mxu2 %vm472_vm1, %v3201_v15  ;;  %v2291_v30 = vpop.f32.mrf.mxu2  ;;  %v2560_v55 = vpop.f32.mrf.mxu3  ;;  %v3472_v15 = vld [vmem:[#allocation2 + $0x6b] sm:$0xff] }
 0x2f2   : > { %12219 = vmatmul.msk.f32.gmra.mxu0 %vm472_vm1, %v3882_v39  ;;  %v2345_v17 = vadd.f32 %v2291_v30, %v2067_v18  ;;  %v2620_v52 = vadd.f32 %v2560_v55, %v2342_v60  ;;  %v3117_v56 = vpop.f32.mrf.mxu1  ;;  %12252 = vmatmul.msk.f32.gmra.mxu1 %vm472_vm1, %v3849_v20 }
 0x2f3   : > { %12186 = vmatmul.msk.f32.gmra.mxu3 %vm472_vm1, %v3472_v15 }
 0x2f4   : > { %v2898_v45 = vadd.f32 %v2838_v50, %v2620_v52 }
 0x2f6   : > { %v15196_v18 = vadd.f32 %v3117_v56, %v2898_v45 }
 0x2f7   : > { %v2841_v46 = vpop.f32.mrf.mxu0 }
 0x2f9   : > { %12160 = vmatmul.msk.f32.gmra.mxu2 %vm472_vm1, %v3202_v3  ;;  %v2294_v24 = vpop.f32.mrf.mxu2  ;;  %v2563_v62 = vpop.f32.mrf.mxu3  ;;  %v3204_v3 = vld [vmem:[#allocation2 + $0xe2] sm:$0xff] }
 0x2fa   : > { %12220 = vmatmul.msk.f32.gmra.mxu0 %vm472_vm1, %v3883_v32  ;;  %v2346_v60 = vadd.f32 %v2294_v24, %v2068_v7  ;;  %v2621_v61 = vadd.f32 %v2563_v62, %v2343_v2  ;;  %v3120_v51 = vpop.f32.mrf.mxu1  ;;  %12253 = vmatmul.msk.f32.gmra.mxu1 %vm472_vm1, %v3850_v28  ;;  %v3474_v32 = vld [vmem:[#allocation2 + $0x83] sm:$0xff]  ;;  %v3205_v24 = vld [vmem:[#allocation2 + $0xf2] sm:$0xff] }
 0x2fb   : > { %12187 = vmatmul.msk.f32.gmra.mxu3 %vm472_vm1, %v3473_v58  ;;  %v3886_v58 = vld [vmem:[#allocation3 + $0x49] sm:$0xff] }
 0x2fc   : > { %v2899_v50 = vadd.f32 %v2841_v46, %v2621_v61  ;;  %v3851_v46 = vld [vmem:[#allocation3 + $0x30] sm:$0xff] }
 0x2fe   : > { %v15204_v15 = vadd.f32 %v3120_v51, %v2899_v50  ;;  %v3852_v50 = vld [vmem:[#allocation3 + $0x38] sm:$0xff] }
 0x2ff   : > { %v2844_v39 = vpop.f32.mrf.mxu0 }
 0x301   : > { %12161 = vmatmul.msk.f32.gmra.mxu2 %vm472_vm1, %v3203_v53  ;;  %v2297_v30 = vpop.f32.mrf.mxu2  ;;  %v2566_v55 = vpop.f32.mrf.mxu3 }
 0x302   : > { %12221 = vmatmul.msk.f32.gmra.mxu0 %vm472_vm1, %v3884_v19  ;;  %v2347_v2 = vadd.f32 %v2297_v30, %v2069_v43  ;;  %v2622_v52 = vadd.f32 %v2566_v55, %v2344_v35  ;;  %v3123_v20 = vpop.f32.mrf.mxu1  ;;  %12254 = vmatmul.msk.f32.gmra.mxu1 %vm472_vm1, %v3851_v46  ;;  %v3206_v19 = vld [vmem:[#allocation2 + $0xfa] sm:$0xff]  ;;  %v3853_v46 = vld [vmem:[#allocation3 + $0x48] sm:$0xff] }
 0x303   : > { %12188 = vmatmul.msk.f32.gmra.mxu3 %vm472_vm1, %v3474_v32  ;;  %v3476_v32 = vld [vmem:[#allocation2 + $0x9b] sm:$0xff] }
 0x304   : > { %v2900_v56 = vadd.f32 %v2844_v39, %v2622_v52  ;;  %v3475_v39 = vld [vmem:[#allocation2 + $0x93] sm:$0xff] }
 0x307   : > { %v2847_v45 = vpop.f32.mrf.mxu0 }
 0x309   : > { %12162 = vmatmul.msk.f32.gmra.mxu2 %vm472_vm1, %v3204_v3  ;;  %v2300_v7 = vpop.f32.mrf.mxu2  ;;  %v2569_v53 = vpop.f32.mrf.mxu3  ;;  %v15218_v3 = vadd.f32 %v3123_v20, %v2900_v56 }
 0x30a   : > { %12222 = vmatmul.msk.f32.gmra.mxu0 %vm472_vm1, %v3885_v6  ;;  %v2348_v35 = vadd.f32 %v2300_v7, %v2070_v31  ;;  %v2623_v62 = vadd.f32 %v2569_v53, %v2345_v17  ;;  %v3126_v61 = vpop.f32.mrf.mxu1  ;;  %12255 = vmatmul.msk.f32.gmra.mxu1 %vm472_vm1, %v3852_v50  ;;  %v3207_v31 = vld [vmem:[#allocation2 + $0x10a] sm:$0xff] }
 0x30b   : > { %12189 = vmatmul.msk.f32.gmra.mxu3 %vm472_vm1, %v3475_v39  ;;  %v3477_v50 = vld [vmem:[#allocation2 + $0xab] sm:$0xff] }
 0x30c   : > { %v2901_v51 = vadd.f32 %v2847_v45, %v2623_v62 }
 0x30e   : > { %v15226_v7 = vadd.f32 %v3126_v61, %v2901_v51 }
 0x30f   : > { %v2850_v28 = vpop.f32.mrf.mxu0 }
 0x311   : > { %12163 = vmatmul.msk.f32.gmra.mxu2 %vm472_vm1, %v3205_v24  ;;  %v2303_v26 = vpop.f32.mrf.mxu2  ;;  %v2572_v17 = vpop.f32.mrf.mxu3 }
 0x312   : > { %12223 = vmatmul.msk.f32.gmra.mxu0 %vm472_vm1, %v3886_v58  ;;  %v2349_v43 = vadd.f32 %v2303_v26, %v2071_v63  ;;  %v2624_v30 = vadd.f32 %v2572_v17, %v2346_v60  ;;  %v3129_v55 = vpop.f32.mrf.mxu1  ;;  %12256 = vmatmul.msk.f32.gmra.mxu1 %vm472_vm1, %v3853_v46  ;;  %v3208_v58 = vld [vmem:[#allocation2 + $0x112] sm:$0xff] }
 0x313   : > { %12190 = vmatmul.msk.f32.gmra.mxu3 %vm472_vm1, %v3476_v32  ;;  %v3209_v32 = vld [vmem:[#allocation2 + $0x122] sm:$0xff] }
 0x314   : > { %v2902_v52 = vadd.f32 %v2850_v28, %v2624_v30  ;;  %v3854_v28 = vld [vmem:[#allocation3 + $0x50] sm:$0xff]  ;;  %v3855_v30 = vld [vmem:[#allocation3 + $0x60] sm:$0xff] }
 0x316   : > { %v15234_v63 = vadd.f32 %v3129_v55, %v2902_v52 }
 0x317   : > { %v2853_v45 = vpop.f32.mrf.mxu0 }
 0x319   : > { %12164 = vmatmul.msk.f32.gmra.mxu2 %vm472_vm1, %v3206_v19  ;;  %v2306_v6 = vpop.f32.mrf.mxu2  ;;  %v2575_v20 = vpop.f32.mrf.mxu3 }
 0x31a   : > { %12224 = vmatmul.msk.f32.gmra.mxu0 %vm472_vm1, %v3887_v10  ;;  %v2350_v60 = vadd.f32 %v2306_v6, %v2072_v9  ;;  %v2625_v56 = vadd.f32 %v2575_v20, %v2347_v2  ;;  %v3132_v24 = vpop.f32.mrf.mxu1  ;;  %12257 = vmatmul.msk.f32.gmra.mxu1 %vm472_vm1, %v3854_v28  ;;  %v3856_v20 = vld [vmem:[#allocation3 + $0x68] sm:$0xff] }
 0x31b   : > { %12191 = vmatmul.msk.f32.gmra.mxu3 %vm472_vm1, %v3477_v50  ;;  %v3210_v28 = vld [vmem:[#allocation2 + $0x12a] sm:$0xff] }
 0x31c   : > { %v2903_v53 = vadd.f32 %v2853_v45, %v2625_v56  ;;  %v3478_v45 = vld [vmem:[#allocation2 + $0xb3] sm:$0xff]  ;;  %v3479_v56 = vld [vmem:[#allocation2 + $0xc3] sm:$0xff] }
 0x31e   : > { %v15242_v10 = vadd.f32 %v3132_v24, %v2903_v53 }
 0x31f   : > { %v2856_v62 = vpop.f32.mrf.mxu0 }
 0x321   : > { %12165 = vmatmul.msk.f32.gmra.mxu2 %vm472_vm1, %v3207_v31  ;;  %v2309_v39 = vpop.f32.mrf.mxu2  ;;  %v2578_v61 = vpop.f32.mrf.mxu3 }
 0x322   : > { %12225 = vmatmul.msk.f32.gmra.mxu0 %vm472_vm1, %v3888_v54  ;;  %v2351_v2 = vadd.f32 %v2309_v39, %v2073_v47  ;;  %v2626_v51 = vadd.f32 %v2578_v61, %v2348_v35  ;;  %v3135_v26 = vpop.f32.mrf.mxu1  ;;  %12258 = vmatmul.msk.f32.gmra.mxu1 %vm472_vm1, %v3855_v30  ;;  %v3480_v61 = vld [vmem:[#allocation2 + $0xcb] sm:$0xff] }
 0x323   : > { %12192 = vmatmul.msk.f32.gmra.mxu3 %vm472_vm1, %v3478_v45 }
 0x324   : > { %v2904_v19 = vadd.f32 %v2856_v62, %v2626_v51 }
 0x326   : > { %v15250_v50 = vadd.f32 %v3135_v26, %v2904_v19 }
 0x327   : > { %v2859_v17 = vpop.f32.mrf.mxu0 }
 0x329   : > { %12166 = vmatmul.msk.f32.gmra.mxu2 %vm472_vm1, %v3208_v58  ;;  %v2312_v46 = vpop.f32.mrf.mxu2  ;;  %v2581_v55 = vpop.f32.mrf.mxu3  ;;  %v3857_v58 = vld [vmem:[#allocation3 + $0x78] sm:$0xff] }
 0x32a   : > { %12226 = vmatmul.msk.f32.gmra.mxu0 %vm472_vm1, %v3889_v40  ;;  %v2352_v35 = vadd.f32 %v2312_v46, %v2074_v59  ;;  %v2627_v52 = vadd.f32 %v2581_v55, %v2349_v43  ;;  %v3138_v9 = vpop.f32.mrf.mxu1  ;;  %12259 = vmatmul.msk.f32.gmra.mxu1 %vm472_vm1, %v3856_v20  ;;  %v3858_v46 = vld [vmem:[#allocation3 + $0x80] sm:$0xff] }
 0x32b   : > { %12193 = vmatmul.msk.f32.gmra.mxu3 %vm472_vm1, %v3479_v56 }
 0x32c   : > { %v2905_v6 = vadd.f32 %v2859_v17, %v2627_v52  ;;  %v3211_v17 = vld [vmem:[#allocation2 + $0x13a] sm:$0xff]  ;;  %v3212_v52 = vld [vmem:[#allocation2 + $0x142] sm:$0xff] }
 0x32e   : > { %v15258_v30 = vadd.f32 %v3138_v9, %v2905_v6 }
 0x32f   : > { %v2862_v31 = vpop.f32.mrf.mxu0 }
 0x331   : > { %12167 = vmatmul.msk.f32.gmra.mxu2 %vm472_vm1, %v3209_v32  ;;  %v2315_v62 = vpop.f32.mrf.mxu2  ;;  %v2584_v24 = vpop.f32.mrf.mxu3  ;;  %v3481_v32 = vld [vmem:[#allocation2 + $0xdb] sm:$0xff] }
 0x332   : > { %12227 = vmatmul.msk.f32.gmra.mxu0 %vm472_vm1, %v3890_v5  ;;  %v2353_v43 = vadd.f32 %v2315_v62, %v2075_v14  ;;  %v2628_v53 = vadd.f32 %v2584_v24, %v2350_v60  ;;  %v3141_v54 = vpop.f32.mrf.mxu1  ;;  %12260 = vmatmul.msk.f32.gmra.mxu1 %vm472_vm1, %v3857_v58  ;;  %v3859_v14 = vld [vmem:[#allocation3 + $0x90] sm:$0xff]  ;;  %v3482_v62 = vld [vmem:[#allocation2 + $0xe3] sm:$0xff] }
 0x333   : > { %12194 = vmatmul.msk.f32.gmra.mxu3 %vm472_vm1, %v3480_v61  ;;  %v3860_v61 = vld [vmem:[#allocation3 + $0x98] sm:$0xff] }
 0x334   : > { %v2906_v47 = vadd.f32 %v2862_v31, %v2628_v53 }
 0x336   : > { %v15266_v31 = vadd.f32 %v3141_v54, %v2906_v47 }
 0x337   : > { %v2865_v39 = vpop.f32.mrf.mxu0 }
 0x339   : > { %12168 = vmatmul.msk.f32.gmra.mxu2 %vm472_vm1, %v3210_v28  ;;  %v2318_v51 = vpop.f32.mrf.mxu2  ;;  %v2587_v26 = vpop.f32.mrf.mxu3  ;;  %v3213_v28 = vld [vmem:[#allocation2 + $0x152] sm:$0xff] }
 0x33a   : > { %12228 = vmatmul.msk.f32.gmra.mxu0 %vm472_vm1, %v3891_v13  ;;  %v2354_v60 = vadd.f32 %v2318_v51, %v2076_v27  ;;  %v2629_v19 = vadd.f32 %v2587_v26, %v2351_v2  ;;  %v3144_v45 = vpop.f32.mrf.mxu1  ;;  %12261 = vmatmul.msk.f32.gmra.mxu1 %vm472_vm1, %v3858_v46  ;;  %v3483_v13 = vld [vmem:[#allocation2 + $0xf3] sm:$0xff]  ;;  %v3894_v27 = vld [vmem:[#allocation3 + $0xa9] sm:$0xff] }
 0x33b   : > { %12195 = vmatmul.msk.f32.gmra.mxu3 %vm472_vm1, %v3481_v32  ;;  %v3861_v46 = vld [vmem:[#allocation3 + $0xa8] sm:$0xff]  ;;  %v3484_v32 = vld [vmem:[#allocation2 + $0xfb] sm:$0xff] }
 0x33c   : > { %v2907_v40 = vadd.f32 %v2865_v39, %v2629_v19 }
 0x33e   : > { %v15273_v54 = vadd.f32 %v3144_v45, %v2907_v40 }
 0x33f   : > { %v2868_v59 = vpop.f32.mrf.mxu0 }
 0x341   : > { %12169 = vmatmul.msk.f32.gmra.mxu2 %vm472_vm1, %v3211_v17  ;;  %v2321_v55 = vpop.f32.mrf.mxu2  ;;  %v2590_v9 = vpop.f32.mrf.mxu3 }
 0x342   : > { %12229 = vmatmul.msk.f32.gmra.mxu0 %vm472_vm1, %v3892_v25  ;;  %v2355_v2 = vadd.f32 %v2321_v55, %v2077_v8  ;;  %v2630_v6 = vadd.f32 %v2590_v9, %v2352_v35  ;;  %v3147_v20 = vpop.f32.mrf.mxu1  ;;  %12262 = vmatmul.msk.f32.gmra.mxu1 %vm472_vm1, %v3859_v14  ;;  %v3895_v25 = vld [vmem:[#allocation3 + $0xb1] sm:$0xff] }
 0x343   : > { %12196 = vmatmul.msk.f32.gmra.mxu3 %vm472_vm1, %v3482_v62  ;;  %v3485_v14 = vld [vmem:[#allocation2 + $0x10b] sm:$0xff]  ;;  %v15294_v62 = vld [vmem:[%s19609_s2] ss:$0 sm:$0xff] }
 0x344   : > { %v2908_v56 = vadd.f32 %v2868_v59, %v2630_v6 }
 0x346   : > { %v15280_v19 = vadd.f32 %v3147_v20, %v2908_v56 }
 0x347   : > { %v2871_v5 = vpop.f32.mrf.mxu0 }
 0x349   : > { %12170 = vmatmul.msk.f32.gmra.mxu2 %vm472_vm1, %v3212_v52  ;;  %v3341_v22 = vpop.f32.mrf.mxu2  ;;  %v2593_v35 = vpop.f32.mrf.mxu3 }
 0x34a   : > { %12230 = vmatmul.msk.f32.gmra.mxu0 %vm472_vm1, %v3893_v11  ;;  %v3437_v24 = vadd.f32 %v3341_v22, %v14977_v23  ;;  %v2631_v53 = vadd.f32 %v2593_v35, %v2353_v43  ;;  %v3150_v47 = vpop.f32.mrf.mxu1  ;;  %12263 = vmatmul.msk.f32.gmra.mxu1 %vm472_vm1, %v3860_v61  ;;  %v3214_v23 = vld [vmem:[#allocation2 + $0x15a] sm:$0xff]  ;;  %v3216_v11 = vld [vmem:[#allocation2 + $0x172] sm:$0xff] }
 0x34b   : > { %12197 = vmatmul.msk.f32.gmra.mxu3 %vm472_vm1, %v3483_v13  ;;  %v15302_v22 = vld [vmem:[%s19191_s6] ss:$0 sm:$0xff] }
 0x34c   : > { %v2909_v39 = vadd.f32 %v2871_v5, %v2631_v53  ;;  %v3862_v5 = vld [vmem:[#allocation3 + $0xb0] sm:$0xff]  ;;  %v19610_v53 = vld [vmem:[#allocation8_spill] sm:$0xff] }
 0x34e   : > { %v15287_v9 = vadd.f32 %v3150_v47, %v2909_v39  ;;  %v1181_v47 = vadd.f32 %v15294_v62, %v19610_v53 }
 0x34f   : > { %v2874_v58 = vpop.f32.mrf.mxu0 }
 0x351   : > { %12171 = vmatmul.msk.f32.gmra.mxu2 %vm472_vm1, %v3213_v28  ;;  %v3344_v51 = vpop.f32.mrf.mxu2  ;;  %v2596_v43 = vpop.f32.mrf.mxu3 }
 0x352   : > { %12231 = vmatmul.msk.f32.gmra.mxu0 %vm472_vm1, %v3894_v27  ;;  %v3438_v17 = vadd.f32 %v3344_v51, %v14992_v44  ;;  %v2632_v26 = vadd.f32 %v2596_v43, %v2354_v60  ;;  %v3153_v45 = vpop.f32.mrf.mxu1  ;;  %12264 = vmatmul.msk.f32.gmra.mxu1 %vm472_vm1, %v3861_v46  ;;  %v3215_v44 = vld [vmem:[#allocation2 + $0x16a] sm:$0xff]  ;;  %v3863_v51 = vld [vmem:[#allocation3 + $0xc0] sm:$0xff]  ;;  %v1276_v43 = vmax.f32 %v1181_v47, 0.0 }
 0x353   : > { %12198 = vmatmul.msk.f32.gmra.mxu3 %vm472_vm1, %v3484_v32  ;;  %v19612_v32 = vld [vmem:[#allocation9_spill] sm:$0xff]  ;;  %v19614_v47 = vld [vmem:[#allocation10_spill] sm:$0xff] }
 0x354   : > { %v2910_v40 = vadd.f32 %v2874_v58, %v2632_v26  ;;  %v3897_v26 = vld [vmem:[#allocation3 + $0xc9] sm:$0xff] }
 0x356   : > { %v15310_v58 = vadd.f32 %v3153_v45, %v2910_v40  ;;  %v3217_v45 = vld [vmem:[#allocation2 + $0x182] sm:$0xff] }
 0x357   : > { %v2877_v59 = vpop.f32.mrf.mxu0 }
 0x359   : > { %12172 = vmatmul.msk.f32.gmra.mxu2 %vm472_vm1, %v3214_v23  ;;  %v3347_v8 = vpop.f32.mrf.mxu2  ;;  %v2599_v60 = vpop.f32.mrf.mxu3  ;;  %v3486_v23 = vld [vmem:[#allocation2 + $0x113] sm:$0xff] }
 0x35a   : > { %12232 = vmatmul.msk.f32.gmra.mxu0 %vm472_vm1, %v3895_v25  ;;  %v3439_v55 = vadd.f32 %v3347_v8, %v15004_v21  ;;  %v2633_v52 = vadd.f32 %v2599_v60, %v2355_v2  ;;  %v3156_v6 = vpop.f32.mrf.mxu1  ;;  %12265 = vmatmul.msk.f32.gmra.mxu1 %vm472_vm1, %v3862_v5  ;;  %v3896_v21 = vld [vmem:[#allocation3 + $0xc1] sm:$0xff]  ;;  %v1184_v25 = vadd.f32 %v15294_v62, %v19612_v32 }
 0x35b   : > { %12199 = vmatmul.msk.f32.gmra.mxu3 %vm472_vm1, %v3485_v14  ;;  %v3864_v14 = vld [vmem:[#allocation3 + $0xc8] sm:$0xff]  ;;  %v3219_v32 = vld [vmem:[#allocation2 + $0x19a] sm:$0xff] }
 0x35c   : > { %v2911_v20 = vadd.f32 %v2877_v59, %v2633_v52 }
 0x35f   : > { %v15289_v56 = vpop.f32.mrf.mxu0 }
 0x361   : > { %12173 = vmatmul.msk.f32.gmra.mxu2 %vm472_vm1, %v3215_v44  ;;  %v3350_v2 = vpop.f32.mrf.mxu2  ;;  %v3619_v35 = vpop.f32.mrf.mxu3  ;;  %v15326_v44 = vadd.f32 %v3156_v6, %v2911_v20  ;;  %v3218_v6 = vld [vmem:[#allocation2 + $0x18a] sm:$0xff] }
 0x362   : > { %12233 = vmatmul.msk.f32.gmra.mxu0 %vm472_vm1, %v3896_v21  ;;  %v15305_v28 = vadd.f32 %v3350_v2, %v15016_v4  ;;  %v3715_v39 = vadd.f32 %v3619_v35, %v3437_v24  ;;  %v15312_v61 = vpop.f32.mrf.mxu1  ;;  %12266 = vmatmul.msk.f32.gmra.mxu1 %vm472_vm1, %v3863_v51  ;;  %v3487_v21 = vld [vmem:[#allocation2 + $0x123] sm:$0xff]  ;;  %v1277_v2 = vmax.f32 %v1184_v25, 0.0 }
 0x363   : > { %12200 = vmatmul.msk.f32.gmra.mxu3 %vm472_vm1, %v3486_v23 }
 0x364   : > { %v3751_v13 = vadd.f32 %v15302_v22, %v3715_v39  ;;  %v1187_v39 = vadd.f32 %v15294_v62, %v19614_v47  ;;  %v3900_v47 = vld [vmem:[#allocation3 + $0xf1] sm:$0xff] }
 0x366   : > { %v3783_v4 = vmax.f32 %v3751_v13, 0.0 }
 0x367   : > { %v15315_v27 = vpop.f32.mrf.mxu0 }
 0x368   : > { %v15320_v40 = vadd.f32 %v3783_v4, %v1276_v43  ;;  %v3865_v4 = vld [vmem:[#allocation3 + $0xd8] sm:$0xff] }
 0x369   : > { %12174 = vmatmul.msk.f32.gmra.mxu2 %vm472_vm1, %v3216_v11  ;;  %v3353_v24 = vpop.f32.mrf.mxu2  ;;  %v3622_v46 = vpop.f32.mrf.mxu3  ;;  %v3898_v11 = vld [vmem:[#allocation3 + $0xd9] sm:$0xff] }
 0x36a   : > { %12234 = vmatmul.msk.f32.gmra.mxu0 %vm472_vm1, %v3897_v26  ;;  %19611 = vst [vmem:[#allocation12_spill] sm:$0xff] %v15320_v40  ;;  %v3441_v59 = vadd.f32 %v3353_v24, %v15028_v42  ;;  %v3716_v8 = vadd.f32 %v3622_v46, %v3438_v17  ;;  %v15328_v60 = vpop.f32.mrf.mxu1  ;;  %12267 = vmatmul.msk.f32.gmra.mxu1 %vm472_vm1, %v3864_v14  ;;  %v3488_v26 = vld [vmem:[#allocation2 + $0x12b] sm:$0xff]  ;;  %v1278_v24 = vmax.f32 %v1187_v39, 0.0 }
 0x36b   : > { %12201 = vmatmul.msk.f32.gmra.mxu3 %vm472_vm1, %v3487_v21  ;;  %v19643_v40 = vld [vmem:[#allocation65_spill] sm:$0xff] }
 0x36c   : > { %v3752_v52 = vadd.f32 %v15302_v22, %v3716_v8 }
 0x36e   : > { %v3784_v42 = vmax.f32 %v3752_v52, 0.0  ;;  %v19616_v52 = vld [vmem:[#allocation11_spill] sm:$0xff] }
 0x36f   : > { %v15331_v5 = vpop.f32.mrf.mxu0  ;;  %v1190_v14 = vadd.f32 %v15294_v62, %v19616_v52  ;;  %v3490_v52 = vld [vmem:[#allocation2 + $0x143] sm:$0xff] }
 0x370   : > { %v15336_v20 = vadd.f32 %v3784_v42, %v1277_v2 }
 0x371   : > { %12175 = vmatmul.msk.f32.gmra.mxu2 %vm472_vm1, %v3217_v45  ;;  %v3356_v17 = vpop.f32.mrf.mxu2  ;;  %v3625_v53 = vpop.f32.mrf.mxu3 }
 0x372   : > { %12235 = vmatmul.msk.f32.gmra.mxu0 %vm472_vm1, %v3898_v11  ;;  %19613 = vst [vmem:[#allocation58_spill] sm:$0xff] %v15336_v20  ;;  %v3442_v35 = vadd.f32 %v3356_v17, %v15048_v57  ;;  %v3717_v13 = vadd.f32 %v3625_v53, %v3439_v55  ;;  %v15342_v51 = vpop.f32.mrf.mxu1  ;;  %12268 = vmatmul.msk.f32.gmra.mxu1 %vm472_vm1, %v3865_v4  ;;  %v3899_v57 = vld [vmem:[#allocation3 + $0xe1] sm:$0xff]  ;;  %v1279_v53 = vmax.f32 %v1190_v14, 0.0  ;;  %v3875_v20 = vld [vmem:[#allocation3 + $0x150] sm:$0xff] }
 0x373   : > { %12202 = vmatmul.msk.f32.gmra.mxu3 %vm472_vm1, %v3488_v26  ;;  %v3866_v17 = vld [vmem:[#allocation3 + $0xe0] sm:$0xff]  ;;  %v19618_v26 = vld [vmem:[#allocation13_spill] sm:$0xff] }
 0x374   : > { %v3753_v23 = vadd.f32 %v15302_v22, %v3717_v13  ;;  %v3220_v13 = vld [vmem:[#allocation2 + $0x1a2] sm:$0xff] }
 0x376   : > { %v3785_v45 = vmax.f32 %v3753_v23, 0.0 }
 0x377   : > { %v15345_v43 = vpop.f32.mrf.mxu0 }
 0x378   : > { %v15350_v55 = vadd.f32 %v3785_v45, %v1278_v24  ;;  %v1193_v24 = vadd.f32 %v15294_v62, %v19618_v26  ;;  %v3868_v26 = vld [vmem:[#allocation3 + $0xf8] sm:$0xff] }
 0x379   : > { %12176 = vmatmul.msk.f32.gmra.mxu2 %vm472_vm1, %v3218_v6  ;;  %v3359_v46 = vpop.f32.mrf.mxu2  ;;  %v3628_v8 = vpop.f32.mrf.mxu3  ;;  %v3489_v6 = vld [vmem:[#allocation2 + $0x13b] sm:$0xff] }
 0x37a   : > { %12236 = vmatmul.msk.f32.gmra.mxu0 %vm472_vm1, %v3899_v57  ;;  %19615 = vst [vmem:[#allocation14_spill] sm:$0xff] %v15350_v55  ;;  %v3443_v25 = vadd.f32 %v3359_v46, %v15060_v0  ;;  %v3718_v21 = vadd.f32 %v3628_v8, %v15305_v28  ;;  %v15357_v2 = vpop.f32.mrf.mxu1  ;;  %12269 = vmatmul.msk.f32.gmra.mxu1 %vm472_vm1, %v3866_v17  ;;  %v3867_v8 = vld [vmem:[#allocation3 + $0xf0] sm:$0xff]  ;;  %v1280_v14 = vmax.f32 %v1193_v24, 0.0  ;;  %v3874_v55 = vld [vmem:[#allocation3 + $0x140] sm:$0xff] }
 0x37b   : > { %12203 = vmatmul.msk.f32.gmra.mxu3 %vm472_vm1, %v3489_v6  ;;  %v3491_v24 = vld [vmem:[#allocation2 + $0x153] sm:$0xff] }
 0x37c   : > { %v3754_v42 = vadd.f32 %v15302_v22, %v3718_v21 }
 0x37e   : > { %v3786_v0 = vmax.f32 %v3754_v42, 0.0 }
 0x37f   : > { %v15360_v11 = vpop.f32.mrf.mxu0 }
 0x380   : > { %v15365_v28 = vadd.f32 %v3786_v0, %v1279_v53  ;;  %v19620_v53 = vld [vmem:[#allocation17_spill] sm:$0xff] }
 0x381   : > { %12177 = vmatmul.msk.f32.gmra.mxu2 %vm472_vm1, %v3219_v32  ;;  %v3362_v39 = vpop.f32.mrf.mxu2  ;;  %v3631_v4 = vpop.f32.mrf.mxu3  ;;  %v1196_v0 = vadd.f32 %v15294_v62, %v19620_v53 }
 0x382   : > { %12237 = vmatmul.msk.f32.gmra.mxu0 %vm472_vm1, %v3900_v47  ;;  %19617 = vst [vmem:[#allocation19_spill] sm:$0xff] %v15365_v28  ;;  %v3444_v23 = vadd.f32 %v3362_v39, %v15072_v38  ;;  %v3719_v45 = vadd.f32 %v3631_v4, %v3441_v59  ;;  %v15371_v57 = vpop.f32.mrf.mxu1  ;;  %12270 = vmatmul.msk.f32.gmra.mxu1 %vm472_vm1, %v3867_v8  ;;  %v3901_v38 = vld [vmem:[#allocation3 + $0xf9] sm:$0xff] }
 0x383   : > { %12204 = vmatmul.msk.f32.gmra.mxu3 %vm472_vm1, %v3490_v52 }
 0x384   : > { %v3755_v46 = vadd.f32 %v15302_v22, %v3719_v45  ;;  %v1281_v45 = vmax.f32 %v1196_v0, 0.0 }
 0x386   : > { %v3787_v21 = vmax.f32 %v3755_v46, 0.0 }
 0x387   : > { %v15374_v32 = vpop.f32.mrf.mxu0 }
 0x388   : > { %v15379_v17 = vadd.f32 %v3787_v21, %v1280_v14  ;;  %v19622_v21 = vld [vmem:[#allocation20_spill] sm:$0xff] }
 0x389   : > { %12178 = vmatmul.msk.f32.gmra.mxu2 %vm472_vm1, %v3220_v13  ;;  %v3365_v42 = vpop.f32.mrf.mxu2  ;;  %v3634_v6 = vpop.f32.mrf.mxu3 }
 0x38a   : > { %12238 = vmatmul.msk.f32.gmra.mxu0 %vm472_vm1, %v3901_v38  ;;  %19619 = vst [vmem:[#allocation24_spill] sm:$0xff] %v15379_v17  ;;  %v3445_v59 = vadd.f32 %v3365_v42, %v15084_v49  ;;  %v3720_v47 = vadd.f32 %v3634_v6, %v3442_v35  ;;  %v15384_v39 = vpop.f32.mrf.mxu1  ;;  %12271 = vmatmul.msk.f32.gmra.mxu1 %vm472_vm1, %v3868_v26  ;;  %v3902_v49 = vld [vmem:[#allocation3 + $0x109] sm:$0xff] }
 0x38b   : > { %12205 = vmatmul.msk.f32.gmra.mxu3 %vm472_vm1, %v3491_v24  ;;  %v1199_v38 = vadd.f32 %v15294_v62, %v19622_v21 }
 0x38c   : > { %v3756_v13 = vadd.f32 %v15302_v22, %v3720_v47  ;;  %v3869_v47 = vld [vmem:[#allocation3 + $0x108] sm:$0xff] }
 0x38d   : > { %v1282_v26 = vmax.f32 %v1199_v38, 0.0 }
 0x38e   : > { %v3788_v46 = vmax.f32 %v3756_v13, 0.0  ;;  %v3492_v13 = vld [vmem:[#allocation2 + $0x15b] sm:$0xff] }
 0x38f   : > { %v15387_v4 = vpop.f32.mrf.mxu0 }
 0x390   : > { %v15392_v52 = vadd.f32 %v3788_v46, %v1281_v45 }
 0x391   : > { %v3368_v8 = vpop.f32.mrf.mxu2  ;;  %v3637_v14 = vpop.f32.mrf.mxu3 }
 0x392   : > { %12239 = vmatmul.msk.f32.gmra.mxu0 %vm472_vm1, %v3902_v49  ;;  %19621 = vst [vmem:[#allocation25_spill] sm:$0xff] %v15392_v52  ;;  %v3446_v35 = vadd.f32 %v3368_v8, %v15095_v48  ;;  %v3721_v42 = vadd.f32 %v3637_v14, %v3443_v25  ;;  %v15397_v6 = vpop.f32.mrf.mxu1  ;;  %12272 = vmatmul.msk.f32.gmra.mxu1 %vm472_vm1, %v3869_v47  ;;  %v3903_v48 = vld [vmem:[#allocation3 + $0x111] sm:$0xff] }
 0x393   : > { %12206 = vmatmul.msk.f32.gmra.mxu3 %vm472_vm1, %v3492_v13  ;;  %v19624_v8 = vld [vmem:[#allocation23_spill] sm:$0xff]  ;;  %v3870_v47 = vld [vmem:[#allocation3 + $0x110] sm:$0xff] }
 0x394   : > { %v3757_v53 = vadd.f32 %v15302_v22, %v3721_v42  ;;  %v1202_v14 = vadd.f32 %v15294_v62, %v19624_v8  ;;  %v3493_v13 = vld [vmem:[#allocation2 + $0x16b] sm:$0xff] }
 0x396   : > { %v3789_v24 = vmax.f32 %v3757_v53, 0.0  ;;  %v1283_v52 = vmax.f32 %v1202_v14, 0.0 }
 0x397   : > { %v15400_v0 = vpop.f32.mrf.mxu0 }
 0x398   : > { %v15405_v46 = vadd.f32 %v3789_v24, %v1282_v26 }
 0x399   : > { %v3371_v45 = vpop.f32.mrf.mxu2  ;;  %v3640_v49 = vpop.f32.mrf.mxu3 }
 0x39a   : > { %12240 = vmatmul.msk.f32.gmra.mxu0 %vm472_vm1, %v3903_v48  ;;  %19623 = vst [vmem:[#allocation21_spill] sm:$0xff] %v15405_v46  ;;  %v3447_v25 = vadd.f32 %v3371_v45, %v15106_v33  ;;  %v3722_v21 = vadd.f32 %v3640_v49, %v3444_v23  ;;  %v15410_v42 = vpop.f32.mrf.mxu1  ;;  %12273 = vmatmul.msk.f32.gmra.mxu1 %vm472_vm1, %v3870_v47  ;;  %v3904_v33 = vld [vmem:[#allocation3 + $0x121] sm:$0xff] }
 0x39b   : > { %12207 = vmatmul.msk.f32.gmra.mxu3 %vm472_vm1, %v3493_v13  ;;  %v19626_v49 = vld [vmem:[#allocation28_spill] sm:$0xff]  ;;  %v3494_v13 = vld [vmem:[#allocation2 + $0x173] sm:$0xff] }
 0x39c   : > { %v3758_v38 = vadd.f32 %v15302_v22, %v3722_v21  ;;  %v1205_v8 = vadd.f32 %v15294_v62, %v19626_v49  ;;  %v3871_v47 = vld [vmem:[#allocation3 + $0x120] sm:$0xff] }
 0x39e   : > { %v3790_v26 = vmax.f32 %v3758_v38, 0.0  ;;  %v1284_v17 = vmax.f32 %v1205_v8, 0.0 }
 0x39f   : > { %v15413_v53 = vpop.f32.mrf.mxu0 }
 0x3a0   : > { %v15418_v48 = vadd.f32 %v3790_v26, %v1283_v52 }
 0x3a1   : > { %v3374_v24 = vpop.f32.mrf.mxu2  ;;  %v3643_v45 = vpop.f32.mrf.mxu3 }
 0x3a2   : > { %12241 = vmatmul.msk.f32.gmra.mxu0 %vm472_vm1, %v3904_v33  ;;  %19625 = vst [vmem:[#allocation16_spill] sm:$0xff] %v15418_v48  ;;  %v3448_v23 = vadd.f32 %v3374_v24, %v15117_v41  ;;  %v3723_v21 = vadd.f32 %v3643_v45, %v3445_v59  ;;  %v15423_v46 = vpop.f32.mrf.mxu1  ;;  %12274 = vmatmul.msk.f32.gmra.mxu1 %vm472_vm1, %v3871_v47  ;;  %v3905_v41 = vld [vmem:[#allocation3 + $0x129] sm:$0xff] }
 0x3a3   : > { %12208 = vmatmul.msk.f32.gmra.mxu3 %vm472_vm1, %v3494_v13  ;;  %v19628_v45 = vld [vmem:[#allocation33_spill] sm:$0xff] }
 0x3a4   : > { %v3759_v14 = vadd.f32 %v15302_v22, %v3723_v21  ;;  %v1208_v49 = vadd.f32 %v15294_v62, %v19628_v45  ;;  %v3872_v47 = vld [vmem:[#allocation3 + $0x128] sm:$0xff] }
 0x3a5   : > { %v3495_v13 = vld [vmem:[#allocation2 + $0x183] sm:$0xff] }
 0x3a6   : > { %v3791_v52 = vmax.f32 %v3759_v14, 0.0  ;;  %v1285_v28 = vmax.f32 %v1208_v49, 0.0 }
 0x3a7   : > { %v15426_v38 = vpop.f32.mrf.mxu0 }
 0x3a8   : > { %v15431_v33 = vadd.f32 %v3791_v52, %v1284_v17 }
 0x3a9   : > { %v3377_v26 = vpop.f32.mrf.mxu2  ;;  %v3646_v24 = vpop.f32.mrf.mxu3 }
 0x3aa   : > { %12242 = vmatmul.msk.f32.gmra.mxu0 %vm472_vm1, %v3905_v41  ;;  %19627 = vst [vmem:[#allocation15_spill] sm:$0xff] %v15431_v33  ;;  %v3449_v59 = vadd.f32 %v3377_v26, %v15136_v12  ;;  %v3724_v21 = vadd.f32 %v3646_v24, %v3446_v35  ;;  %v15436_v48 = vpop.f32.mrf.mxu1  ;;  %12275 = vmatmul.msk.f32.gmra.mxu1 %vm472_vm1, %v3872_v47  ;;  %v3906_v12 = vld [vmem:[#allocation3 + $0x139] sm:$0xff]  ;;  %v19630_v24 = vld [vmem:[#allocation38_spill] sm:$0xff] }
 0x3ab   : > { %12209 = vmatmul.msk.f32.gmra.mxu3 %vm472_vm1, %v3495_v13  ;;  %v1211_v45 = vadd.f32 %v15294_v62, %v19630_v24  ;;  %v3221_v13 = vld [vmem:[#allocation2 + $0x1b2] sm:$0xff] }
 0x3ac   : > { %v3760_v8 = vadd.f32 %v15302_v22, %v3724_v21  ;;  %v3873_v33 = vld [vmem:[#allocation3 + $0x138] sm:$0xff]  ;;  %12179 = vmatmul.msk.f32.gmra.mxu2 %vm472_vm1, %v3221_v13 }
 0x3ae   : > { %v3792_v17 = vmax.f32 %v3760_v8, 0.0 }
 0x3af   : > { %v15439_v14 = vpop.f32.mrf.mxu0 }
 0x3b0   : > { %v15444_v41 = vadd.f32 %v3792_v17, %v1285_v28  ;;  %v1286_v28 = vmax.f32 %v1211_v45, 0.0  ;;  %v3907_v17 = vld [vmem:[#allocation3 + $0x141] sm:$0xff] }
 0x3b1   : > { %v3380_v52 = vpop.f32.mrf.mxu2  ;;  %v3649_v26 = vpop.f32.mrf.mxu3 }
 0x3b2   : > { %12243 = vmatmul.msk.f32.gmra.mxu0 %vm472_vm1, %v3906_v12  ;;  %19629 = vst [vmem:[#allocation64_spill] sm:$0xff] %v15444_v41  ;;  %v15447_v35 = vadd.f32 %v3380_v52, %v15153_v34  ;;  %v3725_v21 = vadd.f32 %v3649_v26, %v3447_v25  ;;  %v15451_v49 = vpop.f32.mrf.mxu1  ;;  %v3496_v12 = vld [vmem:[#allocation2 + $0x18b] sm:$0xff]  ;;  %12276 = vmatmul.msk.f32.gmra.mxu1 %vm472_vm1, %v3873_v33 }
 0x3b3   : > { %12210 = vmatmul.msk.f32.gmra.mxu3 %vm472_vm1, %v3496_v12  ;;  %v3222_v12 = vld [vmem:[#allocation2 + $0x1ba] sm:$0xff] }
 0x3b4   : > { %v3761_v8 = vadd.f32 %v15302_v22, %v3725_v21  ;;  %v19632_v21 = vld [vmem:[#allocation43_spill] sm:$0xff]  ;;  %12180 = vmatmul.msk.f32.gmra.mxu2 %vm472_vm1, %v3222_v12 }
 0x3b5   : > { %v1214_v41 = vadd.f32 %v15294_v62, %v19632_v21 }
 0x3b6   : > { %v3793_v34 = vmax.f32 %v3761_v8, 0.0 }
 0x3b7   : > { %v15454_v47 = vpop.f32.mrf.mxu0 }
 0x3b8   : > { %v15460_v52 = vadd.f32 %v3793_v34, %v1286_v28  ;;  %v1287_v28 = vmax.f32 %v1214_v41, 0.0  ;;  %v3908_v34 = vld [vmem:[#allocation3 + $0x151] sm:$0xff] }
 0x3b9   : > { %v3383_v25 = vpop.f32.mrf.mxu2  ;;  %v3652_v24 = vpop.f32.mrf.mxu3 }
 0x3ba   : > { %12244 = vmatmul.msk.f32.gmra.mxu0 %vm472_vm1, %v3907_v17  ;;  %19631 = vst [vmem:[#allocation18_spill] sm:$0xff] %v15460_v52  ;;  %v15463_v26 = vadd.f32 %v3383_v25, %v15161_v16  ;;  %v3726_v13 = vadd.f32 %v3652_v24, %v3448_v23  ;;  %v15467_v45 = vpop.f32.mrf.mxu1  ;;  %v3497_v17 = vld [vmem:[#allocation2 + $0x19b] sm:$0xff]  ;;  %12277 = vmatmul.msk.f32.gmra.mxu1 %vm472_vm1, %v3874_v55 }
 0x3bb   : > { %12211 = vmatmul.msk.f32.gmra.mxu3 %vm472_vm1, %v3497_v17  ;;  %v4338_v17 = vld [vmem:[#allocation3 + $0x2] sm:$0xff] }
 0x3bc   : > { %v3762_v33 = vadd.f32 %v15302_v22, %v3726_v13  ;;  %v19634_v13 = vld [vmem:[#allocation48_spill] sm:$0xff]  ;;  %12284 = vmatmul.msk.f32.vlgmr.msra.gmra.mxu2 %vm472_vm1, %v4338_v17 }
 0x3bd   : > { %v1217_v52 = vadd.f32 %v15294_v62, %v19634_v13 }
 0x3be   : > { %v3794_v16 = vmax.f32 %v3762_v33, 0.0 }
 0x3bf   : > { %v15470_v8 = vpop.f32.mrf.mxu0 }
 0x3c0   : > { %v15476_v25 = vadd.f32 %v3794_v16, %v1287_v28  ;;  %v1288_v28 = vmax.f32 %v1217_v52, 0.0 }
 0x3c1   : > { %v3386_v23 = vpop.f32.mrf.mxu2  ;;  %v3655_v21 = vpop.f32.mrf.mxu3 }
 0x3c2   : > { %12245 = vmatmul.msk.f32.gmra.mxu0 %vm472_vm1, %v3908_v34  ;;  %19633 = vst [vmem:[#allocation22_spill] sm:$0xff] %v15476_v25  ;;  %v15479_v24 = vadd.f32 %v3386_v23, %v15170_v29  ;;  %v3727_v12 = vadd.f32 %v3655_v21, %v3449_v59  ;;  %v15483_v41 = vpop.f32.mrf.mxu1  ;;  %v3498_v34 = vld [vmem:[#allocation2 + $0x1a3] sm:$0xff]  ;;  %v12418_v29 = vld [vmem:[%s19194_s9 + $0x18] sm:$0xf]  ;;  %12278 = vmatmul.msk.f32.gmra.mxu1 %vm472_vm1, %v3875_v20  ;;  %v12452_v23 = vld [vmem:[%s19194_s9 + $0x1c] sm:$0xf] }
 0x3c3   : > { %12212 = vmatmul.msk.f32.gmra.mxu3 %vm472_vm1, %v3498_v34  ;;  %v3909_v59 = vld [vmem:[#allocation3 + $0x159] sm:$0xff]  ;;  %12419 = vmatpush.msk.msrb.mxu2 %vm634_vm0, %v12418_v29 }
 0x3c4   : > { %v3763_v55 = vadd.f32 %v15302_v22, %v3727_v12  ;;  %12453 = vmatpush.msk.msrb.mxu3 %vm634_vm0, %v12452_v23  ;;  %v19636_v12 = vld [vmem:[#allocation53_spill] sm:$0xff]  ;;  %v3499_v25 = vld [vmem:[#allocation2 + $0x1b3] sm:$0xff] }
 0x3c6   : > { %v3795_v16 = vmax.f32 %v3763_v55, 0.0  ;;  %v1220_v55 = vadd.f32 %v15294_v62, %v19636_v12 }
 0x3c7   : > { %v15486_v33 = vpop.f32.mrf.mxu0 }
 0x3c8   : > { %v15499_v13 = vadd.f32 %v3795_v16, %v1288_v28  ;;  %v4339_v28 = vld [vmem:[#allocation3 + $0xa] sm:$0xff]  ;;  %v3876_v16 = vld [vmem:[#allocation3 + $0x158] sm:$0xff]  ;;  %v1289_v23 = vmax.f32 %v1220_v55, 0.0  ;;  %v12520_v55 = vld [vmem:[%s19194_s9 + $0x24] sm:$0xf] }
 0x3c9   : > { %v3389_v21 = vpop.f32.mrf.mxu2  ;;  %v3658_v20 = vpop.f32.mrf.mxu3  ;;  %12285 = vmatmul.msk.f32.gmra.mxu2 %vm472_vm1, %v4339_v28  ;;  %12521 = vmatpush.msk.msrb.mxu1 %vm634_vm0, %v12520_v55 }
 0x3ca   : > { %12246 = vmatmul.msk.f32.gmra.mxu0 %vm472_vm1, %v3909_v59  ;;  %19635 = vst [vmem:[#allocation29_spill] sm:$0xff] %v15499_v13  ;;  %v15503_v52 = vadd.f32 %v3389_v21, %v15179_v1  ;;  %v3728_v17 = vadd.f32 %v3658_v20, %v15447_v35  ;;  %v15508_v34 = vpop.f32.mrf.mxu1  ;;  %12279 = vmatmul.msk.f32.gmra.mxu1 %vm472_vm1, %v3876_v16  ;;  %v3910_v21 = vld [vmem:[#allocation3 + $0x169] sm:$0xff]  ;;  %v12486_v35 = vld [vmem:[%s19194_s9 + $0x20] sm:$0xf] }
 0x3cb   : > { %12213 = vmatmul.msk.f32.gmra.mxu3 %vm472_vm1, %v3499_v25  ;;  %12487 = vmatpush.msk.msrb.mxu0 %vm634_vm0, %v12486_v35  ;;  %v19639_v25 = vld [vmem:[#allocation59_spill] sm:$0xff] }
 0x3cc   : > { %v3764_v59 = vadd.f32 %v15302_v22, %v3728_v17  ;;  %v1223_v28 = vadd.f32 %v15294_v62, %v19639_v25  ;;  %v3911_v25 = vld [vmem:[#allocation3 + $0x171] sm:$0xff] }
 0x3ce   : > { %v3796_v1 = vmax.f32 %v3764_v59, 0.0 }
 0x3cf   : > { %v15511_v29 = vpop.f32.mrf.mxu0 }
 0x3d0   : > { %19637 = vst [vmem:[#allocation30_spill] sm:$0xff] %v15511_v29  ;;  %v15520_v12 = vadd.f32 %v3796_v1, %v1289_v23  ;;  %v3500_v23 = vld [vmem:[#allocation2 + $0x1bb] sm:$0xff]  ;;  %v3878_v29 = vld [vmem:[#allocation3 + $0x170] sm:$0xff] }
 0x3d1   : > { %v3392_v20 = vpop.f32.mrf.mxu2  ;;  %v3661_v59 = vpop.f32.mrf.mxu3 }
 0x3d2   : > { %12247 = vmatmul.msk.f32.gmra.mxu0 %vm472_vm1, %v3910_v21  ;;  %19638 = vst [vmem:[#allocation26_spill] sm:$0xff] %v15520_v12  ;;  %v3454_v17 = vadd.f32 %v3392_v20, %v15188_v36  ;;  %v3729_v16 = vadd.f32 %v3661_v59, %v15463_v26  ;;  %v15531_v21 = vpop.f32.mrf.mxu1  ;;  %v4340_v36 = vld [vmem:[#allocation3 + $0x1a] sm:$0xff]  ;;  %v3877_v20 = vld [vmem:[#allocation3 + $0x168] sm:$0xff]  ;;  %v1290_v12 = vmax.f32 %v1223_v28, 0.0 }
 0x3d3   : > { %19640 = vst [vmem:[#allocation70_spill] sm:$0xff] %v15531_v21  ;;  %12286 = vmatmul.msk.f32.gmra.mxu2 %vm472_vm1, %v4340_v36  ;;  %12280 = vmatmul.msk.f32.gmra.mxu1 %vm472_vm1, %v3877_v20  ;;  %v4616_v20 = vld [vmem:[#allocation3 + $0x3] sm:$0xff] }
 0x3d4   : > { %v3765_v1 = vadd.f32 %v15302_v22, %v3729_v16  ;;  %12214 = vmatmul.msk.f32.gmra.mxu3 %vm472_vm1, %v3500_v23  ;;  %v4894_v21 = vld [vmem:[#allocation3 + $0x4] sm:$0xff] }
 0x3d6   : > { %v3797_v55 = vmax.f32 %v3765_v1, 0.0 }
 0x3d7   : > { %v15534_v35 = vpop.f32.mrf.mxu0 }
 0x3d8   : > { %19641 = vst [vmem:[#allocation27_spill] sm:$0xff] %v15534_v35  ;;  %v15540_v59 = vadd.f32 %v3797_v55, %v1290_v12  ;;  %v1226_v35 = vadd.f32 %v15294_v62, %v19643_v40 }
 0x3d9   : > { %v3395_v26 = vpop.f32.mrf.mxu2  ;;  %v3664_v13 = vpop.f32.mrf.mxu3 }
 0x3da   : > { %12248 = vmatmul.msk.f32.gmra.mxu0 %vm472_vm1, %v3911_v25  ;;  %19642 = vst [vmem:[#allocation34_spill] sm:$0xff] %v15540_v59  ;;  %v3455_v16 = vadd.f32 %v3395_v26, %v15196_v18  ;;  %v3730_v36 = vadd.f32 %v3664_v13, %v15479_v24  ;;  %v15546_v28 = vpop.f32.mrf.mxu1  ;;  %v4341_v25 = vld [vmem:[#allocation3 + $0x22] sm:$0xff]  ;;  %v1291_v12 = vmax.f32 %v1226_v35, 0.0  ;;  %v19646_v26 = vld [vmem:[#allocation71_spill] sm:$0xff] }
 0x3db   : > { %12287 = vmatmul.msk.f32.gmra.mxu2 %vm472_vm1, %v4341_v25  ;;  %12281 = vmatmul.msk.f32.gmra.mxu1 %vm472_vm1, %v3878_v29  ;;  %v5173_v35 = vld [vmem:[#allocation3 + $0x18] sm:$0xff]  ;;  %v4617_v29 = vld [vmem:[#allocation3 + $0xb] sm:$0xff] }
 0x3dc   : > { %v3766_v1 = vadd.f32 %v15302_v22, %v3730_v36  ;;  %12318 = vmatmul.msk.f32.vlgmr.msra.gmra.mxu3 %vm472_vm1, %v4616_v20  ;;  %v1229_v36 = vadd.f32 %v15294_v62, %v19646_v26 }
 0x3de   : > { %v3798_v18 = vmax.f32 %v3766_v1, 0.0 }
 0x3df   : > { %v15549_v23 = vpop.f32.mrf.mxu0 }
 0x3e0   : > { %19644 = vst [vmem:[#allocation35_spill] sm:$0xff] %v15549_v23  ;;  %v15555_v24 = vadd.f32 %v3798_v18, %v1291_v12  ;;  %v4342_v23 = vld [vmem:[#allocation3 + $0x32] sm:$0xff]  ;;  %v1292_v12 = vmax.f32 %v1229_v36, 0.0  ;;  %v4618_v36 = vld [vmem:[#allocation3 + $0x1b] sm:$0xff] }
 0x3e1   : > { %v3398_v40 = vpop.f32.mrf.mxu2  ;;  %v3667_v55 = vpop.f32.mrf.mxu3 }
 0x3e2   : > { %12352 = vmatmul.msk.f32.vlgmr.msra.gmra.mxu0 %vm472_vm1, %v4894_v21  ;;  %19645 = vst [vmem:[#allocation31_spill] sm:$0xff] %v15555_v24  ;;  %v3456_v13 = vadd.f32 %v3398_v40, %v15204_v15  ;;  %v3731_v59 = vadd.f32 %v3667_v55, %v15503_v52  ;;  %v15561_v25 = vpop.f32.mrf.mxu1  ;;  %v4895_v21 = vld [vmem:[#allocation3 + $0xc] sm:$0xff]  ;;  %v19649_v55 = vld [vmem:[#allocation76_spill] sm:$0xff] }
 0x3e3   : > { %12288 = vmatmul.msk.f32.gmra.mxu2 %vm472_vm1, %v4342_v23  ;;  %12386 = vmatmul.msk.f32.vlgmr.msra.gmra.mxu1 %vm472_vm1, %v5173_v35  ;;  %v1232_v26 = vadd.f32 %v15294_v62, %v19649_v55  ;;  %v5174_v23 = vld [vmem:[#allocation3 + $0x20] sm:$0xff] }
 0x3e4   : > { %v3767_v1 = vadd.f32 %v15302_v22, %v3731_v59  ;;  %12319 = vmatmul.msk.f32.gmra.mxu3 %vm472_vm1, %v4617_v29  ;;  %v4896_v29 = vld [vmem:[#allocation3 + $0x1c] sm:$0xff] }
 0x3e6   : > { %v3799_v15 = vmax.f32 %v3767_v1, 0.0 }
 0x3e7   : > { %v15564_v20 = vpop.f32.mrf.mxu0 }
 0x3e8   : > { %19647 = vst [vmem:[#allocation32_spill] sm:$0xff] %v15564_v20  ;;  %v15570_v18 = vadd.f32 %v3799_v15, %v1292_v12  ;;  %v1293_v12 = vmax.f32 %v1232_v26, 0.0  ;;  %v4619_v26 = vld [vmem:[#allocation3 + $0x23] sm:$0xff] }
 0x3e9   : > { %v3401_v52 = vpop.f32.mrf.mxu2  ;;  %v3670_v59 = vpop.f32.mrf.mxu3 }
 0x3ea   : > { %12353 = vmatmul.msk.f32.gmra.mxu0 %vm472_vm1, %v4895_v21  ;;  %19648 = vst [vmem:[#allocation39_spill] sm:$0xff] %v15570_v18  ;;  %v3457_v40 = vadd.f32 %v3401_v52, %v15218_v3  ;;  %v3732_v24 = vadd.f32 %v3670_v59, %v3454_v17  ;;  %v15575_v20 = vpop.f32.mrf.mxu1  ;;  %v4343_v21 = vld [vmem:[#allocation3 + $0x3a] sm:$0xff]  ;;  %v19652_v59 = vld [vmem:[#allocation82_spill] sm:$0xff] }
 0x3eb   : > { %12289 = vmatmul.msk.f32.gmra.mxu2 %vm472_vm1, %v4343_v21  ;;  %12387 = vmatmul.msk.f32.gmra.mxu1 %vm472_vm1, %v5174_v23  ;;  %v1235_v55 = vadd.f32 %v15294_v62, %v19652_v59  ;;  %v4344_v21 = vld [vmem:[#allocation3 + $0x4a] sm:$0xff] }
 0x3ec   : > { %v3768_v35 = vadd.f32 %v15302_v22, %v3732_v24  ;;  %12320 = vmatmul.msk.f32.gmra.mxu3 %vm472_vm1, %v4618_v36  ;;  %v4897_v36 = vld [vmem:[#allocation3 + $0x24] sm:$0xff] }
 0x3ee   : > { %v3800_v3 = vmax.f32 %v3768_v35, 0.0 }
 0x3ef   : > { %v15578_v1 = vpop.f32.mrf.mxu0 }
 0x3f0   : > { %19650 = vst [vmem:[#allocation40_spill] sm:$0xff] %v15578_v1  ;;  %v15584_v15 = vadd.f32 %v3800_v3, %v1293_v12  ;;  %v1294_v12 = vmax.f32 %v1235_v55, 0.0 }
 0x3f1   : > { %v3404_v17 = vpop.f32.mrf.mxu2  ;;  %v3673_v24 = vpop.f32.mrf.mxu3 }
 0x3f2   : > { %12354 = vmatmul.msk.f32.gmra.mxu0 %vm472_vm1, %v4896_v29  ;;  %19651 = vst [vmem:[#allocation36_spill] sm:$0xff] %v15584_v15  ;;  %v3458_v52 = vadd.f32 %v3404_v17, %v15226_v7  ;;  %v3733_v18 = vadd.f32 %v3673_v24, %v3455_v16  ;;  %v15589_v1 = vpop.f32.mrf.mxu1  ;;  %v5175_v29 = vld [vmem:[#allocation3 + $0x30] sm:$0xff] }
 0x3f3   : > { %12290 = vmatmul.msk.f32.gmra.mxu2 %vm472_vm1, %v4344_v21  ;;  %12388 = vmatmul.msk.f32.gmra.mxu1 %vm472_vm1, %v5175_v29  ;;  %v19655_v24 = vld [vmem:[#allocation86_spill] sm:$0xff] }
 0x3f4   : > { %v3769_v23 = vadd.f32 %v15302_v22, %v3733_v18  ;;  %12321 = vmatmul.msk.f32.gmra.mxu3 %vm472_vm1, %v4619_v26  ;;  %v1238_v59 = vadd.f32 %v15294_v62, %v19655_v24  ;;  %v5176_v26 = vld [vmem:[#allocation3 + $0x38] sm:$0xff] }
 0x3f5   : > { %v4620_v29 = vld [vmem:[#allocation3 + $0x33] sm:$0xff] }
 0x3f6   : > { %v3801_v7 = vmax.f32 %v3769_v23, 0.0  ;;  %v4345_v23 = vld [vmem:[#allocation3 + $0x52] sm:$0xff] }
 0x3f7   : > { %v15592_v35 = vpop.f32.mrf.mxu0 }
 0x3f8   : > { %19653 = vst [vmem:[#allocation81_spill] sm:$0xff] %v15592_v35  ;;  %v15598_v3 = vadd.f32 %v3801_v7, %v1294_v12  ;;  %v4898_v12 = vld [vmem:[#allocation3 + $0x34] sm:$0xff] }
 0x3f9   : > { %v3407_v16 = vpop.f32.mrf.mxu2  ;;  %v3676_v17 = vpop.f32.mrf.mxu3 }
 0x3fa   : > { %12355 = vmatmul.msk.f32.gmra.mxu0 %vm472_vm1, %v4897_v36  ;;  %19654 = vst [vmem:[#allocation37_spill] sm:$0xff] %v15598_v3  ;;  %v3459_v18 = vadd.f32 %v3407_v16, %v15234_v63  ;;  %v3734_v15 = vadd.f32 %v3676_v17, %v3456_v13  ;;  %v15603_v35 = vpop.f32.mrf.mxu1  ;;  %v1295_v36 = vmax.f32 %v1238_v59, 0.0  ;;  %v19658_v17 = vld [vmem:[#allocation88_spill] sm:$0xff] }
 0x3fb   : > { %12291 = vmatmul.msk.f32.gmra.mxu2 %vm472_vm1, %v4345_v23  ;;  %12389 = vmatmul.msk.f32.gmra.mxu1 %vm472_vm1, %v5176_v26  ;;  %v1241_v24 = vadd.f32 %v15294_v62, %v19658_v17  ;;  %v4346_v26 = vld [vmem:[#allocation3 + $0x62] sm:$0xff] }
 0x3fc   : > { %v3770_v55 = vadd.f32 %v15302_v22, %v3734_v15  ;;  %12322 = vmatmul.msk.f32.gmra.mxu3 %vm472_vm1, %v4620_v29  ;;  %v5177_v29 = vld [vmem:[#allocation3 + $0x48] sm:$0xff] }
 0x3fe   : > { %v3802_v63 = vmax.f32 %v3770_v55, 0.0 }
 0x3ff   : > { %v15606_v21 = vpop.f32.mrf.mxu0 }
 0x400   : > { %19656 = vst [vmem:[#allocation44_spill] sm:$0xff] %v15606_v21  ;;  %v15612_v7 = vadd.f32 %v3802_v63, %v1295_v36  ;;  %v4621_v21 = vld [vmem:[#allocation3 + $0x3b] sm:$0xff]  ;;  %v1296_v36 = vmax.f32 %v1241_v24, 0.0 }
 0x401   : > { %v3410_v13 = vpop.f32.mrf.mxu2  ;;  %v3679_v16 = vpop.f32.mrf.mxu3  ;;  %v4899_v63 = vld [vmem:[#allocation3 + $0x3c] sm:$0xff] }
 0x402   : > { %12356 = vmatmul.msk.f32.gmra.mxu0 %vm472_vm1, %v4898_v12  ;;  %19657 = vst [vmem:[#allocation45_spill] sm:$0xff] %v15612_v7  ;;  %v3460_v15 = vadd.f32 %v3410_v13, %v15242_v10  ;;  %v3735_v3 = vadd.f32 %v3679_v16, %v3457_v40  ;;  %v15617_v23 = vpop.f32.mrf.mxu1  ;;  %v19661_v16 = vld [vmem:[#allocation90_spill] sm:$0xff] }
 0x403   : > { %12292 = vmatmul.msk.f32.gmra.mxu2 %vm472_vm1, %v4346_v26  ;;  %12390 = vmatmul.msk.f32.gmra.mxu1 %vm472_vm1, %v5177_v29  ;;  %v1244_v17 = vadd.f32 %v15294_v62, %v19661_v16  ;;  %v5178_v29 = vld [vmem:[#allocation3 + $0x50] sm:$0xff] }
 0x404   : > { %v3771_v59 = vadd.f32 %v15302_v22, %v3735_v3  ;;  %12323 = vmatmul.msk.f32.gmra.mxu3 %vm472_vm1, %v4621_v21  ;;  %v4347_v21 = vld [vmem:[#allocation3 + $0x6a] sm:$0xff] }
 0x406   : > { %v3803_v10 = vmax.f32 %v3771_v59, 0.0 }
 0x407   : > { %v15620_v55 = vpop.f32.mrf.mxu0 }
 0x408   : > { %19659 = vst [vmem:[#allocation41_spill] sm:$0xff] %v15620_v55  ;;  %v15626_v12 = vadd.f32 %v3803_v10, %v1296_v36  ;;  %v4622_v55 = vld [vmem:[#allocation3 + $0x4b] sm:$0xff]  ;;  %v1297_v36 = vmax.f32 %v1244_v17, 0.0 }
 0x409   : > { %v3413_v40 = vpop.f32.mrf.mxu2  ;;  %v3682_v13 = vpop.f32.mrf.mxu3  ;;  %v4900_v10 = vld [vmem:[#allocation3 + $0x4c] sm:$0xff] }
 0x40a   : > { %12357 = vmatmul.msk.f32.gmra.mxu0 %vm472_vm1, %v4899_v63  ;;  %19660 = vst [vmem:[#allocation42_spill] sm:$0xff] %v15626_v12  ;;  %v3461_v3 = vadd.f32 %v3413_v40, %v15250_v50  ;;  %v3736_v7 = vadd.f32 %v3682_v13, %v3458_v52  ;;  %v15631_v26 = vpop.f32.mrf.mxu1  ;;  %v19664_v13 = vld [vmem:[#allocation94_spill] sm:$0xff] }
 0x40b   : > { %12293 = vmatmul.msk.f32.gmra.mxu2 %vm472_vm1, %v4347_v21  ;;  %12391 = vmatmul.msk.f32.gmra.mxu1 %vm472_vm1, %v5178_v29  ;;  %v1247_v16 = vadd.f32 %v15294_v62, %v19664_v13  ;;  %v5179_v29 = vld [vmem:[#allocation3 + $0x60] sm:$0xff] }
 0x40c   : > { %v3772_v24 = vadd.f32 %v15302_v22, %v3736_v7  ;;  %12324 = vmatmul.msk.f32.gmra.mxu3 %vm472_vm1, %v4622_v55  ;;  %v4348_v55 = vld [vmem:[#allocation3 + $0x7a] sm:$0xff] }
 0x40e   : > { %v3804_v50 = vmax.f32 %v3772_v24, 0.0 }
 0x40f   : > { %v15634_v59 = vpop.f32.mrf.mxu0 }
 0x410   : > { %19662 = vst [vmem:[#allocation49_spill] sm:$0xff] %v15634_v59  ;;  %v15640_v63 = vadd.f32 %v3804_v50, %v1297_v36  ;;  %v4623_v59 = vld [vmem:[#allocation3 + $0x53] sm:$0xff]  ;;  %v1298_v36 = vmax.f32 %v1247_v16, 0.0 }
 0x411   : > { %v3416_v52 = vpop.f32.mrf.mxu2  ;;  %v3685_v40 = vpop.f32.mrf.mxu3  ;;  %v4901_v50 = vld [vmem:[#allocation3 + $0x54] sm:$0xff] }
 0x412   : > { %12358 = vmatmul.msk.f32.gmra.mxu0 %vm472_vm1, %v4900_v10  ;;  %19663 = vst [vmem:[#allocation50_spill] sm:$0xff] %v15640_v63  ;;  %v3462_v7 = vadd.f32 %v3416_v52, %v15258_v30  ;;  %v3737_v12 = vadd.f32 %v3685_v40, %v3459_v18  ;;  %v15645_v21 = vpop.f32.mrf.mxu1  ;;  %v19667_v40 = vld [vmem:[#allocation98_spill] sm:$0xff] }
 0x413   : > { %12294 = vmatmul.msk.f32.gmra.mxu2 %vm472_vm1, %v4348_v55  ;;  %12392 = vmatmul.msk.f32.gmra.mxu1 %vm472_vm1, %v5179_v29  ;;  %v1250_v13 = vadd.f32 %v15294_v62, %v19667_v40  ;;  %v5180_v29 = vld [vmem:[#allocation3 + $0x68] sm:$0xff] }
 0x414   : > { %v3773_v17 = vadd.f32 %v15302_v22, %v3737_v12  ;;  %12325 = vmatmul.msk.f32.gmra.mxu3 %vm472_vm1, %v4623_v59  ;;  %v4349_v59 = vld [vmem:[#allocation3 + $0x82] sm:$0xff] }
 0x416   : > { %v3805_v30 = vmax.f32 %v3773_v17, 0.0 }
 0x417   : > { %v15648_v24 = vpop.f32.mrf.mxu0 }
 0x418   : > { %19665 = vst [vmem:[#allocation46_spill] sm:$0xff] %v15648_v24  ;;  %v15654_v10 = vadd.f32 %v3805_v30, %v1298_v36  ;;  %v15664_v24 = vld [vmem:[#allocation3 + $0x63] sm:$0xff]  ;;  %v1299_v36 = vmax.f32 %v1250_v13, 0.0 }
 0x419   : > { %v3419_v18 = vpop.f32.mrf.mxu2  ;;  %v3688_v52 = vpop.f32.mrf.mxu3  ;;  %19668 = vst [vmem:[#allocation54_spill] sm:$0xff] %v15664_v24 }
 0x41a   : > { %12359 = vmatmul.msk.f32.gmra.mxu0 %vm472_vm1, %v4901_v50  ;;  %19666 = vst [vmem:[#allocation47_spill] sm:$0xff] %v15654_v10  ;;  %v3463_v12 = vadd.f32 %v3419_v18, %v15266_v31  ;;  %v3738_v63 = vadd.f32 %v3688_v52, %v3460_v15  ;;  %v15659_v55 = vpop.f32.mrf.mxu1  ;;  %v15670_v15 = vld [vmem:[#allocation3 + $0x64] sm:$0xff]  ;;  %v1253_v52 = vadd.f32 %v15294_v62, %v14813_v37  ;;  %v5181_v10 = vld [vmem:[#allocation3 + $0x78] sm:$0xff]  ;;  %v15690_v37 = vld [vmem:[#allocation3 + $0x6c] sm:$0xff] }
 0x41b   : > { %12295 = vmatmul.msk.f32.gmra.mxu2 %vm472_vm1, %v4349_v59  ;;  %12393 = vmatmul.msk.f32.gmra.mxu1 %vm472_vm1, %v5180_v29  ;;  %19669 = vst [vmem:[#allocation55_spill] sm:$0xff] %v15670_v15  ;;  %v4350_v29 = vld [vmem:[#allocation3 + $0x92] sm:$0xff] }
 0x41c   : > { %v3774_v16 = vadd.f32 %v15302_v22, %v3738_v63  ;;  %12326 = vmatmul.msk.f32.gmra.mxu3 %vm472_vm1, %v15664_v24  ;;  %v15684_v24 = vld [vmem:[#allocation3 + $0x6b] sm:$0xff]  ;;  %19673 = vst [vmem:[#allocation61_spill] sm:$0xff] %v15690_v37 }
 0x41d   : > { %19672 = vst [vmem:[#allocation60_spill] sm:$0xff] %v15684_v24 }
 0x41e   : > { %v3806_v31 = vmax.f32 %v3774_v16, 0.0 }
 0x41f   : > { %v15662_v17 = vpop.f32.mrf.mxu0 }
 0x420   : > { %v15674_v30 = vadd.f32 %v3806_v31, %v1299_v36  ;;  %v1300_v36 = vmax.f32 %v1253_v52, 0.0 }
 0x421   : > { %v3422_v63 = vpop.f32.mrf.mxu2  ;;  %v3691_v18 = vpop.f32.mrf.mxu3 }
 0x422   : > { %12360 = vmatmul.msk.f32.gmra.mxu0 %vm472_vm1, %v15670_v15  ;;  %19670 = vst [vmem:[#allocation51_spill] sm:$0xff] %v15674_v30  ;;  %v3464_v50 = vadd.f32 %v3422_v63, %v15273_v54  ;;  %v3739_v40 = vadd.f32 %v3691_v18, %v3461_v3  ;;  %v15679_v13 = vpop.f32.mrf.mxu1  ;;  %v5182_v15 = vld [vmem:[#allocation3 + $0x80] sm:$0xff] }
 0x423   : > { %12296 = vmatmul.msk.f32.gmra.mxu2 %vm472_vm1, %v4350_v29  ;;  %12394 = vmatmul.msk.f32.gmra.mxu1 %vm472_vm1, %v5181_v10 }
 0x424   : > { %v3775_v16 = vadd.f32 %v15302_v22, %v3739_v40  ;;  %12327 = vmatmul.msk.f32.gmra.mxu3 %vm472_vm1, %v15684_v24  ;;  %v19675_v40 = vld [vmem:[#allocation99_spill] sm:$0xff] }
 0x425   : > { %v1256_v52 = vadd.f32 %v15294_v62, %v19675_v40  ;;  %v4351_v24 = vld [vmem:[#allocation3 + $0x9a] sm:$0xff] }
 0x426   : > { %v3807_v54 = vmax.f32 %v3775_v16, 0.0 }
 0x427   : > { %v15682_v59 = vpop.f32.mrf.mxu0 }
 0x428   : > { %19671 = vst [vmem:[#allocation52_spill] sm:$0xff] %v15682_v59  ;;  %v15694_v31 = vadd.f32 %v3807_v54, %v1300_v36  ;;  %v15704_v59 = vld [vmem:[#allocation3 + $0x7b] sm:$0xff]  ;;  %v1301_v36 = vmax.f32 %v1256_v52, 0.0 }
 0x429   : > { %v3425_v3 = vpop.f32.mrf.mxu2  ;;  %v3694_v18 = vpop.f32.mrf.mxu3  ;;  %19676 = vst [vmem:[#allocation57_spill] sm:$0xff] %v15704_v59 }
 0x42a   : > { %12361 = vmatmul.msk.f32.gmra.mxu0 %vm472_vm1, %v15690_v37  ;;  %19674 = vst [vmem:[#allocation56_spill] sm:$0xff] %v15694_v31  ;;  %v3465_v63 = vadd.f32 %v3425_v3, %v15280_v19  ;;  %v3740_v29 = vadd.f32 %v3694_v18, %v3462_v7  ;;  %v15699_v10 = vpop.f32.mrf.mxu1  ;;  %v15710_v7 = vld [vmem:[#allocation3 + $0x7c] sm:$0xff]  ;;  %v5183_v37 = vld [vmem:[#allocation3 + $0x90] sm:$0xff] }
 0x42b   : > { %12297 = vmatmul.msk.f32.gmra.mxu2 %vm472_vm1, %v4351_v24  ;;  %12395 = vmatmul.msk.f32.gmra.mxu1 %vm472_vm1, %v5182_v15  ;;  %19677 = vst [vmem:[#allocation66_spill] sm:$0xff] %v15710_v7  ;;  %v19679_v24 = vld [vmem:[#allocation100_spill] sm:$0xff] }
 0x42c   : > { %v3776_v16 = vadd.f32 %v15302_v22, %v3740_v29  ;;  %12328 = vmatmul.msk.f32.gmra.mxu3 %vm472_vm1, %v15704_v59  ;;  %v1259_v52 = vadd.f32 %v15294_v62, %v19679_v24  ;;  %v4352_v59 = vld [vmem:[#allocation3 + $0xaa] sm:$0xff] }
 0x42d   : > { %v15732_v62 = vld [vmem:[#allocation3 + $0x84] sm:$0xff] }
 0x42e   : > { %v3808_v19 = vmax.f32 %v3776_v16, 0.0  ;;  %19682 = vst [vmem:[#allocation72_spill] sm:$0xff] %v15732_v62 }
 0x42f   : > { %v15702_v30 = vpop.f32.mrf.mxu0 }
 0x430   : > { %v15714_v3 = vadd.f32 %v3808_v19, %v1301_v36  ;;  %v1302_v36 = vmax.f32 %v1259_v52, 0.0 }
 0x431   : > { %v3428_v54 = vpop.f32.mrf.mxu2  ;;  %v3697_v40 = vpop.f32.mrf.mxu3 }
 0x432   : > { %12362 = vmatmul.msk.f32.gmra.mxu0 %vm472_vm1, %v15710_v7  ;;  %19678 = vst [vmem:[#allocation67_spill] sm:$0xff] %v15714_v3  ;;  %v15717_v18 = vadd.f32 %v3428_v54, %v15287_v9  ;;  %v3741_v15 = vadd.f32 %v3697_v40, %v3463_v12  ;;  %v15721_v29 = vpop.f32.mrf.mxu1  ;;  %v15726_v7 = vld [vmem:[#allocation3 + $0x83] sm:$0xff] }
 0x433   : > { %19681 = vst [vmem:[#allocation63_spill] sm:$0xff] %v15726_v7  ;;  %12298 = vmatmul.msk.f32.gmra.mxu2 %vm472_vm1, %v4352_v59  ;;  %12396 = vmatmul.msk.f32.gmra.mxu1 %vm472_vm1, %v5183_v37  ;;  %v15744_v59 = vld [vmem:[%s19609_s2] ss:$0 sm:$0xff]  ;;  %v19684_v37 = vld [vmem:[#allocation101_spill] sm:$0xff] }
 0x434   : > { %v3777_v16 = vadd.f32 %v15302_v22, %v3741_v15  ;;  %12329 = vmatmul.msk.f32.gmra.mxu3 %vm472_vm1, %v15726_v7  ;;  %v1262_v40 = vadd.f32 %v15744_v59, %v19684_v37  ;;  %v15753_v15 = vld [vmem:[%s19191_s6] ss:$0 sm:$0xff]  ;;  %v19689_v7 = vld [vmem:[#allocation102_spill] sm:$0xff] }
 0x436   : > { %v3809_v9 = vmax.f32 %v3777_v16, 0.0 }
 0x437   : > { %v15724_v31 = vpop.f32.mrf.mxu0 }
 0x438   : > { %19680 = vst [vmem:[#allocation62_spill] sm:$0xff] %v15724_v31  ;;  %v15736_v22 = vadd.f32 %v3809_v9, %v1302_v36  ;;  %v4353_v36 = vld [vmem:[#allocation3 + $0xb2] sm:$0xff]  ;;  %v15778_v31 = vld [vmem:[#allocation3 + $0x9b] sm:$0xff] }
 0x439   : > { %v3431_v12 = vpop.f32.mrf.mxu2  ;;  %v3700_v19 = vpop.f32.mrf.mxu3  ;;  %v5184_v9 = vld [vmem:[#allocation3 + $0x98] sm:$0xff]  ;;  %19690 = vst [vmem:[#allocation74_spill] sm:$0xff] %v15778_v31 }
 0x43a   : > { %12363 = vmatmul.msk.f32.gmra.mxu0 %vm472_vm1, %v15732_v62  ;;  %19683 = vst [vmem:[#allocation73_spill] sm:$0xff] %v15736_v22  ;;  %v15739_v54 = vadd.f32 %v3431_v12, %v15310_v58  ;;  %v3742_v24 = vadd.f32 %v3700_v19, %v3464_v50  ;;  %v15748_v52 = vpop.f32.mrf.mxu1  ;;  %v15758_v12 = vld [vmem:[#allocation3 + $0x93] sm:$0xff]  ;;  %v1303_v22 = vmax.f32 %v1262_v40, 0.0  ;;  %v1265_v40 = vadd.f32 %v15744_v59, %v19689_v7 }
 0x43b   : > { %19685 = vst [vmem:[#allocation68_spill] sm:$0xff] %v15748_v52  ;;  %12299 = vmatmul.msk.f32.gmra.mxu2 %vm472_vm1, %v4353_v36  ;;  %12397 = vmatmul.msk.f32.gmra.mxu1 %vm472_vm1, %v5184_v9  ;;  %v15764_v19 = vld [vmem:[#allocation3 + $0x94] sm:$0xff]  ;;  %v5185_v52 = vld [vmem:[#allocation3 + $0xa8] sm:$0xff]  ;;  %v4243_v7 = vadd.f32 %v15312_v61, %v15289_v56 }
 0x43c   : > { %v3778_v16 = vadd.f32 %v15753_v15, %v3742_v24  ;;  %19687 = vst [vmem:[#allocation77_spill] sm:$0xff] %v15758_v12  ;;  %12330 = vmatmul.msk.f32.gmra.mxu3 %vm472_vm1, %v15758_v12  ;;  %v15800_v56 = vld [vmem:[#allocation3 + $0xca] sm:$0xff] }
 0x43d   : > { %19694 = vst [vmem:[#allocation84_spill] sm:$0xff] %v15800_v56  ;;  %v5186_v61 = vld [vmem:[#allocation3 + $0xb0] sm:$0xff] }
 0x43e   : > { %v3810_v50 = vmax.f32 %v3778_v16, 0.0 }
 0x43f   : > { %v15756_v58 = vpop.f32.mrf.mxu0 }
 0x440   : > { %19686 = vst [vmem:[#allocation69_spill] sm:$0xff] %v15756_v58  ;;  %v15768_v37 = vadd.f32 %v3810_v50, %v1303_v22  ;;  %v4354_v58 = vld [vmem:[#allocation3 + $0xc2] sm:$0xff]  ;;  %v1304_v22 = vmax.f32 %v1265_v40, 0.0  ;;  %v19693_v40 = vld [vmem:[#allocation103_spill] sm:$0xff] }
 0x441   : > { %v3434_v24 = vpop.f32.mrf.mxu2  ;;  %v3703_v3 = vpop.f32.mrf.mxu3 }
 0x442   : > { %12364 = vmatmul.msk.f32.gmra.mxu0 %vm472_vm1, %v15764_v19  ;;  %19688 = vst [vmem:[#allocation78_spill] sm:$0xff] %v15768_v37  ;;  %v3468_v62 = vadd.f32 %v3434_v24, %v15326_v44  ;;  %v3743_v36 = vadd.f32 %v3703_v3, %v3465_v63  ;;  %v15773_v9 = vpop.f32.mrf.mxu1  ;;  %v15784_v63 = vld [vmem:[#allocation3 + $0x9c] sm:$0xff] }
 0x443   : > { %12300 = vmatmul.msk.f32.gmra.mxu2 %vm472_vm1, %v4354_v58  ;;  %12398 = vmatmul.msk.f32.gmra.mxu1 %vm472_vm1, %v5185_v52  ;;  %19691 = vst [vmem:[#allocation75_spill] sm:$0xff] %v15784_v63  ;;  %v1268_v52 = vadd.f32 %v15744_v59, %v19693_v40 }
 0x444   : > { %v3779_v16 = vadd.f32 %v15753_v15, %v3743_v36  ;;  %12331 = vmatmul.msk.f32.gmra.mxu3 %vm472_vm1, %v15778_v31 }
 0x446   : > { %v3811_v44 = vmax.f32 %v3779_v16, 0.0 }
 0x447   : > { %v15776_v12 = vpop.f32.mrf.mxu0 }
 0x448   : > { %v15790_v3 = vadd.f32 %v3811_v44, %v1304_v22  ;;  %v1305_v22 = vmax.f32 %v1268_v52, 0.0  ;;  %v19698_v52 = vld [vmem:[#allocation104_spill] sm:$0xff] }
 0x449   : > { %v4488_v50 = vpop.f32.mrf.mxu2  ;;  %v3706_v24 = vpop.f32.mrf.mxu3 }
 0x44a   : > { %12365 = vmatmul.msk.f32.gmra.mxu0 %vm472_vm1, %v15784_v63  ;;  %19692 = vst [vmem:[#allocation83_spill] sm:$0xff] %v15790_v3  ;;  %v4584_v58 = vadd.f32 %v4488_v50, %v4243_v7  ;;  %v3744_v36 = vadd.f32 %v3706_v24, %v15717_v18  ;;  %v15795_v16 = vpop.f32.mrf.mxu1  ;;  %v15802_v63 = vld [vmem:[#allocation3 + $0xab] sm:$0xff]  ;;  %v4246_v7 = vadd.f32 %v15328_v60, %v15315_v27  ;;  %v15825_v27 = vld [vmem:[#allocation3 + $0xda] sm:$0xff] }
 0x44b   : > { %19695 = vst [vmem:[#allocation79_spill] sm:$0xff] %v15802_v63  ;;  %12301 = vmatmul.msk.f32.gmra.mxu2 %vm472_vm1, %v15800_v56  ;;  %12399 = vmatmul.msk.f32.gmra.mxu1 %vm472_vm1, %v5186_v61  ;;  %v15809_v18 = vld [vmem:[#allocation3 + $0xac] sm:$0xff]  ;;  %v1271_v61 = vadd.f32 %v15744_v59, %v19698_v52  ;;  %v5187_v60 = vld [vmem:[#allocation3 + $0xc0] sm:$0xff] }
 0x44c   : > { %v3780_v37 = vadd.f32 %v15753_v15, %v3744_v36  ;;  %12332 = vmatmul.msk.f32.gmra.mxu3 %vm472_vm1, %v15802_v63  ;;  %19696 = vst [vmem:[#allocation80_spill] sm:$0xff] %v15809_v18 }
 0x44d   : > { %19700 = vst [vmem:[#allocation91_spill] sm:$0xff] %v15825_v27 }
 0x44e   : > { %v3812_v44 = vmax.f32 %v3780_v37, 0.0 }
 0x44f   : > { %v15798_v31 = vpop.f32.mrf.mxu0 }
 0x450   : > { %v15815_v50 = vadd.f32 %v3812_v44, %v1305_v22  ;;  %v1306_v22 = vmax.f32 %v1271_v61, 0.0  ;;  %v19703_v61 = vld [vmem:[#allocation105_spill] sm:$0xff] }
 0x451   : > { %v4491_v24 = vpop.f32.mrf.mxu2  ;;  %v3709_v40 = vpop.f32.mrf.mxu3 }
 0x452   : > { %12366 = vmatmul.msk.f32.gmra.mxu0 %vm472_vm1, %v15809_v18  ;;  %19697 = vst [vmem:[#allocation87_spill] sm:$0xff] %v15815_v50  ;;  %v4585_v36 = vadd.f32 %v4491_v24, %v4246_v7  ;;  %v3745_v37 = vadd.f32 %v3709_v40, %v15739_v54  ;;  %v15820_v3 = vpop.f32.mrf.mxu1  ;;  %v15827_v18 = vld [vmem:[#allocation3 + $0xb3] sm:$0xff]  ;;  %v4249_v7 = vadd.f32 %v15342_v51, %v15331_v5  ;;  %v5188_v5 = vld [vmem:[#allocation3 + $0xc8] sm:$0xff] }
 0x453   : > { %19701 = vst [vmem:[#allocation92_spill] sm:$0xff] %v15827_v18  ;;  %12302 = vmatmul.msk.f32.gmra.mxu2 %vm472_vm1, %v15825_v27  ;;  %12400 = vmatmul.msk.f32.gmra.mxu1 %vm472_vm1, %v5187_v60  ;;  %v15834_v54 = vld [vmem:[#allocation3 + $0xb4] sm:$0xff]  ;;  %v1274_v60 = vadd.f32 %v15744_v59, %v19703_v61  ;;  %v15849_v51 = vld [vmem:[#allocation3 + $0xc3] sm:$0xff]  ;;  %v4252_v59 = vadd.f32 %v15357_v2, %v15345_v43  ;;  %v15877_v43 = vld [vmem:[#allocation3 + $0xcc] sm:$0xff] }
 0x454   : > { %v3781_v56 = vadd.f32 %v15753_v15, %v3745_v37  ;;  %12333 = vmatmul.msk.f32.gmra.mxu3 %vm472_vm1, %v15827_v18  ;;  %v4255_v2 = vadd.f32 %v15371_v57, %v15360_v11  ;;  %v15896_v11 = vld [vmem:[#allocation3 + $0xdc] sm:$0xff]  ;;  %v4258_v57 = vadd.f32 %v15384_v39, %v15374_v32  ;;  %v15915_v32 = vld [vmem:[#allocation3 + $0xe4] sm:$0xff]  ;;  %v4261_v39 = vadd.f32 %v15397_v6, %v15387_v4  ;;  %v15934_v4 = vld [vmem:[#allocation3 + $0xf4] sm:$0xff] }
 0x455   : > { %19709 = vst [vmem:[#allocation9_spill] sm:$0xff] %v15896_v11  ;;  %v4264_v6 = vadd.f32 %v15410_v42, %v15400_v0  ;;  %v15953_v0 = vld [vmem:[#allocation3 + $0xfc] sm:$0xff]  ;;  %v4267_v42 = vadd.f32 %v15423_v46, %v15413_v53  ;;  %v15972_v46 = vld [vmem:[#allocation3 + $0x10c] sm:$0xff]  ;;  %v4270_v53 = vadd.f32 %v15436_v48, %v15426_v38  ;;  %v15991_v48 = vld [vmem:[#allocation3 + $0x114] sm:$0xff]  ;;  %v4273_v38 = vadd.f32 %v15451_v49, %v15439_v14 }
 0x456   : > { %v3813_v44 = vmax.f32 %v3781_v56, 0.0  ;;  %19712 = vst [vmem:[#allocation13_spill] sm:$0xff] %v15915_v32  ;;  %v16010_v14 = vld [vmem:[#allocation3 + $0x124] sm:$0xff]  ;;  %v4276_v49 = vadd.f32 %v15467_v45, %v15454_v47  ;;  %v16033_v45 = vld [vmem:[#allocation3 + $0x12c] sm:$0xff] }
 0x457   : > { %v15823_v63 = vpop.f32.mrf.mxu0  ;;  %19715 = vst [vmem:[#allocation23_spill] sm:$0xff] %v15934_v4 }
 0x458   : > { %19699 = vst [vmem:[#allocation85_spill] sm:$0xff] %v15823_v63  ;;  %v15840_v24 = vadd.f32 %v3813_v44, %v1306_v22  ;;  %v15847_v63 = vld [vmem:[#allocation3 + $0xe2] sm:$0xff]  ;;  %v1307_v22 = vmax.f32 %v1274_v60, 0.0 }
 0x459   : > { %v4494_v40 = vpop.f32.mrf.mxu2  ;;  %v3712_v52 = vpop.f32.mrf.mxu3  ;;  %19704 = vst [vmem:[#allocation95_spill] sm:$0xff] %v15847_v63 }
 0x45a   : > { %12367 = vmatmul.msk.f32.gmra.mxu0 %vm472_vm1, %v15834_v54  ;;  %19702 = vst [vmem:[#allocation89_spill] sm:$0xff] %v15840_v24  ;;  %v4586_v37 = vadd.f32 %v4494_v40, %v4249_v7  ;;  %v3746_v56 = vadd.f32 %v3712_v52, %v3468_v62  ;;  %v15844_v50 = vpop.f32.mrf.mxu1  ;;  %v15856_v62 = vld [vmem:[#allocation3 + $0xc4] sm:$0xff]  ;;  %v5189_v24 = vld [vmem:[#allocation3 + $0xd8] sm:$0xff] }
 0x45b   : > { %12303 = vmatmul.msk.f32.gmra.mxu2 %vm472_vm1, %v15847_v63  ;;  %12401 = vmatmul.msk.f32.gmra.mxu1 %vm472_vm1, %v5188_v5  ;;  %v15868_v5 = vld [vmem:[#allocation3 + $0xf2] sm:$0xff]  ;;  %19718 = vst [vmem:[#allocation38_spill] sm:$0xff] %v15953_v0 }
 0x45c   : > { %v3782_v27 = vadd.f32 %v15753_v15, %v3746_v56  ;;  %12334 = vmatmul.msk.f32.gmra.mxu3 %vm472_vm1, %v15849_v51  ;;  %19706 = vst [vmem:[#allocation93_spill] sm:$0xff] %v15868_v5  ;;  %v15870_v63 = vld [vmem:[#allocation3 + $0xcb] sm:$0xff] }
 0x45d   : > { %19721 = vst [vmem:[#allocation53_spill] sm:$0xff] %v15972_v46 }
 0x45e   : > { %v3814_v44 = vmax.f32 %v3782_v27, 0.0  ;;  %19724 = vst [vmem:[#allocation71_spill] sm:$0xff] %v15991_v48 }
 0x45f   : > { %v5044_v18 = vpop.f32.mrf.mxu0  ;;  %19729 = vst [vmem:[#allocation90_spill] sm:$0xff] %v16033_v45 }
 0x460   : > { %v15862_v15 = vadd.f32 %v3814_v44, %v1307_v22 }
 0x461   : > { %v4497_v7 = vpop.f32.mrf.mxu2  ;;  %v4766_v40 = vpop.f32.mrf.mxu3 }
 0x462   : > { %12368 = vmatmul.msk.f32.gmra.mxu0 %vm472_vm1, %v15856_v62  ;;  %19705 = vst [vmem:[#allocation96_spill] sm:$0xff] %v15862_v15  ;;  %v4587_v52 = vadd.f32 %v4497_v7, %v4252_v59  ;;  %v4862_v61 = vadd.f32 %v4766_v40, %v4584_v58  ;;  %v15864_v60 = vpop.f32.mrf.mxu1  ;;  %v15887_v40 = vld [vmem:[#allocation3 + $0xfa] sm:$0xff] }
 0x463   : > { %12304 = vmatmul.msk.f32.gmra.mxu2 %vm472_vm1, %v15868_v5  ;;  %12402 = vmatmul.msk.f32.gmra.mxu1 %vm472_vm1, %v5189_v24  ;;  %19707 = vst [vmem:[#allocation97_spill] sm:$0xff] %v15887_v40  ;;  %v15889_v15 = vld [vmem:[#allocation3 + $0xdb] sm:$0xff]  ;;  %v5191_v5 = vld [vmem:[#allocation3 + $0xf0] sm:$0xff] }
 0x464   : > { %v15866_v27 = vadd.f32 %v5044_v18, %v4862_v61  ;;  %12335 = vmatmul.msk.f32.gmra.mxu3 %vm472_vm1, %v15870_v63  ;;  %v5190_v61 = vld [vmem:[#allocation3 + $0xe0] sm:$0xff]  ;;  %19708 = vst [vmem:[#allocation8_spill] sm:$0xff] %v15889_v15 }
 0x466   : > { %v16028_v47 = vadd.f32 %v15864_v60, %v15866_v27 }
 0x467   : > { %v5047_v56 = vpop.f32.mrf.mxu0 }
 0x469   : > { %v4500_v58 = vpop.f32.mrf.mxu2  ;;  %v4769_v18 = vpop.f32.mrf.mxu3 }
 0x46a   : > { %12369 = vmatmul.msk.f32.gmra.mxu0 %vm472_vm1, %v15877_v43  ;;  %v4588_v22 = vadd.f32 %v4500_v58, %v4255_v2  ;;  %v4863_v44 = vadd.f32 %v4769_v18, %v4585_v36  ;;  %v15883_v59 = vpop.f32.mrf.mxu1 }
 0x46b   : > { %12305 = vmatmul.msk.f32.gmra.mxu2 %vm472_vm1, %v15887_v40  ;;  %12403 = vmatmul.msk.f32.gmra.mxu1 %vm472_vm1, %v5190_v61  ;;  %v15906_v40 = vld [vmem:[#allocation3 + $0x10a] sm:$0xff] }
 0x46c   : > { %v15885_v7 = vadd.f32 %v5047_v56, %v4863_v44  ;;  %12336 = vmatmul.msk.f32.gmra.mxu3 %vm472_vm1, %v15889_v15  ;;  %19710 = vst [vmem:[#allocation10_spill] sm:$0xff] %v15906_v40  ;;  %v15908_v15 = vld [vmem:[#allocation3 + $0xe3] sm:$0xff] }
 0x46d   : > { %19711 = vst [vmem:[#allocation11_spill] sm:$0xff] %v15908_v15 }
 0x46f   : > { %v5050_v24 = vpop.f32.mrf.mxu0 }
 0x471   : > { %v4503_v36 = vpop.f32.mrf.mxu2  ;;  %v4772_v56 = vpop.f32.mrf.mxu3 }
 0x472   : > { %12370 = vmatmul.msk.f32.gmra.mxu0 %vm472_vm1, %v15896_v11  ;;  %v4589_v2 = vadd.f32 %v4503_v36, %v4258_v57  ;;  %v4864_v58 = vadd.f32 %v4772_v56, %v4586_v37  ;;  %v15902_v18 = vpop.f32.mrf.mxu1  ;;  %v15927_v11 = vld [vmem:[#allocation3 + $0xf3] sm:$0xff] }
 0x473   : > { %12306 = vmatmul.msk.f32.gmra.mxu2 %vm472_vm1, %v15906_v40  ;;  %12404 = vmatmul.msk.f32.gmra.mxu1 %vm472_vm1, %v5191_v5  ;;  %v15925_v40 = vld [vmem:[#allocation3 + $0x112] sm:$0xff]  ;;  %19714 = vst [vmem:[#allocation20_spill] sm:$0xff] %v15927_v11 }
 0x474   : > { %v15904_v44 = vadd.f32 %v5050_v24, %v4864_v58  ;;  %12337 = vmatmul.msk.f32.gmra.mxu3 %vm472_vm1, %v15908_v15  ;;  %19713 = vst [vmem:[#allocation17_spill] sm:$0xff] %v15925_v40  ;;  %v5192_v15 = vld [vmem:[#allocation3 + $0xf8] sm:$0xff] }
 0x477   : > { %v5053_v61 = vpop.f32.mrf.mxu0 }
 0x479   : > { %v4506_v37 = vpop.f32.mrf.mxu2  ;;  %v4775_v24 = vpop.f32.mrf.mxu3 }
 0x47a   : > { %12371 = vmatmul.msk.f32.gmra.mxu0 %vm472_vm1, %v15915_v32  ;;  %v4590_v57 = vadd.f32 %v4506_v37, %v4261_v39  ;;  %v4865_v36 = vadd.f32 %v4775_v24, %v4587_v52  ;;  %v15921_v56 = vpop.f32.mrf.mxu1  ;;  %v15946_v32 = vld [vmem:[#allocation3 + $0xfb] sm:$0xff] }
 0x47b   : > { %12307 = vmatmul.msk.f32.gmra.mxu2 %vm472_vm1, %v15925_v40  ;;  %12405 = vmatmul.msk.f32.gmra.mxu1 %vm472_vm1, %v5192_v15  ;;  %v15944_v40 = vld [vmem:[#allocation3 + $0x122] sm:$0xff]  ;;  %19717 = vst [vmem:[#allocation33_spill] sm:$0xff] %v15946_v32 }
 0x47c   : > { %v15923_v58 = vadd.f32 %v5053_v61, %v4865_v36  ;;  %12338 = vmatmul.msk.f32.gmra.mxu3 %vm472_vm1, %v15927_v11  ;;  %19716 = vst [vmem:[#allocation28_spill] sm:$0xff] %v15944_v40  ;;  %v5193_v11 = vld [vmem:[#allocation3 + $0x108] sm:$0xff] }
 0x47f   : > { %v5056_v5 = vpop.f32.mrf.mxu0 }
 0x481   : > { %v4509_v52 = vpop.f32.mrf.mxu2  ;;  %v4778_v61 = vpop.f32.mrf.mxu3 }
 0x482   : > { %12372 = vmatmul.msk.f32.gmra.mxu0 %vm472_vm1, %v15934_v4  ;;  %v4591_v39 = vadd.f32 %v4509_v52, %v4264_v6  ;;  %v4866_v37 = vadd.f32 %v4778_v61, %v4588_v22  ;;  %v15940_v24 = vpop.f32.mrf.mxu1  ;;  %v15965_v4 = vld [vmem:[#allocation3 + $0x10b] sm:$0xff] }
 0x483   : > { %12308 = vmatmul.msk.f32.gmra.mxu2 %vm472_vm1, %v15944_v40  ;;  %12406 = vmatmul.msk.f32.gmra.mxu1 %vm472_vm1, %v5193_v11  ;;  %v15963_v40 = vld [vmem:[#allocation3 + $0x12a] sm:$0xff]  ;;  %19720 = vst [vmem:[#allocation48_spill] sm:$0xff] %v15965_v4 }
 0x484   : > { %v15942_v36 = vadd.f32 %v5056_v5, %v4866_v37  ;;  %12339 = vmatmul.msk.f32.gmra.mxu3 %vm472_vm1, %v15946_v32  ;;  %19719 = vst [vmem:[#allocation43_spill] sm:$0xff] %v15963_v40  ;;  %v5194_v32 = vld [vmem:[#allocation3 + $0x110] sm:$0xff] }
 0x487   : > { %v5059_v15 = vpop.f32.mrf.mxu0 }
 0x489   : > { %v4512_v22 = vpop.f32.mrf.mxu2  ;;  %v4781_v5 = vpop.f32.mrf.mxu3 }
 0x48a   : > { %12373 = vmatmul.msk.f32.gmra.mxu0 %vm472_vm1, %v15953_v0  ;;  %v4592_v6 = vadd.f32 %v4512_v22, %v4267_v42  ;;  %v4867_v52 = vadd.f32 %v4781_v5, %v4589_v2  ;;  %v15959_v61 = vpop.f32.mrf.mxu1  ;;  %v15984_v0 = vld [vmem:[#allocation3 + $0x113] sm:$0xff] }
 0x48b   : > { %12309 = vmatmul.msk.f32.gmra.mxu2 %vm472_vm1, %v15963_v40  ;;  %12407 = vmatmul.msk.f32.gmra.mxu1 %vm472_vm1, %v5194_v32  ;;  %v15982_v40 = vld [vmem:[#allocation3 + $0x13a] sm:$0xff]  ;;  %19723 = vst [vmem:[#allocation65_spill] sm:$0xff] %v15984_v0 }
 0x48c   : > { %v15961_v37 = vadd.f32 %v5059_v15, %v4867_v52  ;;  %12340 = vmatmul.msk.f32.gmra.mxu3 %vm472_vm1, %v15965_v4  ;;  %19722 = vst [vmem:[#allocation59_spill] sm:$0xff] %v15982_v40  ;;  %v5195_v4 = vld [vmem:[#allocation3 + $0x120] sm:$0xff] }
 0x48f   : > { %v5062_v11 = vpop.f32.mrf.mxu0 }
 0x491   : > { %v4515_v2 = vpop.f32.mrf.mxu2  ;;  %v4784_v15 = vpop.f32.mrf.mxu3 }
 0x492   : > { %12374 = vmatmul.msk.f32.gmra.mxu0 %vm472_vm1, %v15972_v46  ;;  %v4593_v42 = vadd.f32 %v4515_v2, %v4270_v53  ;;  %v4868_v22 = vadd.f32 %v4784_v15, %v4590_v57  ;;  %v15978_v5 = vpop.f32.mrf.mxu1  ;;  %v16003_v46 = vld [vmem:[#allocation3 + $0x123] sm:$0xff] }
 0x493   : > { %12310 = vmatmul.msk.f32.gmra.mxu2 %vm472_vm1, %v15982_v40  ;;  %12408 = vmatmul.msk.f32.gmra.mxu1 %vm472_vm1, %v5195_v4  ;;  %v16001_v40 = vld [vmem:[#allocation3 + $0x142] sm:$0xff]  ;;  %19726 = vst [vmem:[#allocation82_spill] sm:$0xff] %v16003_v46 }
 0x494   : > { %v15980_v52 = vadd.f32 %v5062_v11, %v4868_v22  ;;  %12341 = vmatmul.msk.f32.gmra.mxu3 %vm472_vm1, %v15984_v0  ;;  %19725 = vst [vmem:[#allocation76_spill] sm:$0xff] %v16001_v40  ;;  %v5196_v0 = vld [vmem:[#allocation3 + $0x128] sm:$0xff] }
 0x497   : > { %v5065_v32 = vpop.f32.mrf.mxu0 }
 0x499   : > { %v4518_v57 = vpop.f32.mrf.mxu2  ;;  %v4787_v11 = vpop.f32.mrf.mxu3 }
 0x49a   : > { %12375 = vmatmul.msk.f32.gmra.mxu0 %vm472_vm1, %v15991_v48  ;;  %v4594_v53 = vadd.f32 %v4518_v57, %v4273_v38  ;;  %v4869_v2 = vadd.f32 %v4787_v11, %v4591_v39  ;;  %v15997_v15 = vpop.f32.mrf.mxu1  ;;  %v16022_v48 = vld [vmem:[#allocation3 + $0x12b] sm:$0xff] }
 0x49b   : > { %12311 = vmatmul.msk.f32.gmra.mxu2 %vm472_vm1, %v16001_v40  ;;  %12409 = vmatmul.msk.f32.gmra.mxu1 %vm472_vm1, %v5196_v0  ;;  %v16020_v40 = vld [vmem:[#allocation3 + $0x152] sm:$0xff]  ;;  %19728 = vst [vmem:[#allocation88_spill] sm:$0xff] %v16022_v48 }
 0x49c   : > { %v15999_v22 = vadd.f32 %v5065_v32, %v4869_v2  ;;  %12342 = vmatmul.msk.f32.gmra.mxu3 %vm472_vm1, %v16003_v46  ;;  %19727 = vst [vmem:[#allocation86_spill] sm:$0xff] %v16020_v40  ;;  %v5197_v46 = vld [vmem:[#allocation3 + $0x138] sm:$0xff] }
 0x49f   : > { %v5068_v4 = vpop.f32.mrf.mxu0 }
 0x4a1   : > { %v4521_v39 = vpop.f32.mrf.mxu2  ;;  %v4790_v32 = vpop.f32.mrf.mxu3 }
 0x4a2   : > { %12376 = vmatmul.msk.f32.gmra.mxu0 %vm472_vm1, %v16010_v14  ;;  %v4595_v38 = vadd.f32 %v4521_v39, %v4276_v49  ;;  %v4870_v57 = vadd.f32 %v4790_v32, %v4592_v6  ;;  %v16016_v11 = vpop.f32.mrf.mxu1  ;;  %v4279_v6 = vadd.f32 %v15483_v41, %v15470_v8  ;;  %v16051_v8 = vadd.f32 %v15883_v59, %v15885_v7  ;;  %v16056_v41 = vld [vmem:[#allocation3 + $0x13c] sm:$0xff] }
 0x4a3   : > { %12312 = vmatmul.msk.f32.gmra.mxu2 %vm472_vm1, %v16020_v40  ;;  %12410 = vmatmul.msk.f32.gmra.mxu1 %vm472_vm1, %v5197_v46  ;;  %v16043_v46 = vld [vmem:[#allocation3 + $0x15a] sm:$0xff]  ;;  %19732 = vst [vmem:[#allocation99_spill] sm:$0xff] %v16056_v41 }
 0x4a4   : > { %v16018_v2 = vadd.f32 %v5068_v4, %v4870_v57  ;;  %12343 = vmatmul.msk.f32.gmra.mxu3 %vm472_vm1, %v16022_v48  ;;  %19730 = vst [vmem:[#allocation94_spill] sm:$0xff] %v16043_v46  ;;  %v5198_v40 = vld [vmem:[#allocation3 + $0x140] sm:$0xff] }
 0x4a5   : > { %v16045_v48 = vld [vmem:[#allocation3 + $0x13b] sm:$0xff] }
 0x4a6   : > { %19731 = vst [vmem:[#allocation98_spill] sm:$0xff] %v16045_v48 }
 0x4a7   : > { %v5071_v0 = vpop.f32.mrf.mxu0 }
 0x4a9   : > { %v4524_v4 = vpop.f32.mrf.mxu2  ;;  %v4793_v49 = vpop.f32.mrf.mxu3 }
 0x4aa   : > { %12377 = vmatmul.msk.f32.gmra.mxu0 %vm472_vm1, %v16033_v45  ;;  %v4596_v39 = vadd.f32 %v4524_v4, %v4279_v6  ;;  %v4871_v32 = vadd.f32 %v4793_v49, %v4593_v42  ;;  %v16039_v57 = vpop.f32.mrf.mxu1  ;;  %v4282_v42 = vadd.f32 %v15508_v34, %v15486_v33  ;;  %v16075_v33 = vld [vmem:[#allocation3 + $0x144] sm:$0xff]  ;;  %v19737_v34 = vld [vmem:[#allocation30_spill] sm:$0xff] }
 0x4ab   : > { %12313 = vmatmul.msk.f32.gmra.mxu2 %vm472_vm1, %v16043_v46  ;;  %12411 = vmatmul.msk.f32.gmra.mxu1 %vm472_vm1, %v5198_v40  ;;  %v16066_v40 = vld [vmem:[#allocation3 + $0x16a] sm:$0xff]  ;;  %19736 = vst [vmem:[#allocation103_spill] sm:$0xff] %v16075_v33  ;;  %v16085_v45 = vld [vmem:[#allocation3 + $0x172] sm:$0xff] }
 0x4ac   : > { %v16041_v60 = vadd.f32 %v5071_v0, %v4871_v32  ;;  %12344 = vmatmul.msk.f32.gmra.mxu3 %vm472_vm1, %v16045_v48  ;;  %19734 = vst [vmem:[#allocation101_spill] sm:$0xff] %v16066_v40  ;;  %v5199_v46 = vld [vmem:[#allocation3 + $0x150] sm:$0xff]  ;;  %v16068_v48 = vld [vmem:[#allocation3 + $0x143] sm:$0xff] }
 0x4ad   : > { %19735 = vst [vmem:[#allocation102_spill] sm:$0xff] %v16068_v48 }
 0x4ae   : > { %19740 = vst [vmem:[#allocation105_spill] sm:$0xff] %v16085_v45 }
 0x4af   : > { %v5074_v27 = vpop.f32.mrf.mxu0 }
 0x4b1   : > { %v4527_v0 = vpop.f32.mrf.mxu2  ;;  %v4796_v6 = vpop.f32.mrf.mxu3 }
 0x4b2   : > { %12378 = vmatmul.msk.f32.gmra.mxu0 %vm472_vm1, %v16056_v41  ;;  %v4597_v4 = vadd.f32 %v4527_v0, %v4282_v42  ;;  %v4872_v49 = vadd.f32 %v4796_v6, %v4594_v53  ;;  %v16062_v32 = vpop.f32.mrf.mxu1  ;;  %v19738_v53 = vld [vmem:[#allocation70_spill] sm:$0xff] }
 0x4b3   : > { %19733 = vst [vmem:[#allocation100_spill] sm:$0xff] %v16062_v32  ;;  %12314 = vmatmul.msk.f32.gmra.mxu2 %vm472_vm1, %v16066_v40  ;;  %12412 = vmatmul.msk.f32.gmra.mxu1 %vm472_vm1, %v5199_v46  ;;  %v16087_v32 = vld [vmem:[#allocation3 + $0x153] sm:$0xff] }
 0x4b4   : > { %v16064_v59 = vadd.f32 %v5074_v27, %v4872_v49  ;;  %12345 = vmatmul.msk.f32.gmra.mxu3 %vm472_vm1, %v16068_v48  ;;  %v4285_v27 = vadd.f32 %v19738_v53, %v19737_v34  ;;  %v5200_v48 = vld [vmem:[#allocation3 + $0x158] sm:$0xff]  ;;  %19741 = vst [vmem:[#allocation30_spill] sm:$0xff] %v16087_v32 }
 0x4b5   : > { %v16094_v34 = vld [vmem:[#allocation3 + $0x154] sm:$0xff] }
 0x4b6   : > { %19742 = vst [vmem:[#allocation70_spill] sm:$0xff] %v16094_v34 }
 0x4b7   : > { %v5077_v7 = vpop.f32.mrf.mxu0 }
 0x4b9   : > { %v4530_v42 = vpop.f32.mrf.mxu2  ;;  %v4799_v0 = vpop.f32.mrf.mxu3 }
 0x4ba   : > { %12379 = vmatmul.msk.f32.gmra.mxu0 %vm472_vm1, %v16075_v33  ;;  %v4598_v6 = vadd.f32 %v4530_v42, %v4285_v27  ;;  %v4873_v49 = vadd.f32 %v4799_v0, %v4595_v38  ;;  %v16081_v41 = vpop.f32.mrf.mxu1  ;;  %v19743_v38 = vld [vmem:[#allocation27_spill] sm:$0xff] }
 0x4bb   : > { %19739 = vst [vmem:[#allocation104_spill] sm:$0xff] %v16081_v41  ;;  %12315 = vmatmul.msk.f32.gmra.mxu2 %vm472_vm1, %v16085_v45  ;;  %12413 = vmatmul.msk.f32.gmra.mxu1 %vm472_vm1, %v5200_v48  ;;  %v5451_v45 = vld [vmem:[#allocation3 + $0x19] sm:$0xff]  ;;  %v12554_v48 = vld [vmem:[%s19194_s9 + $0x28] sm:$0xf] }
 0x4bc   : > { %v16083_v40 = vadd.f32 %v5077_v7, %v4873_v49  ;;  %12346 = vmatmul.msk.f32.gmra.mxu3 %vm472_vm1, %v16087_v32  ;;  %v4288_v7 = vadd.f32 %v15546_v28, %v19743_v38  ;;  %12555 = vmatpush.msk.msra.mxu2 %vm634_vm0, %v12554_v48  ;;  %v5201_v28 = vld [vmem:[#allocation3 + $0x168] sm:$0xff]  ;;  %v16108_v38 = vld [vmem:[#allocation3 + $0x15b] sm:$0xff] }
 0x4bd   : > { %19746 = vst [vmem:[#allocation107_spill] sm:$0xff] %v16108_v38  ;;  %v16128_v41 = vld [vmem:[#allocation3 + $0x16b] sm:$0xff] }
 0x4be   : > { %19750 = vst [vmem:[#allocation109_spill] sm:$0xff] %v16128_v41 }
 0x4bf   : > { %v5080_v46 = vpop.f32.mrf.mxu0 }
 0x4c1   : > { %v4533_v53 = vpop.f32.mrf.mxu2  ;;  %v4802_v27 = vpop.f32.mrf.mxu3 }
 0x4c2   : > { %12380 = vmatmul.msk.f32.gmra.mxu0 %vm472_vm1, %v16094_v34  ;;  %v4599_v42 = vadd.f32 %v4533_v53, %v4288_v7  ;;  %v4874_v0 = vadd.f32 %v4802_v27, %v4596_v39  ;;  %v16100_v49 = vpop.f32.mrf.mxu1  ;;  %v16114_v39 = vld [vmem:[#allocation3 + $0x15c] sm:$0xff] }
 0x4c3   : > { %19744 = vst [vmem:[#allocation27_spill] sm:$0xff] %v16100_v49  ;;  %12420 = vmatmul.msk.f32.vlgmr.msrb.gmra.mxu2 %vm472_vm1, %v5451_v45  ;;  %12414 = vmatmul.msk.f32.gmra.mxu1 %vm472_vm1, %v5201_v28  ;;  %v19748_v7 = vld [vmem:[#allocation35_spill] sm:$0xff] }
 0x4c4   : > { %v16105_v32 = vadd.f32 %v5080_v46, %v4874_v0  ;;  %12347 = vmatmul.msk.f32.gmra.mxu3 %vm472_vm1, %v16108_v38  ;;  %19747 = vst [vmem:[#allocation108_spill] sm:$0xff] %v16114_v39  ;;  %v12588_v46 = vld [vmem:[%s19194_s9 + $0x2c] sm:$0xf]  ;;  %v4291_v53 = vadd.f32 %v15561_v25, %v19748_v7  ;;  %v5452_v38 = vld [vmem:[#allocation3 + $0x21] sm:$0xff] }
 0x4c5   : > { %12589 = vmatpush.msk.msra.mxu3 %vm634_vm0, %v12588_v46  ;;  %v16134_v25 = vld [vmem:[#allocation3 + $0x16c] sm:$0xff]  ;;  %v19752_v46 = vld [vmem:[#allocation32_spill] sm:$0xff] }
 0x4c6   : > { %19745 = vst [vmem:[#allocation106_spill] sm:$0xff] %v16105_v32  ;;  %v5202_v32 = vld [vmem:[#allocation3 + $0x170] sm:$0xff]  ;;  %v4294_v7 = vadd.f32 %v15575_v20, %v19752_v46 }
 0x4c7   : > { %v5083_v33 = vpop.f32.mrf.mxu0  ;;  %19751 = vst [vmem:[#allocation110_spill] sm:$0xff] %v16134_v25  ;;  %v16154_v20 = vld [vmem:[#allocation3 + $0x173] sm:$0xff] }
 0x4c8   : > { %19754 = vst [vmem:[#allocation111_spill] sm:$0xff] %v16154_v20 }
 0x4c9   : > { %v4536_v45 = vpop.f32.mrf.mxu2  ;;  %v4805_v27 = vpop.f32.mrf.mxu3 }
 0x4ca   : > { %12381 = vmatmul.msk.f32.gmra.mxu0 %vm472_vm1, %v16114_v39  ;;  %v4600_v0 = vadd.f32 %v4536_v45, %v4291_v53  ;;  %v4875_v48 = vadd.f32 %v4805_v27, %v4597_v4  ;;  %v16124_v28 = vpop.f32.mrf.mxu1  ;;  %v12622_v4 = vld [vmem:[%s19194_s9 + $0x30] sm:$0xf] }
 0x4cb   : > { %19749 = vst [vmem:[#allocation35_spill] sm:$0xff] %v16124_v28  ;;  %12421 = vmatmul.msk.f32.gmra.mxu2 %vm472_vm1, %v5452_v38  ;;  %12415 = vmatmul.msk.f32.gmra.mxu1 %vm472_vm1, %v5202_v32  ;;  %v16152_v39 = vld [vmem:[#allocation3 + $0x31] sm:$0xff]  ;;  %v5203_v28 = vld [vmem:[#allocation3 + $0x180] sm:$0xff] }
 0x4cc   : > { %v16126_v34 = vadd.f32 %v5083_v33, %v4875_v48  ;;  %12348 = vmatmul.msk.f32.gmra.mxu3 %vm472_vm1, %v16128_v41  ;;  %v12656_v33 = vld [vmem:[%s19194_s9 + $0x34] sm:$0xf]  ;;  %12623 = vmatpush.msk.msra.mxu0 %vm634_vm0, %v12622_v4  ;;  %19753 = vst [vmem:[#allocation32_spill] sm:$0xff] %v16152_v39 }
 0x4cd   : > { %12657 = vmatpush.msk.msra.mxu1 %vm634_vm0, %v12656_v33  ;;  %v16161_v4 = vld [vmem:[#allocation3 + $0x174] sm:$0xff] }
 0x4ce   : > { %19755 = vst [vmem:[#allocation112_spill] sm:$0xff] %v16161_v4 }
 0x4cf   : > { %v5086_v49 = vpop.f32.mrf.mxu0 }
 0x4d1   : > { %v4539_v32 = vpop.f32.mrf.mxu2  ;;  %v4808_v38 = vpop.f32.mrf.mxu3 }
 0x4d2   : > { %12382 = vmatmul.msk.f32.gmra.mxu0 %vm472_vm1, %v16134_v25  ;;  %v4601_v53 = vadd.f32 %v4539_v32, %v4294_v7  ;;  %v4876_v45 = vadd.f32 %v4808_v38, %v4598_v6  ;;  %v16148_v27 = vpop.f32.mrf.mxu1  ;;  %v19756_v6 = vld [vmem:[#allocation40_spill] sm:$0xff] }
 0x4d3   : > { %12422 = vmatmul.msk.f32.gmra.mxu2 %vm472_vm1, %v16152_v39  ;;  %12416 = vmatmul.msk.f32.gmra.mxu1 %vm472_vm1, %v5203_v28  ;;  %v16171_v39 = vld [vmem:[#allocation3 + $0x39] sm:$0xff] }
 0x4d4   : > { %v16150_v48 = vadd.f32 %v5086_v49, %v4876_v45  ;;  %12349 = vmatmul.msk.f32.gmra.mxu3 %vm472_vm1, %v16154_v20  ;;  %v4297_v49 = vadd.f32 %v15589_v1, %v19756_v6  ;;  %19758 = vst [vmem:[#allocation113_spill] sm:$0xff] %v16171_v39  ;;  %v5204_v20 = vld [vmem:[#allocation3 + $0x188] sm:$0xff]  ;;  %v13157_v1 = vld [vmem:[#allocation3 + $0x1a] sm:$0xff] }
 0x4d5   : > { %v19759_v6 = vld [vmem:[#allocation81_spill] sm:$0xff] }
 0x4d7   : > { %v5089_v41 = vpop.f32.mrf.mxu0 }
 0x4d9   : > { %v4542_v33 = vpop.f32.mrf.mxu2  ;;  %v4811_v46 = vpop.f32.mrf.mxu3 }
 0x4da   : > { %12383 = vmatmul.msk.f32.gmra.mxu0 %vm472_vm1, %v16161_v4  ;;  %v4602_v7 = vadd.f32 %v4542_v33, %v4297_v49  ;;  %v4877_v32 = vadd.f32 %v4811_v46, %v4599_v42  ;;  %v16167_v38 = vpop.f32.mrf.mxu1  ;;  %v4300_v49 = vadd.f32 %v15603_v35, %v19759_v6  ;;  %v13158_v42 = vld [vmem:[#allocation3 + $0x1b] sm:$0xff] }
 0x4db   : > { %19757 = vst [vmem:[#allocation40_spill] sm:$0xff] %v16167_v38  ;;  %12423 = vmatmul.msk.f32.gmra.mxu2 %vm472_vm1, %v16171_v39  ;;  %12417 = vmatmul.msk.f32.gmra.mxu1 %vm472_vm1, %v5204_v20  ;;  %v16184_v38 = vld [vmem:[#allocation3 + $0x49] sm:$0xff]  ;;  %v13159_v20 = vld [vmem:[#allocation3 + $0x1c] sm:$0xff] }
 0x4dc   : > { %v16169_v45 = vadd.f32 %v5089_v41, %v4877_v32  ;;  %12454 = vmatmul.msk.f32.vlgmr.msrb.gmra.mxu3 %vm472_vm1, %v13157_v1  ;;  %19761 = vst [vmem:[#allocation114_spill] sm:$0xff] %v16184_v38  ;;  %v13160_v35 = vld [vmem:[#allocation3 + $0x22] sm:$0xff] }
 0x4dd   : > { %v19762_v1 = vld [vmem:[#allocation44_spill] sm:$0xff] }
 0x4de   : > { %v4303_v6 = vadd.f32 %v15617_v23, %v19762_v1  ;;  %v13163_v23 = vld [vmem:[#allocation3 + $0x32] sm:$0xff] }
 0x4df   : > { %v5092_v28 = vpop.f32.mrf.mxu0 }
 0x4e1   : > { %v4545_v41 = vpop.f32.mrf.mxu2  ;;  %v4814_v33 = vpop.f32.mrf.mxu3 }
 0x4e2   : > { %12488 = vmatmul.msk.f32.vlgmr.msrb.gmra.mxu0 %vm472_vm1, %v13158_v42  ;;  %v4603_v46 = vadd.f32 %v4545_v41, %v4300_v49  ;;  %v4878_v32 = vadd.f32 %v4814_v33, %v4600_v0  ;;  %v16180_v4 = vpop.f32.mrf.mxu1  ;;  %v13161_v0 = vld [vmem:[#allocation3 + $0x23] sm:$0xff] }
 0x4e3   : > { %19760 = vst [vmem:[#allocation81_spill] sm:$0xff] %v16180_v4  ;;  %12424 = vmatmul.msk.f32.gmra.mxu2 %vm472_vm1, %v16184_v38  ;;  %12522 = vmatmul.msk.f32.vlgmr.msrb.gmra.mxu1 %vm472_vm1, %v13159_v20  ;;  %v16197_v4 = vld [vmem:[#allocation3 + $0x51] sm:$0xff]  ;;  %v13162_v20 = vld [vmem:[#allocation3 + $0x24] sm:$0xff] }
 0x4e4   : > { %v16182_v25 = vadd.f32 %v5092_v28, %v4878_v32  ;;  %12455 = vmatmul.msk.f32.gmra.mxu3 %vm472_vm1, %v13160_v35  ;;  %19764 = vst [vmem:[#allocation115_spill] sm:$0xff] %v16197_v4  ;;  %v19765_v35 = vld [vmem:[#allocation41_spill] sm:$0xff] }
 0x4e5   : > { %v4306_v1 = vadd.f32 %v15631_v26, %v19765_v35  ;;  %v13166_v26 = vld [vmem:[#allocation3 + $0x3a] sm:$0xff] }
 0x4e7   : > { %v5095_v39 = vpop.f32.mrf.mxu0 }
 0x4e9   : > { %v4548_v28 = vpop.f32.mrf.mxu2  ;;  %v4817_v49 = vpop.f32.mrf.mxu3 }
 0x4ea   : > { %12489 = vmatmul.msk.f32.gmra.mxu0 %vm472_vm1, %v13161_v0  ;;  %v4604_v42 = vadd.f32 %v4548_v28, %v4303_v6  ;;  %v4879_v41 = vadd.f32 %v4817_v49, %v4601_v53  ;;  %v16193_v33 = vpop.f32.mrf.mxu1  ;;  %v13164_v53 = vld [vmem:[#allocation3 + $0x33] sm:$0xff] }
 0x4eb   : > { %19763 = vst [vmem:[#allocation44_spill] sm:$0xff] %v16193_v33  ;;  %12425 = vmatmul.msk.f32.gmra.mxu2 %vm472_vm1, %v16197_v4  ;;  %12523 = vmatmul.msk.f32.gmra.mxu1 %vm472_vm1, %v13162_v20  ;;  %v16210_v33 = vld [vmem:[#allocation3 + $0x61] sm:$0xff]  ;;  %v13165_v20 = vld [vmem:[#allocation3 + $0x34] sm:$0xff] }
 0x4ec   : > { %v16195_v32 = vadd.f32 %v5095_v39, %v4879_v41  ;;  %12456 = vmatmul.msk.f32.gmra.mxu3 %vm472_vm1, %v13163_v23  ;;  %19767 = vst [vmem:[#allocation116_spill] sm:$0xff] %v16210_v33  ;;  %v19768_v23 = vld [vmem:[#allocation49_spill] sm:$0xff] }
 0x4ed   : > { %v4309_v35 = vadd.f32 %v15645_v21, %v19768_v23  ;;  %v13169_v21 = vld [vmem:[#allocation3 + $0x4a] sm:$0xff] }
 0x4ef   : > { %v5098_v38 = vpop.f32.mrf.mxu0 }
 0x4f1   : > { %v4551_v39 = vpop.f32.mrf.mxu2  ;;  %v4820_v6 = vpop.f32.mrf.mxu3 }
 0x4f2   : > { %12490 = vmatmul.msk.f32.gmra.mxu0 %vm472_vm1, %v13164_v53  ;;  %v4605_v0 = vadd.f32 %v4551_v39, %v4306_v1  ;;  %v4880_v28 = vadd.f32 %v4820_v6, %v4602_v7  ;;  %v16206_v49 = vpop.f32.mrf.mxu1  ;;  %v13167_v7 = vld [vmem:[#allocation3 + $0x3b] sm:$0xff] }
 0x4f3   : > { %19766 = vst [vmem:[#allocation41_spill] sm:$0xff] %v16206_v49  ;;  %12426 = vmatmul.msk.f32.gmra.mxu2 %vm472_vm1, %v16210_v33  ;;  %12524 = vmatmul.msk.f32.gmra.mxu1 %vm472_vm1, %v13165_v20  ;;  %v16223_v49 = vld [vmem:[#allocation3 + $0x69] sm:$0xff]  ;;  %v13168_v20 = vld [vmem:[#allocation3 + $0x3c] sm:$0xff] }
 0x4f4   : > { %v16208_v41 = vadd.f32 %v5098_v38, %v4880_v28  ;;  %12457 = vmatmul.msk.f32.gmra.mxu3 %vm472_vm1, %v13166_v26  ;;  %19770 = vst [vmem:[#allocation117_spill] sm:$0xff] %v16223_v49  ;;  %v19771_v26 = vld [vmem:[#allocation46_spill] sm:$0xff] }
 0x4f5   : > { %v4312_v23 = vadd.f32 %v15659_v55, %v19771_v26  ;;  %v13172_v55 = vld [vmem:[#allocation3 + $0x52] sm:$0xff] }
 0x4f7   : > { %v5101_v4 = vpop.f32.mrf.mxu0 }
 0x4f9   : > { %v4554_v38 = vpop.f32.mrf.mxu2  ;;  %v4823_v1 = vpop.f32.mrf.mxu3 }
 0x4fa   : > { %12491 = vmatmul.msk.f32.gmra.mxu0 %vm472_vm1, %v13167_v7  ;;  %v4606_v53 = vadd.f32 %v4554_v38, %v4309_v35  ;;  %v4881_v39 = vadd.f32 %v4823_v1, %v4603_v46  ;;  %v16219_v6 = vpop.f32.mrf.mxu1  ;;  %v13170_v46 = vld [vmem:[#allocation3 + $0x4b] sm:$0xff] }
 0x4fb   : > { %19769 = vst [vmem:[#allocation49_spill] sm:$0xff] %v16219_v6  ;;  %12427 = vmatmul.msk.f32.gmra.mxu2 %vm472_vm1, %v16223_v49  ;;  %12525 = vmatmul.msk.f32.gmra.mxu1 %vm472_vm1, %v13168_v20  ;;  %v16236_v6 = vld [vmem:[#allocation3 + $0x79] sm:$0xff]  ;;  %v13171_v20 = vld [vmem:[#allocation3 + $0x4c] sm:$0xff] }
 0x4fc   : > { %v16221_v28 = vadd.f32 %v5101_v4, %v4881_v39  ;;  %12458 = vmatmul.msk.f32.gmra.mxu3 %vm472_vm1, %v13169_v21  ;;  %19772 = vst [vmem:[#allocation46_spill] sm:$0xff] %v16236_v6  ;;  %v4315_v21 = vadd.f32 %v15679_v13, %v15662_v17  ;;  %v13175_v17 = vld [vmem:[#allocation3 + $0x62] sm:$0xff] }
 0x4fd   : > { %v19775_v13 = vld [vmem:[#allocation52_spill] sm:$0xff] }
 0x4ff   : > { %v5104_v33 = vpop.f32.mrf.mxu0 }
 0x501   : > { %v4557_v4 = vpop.f32.mrf.mxu2  ;;  %v4826_v35 = vpop.f32.mrf.mxu3 }
 0x502   : > { %12492 = vmatmul.msk.f32.gmra.mxu0 %vm472_vm1, %v13170_v46  ;;  %v4607_v7 = vadd.f32 %v4557_v4, %v4312_v23  ;;  %v4882_v38 = vadd.f32 %v4826_v35, %v4604_v42  ;;  %v16232_v1 = vpop.f32.mrf.mxu1  ;;  %v13173_v42 = vld [vmem:[#allocation3 + $0x53] sm:$0xff] }
 0x503   : > { %12428 = vmatmul.msk.f32.gmra.mxu2 %vm472_vm1, %v16236_v6  ;;  %12526 = vmatmul.msk.f32.gmra.mxu1 %vm472_vm1, %v13171_v20  ;;  %v16249_v6 = vld [vmem:[#allocation3 + $0x81] sm:$0xff]  ;;  %v13174_v20 = vld [vmem:[#allocation3 + $0x54] sm:$0xff] }
 0x504   : > { %v16234_v39 = vadd.f32 %v5104_v33, %v4882_v38  ;;  %12459 = vmatmul.msk.f32.gmra.mxu3 %vm472_vm1, %v13172_v55  ;;  %19774 = vst [vmem:[#allocation119_spill] sm:$0xff] %v16249_v6  ;;  %v4318_v55 = vadd.f32 %v15699_v10, %v19775_v13  ;;  %v13176_v10 = vld [vmem:[#allocation3 + $0x6a] sm:$0xff] }
 0x507   : > { %v5107_v49 = vpop.f32.mrf.mxu0 }
 0x509   : > { %v4560_v33 = vpop.f32.mrf.mxu2  ;;  %v4829_v26 = vpop.f32.mrf.mxu3 }
 0x50a   : > { %12493 = vmatmul.msk.f32.gmra.mxu0 %vm472_vm1, %v13173_v42  ;;  %v4608_v23 = vadd.f32 %v4560_v33, %v4315_v21  ;;  %v4883_v46 = vadd.f32 %v4829_v26, %v4605_v0  ;;  %v16245_v4 = vpop.f32.mrf.mxu1  ;;  %v19776_v0 = vld [vmem:[#allocation54_spill] sm:$0xff] }
 0x50b   : > { %19773 = vst [vmem:[#allocation118_spill] sm:$0xff] %v16245_v4  ;;  %12429 = vmatmul.msk.f32.gmra.mxu2 %vm472_vm1, %v16249_v6  ;;  %12527 = vmatmul.msk.f32.gmra.mxu1 %vm472_vm1, %v13174_v20  ;;  %v16263_v4 = vld [vmem:[#allocation3 + $0x91] sm:$0xff] }
 0x50c   : > { %v16247_v35 = vadd.f32 %v5107_v49, %v4883_v46  ;;  %12460 = vmatmul.msk.f32.gmra.mxu3 %vm472_vm1, %v13175_v17  ;;  %19777 = vst [vmem:[#allocation52_spill] sm:$0xff] %v16263_v4  ;;  %v19778_v20 = vld [vmem:[#allocation55_spill] sm:$0xff]  ;;  %v4321_v17 = vadd.f32 %v15721_v29, %v15702_v30  ;;  %v19784_v29 = vld [vmem:[#allocation62_spill] sm:$0xff] }
 0x50d   : > { %v13177_v30 = vld [vmem:[#allocation3 + $0x7a] sm:$0xff] }
 0x50f   : > { %v5110_v38 = vpop.f32.mrf.mxu0 }
 0x511   : > { %v4563_v49 = vpop.f32.mrf.mxu2  ;;  %v4832_v21 = vpop.f32.mrf.mxu3 }
 0x512   : > { %12494 = vmatmul.msk.f32.gmra.mxu0 %vm472_vm1, %v19776_v0  ;;  %v4609_v42 = vadd.f32 %v4563_v49, %v4318_v55  ;;  %v4884_v33 = vadd.f32 %v4832_v21, %v4606_v53  ;;  %v16259_v26 = vpop.f32.mrf.mxu1  ;;  %v19779_v53 = vld [vmem:[#allocation60_spill] sm:$0xff] }
 0x513   : > { %12430 = vmatmul.msk.f32.gmra.mxu2 %vm472_vm1, %v16263_v4  ;;  %12528 = vmatmul.msk.f32.gmra.mxu1 %vm472_vm1, %v19778_v20  ;;  %v16278_v4 = vld [vmem:[#allocation3 + $0x99] sm:$0xff]  ;;  %v19783_v20 = vld [vmem:[#allocation61_spill] sm:$0xff] }
 0x514   : > { %v16261_v46 = vadd.f32 %v5110_v38, %v4884_v33  ;;  %12461 = vmatmul.msk.f32.gmra.mxu3 %vm472_vm1, %v13176_v10  ;;  %19782 = vst [vmem:[#allocation60_spill] sm:$0xff] %v16278_v4  ;;  %v19785_v10 = vld [vmem:[#allocation68_spill] sm:$0xff] }
 0x517   : > { %v5113_v6 = vpop.f32.mrf.mxu0 }
 0x519   : > { %v4566_v38 = vpop.f32.mrf.mxu2  ;;  %v4835_v13 = vpop.f32.mrf.mxu3 }
 0x51a   : > { %12495 = vmatmul.msk.f32.gmra.mxu0 %vm472_vm1, %v19779_v53  ;;  %v4610_v55 = vadd.f32 %v4566_v38, %v4321_v17  ;;  %v4885_v0 = vadd.f32 %v4835_v13, %v4607_v7  ;;  %v16274_v49 = vpop.f32.mrf.mxu1  ;;  %v4324_v17 = vadd.f32 %v19785_v10, %v19784_v29  ;;  %v19786_v7 = vld [vmem:[#allocation57_spill] sm:$0xff] }
 0x51b   : > { %19780 = vst [vmem:[#allocation54_spill] sm:$0xff] %v16274_v49  ;;  %12431 = vmatmul.msk.f32.gmra.mxu2 %vm472_vm1, %v16278_v4  ;;  %12529 = vmatmul.msk.f32.gmra.mxu1 %vm472_vm1, %v19783_v20  ;;  %v19789_v20 = vld [vmem:[#allocation66_spill] sm:$0xff]  ;;  %v19790_v29 = vld [vmem:[#allocation69_spill] sm:$0xff] }
 0x51c   : > { %v16276_v21 = vadd.f32 %v5113_v6, %v4885_v0  ;;  %12462 = vmatmul.msk.f32.gmra.mxu3 %vm472_vm1, %v13177_v30  ;;  %v13178_v30 = vld [vmem:[#allocation3 + $0x82] sm:$0xff]  ;;  %v4327_v10 = vadd.f32 %v15773_v9, %v19790_v29  ;;  %v13179_v9 = vld [vmem:[#allocation3 + $0x92] sm:$0xff] }
 0x51e   : > { %19781 = vst [vmem:[#allocation55_spill] sm:$0xff] %v16276_v21  ;;  %v16293_v21 = vld [vmem:[#allocation3 + $0xa9] sm:$0xff] }
 0x51f   : > { %v5116_v33 = vpop.f32.mrf.mxu0  ;;  %19788 = vst [vmem:[#allocation62_spill] sm:$0xff] %v16293_v21 }
 0x521   : > { %v4569_v6 = vpop.f32.mrf.mxu2  ;;  %v4838_v53 = vpop.f32.mrf.mxu3 }
 0x522   : > { %12496 = vmatmul.msk.f32.gmra.mxu0 %vm472_vm1, %v19786_v7  ;;  %v4611_v38 = vadd.f32 %v4569_v6, %v4324_v17  ;;  %v4886_v13 = vadd.f32 %v4838_v53, %v4608_v23  ;;  %v16289_v0 = vpop.f32.mrf.mxu1  ;;  %v19791_v23 = vld [vmem:[#allocation63_spill] sm:$0xff] }
 0x523   : > { %19787 = vst [vmem:[#allocation61_spill] sm:$0xff] %v16289_v0  ;;  %12432 = vmatmul.msk.f32.gmra.mxu2 %vm472_vm1, %v16293_v21  ;;  %12530 = vmatmul.msk.f32.gmra.mxu1 %vm472_vm1, %v19789_v20  ;;  %v16308_v0 = vld [vmem:[#allocation3 + $0xb1] sm:$0xff]  ;;  %v19793_v20 = vld [vmem:[#allocation72_spill] sm:$0xff] }
 0x524   : > { %v16291_v49 = vadd.f32 %v5116_v33, %v4886_v13  ;;  %12463 = vmatmul.msk.f32.gmra.mxu3 %vm472_vm1, %v13178_v30  ;;  %19792 = vst [vmem:[#allocation68_spill] sm:$0xff] %v16308_v0  ;;  %v4330_v30 = vadd.f32 %v15795_v16, %v15776_v12  ;;  %v13180_v12 = vld [vmem:[#allocation3 + $0x9a] sm:$0xff]  ;;  %v4333_v16 = vadd.f32 %v15820_v3, %v15798_v31  ;;  %v13181_v31 = vld [vmem:[#allocation3 + $0xaa] sm:$0xff] }
 0x525   : > { %v19799_v3 = vld [vmem:[#allocation85_spill] sm:$0xff] }
 0x527   : > { %v5119_v4 = vpop.f32.mrf.mxu0 }
 0x529   : > { %v4572_v33 = vpop.f32.mrf.mxu2  ;;  %v4841_v17 = vpop.f32.mrf.mxu3 }
 0x52a   : > { %12497 = vmatmul.msk.f32.gmra.mxu0 %vm472_vm1, %v19791_v23  ;;  %v4612_v7 = vadd.f32 %v4572_v33, %v4327_v10  ;;  %v4887_v6 = vadd.f32 %v4841_v17, %v4609_v42  ;;  %v16304_v53 = vpop.f32.mrf.mxu1  ;;  %v19794_v42 = vld [vmem:[#allocation77_spill] sm:$0xff] }
 0x52b   : > { %12433 = vmatmul.msk.f32.gmra.mxu2 %vm472_vm1, %v16308_v0  ;;  %12531 = vmatmul.msk.f32.gmra.mxu1 %vm472_vm1, %v19793_v20  ;;  %v16323_v0 = vld [vmem:[#allocation3 + $0xc1] sm:$0xff] }
 0x52c   : > { %v16306_v13 = vadd.f32 %v5119_v4, %v4887_v6  ;;  %12464 = vmatmul.msk.f32.gmra.mxu3 %vm472_vm1, %v13179_v9  ;;  %19795 = vst [vmem:[#allocation57_spill] sm:$0xff] %v16323_v0 }
 0x52f   : > { %v5122_v21 = vpop.f32.mrf.mxu0 }
 0x531   : > { %v4575_v4 = vpop.f32.mrf.mxu2  ;;  %v4844_v29 = vpop.f32.mrf.mxu3 }
 0x532   : > { %12498 = vmatmul.msk.f32.gmra.mxu0 %vm472_vm1, %v19794_v42  ;;  %v4613_v10 = vadd.f32 %v4575_v4, %v4330_v30  ;;  %v4888_v23 = vadd.f32 %v4844_v29, %v4610_v55  ;;  %v16319_v33 = vpop.f32.mrf.mxu1  ;;  %v19796_v55 = vld [vmem:[#allocation74_spill] sm:$0xff] }
 0x533   : > { %12434 = vmatmul.msk.f32.gmra.mxu2 %vm472_vm1, %v16323_v0  ;;  %12532 = vmatmul.msk.f32.gmra.mxu1 %vm472_vm1, %v15764_v19  ;;  %v19798_v19 = vld [vmem:[#allocation75_spill] sm:$0xff] }
 0x534   : > { %v16321_v17 = vadd.f32 %v5122_v21, %v4888_v23  ;;  %12465 = vmatmul.msk.f32.gmra.mxu3 %vm472_vm1, %v13180_v12  ;;  %v16338_v23 = vld [vmem:[#allocation3 + $0xc9] sm:$0xff]  ;;  %v4336_v12 = vadd.f32 %v15844_v50, %v19799_v3  ;;  %v16353_v0 = vld [vmem:[#allocation3 + $0xd9] sm:$0xff] }
 0x535   : > { %19797 = vst [vmem:[#allocation66_spill] sm:$0xff] %v16338_v23  ;;  %v13182_v50 = vld [vmem:[#allocation3 + $0xb2] sm:$0xff] }
 0x537   : > { %v5125_v6 = vpop.f32.mrf.mxu0 }
 0x539   : > { %v4578_v21 = vpop.f32.mrf.mxu2  ;;  %v4847_v20 = vpop.f32.mrf.mxu3 }
 0x53a   : > { %12499 = vmatmul.msk.f32.gmra.mxu0 %vm472_vm1, %v19796_v55  ;;  %v4614_v9 = vadd.f32 %v4578_v21, %v4333_v16  ;;  %v4889_v30 = vadd.f32 %v4847_v20, %v4611_v38  ;;  %v16334_v42 = vpop.f32.mrf.mxu1  ;;  %v19800_v38 = vld [vmem:[#allocation79_spill] sm:$0xff] }
 0x53b   : > { %12435 = vmatmul.msk.f32.gmra.mxu2 %vm472_vm1, %v16338_v23  ;;  %12533 = vmatmul.msk.f32.gmra.mxu1 %vm472_vm1, %v19798_v19  ;;  %v19801_v19 = vld [vmem:[#allocation80_spill] sm:$0xff] }
 0x53c   : > { %v16336_v4 = vadd.f32 %v5125_v6, %v4889_v30  ;;  %12466 = vmatmul.msk.f32.gmra.mxu3 %vm472_vm1, %v13181_v31  ;;  %v19802_v31 = vld [vmem:[#allocation92_spill] sm:$0xff] }
 0x53f   : > { %v5128_v29 = vpop.f32.mrf.mxu0 }
 0x541   : > { %v4581_v6 = vpop.f32.mrf.mxu2  ;;  %v4850_v16 = vpop.f32.mrf.mxu3 }
 0x542   : > { %12500 = vmatmul.msk.f32.gmra.mxu0 %vm472_vm1, %v19800_v38  ;;  %v4615_v55 = vadd.f32 %v4581_v6, %v4336_v12  ;;  %v4890_v21 = vadd.f32 %v4850_v16, %v4612_v7  ;;  %v16349_v20 = vpop.f32.mrf.mxu1 }
 0x543   : > { %12436 = vmatmul.msk.f32.gmra.mxu2 %vm472_vm1, %v16353_v0  ;;  %12534 = vmatmul.msk.f32.gmra.mxu1 %vm472_vm1, %v19801_v19  ;;  %v13183_v19 = vld [vmem:[#allocation3 + $0xc2] sm:$0xff] }
 0x544   : > { %v16351_v30 = vadd.f32 %v5128_v29, %v4890_v21  ;;  %12467 = vmatmul.msk.f32.gmra.mxu3 %vm472_vm1, %v13182_v50  ;;  %v16367_v21 = vld [vmem:[#allocation3 + $0xe1] sm:$0xff] }
 0x547   : > { %v5131_v23 = vpop.f32.mrf.mxu0 }
 0x549   : > { %v5601_v7 = vpop.f32.mrf.mxu2  ;;  %v4853_v3 = vpop.f32.mrf.mxu3 }
 0x54a   : > { %12501 = vmatmul.msk.f32.gmra.mxu0 %vm472_vm1, %v19802_v31  ;;  %v5697_v29 = vadd.f32 %v5601_v7, %v16028_v47  ;;  %v4891_v12 = vadd.f32 %v4853_v3, %v4613_v10  ;;  %v16363_v38 = vpop.f32.mrf.mxu1 }
 0x54b   : > { %12437 = vmatmul.msk.f32.gmra.mxu2 %vm472_vm1, %v16367_v21  ;;  %12535 = vmatmul.msk.f32.gmra.mxu1 %vm472_vm1, %v15834_v54  ;;  %v19804_v54 = vld [vmem:[#allocation84_spill] sm:$0xff] }
 0x54c   : > { %v16365_v6 = vadd.f32 %v5131_v23, %v4891_v12  ;;  %12468 = vmatmul.msk.f32.gmra.mxu3 %vm472_vm1, %v13183_v19  ;;  %v16381_v12 = vld [vmem:[#allocation3 + $0xf1] sm:$0xff] }
 0x54d   : > { %19803 = vst [vmem:[#allocation69_spill] sm:$0xff] %v16381_v12 }
 0x54f   : > { %v5134_v16 = vpop.f32.mrf.mxu0 }
 0x551   : > { %v5604_v47 = vpop.f32.mrf.mxu2  ;;  %v4856_v10 = vpop.f32.mrf.mxu3 }
 0x552   : > { %12502 = vmatmul.msk.f32.gmra.mxu0 %vm472_vm1, %v15849_v51  ;;  %v5698_v23 = vadd.f32 %v5604_v47, %v16051_v8  ;;  %v4892_v50 = vadd.f32 %v4856_v10, %v4614_v9  ;;  %v16377_v31 = vpop.f32.mrf.mxu1  ;;  %v5421_v51 = vadd.f32 %v15902_v18, %v15904_v44  ;;  %v5422_v18 = vadd.f32 %v15921_v56, %v15923_v58  ;;  %v19810_v56 = vld [vmem:[#allocation11_spill] sm:$0xff] }
 0x553   : > { %12438 = vmatmul.msk.f32.gmra.mxu2 %vm472_vm1, %v16381_v12  ;;  %12536 = vmatmul.msk.f32.gmra.mxu1 %vm472_vm1, %v15856_v62  ;;  %v16397_v12 = vld [vmem:[#allocation3 + $0xf9] sm:$0xff]  ;;  %v5423_v58 = vadd.f32 %v15940_v24, %v15942_v36  ;;  %v5424_v36 = vadd.f32 %v15959_v61, %v15961_v37  ;;  %v19818_v61 = vld [vmem:[#allocation33_spill] sm:$0xff]  ;;  %v5425_v37 = vadd.f32 %v15978_v5, %v15980_v52 }
 0x554   : > { %v16379_v7 = vadd.f32 %v5134_v16, %v4892_v50  ;;  %12469 = vmatmul.msk.f32.gmra.mxu3 %vm472_vm1, %v19804_v54  ;;  %v19806_v62 = vld [vmem:[#allocation8_spill] sm:$0xff]  ;;  %v5426_v52 = vadd.f32 %v15997_v15, %v15999_v22  ;;  %v19826_v15 = vld [vmem:[#allocation65_spill] sm:$0xff]  ;;  %v5427_v22 = vadd.f32 %v16016_v11, %v16018_v2  ;;  %v19830_v11 = vld [vmem:[#allocation82_spill] sm:$0xff]  ;;  %v5428_v2 = vadd.f32 %v16039_v57, %v16041_v60 }
 0x555   : > { %v19814_v24 = vld [vmem:[#allocation20_spill] sm:$0xff] }
 0x556   : > { %v19822_v5 = vld [vmem:[#allocation48_spill] sm:$0xff] }
 0x557   : > { %v5137_v3 = vpop.f32.mrf.mxu0  ;;  %v19833_v57 = vld [vmem:[#allocation88_spill] sm:$0xff] }
 0x558   : > { %v19834_v60 = vld [vmem:[#allocation100_spill] sm:$0xff] }
 0x559   : > { %v5607_v8 = vpop.f32.mrf.mxu2  ;;  %v4859_v9 = vpop.f32.mrf.mxu3 }
 0x55a   : > { %12503 = vmatmul.msk.f32.gmra.mxu0 %vm472_vm1, %v15870_v63  ;;  %v5699_v16 = vadd.f32 %v5607_v8, %v5421_v51  ;;  %v4893_v19 = vadd.f32 %v4859_v9, %v4615_v55  ;;  %v16393_v47 = vpop.f32.mrf.mxu1  ;;  %v19805_v63 = vld [vmem:[#allocation91_spill] sm:$0xff] }
 0x55b   : > { %12439 = vmatmul.msk.f32.gmra.mxu2 %vm472_vm1, %v16397_v12  ;;  %12537 = vmatmul.msk.f32.gmra.mxu1 %vm472_vm1, %v15877_v43  ;;  %v19808_v43 = vld [vmem:[#allocation9_spill] sm:$0xff] }
 0x55c   : > { %v16395_v10 = vadd.f32 %v5137_v3, %v4893_v19  ;;  %12470 = vmatmul.msk.f32.gmra.mxu3 %vm472_vm1, %v19805_v63  ;;  %v16413_v19 = vld [vmem:[#allocation3 + $0x109] sm:$0xff]  ;;  %v19809_v63 = vld [vmem:[#allocation95_spill] sm:$0xff] }
 0x55d   : > { %19807 = vst [vmem:[#allocation63_spill] sm:$0xff] %v16413_v19 }
 0x55f   : > { %v6157_v50 = vpop.f32.mrf.mxu0 }
 0x561   : > { %v5610_v44 = vpop.f32.mrf.mxu2  ;;  %v5879_v55 = vpop.f32.mrf.mxu3 }
 0x562   : > { %12504 = vmatmul.msk.f32.gmra.mxu0 %vm472_vm1, %v19806_v62  ;;  %v5700_v3 = vadd.f32 %v5610_v44, %v5422_v18  ;;  %v5975_v54 = vadd.f32 %v5879_v55, %v5697_v29  ;;  %v16409_v51 = vpop.f32.mrf.mxu1 }
 0x563   : > { %12440 = vmatmul.msk.f32.gmra.mxu2 %vm472_vm1, %v16413_v19  ;;  %12538 = vmatmul.msk.f32.gmra.mxu1 %vm472_vm1, %v19808_v43  ;;  %v16429_v19 = vld [vmem:[#allocation3 + $0x111] sm:$0xff]  ;;  %v19812_v43 = vld [vmem:[#allocation13_spill] sm:$0xff] }
 0x564   : > { %v16411_v8 = vadd.f32 %v6157_v50, %v5975_v54  ;;  %12471 = vmatmul.msk.f32.gmra.mxu3 %vm472_vm1, %v19809_v63  ;;  %19811 = vst [vmem:[#allocation72_spill] sm:$0xff] %v16429_v19  ;;  %v19813_v63 = vld [vmem:[#allocation93_spill] sm:$0xff] }
 0x567   : > { %v6160_v9 = vpop.f32.mrf.mxu0 }
 0x569   : > { %v5613_v29 = vpop.f32.mrf.mxu2  ;;  %v5882_v50 = vpop.f32.mrf.mxu3 }
 0x56a   : > { %12505 = vmatmul.msk.f32.gmra.mxu0 %vm472_vm1, %v19810_v56  ;;  %v5701_v62 = vadd.f32 %v5613_v29, %v5423_v58  ;;  %v5976_v18 = vadd.f32 %v5882_v50, %v5698_v23  ;;  %v16425_v44 = vpop.f32.mrf.mxu1 }
 0x56b   : > { %12441 = vmatmul.msk.f32.gmra.mxu2 %vm472_vm1, %v16429_v19  ;;  %12539 = vmatmul.msk.f32.gmra.mxu1 %vm472_vm1, %v19812_v43  ;;  %v16445_v19 = vld [vmem:[#allocation3 + $0x121] sm:$0xff]  ;;  %v19816_v43 = vld [vmem:[#allocation23_spill] sm:$0xff] }
 0x56c   : > { %v16427_v55 = vadd.f32 %v6160_v9, %v5976_v18  ;;  %12472 = vmatmul.msk.f32.gmra.mxu3 %vm472_vm1, %v19813_v63  ;;  %19815 = vst [vmem:[#allocation77_spill] sm:$0xff] %v16445_v19  ;;  %v19817_v63 = vld [vmem:[#allocation97_spill] sm:$0xff] }
 0x56f   : > { %v6163_v54 = vpop.f32.mrf.mxu0 }
 0x571   : > { %v5616_v23 = vpop.f32.mrf.mxu2  ;;  %v5885_v9 = vpop.f32.mrf.mxu3 }
 0x572   : > { %12506 = vmatmul.msk.f32.gmra.mxu0 %vm472_vm1, %v19814_v24  ;;  %v5702_v56 = vadd.f32 %v5616_v23, %v5424_v36  ;;  %v5977_v58 = vadd.f32 %v5885_v9, %v5699_v16  ;;  %v16441_v29 = vpop.f32.mrf.mxu1 }
 0x573   : > { %12442 = vmatmul.msk.f32.gmra.mxu2 %vm472_vm1, %v16445_v19  ;;  %12540 = vmatmul.msk.f32.gmra.mxu1 %vm472_vm1, %v19816_v43  ;;  %v16461_v19 = vld [vmem:[#allocation3 + $0x129] sm:$0xff] }
 0x574   : > { %v16443_v50 = vadd.f32 %v6163_v54, %v5977_v58  ;;  %12473 = vmatmul.msk.f32.gmra.mxu3 %vm472_vm1, %v19817_v63  ;;  %19819 = vst [vmem:[#allocation74_spill] sm:$0xff] %v16461_v19  ;;  %v19820_v43 = vld [vmem:[#allocation38_spill] sm:$0xff] }
 0x575   : > { %v19821_v63 = vld [vmem:[#allocation10_spill] sm:$0xff] }
 0x577   : > { %v6166_v18 = vpop.f32.mrf.mxu0 }
 0x579   : > { %v5619_v16 = vpop.f32.mrf.mxu2  ;;  %v5888_v54 = vpop.f32.mrf.mxu3 }
 0x57a   : > { %12507 = vmatmul.msk.f32.gmra.mxu0 %vm472_vm1, %v19818_v61  ;;  %v5703_v24 = vadd.f32 %v5619_v16, %v5425_v37  ;;  %v5978_v36 = vadd.f32 %v5888_v54, %v5700_v3  ;;  %v16457_v23 = vpop.f32.mrf.mxu1 }
 0x57b   : > { %12443 = vmatmul.msk.f32.gmra.mxu2 %vm472_vm1, %v16461_v19  ;;  %12541 = vmatmul.msk.f32.gmra.mxu1 %vm472_vm1, %v19820_v43  ;;  %v16477_v19 = vld [vmem:[#allocation3 + $0x139] sm:$0xff]  ;;  %v19824_v43 = vld [vmem:[#allocation53_spill] sm:$0xff] }
 0x57c   : > { %v16459_v9 = vadd.f32 %v6166_v18, %v5978_v36  ;;  %12474 = vmatmul.msk.f32.gmra.mxu3 %vm472_vm1, %v19821_v63  ;;  %19823 = vst [vmem:[#allocation75_spill] sm:$0xff] %v16477_v19  ;;  %v19825_v63 = vld [vmem:[#allocation17_spill] sm:$0xff] }
 0x57f   : > { %v6169_v58 = vpop.f32.mrf.mxu0 }
 0x581   : > { %v5622_v3 = vpop.f32.mrf.mxu2  ;;  %v5891_v18 = vpop.f32.mrf.mxu3 }
 0x582   : > { %12508 = vmatmul.msk.f32.gmra.mxu0 %vm472_vm1, %v19822_v5  ;;  %v5704_v61 = vadd.f32 %v5622_v3, %v5426_v52  ;;  %v5979_v37 = vadd.f32 %v5891_v18, %v5701_v62  ;;  %v16473_v16 = vpop.f32.mrf.mxu1 }
 0x583   : > { %12444 = vmatmul.msk.f32.gmra.mxu2 %vm472_vm1, %v16477_v19  ;;  %12542 = vmatmul.msk.f32.gmra.mxu1 %vm472_vm1, %v19824_v43  ;;  %v16493_v19 = vld [vmem:[#allocation3 + $0x141] sm:$0xff]  ;;  %v19828_v43 = vld [vmem:[#allocation71_spill] sm:$0xff] }
 0x584   : > { %v16475_v54 = vadd.f32 %v6169_v58, %v5979_v37  ;;  %12475 = vmatmul.msk.f32.gmra.mxu3 %vm472_vm1, %v19825_v63  ;;  %19827 = vst [vmem:[#allocation85_spill] sm:$0xff] %v16493_v19  ;;  %v19829_v63 = vld [vmem:[#allocation28_spill] sm:$0xff] }
 0x587   : > { %v6172_v36 = vpop.f32.mrf.mxu0 }
 0x589   : > { %v5625_v62 = vpop.f32.mrf.mxu2  ;;  %v5894_v58 = vpop.f32.mrf.mxu3 }
 0x58a   : > { %12509 = vmatmul.msk.f32.gmra.mxu0 %vm472_vm1, %v19826_v15  ;;  %v5705_v5 = vadd.f32 %v5625_v62, %v5427_v22  ;;  %v5980_v52 = vadd.f32 %v5894_v58, %v5702_v56  ;;  %v16489_v3 = vpop.f32.mrf.mxu1 }
 0x58b   : > { %12445 = vmatmul.msk.f32.gmra.mxu2 %vm472_vm1, %v16493_v19  ;;  %12543 = vmatmul.msk.f32.gmra.mxu1 %vm472_vm1, %v19828_v43  ;;  %v16509_v19 = vld [vmem:[#allocation3 + $0x151] sm:$0xff] }
 0x58c   : > { %v16491_v18 = vadd.f32 %v6172_v36, %v5980_v52  ;;  %12476 = vmatmul.msk.f32.gmra.mxu3 %vm472_vm1, %v19829_v63  ;;  %19831 = vst [vmem:[#allocation79_spill] sm:$0xff] %v16509_v19  ;;  %v19832_v43 = vld [vmem:[#allocation43_spill] sm:$0xff] }
 0x58f   : > { %v6175_v37 = vpop.f32.mrf.mxu0 }
 0x591   : > { %v5628_v56 = vpop.f32.mrf.mxu2  ;;  %v5897_v36 = vpop.f32.mrf.mxu3 }
 0x592   : > { %12510 = vmatmul.msk.f32.gmra.mxu0 %vm472_vm1, %v19830_v11  ;;  %v5706_v15 = vadd.f32 %v5628_v56, %v5428_v2  ;;  %v5981_v22 = vadd.f32 %v5897_v36, %v5703_v24  ;;  %v16505_v62 = vpop.f32.mrf.mxu1  ;;  %v5429_v24 = vadd.f32 %v19834_v60, %v16064_v59  ;;  %v19839_v59 = vld [vmem:[#allocation98_spill] sm:$0xff] }
 0x593   : > { %12446 = vmatmul.msk.f32.gmra.mxu2 %vm472_vm1, %v16509_v19  ;;  %12544 = vmatmul.msk.f32.gmra.mxu1 %vm472_vm1, %v16010_v14  ;;  %v16525_v19 = vld [vmem:[#allocation3 + $0x159] sm:$0xff]  ;;  %v19837_v14 = vld [vmem:[#allocation90_spill] sm:$0xff] }
 0x594   : > { %v16507_v58 = vadd.f32 %v6175_v37, %v5981_v22  ;;  %12477 = vmatmul.msk.f32.gmra.mxu3 %vm472_vm1, %v19832_v43  ;;  %19836 = vst [vmem:[#allocation92_spill] sm:$0xff] %v16525_v19  ;;  %v19838_v43 = vld [vmem:[#allocation59_spill] sm:$0xff] }
 0x597   : > { %v6178_v52 = vpop.f32.mrf.mxu0 }
 0x599   : > { %v5631_v37 = vpop.f32.mrf.mxu2  ;;  %v5900_v63 = vpop.f32.mrf.mxu3 }
 0x59a   : > { %12511 = vmatmul.msk.f32.gmra.mxu0 %vm472_vm1, %v19833_v57  ;;  %v5707_v11 = vadd.f32 %v5631_v37, %v5429_v24  ;;  %v5982_v2 = vadd.f32 %v5900_v63, %v5704_v61  ;;  %v16521_v56 = vpop.f32.mrf.mxu1  ;;  %v19840_v61 = vld [vmem:[#allocation104_spill] sm:$0xff] }
 0x59b   : > { %19835 = vst [vmem:[#allocation80_spill] sm:$0xff] %v16521_v56  ;;  %12447 = vmatmul.msk.f32.gmra.mxu2 %vm472_vm1, %v16525_v19  ;;  %12545 = vmatmul.msk.f32.gmra.mxu1 %vm472_vm1, %v19837_v14  ;;  %v5430_v57 = vadd.f32 %v19840_v61, %v16083_v40  ;;  %v16541_v56 = vld [vmem:[#allocation3 + $0x169] sm:$0xff]  ;;  %v19844_v14 = vld [vmem:[#allocation99_spill] sm:$0xff] }
 0x59c   : > { %v16523_v36 = vadd.f32 %v6178_v52, %v5982_v2  ;;  %12478 = vmatmul.msk.f32.gmra.mxu3 %vm472_vm1, %v19838_v43  ;;  %19843 = vst [vmem:[#allocation8_spill] sm:$0xff] %v16541_v56  ;;  %v19845_v43 = vld [vmem:[#allocation76_spill] sm:$0xff]  ;;  %v19846_v40 = vld [vmem:[#allocation102_spill] sm:$0xff] }
 0x59f   : > { %v6181_v22 = vpop.f32.mrf.mxu0 }
 0x5a1   : > { %v5634_v52 = vpop.f32.mrf.mxu2  ;;  %v5903_v60 = vpop.f32.mrf.mxu3 }
 0x5a2   : > { %12512 = vmatmul.msk.f32.gmra.mxu0 %vm472_vm1, %v19839_v59  ;;  %v5708_v24 = vadd.f32 %v5634_v52, %v5430_v57  ;;  %v5983_v37 = vadd.f32 %v5903_v60, %v5705_v5  ;;  %v16537_v63 = vpop.f32.mrf.mxu1  ;;  %v19847_v5 = vld [vmem:[#allocation106_spill] sm:$0xff]  ;;  %v19848_v59 = vld [vmem:[#allocation27_spill] sm:$0xff] }
 0x5a3   : > { %19841 = vst [vmem:[#allocation84_spill] sm:$0xff] %v16537_v63  ;;  %12448 = vmatmul.msk.f32.gmra.mxu2 %vm472_vm1, %v16541_v56  ;;  %12546 = vmatmul.msk.f32.gmra.mxu1 %vm472_vm1, %v19844_v14  ;;  %v5431_v61 = vadd.f32 %v19848_v59, %v19847_v5  ;;  %v19851_v14 = vld [vmem:[#allocation103_spill] sm:$0xff] }
 0x5a4   : > { %v16539_v2 = vadd.f32 %v6181_v22, %v5983_v37  ;;  %12479 = vmatmul.msk.f32.gmra.mxu3 %vm472_vm1, %v19845_v43  ;;  %v19852_v43 = vld [vmem:[#allocation86_spill] sm:$0xff] }
 0x5a6   : > { %19842 = vst [vmem:[#allocation91_spill] sm:$0xff] %v16539_v2  ;;  %v16557_v2 = vld [vmem:[#allocation3 + $0x171] sm:$0xff] }
 0x5a7   : > { %v6184_v19 = vpop.f32.mrf.mxu0  ;;  %19850 = vst [vmem:[#allocation95_spill] sm:$0xff] %v16557_v2 }
 0x5a9   : > { %v5637_v22 = vpop.f32.mrf.mxu2  ;;  %v5906_v57 = vpop.f32.mrf.mxu3 }
 0x5aa   : > { %12513 = vmatmul.msk.f32.gmra.mxu0 %vm472_vm1, %v19846_v40  ;;  %v5709_v52 = vadd.f32 %v5637_v22, %v5431_v61  ;;  %v5984_v60 = vadd.f32 %v5906_v57, %v5706_v15  ;;  %v16553_v37 = vpop.f32.mrf.mxu1  ;;  %v19853_v40 = vld [vmem:[#allocation30_spill] sm:$0xff]  ;;  %v19854_v15 = vld [vmem:[#allocation35_spill] sm:$0xff] }
 0x5ab   : > { %19849 = vst [vmem:[#allocation9_spill] sm:$0xff] %v16553_v37  ;;  %12449 = vmatmul.msk.f32.gmra.mxu2 %vm472_vm1, %v16557_v2  ;;  %12547 = vmatmul.msk.f32.gmra.mxu1 %vm472_vm1, %v19851_v14  ;;  %v5432_v5 = vadd.f32 %v19854_v15, %v16126_v34  ;;  %v16573_v37 = vld [vmem:[#allocation3 + $0x181] sm:$0xff]  ;;  %v19856_v14 = vld [vmem:[#allocation70_spill] sm:$0xff]  ;;  %v19858_v34 = vld [vmem:[#allocation107_spill] sm:$0xff] }
 0x5ac   : > { %v16555_v63 = vadd.f32 %v6184_v19, %v5984_v60  ;;  %12480 = vmatmul.msk.f32.gmra.mxu3 %vm472_vm1, %v19852_v43  ;;  %19855 = vst [vmem:[#allocation11_spill] sm:$0xff] %v16573_v37  ;;  %v19857_v43 = vld [vmem:[#allocation94_spill] sm:$0xff] }
 0x5af   : > { %v6187_v56 = vpop.f32.mrf.mxu0 }
 0x5b1   : > { %v5640_v19 = vpop.f32.mrf.mxu2  ;;  %v5909_v59 = vpop.f32.mrf.mxu3 }
 0x5b2   : > { %12514 = vmatmul.msk.f32.gmra.mxu0 %vm472_vm1, %v19853_v40  ;;  %v5710_v61 = vadd.f32 %v5640_v19, %v5432_v5  ;;  %v5985_v22 = vadd.f32 %v5909_v59, %v5707_v11  ;;  %v16569_v57 = vpop.f32.mrf.mxu1  ;;  %v5433_v11 = vadd.f32 %v16148_v27, %v16150_v48  ;;  %v19862_v27 = vld [vmem:[#allocation109_spill] sm:$0xff]  ;;  %v19863_v48 = vld [vmem:[#allocation40_spill] sm:$0xff] }
 0x5b3   : > { %12450 = vmatmul.msk.f32.gmra.mxu2 %vm472_vm1, %v16573_v37  ;;  %12548 = vmatmul.msk.f32.gmra.mxu1 %vm472_vm1, %v19856_v14  ;;  %v16589_v37 = vld [vmem:[#allocation3 + $0x189] sm:$0xff]  ;;  %v19860_v14 = vld [vmem:[#allocation108_spill] sm:$0xff] }
 0x5b4   : > { %v16571_v60 = vadd.f32 %v6187_v56, %v5985_v22  ;;  %12481 = vmatmul.msk.f32.gmra.mxu3 %vm472_vm1, %v19857_v43  ;;  %19859 = vst [vmem:[#allocation13_spill] sm:$0xff] %v16589_v37  ;;  %v19861_v43 = vld [vmem:[#allocation101_spill] sm:$0xff] }
 0x5b7   : > { %v6190_v2 = vpop.f32.mrf.mxu0 }
 0x5b9   : > { %v5643_v56 = vpop.f32.mrf.mxu2  ;;  %v5912_v40 = vpop.f32.mrf.mxu3 }
 0x5ba   : > { %12515 = vmatmul.msk.f32.gmra.mxu0 %vm472_vm1, %v19858_v34  ;;  %v5711_v15 = vadd.f32 %v5643_v56, %v5433_v11  ;;  %v5986_v5 = vadd.f32 %v5912_v40, %v5708_v24  ;;  %v16585_v19 = vpop.f32.mrf.mxu1  ;;  %v5434_v24 = vadd.f32 %v19863_v48, %v16169_v45  ;;  %v19867_v45 = vld [vmem:[#allocation105_spill] sm:$0xff]  ;;  %v19868_v48 = vld [vmem:[#allocation111_spill] sm:$0xff] }
 0x5bb   : > { %12451 = vmatmul.msk.f32.gmra.mxu2 %vm472_vm1, %v16589_v37  ;;  %12549 = vmatmul.msk.f32.gmra.mxu1 %vm472_vm1, %v19860_v14 }
 0x5bc   : > { %v16587_v59 = vadd.f32 %v6190_v2, %v5986_v5  ;;  %12482 = vmatmul.msk.f32.gmra.mxu3 %vm472_vm1, %v19861_v43  ;;  %v12690_v5 = vld [vmem:[%s19194_s9 + $0x38] sm:$0xf]  ;;  %v6563_v43 = vld [vmem:[#allocation3 + $0x30] sm:$0xff] }
 0x5bd   : > { %12691 = vmatpush.msk.msrb.mxu2 %vm634_vm0, %v12690_v5 }
 0x5bf   : > { %v6193_v22 = vpop.f32.mrf.mxu0 }
 0x5c1   : > { %v5646_v2 = vpop.f32.mrf.mxu2  ;;  %v5915_v34 = vpop.f32.mrf.mxu3 }
 0x5c2   : > { %12516 = vmatmul.msk.f32.gmra.mxu0 %vm472_vm1, %v19862_v27  ;;  %v5712_v11 = vadd.f32 %v5646_v2, %v5434_v24  ;;  %v5987_v56 = vadd.f32 %v5915_v34, %v5709_v52  ;;  %v16601_v40 = vpop.f32.mrf.mxu1  ;;  %v19866_v27 = vld [vmem:[#allocation110_spill] sm:$0xff]  ;;  %v12724_v52 = vld [vmem:[%s19194_s9 + $0x3c] sm:$0xf] }
 0x5c3   : > { %19864 = vst [vmem:[#allocation93_spill] sm:$0xff] %v16601_v40  ;;  %12556 = vmatmul.msk.f32.vlgmr.msra.gmra.mxu2 %vm472_vm1, %v6563_v43  ;;  %12550 = vmatmul.msk.f32.gmra.mxu1 %vm472_vm1, %v19866_v27  ;;  %v6564_v40 = vld [vmem:[#allocation3 + $0x38] sm:$0xff] }
 0x5c4   : > { %v16606_v14 = vadd.f32 %v6193_v22, %v5987_v56  ;;  %12483 = vmatmul.msk.f32.gmra.mxu3 %vm472_vm1, %v19867_v45  ;;  %v19869_v22 = vld [vmem:[#allocation81_spill] sm:$0xff] }
 0x5c5   : > { %12725 = vmatpush.msk.msrb.mxu3 %vm634_vm0, %v12724_v52  ;;  %v5435_v24 = vadd.f32 %v19869_v22, %v16182_v25  ;;  %v16633_v25 = vld [vmem:[#allocation3 + $0x183] sm:$0xff] }
 0x5c6   : > { %19865 = vst [vmem:[#allocation20_spill] sm:$0xff] %v16606_v14  ;;  %v16626_v14 = vld [vmem:[#allocation3 + $0x182] sm:$0xff] }
 0x5c7   : > { %v6196_v37 = vpop.f32.mrf.mxu0  ;;  %19872 = vst [vmem:[#allocation33_spill] sm:$0xff] %v16626_v14 }
 0x5c8   : > { %19874 = vst [vmem:[#allocation38_spill] sm:$0xff] %v16633_v25 }
 0x5c9   : > { %v5649_v2 = vpop.f32.mrf.mxu2  ;;  %v5918_v34 = vpop.f32.mrf.mxu3 }
 0x5ca   : > { %12517 = vmatmul.msk.f32.gmra.mxu0 %vm472_vm1, %v19868_v48  ;;  %v5713_v56 = vadd.f32 %v5649_v2, %v5435_v24  ;;  %v5988_v5 = vadd.f32 %v5918_v34, %v5710_v61  ;;  %v16622_v43 = vpop.f32.mrf.mxu1  ;;  %v19873_v48 = vld [vmem:[#allocation112_spill] sm:$0xff] }
 0x5cb   : > { %19870 = vst [vmem:[#allocation23_spill] sm:$0xff] %v16622_v43  ;;  %12557 = vmatmul.msk.f32.gmra.mxu2 %vm472_vm1, %v6564_v40  ;;  %12551 = vmatmul.msk.f32.gmra.mxu1 %vm472_vm1, %v19873_v48  ;;  %v12758_v61 = vld [vmem:[%s19194_s9 + $0x40] sm:$0xf]  ;;  %v16651_v43 = vld [vmem:[#allocation3 + $0x48] sm:$0xff] }
 0x5cc   : > { %v16624_v27 = vadd.f32 %v6196_v37, %v5988_v5  ;;  %12484 = vmatmul.msk.f32.gmra.mxu3 %vm472_vm1, %v16626_v14  ;;  %v12792_v37 = vld [vmem:[%s19194_s9 + $0x44] sm:$0xf]  ;;  %12759 = vmatpush.msk.msrb.mxu0 %vm634_vm0, %v12758_v61  ;;  %19876 = vst [vmem:[#allocation10_spill] sm:$0xff] %v16651_v43 }
 0x5cd   : > { %v19875_v40 = vld [vmem:[#allocation44_spill] sm:$0xff]  ;;  %12793 = vmatpush.msk.msrb.mxu1 %vm634_vm0, %v12792_v37 }
 0x5ce   : > { %19871 = vst [vmem:[#allocation97_spill] sm:$0xff] %v16624_v27  ;;  %v5436_v52 = vadd.f32 %v19875_v40, %v16195_v32  ;;  %v6315_v27 = vld [vmem:[#allocation3 + $0x184] sm:$0xff] }
 0x5cf   : > { %v6199_v45 = vpop.f32.mrf.mxu0  ;;  %v16660_v32 = vld [vmem:[#allocation3 + $0x18b] sm:$0xff] }
 0x5d0   : > { %19878 = vst [vmem:[#allocation53_spill] sm:$0xff] %v16660_v32 }
 0x5d1   : > { %v5652_v22 = vpop.f32.mrf.mxu2  ;;  %v5921_v24 = vpop.f32.mrf.mxu3 }
 0x5d2   : > { %12518 = vmatmul.msk.f32.gmra.mxu0 %vm472_vm1, %v16633_v25  ;;  %v5714_v2 = vadd.f32 %v5652_v22, %v5436_v52  ;;  %v5989_v34 = vadd.f32 %v5921_v24, %v5711_v15  ;;  %v16647_v5 = vpop.f32.mrf.mxu1  ;;  %v16653_v25 = vld [vmem:[#allocation3 + $0x18a] sm:$0xff] }
 0x5d3   : > { %19877 = vst [vmem:[#allocation48_spill] sm:$0xff] %v16653_v25  ;;  %12558 = vmatmul.msk.f32.gmra.mxu2 %vm472_vm1, %v16651_v43  ;;  %12552 = vmatmul.msk.f32.gmra.mxu1 %vm472_vm1, %v6315_v27  ;;  %v19879_v15 = vld [vmem:[#allocation41_spill] sm:$0xff] }
 0x5d4   : > { %v16649_v48 = vadd.f32 %v6199_v45, %v5989_v34  ;;  %12485 = vmatmul.msk.f32.gmra.mxu3 %vm472_vm1, %v16653_v25  ;;  %v5437_v45 = vadd.f32 %v19879_v15, %v16208_v41  ;;  %v16670_v34 = vld [vmem:[#allocation3 + $0x50] sm:$0xff] }
 0x5d5   : > { %19881 = vst [vmem:[#allocation65_spill] sm:$0xff] %v16670_v34  ;;  %v6316_v43 = vld [vmem:[#allocation3 + $0x18c] sm:$0xff] }
 0x5d6   : > { %v7119_v41 = vld [vmem:[#allocation3 + $0x32] sm:$0xff] }
 0x5d7   : > { %v6202_v14 = vpop.f32.mrf.mxu0 }
 0x5d9   : > { %v5655_v61 = vpop.f32.mrf.mxu2  ;;  %v5924_v37 = vpop.f32.mrf.mxu3 }
 0x5da   : > { %12519 = vmatmul.msk.f32.gmra.mxu0 %vm472_vm1, %v16660_v32  ;;  %v5715_v40 = vadd.f32 %v5655_v61, %v5437_v45  ;;  %v5990_v52 = vadd.f32 %v5924_v37, %v5712_v11  ;;  %v16666_v22 = vpop.f32.mrf.mxu1  ;;  %v19882_v32 = vld [vmem:[#allocation32_spill] sm:$0xff]  ;;  %v19883_v11 = vld [vmem:[#allocation49_spill] sm:$0xff] }
 0x5db   : > { %19880 = vst [vmem:[#allocation17_spill] sm:$0xff] %v16666_v22  ;;  %12559 = vmatmul.msk.f32.gmra.mxu2 %vm472_vm1, %v16670_v34  ;;  %12553 = vmatmul.msk.f32.gmra.mxu1 %vm472_vm1, %v6316_v43  ;;  %v5438_v15 = vadd.f32 %v19883_v11, %v16221_v28  ;;  %v16684_v22 = vld [vmem:[#allocation3 + $0x60] sm:$0xff]  ;;  %v7397_v43 = vld [vmem:[#allocation3 + $0x33] sm:$0xff] }
 0x5dc   : > { %v16668_v24 = vadd.f32 %v6202_v14, %v5990_v52  ;;  %12590 = vmatmul.msk.f32.vlgmr.msra.gmra.mxu3 %vm472_vm1, %v19882_v32  ;;  %19884 = vst [vmem:[#allocation71_spill] sm:$0xff] %v16684_v22  ;;  %v19885_v32 = vld [vmem:[#allocation113_spill] sm:$0xff]  ;;  %v7120_v28 = vld [vmem:[#allocation3 + $0x3a] sm:$0xff] }
 0x5df   : > { %v6205_v27 = vpop.f32.mrf.mxu0 }
 0x5e1   : > { %v5658_v14 = vpop.f32.mrf.mxu2  ;;  %v5927_v45 = vpop.f32.mrf.mxu3 }
 0x5e2   : > { %12624 = vmatmul.msk.f32.vlgmr.msra.gmra.mxu0 %vm472_vm1, %v7119_v41  ;;  %v5716_v61 = vadd.f32 %v5658_v14, %v5438_v15  ;;  %v5991_v37 = vadd.f32 %v5927_v45, %v5713_v56  ;;  %v16680_v52 = vpop.f32.mrf.mxu1  ;;  %v5439_v56 = vadd.f32 %v16232_v1, %v16234_v39  ;;  %v16705_v1 = vld [vmem:[#allocation3 + $0x4a] sm:$0xff] }
 0x5e3   : > { %12560 = vmatmul.msk.f32.gmra.mxu2 %vm472_vm1, %v16684_v22  ;;  %12658 = vmatmul.msk.f32.vlgmr.msra.gmra.mxu1 %vm472_vm1, %v7397_v43  ;;  %v16698_v22 = vld [vmem:[#allocation3 + $0x68] sm:$0xff]  ;;  %v7398_v43 = vld [vmem:[#allocation3 + $0x3b] sm:$0xff]  ;;  %19888 = vst [vmem:[#allocation82_spill] sm:$0xff] %v16705_v1  ;;  %v19889_v39 = vld [vmem:[#allocation118_spill] sm:$0xff] }
 0x5e4   : > { %v16682_v25 = vadd.f32 %v6205_v27, %v5991_v37  ;;  %12591 = vmatmul.msk.f32.gmra.mxu3 %vm472_vm1, %v19885_v32  ;;  %19886 = vst [vmem:[#allocation28_spill] sm:$0xff] %v16698_v22  ;;  %v19887_v32 = vld [vmem:[#allocation114_spill] sm:$0xff] }
 0x5e7   : > { %v6208_v34 = vpop.f32.mrf.mxu0 }
 0x5e9   : > { %v5661_v27 = vpop.f32.mrf.mxu2  ;;  %v5930_v41 = vpop.f32.mrf.mxu3 }
 0x5ea   : > { %12625 = vmatmul.msk.f32.gmra.mxu0 %vm472_vm1, %v7120_v28  ;;  %v5717_v11 = vadd.f32 %v5661_v27, %v5439_v56  ;;  %v5992_v15 = vadd.f32 %v5930_v41, %v5714_v2  ;;  %v16694_v14 = vpop.f32.mrf.mxu1  ;;  %v5440_v2 = vadd.f32 %v19889_v39, %v16247_v35  ;;  %v16722_v35 = vld [vmem:[#allocation3 + $0x52] sm:$0xff] }
 0x5eb   : > { %12561 = vmatmul.msk.f32.gmra.mxu2 %vm472_vm1, %v16698_v22  ;;  %12659 = vmatmul.msk.f32.gmra.mxu1 %vm472_vm1, %v7398_v43  ;;  %v16715_v22 = vld [vmem:[#allocation3 + $0x78] sm:$0xff]  ;;  %19892 = vst [vmem:[#allocation88_spill] sm:$0xff] %v16722_v35 }
 0x5ec   : > { %v16696_v45 = vadd.f32 %v6208_v34, %v5992_v15  ;;  %12592 = vmatmul.msk.f32.gmra.mxu3 %vm472_vm1, %v19887_v32  ;;  %19890 = vst [vmem:[#allocation43_spill] sm:$0xff] %v16715_v22  ;;  %v7399_v32 = vld [vmem:[#allocation3 + $0x4b] sm:$0xff] }
 0x5ef   : > { %v6211_v37 = vpop.f32.mrf.mxu0 }
 0x5f1   : > { %v5664_v34 = vpop.f32.mrf.mxu2  ;;  %v5933_v28 = vpop.f32.mrf.mxu3 }
 0x5f2   : > { %12626 = vmatmul.msk.f32.gmra.mxu0 %vm472_vm1, %v16705_v1  ;;  %v5718_v56 = vadd.f32 %v5664_v34, %v5440_v2  ;;  %v5993_v27 = vadd.f32 %v5933_v28, %v5715_v40  ;;  %v16711_v41 = vpop.f32.mrf.mxu1  ;;  %v19891_v1 = vld [vmem:[#allocation115_spill] sm:$0xff]  ;;  %v5441_v40 = vadd.f32 %v16259_v26, %v16261_v46  ;;  %v16739_v26 = vld [vmem:[#allocation3 + $0x62] sm:$0xff] }
 0x5f3   : > { %12562 = vmatmul.msk.f32.gmra.mxu2 %vm472_vm1, %v16715_v22  ;;  %12660 = vmatmul.msk.f32.gmra.mxu1 %vm472_vm1, %v7399_v32  ;;  %v16732_v22 = vld [vmem:[#allocation3 + $0x80] sm:$0xff]  ;;  %19897 = vst [vmem:[#allocation98_spill] sm:$0xff] %v16739_v26  ;;  %v19898_v46 = vld [vmem:[#allocation55_spill] sm:$0xff] }
 0x5f4   : > { %v16713_v15 = vadd.f32 %v6211_v37, %v5993_v27  ;;  %12593 = vmatmul.msk.f32.gmra.mxu3 %vm472_vm1, %v19891_v1  ;;  %19895 = vst [vmem:[#allocation59_spill] sm:$0xff] %v16732_v22  ;;  %v7400_v1 = vld [vmem:[#allocation3 + $0x53] sm:$0xff] }
 0x5f7   : > { %v6214_v43 = vpop.f32.mrf.mxu0 }
 0x5f9   : > { %v5667_v37 = vpop.f32.mrf.mxu2  ;;  %v5936_v39 = vpop.f32.mrf.mxu3 }
 0x5fa   : > { %12627 = vmatmul.msk.f32.gmra.mxu0 %vm472_vm1, %v16722_v35  ;;  %v5719_v2 = vadd.f32 %v5667_v37, %v5441_v40  ;;  %v5994_v34 = vadd.f32 %v5936_v39, %v5716_v61  ;;  %v16728_v28 = vpop.f32.mrf.mxu1  ;;  %v19896_v35 = vld [vmem:[#allocation116_spill] sm:$0xff]  ;;  %v19899_v61 = vld [vmem:[#allocation54_spill] sm:$0xff] }
 0x5fb   : > { %19893 = vst [vmem:[#allocation100_spill] sm:$0xff] %v16728_v28  ;;  %12563 = vmatmul.msk.f32.gmra.mxu2 %vm472_vm1, %v16732_v22  ;;  %12661 = vmatmul.msk.f32.gmra.mxu1 %vm472_vm1, %v7400_v1 }
 0x5fc   : > { %v16730_v27 = vadd.f32 %v6214_v43, %v5994_v34  ;;  %12594 = vmatmul.msk.f32.gmra.mxu3 %vm472_vm1, %v19896_v35  ;;  %v5442_v43 = vadd.f32 %v19899_v61, %v19898_v46  ;;  %v7401_v35 = vld [vmem:[#allocation3 + $0x63] sm:$0xff] }
 0x5fd   : > { %v16756_v46 = vld [vmem:[#allocation3 + $0x6a] sm:$0xff] }
 0x5fe   : > { %19894 = vst [vmem:[#allocation90_spill] sm:$0xff] %v16730_v27  ;;  %v16749_v27 = vld [vmem:[#allocation3 + $0x90] sm:$0xff] }
 0x5ff   : > { %v6217_v32 = vpop.f32.mrf.mxu0  ;;  %19901 = vst [vmem:[#allocation99_spill] sm:$0xff] %v16749_v27 }
 0x600   : > { %19903 = vst [vmem:[#allocation76_spill] sm:$0xff] %v16756_v46 }
 0x601   : > { %v5670_v40 = vpop.f32.mrf.mxu2  ;;  %v5939_v37 = vpop.f32.mrf.mxu3 }
 0x602   : > { %12628 = vmatmul.msk.f32.gmra.mxu0 %vm472_vm1, %v16739_v26  ;;  %v5720_v39 = vadd.f32 %v5670_v40, %v5442_v43  ;;  %v5995_v34 = vadd.f32 %v5939_v37, %v5717_v11  ;;  %v16745_v28 = vpop.f32.mrf.mxu1  ;;  %v19902_v26 = vld [vmem:[#allocation117_spill] sm:$0xff] }
 0x603   : > { %19900 = vst [vmem:[#allocation104_spill] sm:$0xff] %v16745_v28  ;;  %12564 = vmatmul.msk.f32.gmra.mxu2 %vm472_vm1, %v16749_v27  ;;  %12662 = vmatmul.msk.f32.gmra.mxu1 %vm472_vm1, %v7401_v35  ;;  %v19904_v11 = vld [vmem:[#allocation61_spill] sm:$0xff]  ;;  %v16766_v28 = vld [vmem:[#allocation3 + $0x98] sm:$0xff] }
 0x604   : > { %v16747_v22 = vadd.f32 %v6217_v32, %v5995_v34  ;;  %12595 = vmatmul.msk.f32.gmra.mxu3 %vm472_vm1, %v19902_v26  ;;  %v5443_v32 = vadd.f32 %v19904_v11, %v16291_v49  ;;  %19905 = vst [vmem:[#allocation102_spill] sm:$0xff] %v16766_v28  ;;  %v7402_v26 = vld [vmem:[#allocation3 + $0x6b] sm:$0xff]  ;;  %v16773_v49 = vld [vmem:[#allocation3 + $0x7a] sm:$0xff] }
 0x605   : > { %19907 = vst [vmem:[#allocation106_spill] sm:$0xff] %v16773_v49 }
 0x607   : > { %v6220_v1 = vpop.f32.mrf.mxu0 }
 0x609   : > { %v5673_v61 = vpop.f32.mrf.mxu2  ;;  %v5942_v43 = vpop.f32.mrf.mxu3 }
 0x60a   : > { %12629 = vmatmul.msk.f32.gmra.mxu0 %vm472_vm1, %v16756_v46  ;;  %v5721_v40 = vadd.f32 %v5673_v61, %v5443_v32  ;;  %v5996_v37 = vadd.f32 %v5942_v43, %v5718_v56  ;;  %v16762_v34 = vpop.f32.mrf.mxu1  ;;  %v19906_v46 = vld [vmem:[#allocation46_spill] sm:$0xff]  ;;  %v5444_v56 = vadd.f32 %v16304_v53, %v16306_v13  ;;  %v16790_v53 = vld [vmem:[#allocation3 + $0x82] sm:$0xff]  ;;  %v5445_v13 = vadd.f32 %v16319_v33, %v16321_v17 }
 0x60b   : > { %12565 = vmatmul.msk.f32.gmra.mxu2 %vm472_vm1, %v16766_v28  ;;  %12663 = vmatmul.msk.f32.gmra.mxu1 %vm472_vm1, %v7402_v26  ;;  %v16783_v28 = vld [vmem:[#allocation3 + $0xa8] sm:$0xff]  ;;  %19910 = vst [vmem:[#allocation103_spill] sm:$0xff] %v16790_v53  ;;  %v16807_v33 = vld [vmem:[#allocation3 + $0x92] sm:$0xff]  ;;  %v5446_v17 = vadd.f32 %v16334_v42, %v16336_v4  ;;  %v16824_v42 = vld [vmem:[#allocation3 + $0x9a] sm:$0xff]  ;;  %v5447_v4 = vadd.f32 %v16349_v20, %v16351_v30 }
 0x60c   : > { %v16764_v27 = vadd.f32 %v6220_v1, %v5996_v37  ;;  %12596 = vmatmul.msk.f32.gmra.mxu3 %vm472_vm1, %v19906_v46  ;;  %19908 = vst [vmem:[#allocation27_spill] sm:$0xff] %v16783_v28  ;;  %v7403_v46 = vld [vmem:[#allocation3 + $0x7b] sm:$0xff]  ;;  %v16841_v20 = vld [vmem:[#allocation3 + $0xaa] sm:$0xff]  ;;  %v5448_v30 = vadd.f32 %v16363_v38, %v16365_v6  ;;  %v16858_v38 = vld [vmem:[#allocation3 + $0xb2] sm:$0xff]  ;;  %v5449_v6 = vadd.f32 %v16377_v31, %v16379_v7 }
 0x60d   : > { %19913 = vst [vmem:[#allocation30_spill] sm:$0xff] %v16807_v33  ;;  %v16875_v31 = vld [vmem:[#allocation3 + $0xc2] sm:$0xff]  ;;  %v5450_v7 = vadd.f32 %v16393_v47, %v16395_v10  ;;  %v16892_v47 = vld [vmem:[#allocation3 + $0xca] sm:$0xff]  ;;  %v6531_v10 = vadd.f32 %v16409_v51, %v16411_v8  ;;  %v16909_v51 = vld [vmem:[#allocation3 + $0xda] sm:$0xff]  ;;  %v6532_v8 = vadd.f32 %v16425_v44, %v16427_v55  ;;  %v6533_v55 = vadd.f32 %v16441_v29, %v16443_v50 }
 0x60e   : > { %19916 = vst [vmem:[#allocation70_spill] sm:$0xff] %v16824_v42  ;;  %v16926_v44 = vld [vmem:[#allocation3 + $0xe2] sm:$0xff]  ;;  %v16943_v29 = vld [vmem:[#allocation3 + $0xf2] sm:$0xff]  ;;  %v6534_v50 = vadd.f32 %v16457_v23, %v16459_v9  ;;  %v16960_v23 = vld [vmem:[#allocation3 + $0xfa] sm:$0xff]  ;;  %v6535_v9 = vadd.f32 %v16473_v16, %v16475_v54  ;;  %v6536_v54 = vadd.f32 %v16489_v3, %v16491_v18  ;;  %v6537_v18 = vadd.f32 %v16505_v62, %v16507_v58 }
 0x60f   : > { %v6223_v35 = vpop.f32.mrf.mxu0  ;;  %19919 = vst [vmem:[#allocation107_spill] sm:$0xff] %v16841_v20  ;;  %v16977_v16 = vld [vmem:[#allocation3 + $0x10a] sm:$0xff]  ;;  %v16994_v3 = vld [vmem:[#allocation3 + $0x112] sm:$0xff]  ;;  %v17011_v62 = vld [vmem:[#allocation3 + $0x122] sm:$0xff] }
 0x610   : > { %19922 = vst [vmem:[#allocation101_spill] sm:$0xff] %v16858_v38  ;;  %v19945_v58 = vld [vmem:[#allocation80_spill] sm:$0xff] }
 0x611   : > { %v5676_v1 = vpop.f32.mrf.mxu2  ;;  %v5945_v11 = vpop.f32.mrf.mxu3  ;;  %19925 = vst [vmem:[#allocation40_spill] sm:$0xff] %v16875_v31 }
 0x612   : > { %12630 = vmatmul.msk.f32.gmra.mxu0 %vm472_vm1, %v16773_v49  ;;  %v5722_v32 = vadd.f32 %v5676_v1, %v5444_v56  ;;  %v5997_v61 = vadd.f32 %v5945_v11, %v5719_v2  ;;  %v16779_v43 = vpop.f32.mrf.mxu1  ;;  %v19909_v49 = vld [vmem:[#allocation119_spill] sm:$0xff]  ;;  %19930 = vst [vmem:[#allocation81_spill] sm:$0xff] %v16926_v44 }
 0x613   : > { %12566 = vmatmul.msk.f32.gmra.mxu2 %vm472_vm1, %v16783_v28  ;;  %12664 = vmatmul.msk.f32.gmra.mxu1 %vm472_vm1, %v7403_v46  ;;  %v16800_v28 = vld [vmem:[#allocation3 + $0xb0] sm:$0xff]  ;;  %19934 = vst [vmem:[#allocation41_spill] sm:$0xff] %v16960_v23 }
 0x614   : > { %v16781_v37 = vadd.f32 %v6223_v35, %v5997_v61  ;;  %12597 = vmatmul.msk.f32.gmra.mxu3 %vm472_vm1, %v19909_v49  ;;  %19911 = vst [vmem:[#allocation86_spill] sm:$0xff] %v16800_v28  ;;  %v7404_v49 = vld [vmem:[#allocation3 + $0x83] sm:$0xff] }
 0x615   : > { %19937 = vst [vmem:[#allocation49_spill] sm:$0xff] %v16977_v16 }
 0x616   : > { %19940 = vst [vmem:[#allocation114_spill] sm:$0xff] %v16994_v3 }
 0x617   : > { %v6226_v26 = vpop.f32.mrf.mxu0  ;;  %19944 = vst [vmem:[#allocation116_spill] sm:$0xff] %v17011_v62 }
 0x619   : > { %v5679_v2 = vpop.f32.mrf.mxu2  ;;  %v5948_v35 = vpop.f32.mrf.mxu3 }
 0x61a   : > { %12631 = vmatmul.msk.f32.gmra.mxu0 %vm472_vm1, %v16790_v53  ;;  %v5723_v56 = vadd.f32 %v5679_v2, %v5445_v13  ;;  %v5998_v1 = vadd.f32 %v5948_v35, %v5720_v39  ;;  %v16796_v11 = vpop.f32.mrf.mxu1  ;;  %v19912_v53 = vld [vmem:[#allocation52_spill] sm:$0xff] }
 0x61b   : > { %12567 = vmatmul.msk.f32.gmra.mxu2 %vm472_vm1, %v16800_v28  ;;  %12665 = vmatmul.msk.f32.gmra.mxu1 %vm472_vm1, %v7404_v49  ;;  %v16817_v28 = vld [vmem:[#allocation3 + $0xc0] sm:$0xff] }
 0x61c   : > { %v16798_v61 = vadd.f32 %v6226_v26, %v5998_v1  ;;  %12598 = vmatmul.msk.f32.gmra.mxu3 %vm472_vm1, %v19912_v53  ;;  %19914 = vst [vmem:[#allocation35_spill] sm:$0xff] %v16817_v28  ;;  %v7405_v53 = vld [vmem:[#allocation3 + $0x93] sm:$0xff] }
 0x61f   : > { %v6229_v46 = vpop.f32.mrf.mxu0 }
 0x621   : > { %v5682_v39 = vpop.f32.mrf.mxu2  ;;  %v5951_v26 = vpop.f32.mrf.mxu3 }
 0x622   : > { %12632 = vmatmul.msk.f32.gmra.mxu0 %vm472_vm1, %v16807_v33  ;;  %v5724_v13 = vadd.f32 %v5682_v39, %v5446_v17  ;;  %v5999_v2 = vadd.f32 %v5951_v26, %v5721_v40  ;;  %v16813_v35 = vpop.f32.mrf.mxu1  ;;  %v19915_v33 = vld [vmem:[#allocation60_spill] sm:$0xff] }
 0x623   : > { %12568 = vmatmul.msk.f32.gmra.mxu2 %vm472_vm1, %v16817_v28  ;;  %12666 = vmatmul.msk.f32.gmra.mxu1 %vm472_vm1, %v7405_v53  ;;  %v16834_v28 = vld [vmem:[#allocation3 + $0xc8] sm:$0xff] }
 0x624   : > { %v16815_v1 = vadd.f32 %v6229_v46, %v5999_v2  ;;  %12599 = vmatmul.msk.f32.gmra.mxu3 %vm472_vm1, %v19915_v33  ;;  %19917 = vst [vmem:[#allocation94_spill] sm:$0xff] %v16834_v28  ;;  %v7406_v33 = vld [vmem:[#allocation3 + $0x9b] sm:$0xff] }
 0x627   : > { %v6232_v49 = vpop.f32.mrf.mxu0 }
 0x629   : > { %v5685_v40 = vpop.f32.mrf.mxu2  ;;  %v5954_v46 = vpop.f32.mrf.mxu3 }
 0x62a   : > { %12633 = vmatmul.msk.f32.gmra.mxu0 %vm472_vm1, %v16824_v42  ;;  %v5725_v17 = vadd.f32 %v5685_v40, %v5447_v4  ;;  %v6000_v39 = vadd.f32 %v5954_v46, %v5722_v32  ;;  %v16830_v26 = vpop.f32.mrf.mxu1  ;;  %v19918_v42 = vld [vmem:[#allocation62_spill] sm:$0xff] }
 0x62b   : > { %12569 = vmatmul.msk.f32.gmra.mxu2 %vm472_vm1, %v16834_v28  ;;  %12667 = vmatmul.msk.f32.gmra.mxu1 %vm472_vm1, %v7406_v33  ;;  %v16851_v28 = vld [vmem:[#allocation3 + $0xd8] sm:$0xff] }
 0x62c   : > { %v16832_v2 = vadd.f32 %v6232_v49, %v6000_v39  ;;  %12600 = vmatmul.msk.f32.gmra.mxu3 %vm472_vm1, %v19918_v42  ;;  %19920 = vst [vmem:[#allocation108_spill] sm:$0xff] %v16851_v28  ;;  %v7407_v42 = vld [vmem:[#allocation3 + $0xab] sm:$0xff] }
 0x62f   : > { %v6235_v53 = vpop.f32.mrf.mxu0 }
 0x631   : > { %v5688_v32 = vpop.f32.mrf.mxu2  ;;  %v5957_v49 = vpop.f32.mrf.mxu3 }
 0x632   : > { %12634 = vmatmul.msk.f32.gmra.mxu0 %vm472_vm1, %v16841_v20  ;;  %v5726_v4 = vadd.f32 %v5688_v32, %v5448_v30  ;;  %v6001_v40 = vadd.f32 %v5957_v49, %v5723_v56  ;;  %v16847_v46 = vpop.f32.mrf.mxu1  ;;  %v19921_v20 = vld [vmem:[#allocation68_spill] sm:$0xff] }
 0x633   : > { %12570 = vmatmul.msk.f32.gmra.mxu2 %vm472_vm1, %v16851_v28  ;;  %12668 = vmatmul.msk.f32.gmra.mxu1 %vm472_vm1, %v7407_v42  ;;  %v16868_v28 = vld [vmem:[#allocation3 + $0xe0] sm:$0xff] }
 0x634   : > { %v16849_v39 = vadd.f32 %v6235_v53, %v6001_v40  ;;  %12601 = vmatmul.msk.f32.gmra.mxu3 %vm472_vm1, %v19921_v20  ;;  %19923 = vst [vmem:[#allocation109_spill] sm:$0xff] %v16868_v28  ;;  %v7408_v20 = vld [vmem:[#allocation3 + $0xb3] sm:$0xff] }
 0x637   : > { %v6238_v33 = vpop.f32.mrf.mxu0 }
 0x639   : > { %v5691_v56 = vpop.f32.mrf.mxu2  ;;  %v5960_v53 = vpop.f32.mrf.mxu3 }
 0x63a   : > { %12635 = vmatmul.msk.f32.gmra.mxu0 %vm472_vm1, %v16858_v38  ;;  %v5727_v30 = vadd.f32 %v5691_v56, %v5449_v6  ;;  %v6002_v32 = vadd.f32 %v5960_v53, %v5724_v13  ;;  %v16864_v49 = vpop.f32.mrf.mxu1  ;;  %v19924_v38 = vld [vmem:[#allocation57_spill] sm:$0xff] }
 0x63b   : > { %12571 = vmatmul.msk.f32.gmra.mxu2 %vm472_vm1, %v16868_v28  ;;  %12669 = vmatmul.msk.f32.gmra.mxu1 %vm472_vm1, %v7408_v20  ;;  %v16885_v28 = vld [vmem:[#allocation3 + $0xf0] sm:$0xff] }
 0x63c   : > { %v16866_v40 = vadd.f32 %v6238_v33, %v6002_v32  ;;  %12602 = vmatmul.msk.f32.gmra.mxu3 %vm472_vm1, %v19924_v38  ;;  %19926 = vst [vmem:[#allocation110_spill] sm:$0xff] %v16885_v28  ;;  %v7409_v38 = vld [vmem:[#allocation3 + $0xc3] sm:$0xff] }
 0x63f   : > { %v6241_v42 = vpop.f32.mrf.mxu0 }
 0x641   : > { %v5694_v13 = vpop.f32.mrf.mxu2  ;;  %v5963_v33 = vpop.f32.mrf.mxu3 }
 0x642   : > { %12636 = vmatmul.msk.f32.gmra.mxu0 %vm472_vm1, %v16875_v31  ;;  %v5728_v6 = vadd.f32 %v5694_v13, %v5450_v7  ;;  %v6003_v56 = vadd.f32 %v5963_v33, %v5725_v17  ;;  %v16881_v53 = vpop.f32.mrf.mxu1  ;;  %v19927_v31 = vld [vmem:[#allocation66_spill] sm:$0xff] }
 0x643   : > { %12572 = vmatmul.msk.f32.gmra.mxu2 %vm472_vm1, %v16885_v28  ;;  %12670 = vmatmul.msk.f32.gmra.mxu1 %vm472_vm1, %v7409_v38  ;;  %v16902_v28 = vld [vmem:[#allocation3 + $0xf8] sm:$0xff] }
 0x644   : > { %v16883_v32 = vadd.f32 %v6241_v42, %v6003_v56  ;;  %12603 = vmatmul.msk.f32.gmra.mxu3 %vm472_vm1, %v19927_v31  ;;  %19928 = vst [vmem:[#allocation105_spill] sm:$0xff] %v16902_v28  ;;  %v7410_v31 = vld [vmem:[#allocation3 + $0xcb] sm:$0xff] }
 0x647   : > { %v6244_v20 = vpop.f32.mrf.mxu0 }
 0x649   : > { %v6713_v17 = vpop.f32.mrf.mxu2  ;;  %v5966_v42 = vpop.f32.mrf.mxu3 }
 0x64a   : > { %12637 = vmatmul.msk.f32.gmra.mxu0 %vm472_vm1, %v16892_v47  ;;  %v6809_v7 = vadd.f32 %v6713_v17, %v6531_v10  ;;  %v6004_v13 = vadd.f32 %v5966_v42, %v5726_v4  ;;  %v16898_v33 = vpop.f32.mrf.mxu1 }
 0x64b   : > { %12573 = vmatmul.msk.f32.gmra.mxu2 %vm472_vm1, %v16902_v28  ;;  %12671 = vmatmul.msk.f32.gmra.mxu1 %vm472_vm1, %v7410_v31  ;;  %v16919_v28 = vld [vmem:[#allocation3 + $0x108] sm:$0xff] }
 0x64c   : > { %v16900_v56 = vadd.f32 %v6244_v20, %v6004_v13  ;;  %12604 = vmatmul.msk.f32.gmra.mxu3 %vm472_vm1, %v16353_v0  ;;  %19929 = vst [vmem:[#allocation111_spill] sm:$0xff] %v16919_v28  ;;  %v7411_v0 = vld [vmem:[#allocation3 + $0xdb] sm:$0xff] }
 0x64f   : > { %v6247_v38 = vpop.f32.mrf.mxu0 }
 0x651   : > { %v6716_v4 = vpop.f32.mrf.mxu2  ;;  %v5969_v20 = vpop.f32.mrf.mxu3 }
 0x652   : > { %12638 = vmatmul.msk.f32.gmra.mxu0 %vm472_vm1, %v16909_v51  ;;  %v6810_v10 = vadd.f32 %v6716_v4, %v6532_v8  ;;  %v6005_v17 = vadd.f32 %v5969_v20, %v5727_v30  ;;  %v16915_v42 = vpop.f32.mrf.mxu1 }
 0x653   : > { %12574 = vmatmul.msk.f32.gmra.mxu2 %vm472_vm1, %v16919_v28  ;;  %12672 = vmatmul.msk.f32.gmra.mxu1 %vm472_vm1, %v7411_v0  ;;  %v16936_v28 = vld [vmem:[#allocation3 + $0x110] sm:$0xff] }
 0x654   : > { %v16917_v13 = vadd.f32 %v6247_v38, %v6005_v17  ;;  %12605 = vmatmul.msk.f32.gmra.mxu3 %vm472_vm1, %v16367_v21  ;;  %19931 = vst [vmem:[#allocation112_spill] sm:$0xff] %v16936_v28  ;;  %v7412_v21 = vld [vmem:[#allocation3 + $0xe3] sm:$0xff] }
 0x657   : > { %v6250_v31 = vpop.f32.mrf.mxu0 }
 0x659   : > { %v6719_v30 = vpop.f32.mrf.mxu2  ;;  %v5972_v38 = vpop.f32.mrf.mxu3 }
 0x65a   : > { %12639 = vmatmul.msk.f32.gmra.mxu0 %vm472_vm1, %v16926_v44  ;;  %v6811_v8 = vadd.f32 %v6719_v30, %v6533_v55  ;;  %v6006_v4 = vadd.f32 %v5972_v38, %v5728_v6  ;;  %v16932_v20 = vpop.f32.mrf.mxu1  ;;  %v19932_v44 = vld [vmem:[#allocation69_spill] sm:$0xff] }
 0x65b   : > { %12575 = vmatmul.msk.f32.gmra.mxu2 %vm472_vm1, %v16936_v28  ;;  %12673 = vmatmul.msk.f32.gmra.mxu1 %vm472_vm1, %v7412_v21  ;;  %v16953_v28 = vld [vmem:[#allocation3 + $0x120] sm:$0xff] }
 0x65c   : > { %v16934_v17 = vadd.f32 %v6250_v31, %v6006_v4  ;;  %12606 = vmatmul.msk.f32.gmra.mxu3 %vm472_vm1, %v19932_v44  ;;  %19933 = vst [vmem:[#allocation44_spill] sm:$0xff] %v16953_v28  ;;  %v7413_v44 = vld [vmem:[#allocation3 + $0xf3] sm:$0xff] }
 0x65f   : > { %v7269_v0 = vpop.f32.mrf.mxu0 }
 0x661   : > { %v6722_v6 = vpop.f32.mrf.mxu2  ;;  %v6991_v31 = vpop.f32.mrf.mxu3 }
 0x662   : > { %12640 = vmatmul.msk.f32.gmra.mxu0 %vm472_vm1, %v16943_v29  ;;  %v6812_v55 = vadd.f32 %v6722_v6, %v6534_v50  ;;  %v7087_v30 = vadd.f32 %v6991_v31, %v6809_v7  ;;  %v16949_v38 = vpop.f32.mrf.mxu1 }
 0x663   : > { %12576 = vmatmul.msk.f32.gmra.mxu2 %vm472_vm1, %v16953_v28  ;;  %12674 = vmatmul.msk.f32.gmra.mxu1 %vm472_vm1, %v7413_v44  ;;  %v16970_v28 = vld [vmem:[#allocation3 + $0x128] sm:$0xff] }
 0x664   : > { %v16951_v4 = vadd.f32 %v7269_v0, %v7087_v30  ;;  %12607 = vmatmul.msk.f32.gmra.mxu3 %vm472_vm1, %v16397_v12  ;;  %19935 = vst [vmem:[#allocation32_spill] sm:$0xff] %v16970_v28  ;;  %v7414_v12 = vld [vmem:[#allocation3 + $0xfb] sm:$0xff] }
 0x667   : > { %v7272_v21 = vpop.f32.mrf.mxu0 }
 0x669   : > { %v6725_v7 = vpop.f32.mrf.mxu2  ;;  %v6994_v0 = vpop.f32.mrf.mxu3 }
 0x66a   : > { %12641 = vmatmul.msk.f32.gmra.mxu0 %vm472_vm1, %v16960_v23  ;;  %v6813_v50 = vadd.f32 %v6725_v7, %v6535_v9  ;;  %v7088_v6 = vadd.f32 %v6994_v0, %v6810_v10  ;;  %v16966_v31 = vpop.f32.mrf.mxu1  ;;  %v19936_v23 = vld [vmem:[#allocation63_spill] sm:$0xff] }
 0x66b   : > { %12577 = vmatmul.msk.f32.gmra.mxu2 %vm472_vm1, %v16970_v28  ;;  %12675 = vmatmul.msk.f32.gmra.mxu1 %vm472_vm1, %v7414_v12  ;;  %v16987_v28 = vld [vmem:[#allocation3 + $0x138] sm:$0xff] }
 0x66c   : > { %v16968_v30 = vadd.f32 %v7272_v21, %v7088_v6  ;;  %12608 = vmatmul.msk.f32.gmra.mxu3 %vm472_vm1, %v19936_v23  ;;  %19938 = vst [vmem:[#allocation113_spill] sm:$0xff] %v16987_v28  ;;  %v7415_v23 = vld [vmem:[#allocation3 + $0x10b] sm:$0xff] }
 0x66f   : > { %v7275_v44 = vpop.f32.mrf.mxu0 }
 0x671   : > { %v6728_v10 = vpop.f32.mrf.mxu2  ;;  %v6997_v21 = vpop.f32.mrf.mxu3 }
 0x672   : > { %12642 = vmatmul.msk.f32.gmra.mxu0 %vm472_vm1, %v16977_v16  ;;  %v6814_v9 = vadd.f32 %v6728_v10, %v6536_v54  ;;  %v7089_v7 = vadd.f32 %v6997_v21, %v6811_v8  ;;  %v16983_v0 = vpop.f32.mrf.mxu1  ;;  %v19939_v16 = vld [vmem:[#allocation72_spill] sm:$0xff] }
 0x673   : > { %12578 = vmatmul.msk.f32.gmra.mxu2 %vm472_vm1, %v16987_v28  ;;  %12676 = vmatmul.msk.f32.gmra.mxu1 %vm472_vm1, %v7415_v23  ;;  %v17004_v28 = vld [vmem:[#allocation3 + $0x140] sm:$0xff] }
 0x674   : > { %v16985_v6 = vadd.f32 %v7275_v44, %v7089_v7  ;;  %12609 = vmatmul.msk.f32.gmra.mxu3 %vm472_vm1, %v19939_v16  ;;  %19942 = vst [vmem:[#allocation115_spill] sm:$0xff] %v17004_v28  ;;  %v7416_v16 = vld [vmem:[#allocation3 + $0x113] sm:$0xff] }
 0x677   : > { %v7278_v12 = vpop.f32.mrf.mxu0 }
 0x679   : > { %v6731_v8 = vpop.f32.mrf.mxu2  ;;  %v7000_v44 = vpop.f32.mrf.mxu3 }
 0x67a   : > { %12643 = vmatmul.msk.f32.gmra.mxu0 %vm472_vm1, %v16994_v3  ;;  %v6815_v54 = vadd.f32 %v6731_v8, %v6537_v18  ;;  %v7090_v10 = vadd.f32 %v7000_v44, %v6812_v55  ;;  %v17000_v21 = vpop.f32.mrf.mxu1  ;;  %v19943_v3 = vld [vmem:[#allocation77_spill] sm:$0xff]  ;;  %v6538_v55 = vadd.f32 %v19945_v58, %v16523_v36 }
 0x67b   : > { %19941 = vst [vmem:[#allocation118_spill] sm:$0xff] %v17000_v21  ;;  %12579 = vmatmul.msk.f32.gmra.mxu2 %vm472_vm1, %v17004_v28  ;;  %12677 = vmatmul.msk.f32.gmra.mxu1 %vm472_vm1, %v7416_v16  ;;  %v17021_v21 = vld [vmem:[#allocation3 + $0x150] sm:$0xff] }
 0x67c   : > { %v17002_v7 = vadd.f32 %v7278_v12, %v7090_v10  ;;  %12610 = vmatmul.msk.f32.gmra.mxu3 %vm472_vm1, %v19943_v3  ;;  %19948 = vst [vmem:[#allocation117_spill] sm:$0xff] %v17021_v21  ;;  %v7417_v3 = vld [vmem:[#allocation3 + $0x123] sm:$0xff] }
 0x67d   : > { %v17028_v36 = vld [vmem:[#allocation3 + $0x12a] sm:$0xff] }
 0x67e   : > { %19950 = vst [vmem:[#allocation61_spill] sm:$0xff] %v17028_v36 }
 0x67f   : > { %v7281_v23 = vpop.f32.mrf.mxu0 }
 0x681   : > { %v6734_v12 = vpop.f32.mrf.mxu2  ;;  %v7003_v18 = vpop.f32.mrf.mxu3 }
 0x682   : > { %12644 = vmatmul.msk.f32.gmra.mxu0 %vm472_vm1, %v17011_v62  ;;  %v6816_v8 = vadd.f32 %v6734_v12, %v6538_v55  ;;  %v7091_v44 = vadd.f32 %v7003_v18, %v6813_v50  ;;  %v17017_v10 = vpop.f32.mrf.mxu1  ;;  %v19949_v62 = vld [vmem:[#allocation74_spill] sm:$0xff]  ;;  %v19951_v50 = vld [vmem:[#allocation91_spill] sm:$0xff] }
 0x683   : > { %19946 = vst [vmem:[#allocation55_spill] sm:$0xff] %v17017_v10  ;;  %12580 = vmatmul.msk.f32.gmra.mxu2 %vm472_vm1, %v17021_v21  ;;  %12678 = vmatmul.msk.f32.gmra.mxu1 %vm472_vm1, %v7417_v3 }
 0x684   : > { %v17019_v28 = vadd.f32 %v7281_v23, %v7091_v44  ;;  %12611 = vmatmul.msk.f32.gmra.mxu3 %vm472_vm1, %v19949_v62  ;;  %v19952_v23 = vld [vmem:[#allocation84_spill] sm:$0xff]  ;;  %v7418_v62 = vld [vmem:[#allocation3 + $0x12b] sm:$0xff] }
 0x685   : > { %v6539_v58 = vadd.f32 %v19952_v23, %v19951_v50  ;;  %v17045_v50 = vld [vmem:[#allocation3 + $0x13a] sm:$0xff] }
 0x686   : > { %19947 = vst [vmem:[#allocation54_spill] sm:$0xff] %v17019_v28  ;;  %v17038_v28 = vld [vmem:[#allocation3 + $0x158] sm:$0xff] }
 0x687   : > { %v7284_v16 = vpop.f32.mrf.mxu0  ;;  %19954 = vst [vmem:[#allocation119_spill] sm:$0xff] %v17038_v28 }
 0x688   : > { %19956 = vst [vmem:[#allocation52_spill] sm:$0xff] %v17045_v50 }
 0x689   : > { %v6737_v55 = vpop.f32.mrf.mxu2  ;;  %v7006_v12 = vpop.f32.mrf.mxu3 }
 0x68a   : > { %12645 = vmatmul.msk.f32.gmra.mxu0 %vm472_vm1, %v17028_v36  ;;  %v6817_v18 = vadd.f32 %v6737_v55, %v6539_v58  ;;  %v7092_v44 = vadd.f32 %v7006_v12, %v6814_v9  ;;  %v17034_v10 = vpop.f32.mrf.mxu1  ;;  %v19955_v36 = vld [vmem:[#allocation75_spill] sm:$0xff]  ;;  %v19957_v9 = vld [vmem:[#allocation9_spill] sm:$0xff] }
 0x68b   : > { %19953 = vst [vmem:[#allocation46_spill] sm:$0xff] %v17034_v10  ;;  %12581 = vmatmul.msk.f32.gmra.mxu2 %vm472_vm1, %v17038_v28  ;;  %12679 = vmatmul.msk.f32.gmra.mxu1 %vm472_vm1, %v7418_v62  ;;  %v17055_v10 = vld [vmem:[#allocation3 + $0x168] sm:$0xff] }
 0x68c   : > { %v17036_v21 = vadd.f32 %v7284_v16, %v7092_v44  ;;  %12612 = vmatmul.msk.f32.gmra.mxu3 %vm472_vm1, %v19955_v36  ;;  %v6540_v16 = vadd.f32 %v19957_v9, %v16555_v63  ;;  %19958 = vst [vmem:[#allocation60_spill] sm:$0xff] %v17055_v10  ;;  %v7419_v36 = vld [vmem:[#allocation3 + $0x13b] sm:$0xff] }
 0x68d   : > { %v17062_v63 = vld [vmem:[#allocation3 + $0x142] sm:$0xff] }
 0x68e   : > { %19960 = vst [vmem:[#allocation62_spill] sm:$0xff] %v17062_v63 }
 0x68f   : > { %v7287_v3 = vpop.f32.mrf.mxu0 }
 0x691   : > { %v6740_v23 = vpop.f32.mrf.mxu2  ;;  %v7009_v58 = vpop.f32.mrf.mxu3 }
 0x692   : > { %12646 = vmatmul.msk.f32.gmra.mxu0 %vm472_vm1, %v17045_v50  ;;  %v6818_v55 = vadd.f32 %v6740_v23, %v6540_v16  ;;  %v7093_v12 = vadd.f32 %v7009_v58, %v6815_v54  ;;  %v17051_v44 = vpop.f32.mrf.mxu1  ;;  %v19959_v50 = vld [vmem:[#allocation85_spill] sm:$0xff]  ;;  %v6541_v54 = vadd.f32 %v16569_v57, %v16571_v60  ;;  %v17079_v57 = vld [vmem:[#allocation3 + $0x152] sm:$0xff]  ;;  %v6542_v60 = vadd.f32 %v16585_v19, %v16587_v59  ;;  %v17096_v19 = vld [vmem:[#allocation3 + $0x15a] sm:$0xff] }
 0x693   : > { %12582 = vmatmul.msk.f32.gmra.mxu2 %vm472_vm1, %v17055_v10  ;;  %12680 = vmatmul.msk.f32.gmra.mxu1 %vm472_vm1, %v7419_v36  ;;  %v17072_v10 = vld [vmem:[#allocation3 + $0x170] sm:$0xff]  ;;  %19963 = vst [vmem:[#allocation57_spill] sm:$0xff] %v17079_v57  ;;  %v19969_v59 = vld [vmem:[#allocation20_spill] sm:$0xff] }
 0x694   : > { %v17053_v28 = vadd.f32 %v7287_v3, %v7093_v12  ;;  %12613 = vmatmul.msk.f32.gmra.mxu3 %vm472_vm1, %v19959_v50  ;;  %19961 = vst [vmem:[#allocation68_spill] sm:$0xff] %v17072_v10  ;;  %v7420_v50 = vld [vmem:[#allocation3 + $0x143] sm:$0xff] }
 0x695   : > { %19968 = vst [vmem:[#allocation72_spill] sm:$0xff] %v17096_v19 }
 0x697   : > { %v7290_v62 = vpop.f32.mrf.mxu0 }
 0x699   : > { %v6743_v3 = vpop.f32.mrf.mxu2  ;;  %v7012_v9 = vpop.f32.mrf.mxu3 }
 0x69a   : > { %12647 = vmatmul.msk.f32.gmra.mxu0 %vm472_vm1, %v17062_v63  ;;  %v6819_v16 = vadd.f32 %v6743_v3, %v6541_v54  ;;  %v7094_v23 = vadd.f32 %v7012_v9, %v6816_v8  ;;  %v17068_v58 = vpop.f32.mrf.mxu1  ;;  %v19962_v63 = vld [vmem:[#allocation79_spill] sm:$0xff] }
 0x69b   : > { %12583 = vmatmul.msk.f32.gmra.mxu2 %vm472_vm1, %v17072_v10  ;;  %12681 = vmatmul.msk.f32.gmra.mxu1 %vm472_vm1, %v7420_v50  ;;  %v17089_v10 = vld [vmem:[#allocation3 + $0x180] sm:$0xff] }
 0x69c   : > { %v17070_v12 = vadd.f32 %v7290_v62, %v7094_v23  ;;  %12614 = vmatmul.msk.f32.gmra.mxu3 %vm472_vm1, %v19962_v63  ;;  %19966 = vst [vmem:[#allocation63_spill] sm:$0xff] %v17089_v10  ;;  %v7421_v63 = vld [vmem:[#allocation3 + $0x153] sm:$0xff] }
 0x69f   : > { %v7293_v36 = vpop.f32.mrf.mxu0 }
 0x6a1   : > { %v6746_v8 = vpop.f32.mrf.mxu2  ;;  %v7015_v62 = vpop.f32.mrf.mxu3 }
 0x6a2   : > { %12648 = vmatmul.msk.f32.gmra.mxu0 %vm472_vm1, %v17079_v57  ;;  %v6820_v54 = vadd.f32 %v6746_v8, %v6542_v60  ;;  %v7095_v3 = vadd.f32 %v7015_v62, %v6817_v18  ;;  %v17085_v9 = vpop.f32.mrf.mxu1  ;;  %v19967_v57 = vld [vmem:[#allocation92_spill] sm:$0xff]  ;;  %v19970_v18 = vld [vmem:[#allocation93_spill] sm:$0xff] }
 0x6a3   : > { %19964 = vst [vmem:[#allocation66_spill] sm:$0xff] %v17085_v9  ;;  %12584 = vmatmul.msk.f32.gmra.mxu2 %vm472_vm1, %v17089_v10  ;;  %12682 = vmatmul.msk.f32.gmra.mxu1 %vm472_vm1, %v7421_v63 }
 0x6a4   : > { %v17087_v23 = vadd.f32 %v7293_v36, %v7095_v3  ;;  %12615 = vmatmul.msk.f32.gmra.mxu3 %vm472_vm1, %v19967_v57  ;;  %v6543_v36 = vadd.f32 %v19970_v18, %v19969_v59  ;;  %v7422_v57 = vld [vmem:[#allocation3 + $0x15b] sm:$0xff]  ;;  %v17113_v59 = vld [vmem:[#allocation3 + $0x16a] sm:$0xff] }
 0x6a5   : > { %19975 = vst [vmem:[#allocation91_spill] sm:$0xff] %v17113_v59 }
 0x6a6   : > { %19965 = vst [vmem:[#allocation69_spill] sm:$0xff] %v17087_v23  ;;  %v17106_v23 = vld [vmem:[#allocation3 + $0x188] sm:$0xff] }
 0x6a7   : > { %v7296_v50 = vpop.f32.mrf.mxu0  ;;  %19973 = vst [vmem:[#allocation74_spill] sm:$0xff] %v17106_v23 }
 0x6a9   : > { %v6749_v60 = vpop.f32.mrf.mxu2  ;;  %v7018_v8 = vpop.f32.mrf.mxu3 }
 0x6aa   : > { %12649 = vmatmul.msk.f32.gmra.mxu0 %vm472_vm1, %v17096_v19  ;;  %v6821_v62 = vadd.f32 %v6749_v60, %v6543_v36  ;;  %v7096_v3 = vadd.f32 %v7018_v8, %v6818_v55  ;;  %v17102_v9 = vpop.f32.mrf.mxu1  ;;  %v19974_v19 = vld [vmem:[#allocation8_spill] sm:$0xff]  ;;  %v19976_v55 = vld [vmem:[#allocation97_spill] sm:$0xff] }
 0x6ab   : > { %19971 = vst [vmem:[#allocation77_spill] sm:$0xff] %v17102_v9  ;;  %12585 = vmatmul.msk.f32.gmra.mxu2 %vm472_vm1, %v17106_v23  ;;  %12683 = vmatmul.msk.f32.gmra.mxu1 %vm472_vm1, %v7422_v57 }
 0x6ac   : > { %v17104_v10 = vadd.f32 %v7296_v50, %v7096_v3  ;;  %12616 = vmatmul.msk.f32.gmra.mxu3 %vm472_vm1, %v19974_v19  ;;  %v19977_v50 = vld [vmem:[#allocation23_spill] sm:$0xff]  ;;  %v7423_v19 = vld [vmem:[#allocation3 + $0x16b] sm:$0xff] }
 0x6ad   : > { %v6544_v18 = vadd.f32 %v19977_v50, %v19976_v55  ;;  %v17130_v55 = vld [vmem:[#allocation3 + $0x172] sm:$0xff] }
 0x6ae   : > { %19972 = vst [vmem:[#allocation80_spill] sm:$0xff] %v17104_v10  ;;  %v17123_v10 = vld [vmem:[#allocation3 + $0x198] sm:$0xff] }
 0x6af   : > { %v7299_v63 = vpop.f32.mrf.mxu0  ;;  %19978 = vst [vmem:[#allocation84_spill] sm:$0xff] %v17123_v10 }
 0x6b0   : > { %19980 = vst [vmem:[#allocation75_spill] sm:$0xff] %v17130_v55 }
 0x6b1   : > { %v6752_v36 = vpop.f32.mrf.mxu2  ;;  %v7021_v60 = vpop.f32.mrf.mxu3 }
 0x6b2   : > { %12650 = vmatmul.msk.f32.gmra.mxu0 %vm472_vm1, %v17113_v59  ;;  %v6822_v8 = vadd.f32 %v6752_v36, %v6544_v18  ;;  %v7097_v3 = vadd.f32 %v7021_v60, %v6819_v16  ;;  %v17119_v9 = vpop.f32.mrf.mxu1  ;;  %v19979_v59 = vld [vmem:[#allocation95_spill] sm:$0xff]  ;;  %v6545_v16 = vadd.f32 %v16647_v5, %v16649_v48  ;;  %v19984_v5 = vld [vmem:[#allocation33_spill] sm:$0xff] }
 0x6b3   : > { %12586 = vmatmul.msk.f32.gmra.mxu2 %vm472_vm1, %v17123_v10  ;;  %12684 = vmatmul.msk.f32.gmra.mxu1 %vm472_vm1, %v7423_v19  ;;  %v17140_v10 = vld [vmem:[#allocation3 + $0x1a0] sm:$0xff]  ;;  %v19985_v48 = vld [vmem:[#allocation17_spill] sm:$0xff] }
 0x6b4   : > { %v17121_v23 = vadd.f32 %v7299_v63, %v7097_v3  ;;  %12617 = vmatmul.msk.f32.gmra.mxu3 %vm472_vm1, %v19979_v59  ;;  %19982 = vst [vmem:[#allocation85_spill] sm:$0xff] %v17140_v10  ;;  %v7424_v59 = vld [vmem:[#allocation3 + $0x173] sm:$0xff] }
 0x6b7   : > { %v7302_v57 = vpop.f32.mrf.mxu0 }
 0x6b9   : > { %v6755_v63 = vpop.f32.mrf.mxu2  ;;  %v7024_v50 = vpop.f32.mrf.mxu3 }
 0x6ba   : > { %12651 = vmatmul.msk.f32.gmra.mxu0 %vm472_vm1, %v17130_v55  ;;  %v6823_v18 = vadd.f32 %v6755_v63, %v6545_v16  ;;  %v7098_v36 = vadd.f32 %v7024_v50, %v6820_v54  ;;  %v17136_v60 = vpop.f32.mrf.mxu1  ;;  %v19983_v55 = vld [vmem:[#allocation11_spill] sm:$0xff]  ;;  %v6546_v54 = vadd.f32 %v19985_v48, %v16668_v24  ;;  %v19988_v24 = vld [vmem:[#allocation13_spill] sm:$0xff]  ;;  %v19989_v48 = vld [vmem:[#allocation48_spill] sm:$0xff] }
 0x6bb   : > { %19981 = vst [vmem:[#allocation9_spill] sm:$0xff] %v17136_v60  ;;  %12587 = vmatmul.msk.f32.gmra.mxu2 %vm472_vm1, %v17140_v10  ;;  %12685 = vmatmul.msk.f32.gmra.mxu1 %vm472_vm1, %v7424_v59  ;;  %v12826_v10 = vld [vmem:[%s19194_s9 + $0x48] sm:$0xf] }
 0x6bc   : > { %v17138_v3 = vadd.f32 %v7302_v57, %v7098_v36  ;;  %12618 = vmatmul.msk.f32.gmra.mxu3 %vm472_vm1, %v19983_v55  ;;  %v7675_v55 = vld [vmem:[#allocation3 + $0x34] sm:$0xff]  ;;  %12827 = vmatpush.msk.msra.mxu2 %vm634_vm0, %v12826_v10  ;;  %v6547_v10 = vadd.f32 %v16680_v52, %v16682_v25  ;;  %v12894_v52 = vld [vmem:[%s19194_s9 + $0x50] sm:$0xf] }
 0x6bd   : > { %v17183_v25 = vld [vmem:[#allocation3 + $0x19a] sm:$0xff]  ;;  %12895 = vmatpush.msk.msra.mxu0 %vm634_vm0, %v12894_v52 }
 0x6be   : > { %19993 = vst [vmem:[#allocation93_spill] sm:$0xff] %v17183_v25 }
 0x6bf   : > { %v7305_v19 = vpop.f32.mrf.mxu0 }
 0x6c1   : > { %v6758_v57 = vpop.f32.mrf.mxu2  ;;  %v7027_v16 = vpop.f32.mrf.mxu3 }
 0x6c2   : > { %12652 = vmatmul.msk.f32.gmra.mxu0 %vm472_vm1, %v19984_v5  ;;  %v6824_v63 = vadd.f32 %v6758_v57, %v6546_v54  ;;  %v7099_v50 = vadd.f32 %v7027_v16, %v6821_v62  ;;  %v17151_v36 = vpop.f32.mrf.mxu1  ;;  %v19987_v5 = vld [vmem:[#allocation38_spill] sm:$0xff]  ;;  %v12860_v62 = vld [vmem:[%s19194_s9 + $0x4c] sm:$0xf] }
 0x6c3   : > { %19986 = vst [vmem:[#allocation79_spill] sm:$0xff] %v17151_v36  ;;  %12692 = vmatmul.msk.f32.vlgmr.msrb.gmra.mxu2 %vm472_vm1, %v7675_v55  ;;  %12686 = vmatmul.msk.f32.gmra.mxu1 %vm472_vm1, %v19987_v5  ;;  %v17176_v36 = vld [vmem:[#allocation3 + $0x199] sm:$0xff] }
 0x6c4   : > { %v17156_v59 = vadd.f32 %v7305_v19, %v7099_v50  ;;  %12619 = vmatmul.msk.f32.gmra.mxu3 %vm472_vm1, %v19988_v24  ;;  %v7676_v24 = vld [vmem:[#allocation3 + $0x3c] sm:$0xff]  ;;  %19991 = vst [vmem:[#allocation20_spill] sm:$0xff] %v17176_v36 }
 0x6c5   : > { %12861 = vmatpush.msk.msra.mxu3 %vm634_vm0, %v12860_v62 }
 0x6c7   : > { %v7308_v60 = vpop.f32.mrf.mxu0 }
 0x6c9   : > { %v6761_v19 = vpop.f32.mrf.mxu2  ;;  %v7030_v54 = vpop.f32.mrf.mxu3 }
 0x6ca   : > { %12653 = vmatmul.msk.f32.gmra.mxu0 %vm472_vm1, %v19989_v48  ;;  %v6825_v57 = vadd.f32 %v6761_v19, %v6547_v10  ;;  %v7100_v16 = vadd.f32 %v7030_v54, %v6822_v8  ;;  %v17172_v50 = vpop.f32.mrf.mxu1  ;;  %v19992_v48 = vld [vmem:[#allocation53_spill] sm:$0xff]  ;;  %v12928_v8 = vld [vmem:[%s19194_s9 + $0x54] sm:$0xf] }
 0x6cb   : > { %19990 = vst [vmem:[#allocation92_spill] sm:$0xff] %v17172_v50  ;;  %12693 = vmatmul.msk.f32.gmra.mxu2 %vm472_vm1, %v7676_v24  ;;  %12687 = vmatmul.msk.f32.gmra.mxu1 %vm472_vm1, %v19992_v48  ;;  %v7427_v50 = vld [vmem:[#allocation3 + $0x19b] sm:$0xff] }
 0x6cc   : > { %v17174_v55 = vadd.f32 %v7308_v60, %v7100_v16  ;;  %12620 = vmatmul.msk.f32.gmra.mxu3 %vm472_vm1, %v17176_v36  ;;  %v6548_v60 = vadd.f32 %v16694_v14, %v16696_v45  ;;  %12929 = vmatpush.msk.msra.mxu1 %vm634_vm0, %v12928_v8  ;;  %v17201_v36 = vld [vmem:[#allocation3 + $0x4c] sm:$0xff]  ;;  %v17210_v14 = vld [vmem:[#allocation3 + $0x1a2] sm:$0xff]  ;;  %v6549_v45 = vadd.f32 %v16711_v41, %v16713_v15 }
 0x6cd   : > { %19994 = vst [vmem:[#allocation8_spill] sm:$0xff] %v17201_v36  ;;  %v8232_v41 = vld [vmem:[#allocation3 + $0x49] sm:$0xff] }
 0x6ce   : > { %19996 = vst [vmem:[#allocation23_spill] sm:$0xff] %v17210_v14  ;;  %v20000_v15 = vld [vmem:[#allocation90_spill] sm:$0xff] }
 0x6cf   : > { %v7311_v5 = vpop.f32.mrf.mxu0 }
 0x6d1   : > { %v6764_v62 = vpop.f32.mrf.mxu2  ;;  %v7033_v10 = vpop.f32.mrf.mxu3 }
 0x6d2   : > { %12654 = vmatmul.msk.f32.gmra.mxu0 %vm472_vm1, %v17183_v25  ;;  %v6826_v19 = vadd.f32 %v6764_v62, %v6548_v60  ;;  %v7101_v54 = vadd.f32 %v7033_v10, %v6823_v18  ;;  %v17197_v16 = vpop.f32.mrf.mxu1  ;;  %v17203_v25 = vld [vmem:[#allocation3 + $0x1a1] sm:$0xff]  ;;  %v17220_v10 = vld [vmem:[#allocation3 + $0x54] sm:$0xff] }
 0x6d3   : > { %19995 = vst [vmem:[#allocation97_spill] sm:$0xff] %v17203_v25  ;;  %12694 = vmatmul.msk.f32.gmra.mxu2 %vm472_vm1, %v17201_v36  ;;  %12688 = vmatmul.msk.f32.gmra.mxu1 %vm472_vm1, %v7427_v50  ;;  %v19999_v36 = vld [vmem:[#allocation10_spill] sm:$0xff] }
 0x6d4   : > { %v17199_v24 = vadd.f32 %v7311_v5, %v7101_v54  ;;  %12621 = vmatmul.msk.f32.gmra.mxu3 %vm472_vm1, %v17203_v25  ;;  %19998 = vst [vmem:[#allocation11_spill] sm:$0xff] %v17220_v10  ;;  %v7428_v54 = vld [vmem:[#allocation3 + $0x1a3] sm:$0xff] }
 0x6d7   : > { %v7314_v48 = vpop.f32.mrf.mxu0 }
 0x6d9   : > { %v6767_v18 = vpop.f32.mrf.mxu2  ;;  %v7036_v5 = vpop.f32.mrf.mxu3 }
 0x6da   : > { %12655 = vmatmul.msk.f32.gmra.mxu0 %vm472_vm1, %v17210_v14  ;;  %v6827_v52 = vadd.f32 %v6767_v18, %v6549_v45  ;;  %v7102_v8 = vadd.f32 %v7036_v5, %v6824_v63  ;;  %v17216_v60 = vpop.f32.mrf.mxu1  ;;  %v20001_v63 = vld [vmem:[#allocation100_spill] sm:$0xff] }
 0x6db   : > { %19997 = vst [vmem:[#allocation95_spill] sm:$0xff] %v17216_v60  ;;  %12695 = vmatmul.msk.f32.gmra.mxu2 %vm472_vm1, %v17220_v10  ;;  %12689 = vmatmul.msk.f32.gmra.mxu1 %vm472_vm1, %v7428_v54  ;;  %v6550_v45 = vadd.f32 %v20001_v63, %v20000_v15  ;;  %v17234_v60 = vld [vmem:[#allocation3 + $0x64] sm:$0xff] }
 0x6dc   : > { %v17218_v62 = vadd.f32 %v7314_v48, %v7102_v8  ;;  %12726 = vmatmul.msk.f32.vlgmr.msrb.gmra.mxu3 %vm472_vm1, %v19999_v36  ;;  %20003 = vst [vmem:[#allocation17_spill] sm:$0xff] %v17234_v60  ;;  %v20004_v36 = vld [vmem:[#allocation82_spill] sm:$0xff]  ;;  %v20005_v54 = vld [vmem:[#allocation65_spill] sm:$0xff] }
 0x6df   : > { %v7317_v50 = vpop.f32.mrf.mxu0 }
 0x6e1   : > { %v6770_v48 = vpop.f32.mrf.mxu2  ;;  %v7039_v18 = vpop.f32.mrf.mxu3 }
 0x6e2   : > { %12760 = vmatmul.msk.f32.vlgmr.msrb.gmra.mxu0 %vm472_vm1, %v8232_v41  ;;  %v6828_v5 = vadd.f32 %v6770_v48, %v6550_v45  ;;  %v7103_v8 = vadd.f32 %v7039_v18, %v6825_v57  ;;  %v17230_v14 = vpop.f32.mrf.mxu1  ;;  %v8233_v41 = vld [vmem:[#allocation3 + $0x51] sm:$0xff]  ;;  %v20006_v57 = vld [vmem:[#allocation104_spill] sm:$0xff] }
 0x6e3   : > { %20002 = vst [vmem:[#allocation33_spill] sm:$0xff] %v17230_v14  ;;  %12696 = vmatmul.msk.f32.gmra.mxu2 %vm472_vm1, %v17234_v60  ;;  %12794 = vmatmul.msk.f32.vlgmr.msrb.gmra.mxu1 %vm472_vm1, %v20004_v36  ;;  %v6551_v15 = vadd.f32 %v20006_v57, %v16747_v22  ;;  %v17249_v14 = vld [vmem:[#allocation3 + $0x6c] sm:$0xff]  ;;  %v20008_v36 = vld [vmem:[#allocation88_spill] sm:$0xff] }
 0x6e4   : > { %v17232_v25 = vadd.f32 %v7317_v50, %v7103_v8  ;;  %12727 = vmatmul.msk.f32.gmra.mxu3 %vm472_vm1, %v20005_v54  ;;  %20007 = vst [vmem:[#allocation38_spill] sm:$0xff] %v17249_v14  ;;  %v20009_v54 = vld [vmem:[#allocation71_spill] sm:$0xff]  ;;  %v17257_v22 = vld [vmem:[#allocation3 + $0x61] sm:$0xff] }
 0x6e7   : > { %v7320_v10 = vpop.f32.mrf.mxu0 }
 0x6e9   : > { %v6773_v50 = vpop.f32.mrf.mxu2  ;;  %v7042_v63 = vpop.f32.mrf.mxu3 }
 0x6ea   : > { %12761 = vmatmul.msk.f32.gmra.mxu0 %vm472_vm1, %v8233_v41  ;;  %v6829_v45 = vadd.f32 %v6773_v50, %v6551_v15  ;;  %v7104_v48 = vadd.f32 %v7042_v63, %v6826_v19  ;;  %v17245_v18 = vpop.f32.mrf.mxu1  ;;  %v6552_v19 = vadd.f32 %v16762_v34, %v16764_v27  ;;  %v17275_v27 = vld [vmem:[#allocation3 + $0x69] sm:$0xff]  ;;  %v6553_v34 = vadd.f32 %v16779_v43, %v16781_v37  ;;  %v17293_v43 = vld [vmem:[#allocation3 + $0x79] sm:$0xff] }
 0x6eb   : > { %12697 = vmatmul.msk.f32.gmra.mxu2 %vm472_vm1, %v17249_v14  ;;  %12795 = vmatmul.msk.f32.gmra.mxu1 %vm472_vm1, %v20008_v36  ;;  %v17267_v36 = vld [vmem:[#allocation3 + $0x7c] sm:$0xff]  ;;  %20013 = vst [vmem:[#allocation48_spill] sm:$0xff] %v17275_v27  ;;  %v6554_v37 = vadd.f32 %v16796_v11, %v16798_v61  ;;  %v6555_v61 = vadd.f32 %v16813_v35, %v16815_v1  ;;  %v17329_v35 = vld [vmem:[#allocation3 + $0x91] sm:$0xff] }
 0x6ec   : > { %v17247_v8 = vadd.f32 %v7320_v10, %v7104_v48  ;;  %12728 = vmatmul.msk.f32.gmra.mxu3 %vm472_vm1, %v20009_v54  ;;  %20010 = vst [vmem:[#allocation13_spill] sm:$0xff] %v17267_v36  ;;  %v20011_v54 = vld [vmem:[#allocation98_spill] sm:$0xff]  ;;  %v20012_v14 = vld [vmem:[#allocation28_spill] sm:$0xff]  ;;  %v6556_v1 = vadd.f32 %v16830_v26, %v16832_v2  ;;  %v6557_v2 = vadd.f32 %v16847_v46, %v16849_v39 }
 0x6ed   : > { %20017 = vst [vmem:[#allocation10_spill] sm:$0xff] %v17293_v43  ;;  %v17311_v11 = vld [vmem:[#allocation3 + $0x81] sm:$0xff]  ;;  %v17347_v26 = vld [vmem:[#allocation3 + $0x99] sm:$0xff]  ;;  %v17365_v46 = vld [vmem:[#allocation3 + $0xa9] sm:$0xff]  ;;  %v6558_v39 = vadd.f32 %v16864_v49, %v16866_v40  ;;  %v6559_v40 = vadd.f32 %v16881_v53, %v16883_v32  ;;  %v6560_v32 = vadd.f32 %v16898_v33, %v16900_v56  ;;  %v6561_v56 = vadd.f32 %v16915_v42, %v16917_v13 }
 0x6ee   : > { %20021 = vst [vmem:[#allocation100_spill] sm:$0xff] %v17311_v11  ;;  %v17383_v49 = vld [vmem:[#allocation3 + $0xb1] sm:$0xff]  ;;  %v17401_v53 = vld [vmem:[#allocation3 + $0xc1] sm:$0xff]  ;;  %v17419_v33 = vld [vmem:[#allocation3 + $0xc9] sm:$0xff]  ;;  %v6562_v13 = vadd.f32 %v16932_v20, %v16934_v17  ;;  %v7643_v17 = vadd.f32 %v16949_v38, %v16951_v4  ;;  %v7644_v4 = vadd.f32 %v16966_v31, %v16968_v30  ;;  %v7645_v30 = vadd.f32 %v16983_v0, %v16985_v6 }
 0x6ef   : > { %v7323_v60 = vpop.f32.mrf.mxu0  ;;  %20025 = vst [vmem:[#allocation65_spill] sm:$0xff] %v17329_v35  ;;  %v17437_v42 = vld [vmem:[#allocation3 + $0xd9] sm:$0xff]  ;;  %v17455_v20 = vld [vmem:[#allocation3 + $0xe1] sm:$0xff]  ;;  %v17473_v38 = vld [vmem:[#allocation3 + $0xf1] sm:$0xff] }
 0x6f0   : > { %20029 = vst [vmem:[#allocation88_spill] sm:$0xff] %v17347_v26  ;;  %v17491_v31 = vld [vmem:[#allocation3 + $0xf9] sm:$0xff]  ;;  %v17509_v0 = vld [vmem:[#allocation3 + $0x109] sm:$0xff] }
 0x6f1   : > { %v6776_v10 = vpop.f32.mrf.mxu2  ;;  %v7045_v41 = vpop.f32.mrf.mxu3  ;;  %20033 = vst [vmem:[#allocation98_spill] sm:$0xff] %v17365_v46  ;;  %v20061_v6 = vld [vmem:[#allocation118_spill] sm:$0xff] }
 0x6f2   : > { %12762 = vmatmul.msk.f32.gmra.mxu0 %vm472_vm1, %v17257_v22  ;;  %v6830_v57 = vadd.f32 %v6776_v10, %v6552_v19  ;;  %v7105_v15 = vadd.f32 %v7045_v41, %v6827_v52  ;;  %v17263_v50 = vpop.f32.mrf.mxu1 }
 0x6f3   : > { %12698 = vmatmul.msk.f32.gmra.mxu2 %vm472_vm1, %v17267_v36  ;;  %12796 = vmatmul.msk.f32.gmra.mxu1 %vm472_vm1, %v20011_v54  ;;  %v17285_v36 = vld [vmem:[#allocation3 + $0x84] sm:$0xff] }
 0x6f4   : > { %v17265_v63 = vadd.f32 %v7323_v60, %v7105_v15  ;;  %12729 = vmatmul.msk.f32.gmra.mxu3 %vm472_vm1, %v20012_v14  ;;  %20014 = vst [vmem:[#allocation53_spill] sm:$0xff] %v17285_v36  ;;  %v20015_v14 = vld [vmem:[#allocation76_spill] sm:$0xff] }
 0x6f5   : > { %20037 = vst [vmem:[#allocation76_spill] sm:$0xff] %v17383_v49 }
 0x6f7   : > { %v7326_v48 = vpop.f32.mrf.mxu0 }
 0x6f9   : > { %v6779_v52 = vpop.f32.mrf.mxu2  ;;  %v7048_v60 = vpop.f32.mrf.mxu3 }
 0x6fa   : > { %12763 = vmatmul.msk.f32.gmra.mxu0 %vm472_vm1, %v17275_v27  ;;  %v6831_v19 = vadd.f32 %v6779_v52, %v6553_v34  ;;  %v7106_v10 = vadd.f32 %v7048_v60, %v6828_v5  ;;  %v17281_v41 = vpop.f32.mrf.mxu1  ;;  %v20016_v27 = vld [vmem:[#allocation43_spill] sm:$0xff] }
 0x6fb   : > { %12699 = vmatmul.msk.f32.gmra.mxu2 %vm472_vm1, %v17285_v36  ;;  %12797 = vmatmul.msk.f32.gmra.mxu1 %vm472_vm1, %v20015_v14  ;;  %v17303_v36 = vld [vmem:[#allocation3 + $0x94] sm:$0xff] }
 0x6fc   : > { %v17283_v15 = vadd.f32 %v7326_v48, %v7106_v10  ;;  %12730 = vmatmul.msk.f32.gmra.mxu3 %vm472_vm1, %v20016_v27  ;;  %20018 = vst [vmem:[#allocation90_spill] sm:$0xff] %v17303_v36  ;;  %v20019_v27 = vld [vmem:[#allocation106_spill] sm:$0xff] }
 0x6fd   : > { %20041 = vst [vmem:[#allocation106_spill] sm:$0xff] %v17401_v53 }
 0x6ff   : > { %v7329_v54 = vpop.f32.mrf.mxu0 }
 0x701   : > { %v6782_v5 = vpop.f32.mrf.mxu2  ;;  %v7051_v48 = vpop.f32.mrf.mxu3 }
 0x702   : > { %12764 = vmatmul.msk.f32.gmra.mxu0 %vm472_vm1, %v17293_v43  ;;  %v6832_v34 = vadd.f32 %v6782_v5, %v6554_v37  ;;  %v7107_v52 = vadd.f32 %v7051_v48, %v6829_v45  ;;  %v17299_v60 = vpop.f32.mrf.mxu1  ;;  %v20020_v43 = vld [vmem:[#allocation59_spill] sm:$0xff] }
 0x703   : > { %12700 = vmatmul.msk.f32.gmra.mxu2 %vm472_vm1, %v17303_v36  ;;  %12798 = vmatmul.msk.f32.gmra.mxu1 %vm472_vm1, %v20019_v27  ;;  %v17321_v36 = vld [vmem:[#allocation3 + $0x9c] sm:$0xff] }
 0x704   : > { %v17301_v10 = vadd.f32 %v7329_v54, %v7107_v52  ;;  %12731 = vmatmul.msk.f32.gmra.mxu3 %vm472_vm1, %v20020_v43  ;;  %20022 = vst [vmem:[#allocation82_spill] sm:$0xff] %v17321_v36  ;;  %v20023_v43 = vld [vmem:[#allocation103_spill] sm:$0xff] }
 0x707   : > { %v7332_v14 = vpop.f32.mrf.mxu0 }
 0x709   : > { %v6785_v45 = vpop.f32.mrf.mxu2  ;;  %v7054_v54 = vpop.f32.mrf.mxu3 }
 0x70a   : > { %12765 = vmatmul.msk.f32.gmra.mxu0 %vm472_vm1, %v17311_v11  ;;  %v6833_v37 = vadd.f32 %v6785_v45, %v6555_v61  ;;  %v7108_v5 = vadd.f32 %v7054_v54, %v6830_v57  ;;  %v17317_v48 = vpop.f32.mrf.mxu1  ;;  %v20024_v11 = vld [vmem:[#allocation99_spill] sm:$0xff] }
 0x70b   : > { %12701 = vmatmul.msk.f32.gmra.mxu2 %vm472_vm1, %v17321_v36  ;;  %12799 = vmatmul.msk.f32.gmra.mxu1 %vm472_vm1, %v20023_v43  ;;  %v17339_v36 = vld [vmem:[#allocation3 + $0xac] sm:$0xff] }
 0x70c   : > { %v17319_v52 = vadd.f32 %v7332_v14, %v7108_v5  ;;  %12732 = vmatmul.msk.f32.gmra.mxu3 %vm472_vm1, %v20024_v11  ;;  %20026 = vst [vmem:[#allocation104_spill] sm:$0xff] %v17339_v36  ;;  %v20027_v11 = vld [vmem:[#allocation30_spill] sm:$0xff] }
 0x70d   : > { %20049 = vst [vmem:[#allocation30_spill] sm:$0xff] %v17455_v20 }
 0x70f   : > { %v7335_v27 = vpop.f32.mrf.mxu0 }
 0x711   : > { %v6788_v57 = vpop.f32.mrf.mxu2  ;;  %v7057_v14 = vpop.f32.mrf.mxu3 }
 0x712   : > { %12766 = vmatmul.msk.f32.gmra.mxu0 %vm472_vm1, %v17329_v35  ;;  %v6834_v61 = vadd.f32 %v6788_v57, %v6556_v1  ;;  %v7109_v45 = vadd.f32 %v7057_v14, %v6831_v19  ;;  %v17335_v54 = vpop.f32.mrf.mxu1  ;;  %v20028_v35 = vld [vmem:[#allocation102_spill] sm:$0xff] }
 0x713   : > { %12702 = vmatmul.msk.f32.gmra.mxu2 %vm472_vm1, %v17339_v36  ;;  %12800 = vmatmul.msk.f32.gmra.mxu1 %vm472_vm1, %v20027_v11  ;;  %v17357_v36 = vld [vmem:[#allocation3 + $0xb4] sm:$0xff] }
 0x714   : > { %v17337_v5 = vadd.f32 %v7335_v27, %v7109_v45  ;;  %12733 = vmatmul.msk.f32.gmra.mxu3 %vm472_vm1, %v20028_v35  ;;  %20030 = vst [vmem:[#allocation71_spill] sm:$0xff] %v17357_v36  ;;  %v20031_v35 = vld [vmem:[#allocation70_spill] sm:$0xff] }
 0x715   : > { %20053 = vst [vmem:[#allocation70_spill] sm:$0xff] %v17473_v38 }
 0x717   : > { %v7338_v43 = vpop.f32.mrf.mxu0 }
 0x719   : > { %v6791_v19 = vpop.f32.mrf.mxu2  ;;  %v7060_v27 = vpop.f32.mrf.mxu3 }
 0x71a   : > { %12767 = vmatmul.msk.f32.gmra.mxu0 %vm472_vm1, %v17347_v26  ;;  %v6835_v1 = vadd.f32 %v6791_v19, %v6557_v2  ;;  %v7110_v57 = vadd.f32 %v7060_v27, %v6832_v34  ;;  %v17353_v14 = vpop.f32.mrf.mxu1  ;;  %v20032_v26 = vld [vmem:[#allocation27_spill] sm:$0xff] }
 0x71b   : > { %12703 = vmatmul.msk.f32.gmra.mxu2 %vm472_vm1, %v17357_v36  ;;  %12801 = vmatmul.msk.f32.gmra.mxu1 %vm472_vm1, %v20031_v35  ;;  %v17375_v36 = vld [vmem:[#allocation3 + $0xc4] sm:$0xff] }
 0x71c   : > { %v17355_v45 = vadd.f32 %v7338_v43, %v7110_v57  ;;  %12734 = vmatmul.msk.f32.gmra.mxu3 %vm472_vm1, %v20032_v26  ;;  %20034 = vst [vmem:[#allocation28_spill] sm:$0xff] %v17375_v36  ;;  %v20035_v26 = vld [vmem:[#allocation107_spill] sm:$0xff] }
 0x71d   : > { %20056 = vst [vmem:[#allocation107_spill] sm:$0xff] %v17491_v31 }
 0x71f   : > { %v7341_v11 = vpop.f32.mrf.mxu0 }
 0x721   : > { %v6794_v34 = vpop.f32.mrf.mxu2  ;;  %v7063_v43 = vpop.f32.mrf.mxu3 }
 0x722   : > { %12768 = vmatmul.msk.f32.gmra.mxu0 %vm472_vm1, %v17365_v46  ;;  %v6836_v2 = vadd.f32 %v6794_v34, %v6558_v39  ;;  %v7111_v19 = vadd.f32 %v7063_v43, %v6833_v37  ;;  %v17371_v27 = vpop.f32.mrf.mxu1  ;;  %v20036_v46 = vld [vmem:[#allocation86_spill] sm:$0xff] }
 0x723   : > { %12704 = vmatmul.msk.f32.gmra.mxu2 %vm472_vm1, %v17375_v36  ;;  %12802 = vmatmul.msk.f32.gmra.mxu1 %vm472_vm1, %v20035_v26  ;;  %v17393_v36 = vld [vmem:[#allocation3 + $0xcc] sm:$0xff] }
 0x724   : > { %v17373_v57 = vadd.f32 %v7341_v11, %v7111_v19  ;;  %12735 = vmatmul.msk.f32.gmra.mxu3 %vm472_vm1, %v20036_v46  ;;  %20038 = vst [vmem:[#allocation43_spill] sm:$0xff] %v17393_v36  ;;  %v20039_v46 = vld [vmem:[#allocation101_spill] sm:$0xff] }
 0x725   : > { %20060 = vst [vmem:[#allocation101_spill] sm:$0xff] %v17509_v0 }
 0x727   : > { %v7344_v35 = vpop.f32.mrf.mxu0 }
 0x729   : > { %v6797_v37 = vpop.f32.mrf.mxu2  ;;  %v7066_v11 = vpop.f32.mrf.mxu3 }
 0x72a   : > { %12769 = vmatmul.msk.f32.gmra.mxu0 %vm472_vm1, %v17383_v49  ;;  %v6837_v39 = vadd.f32 %v6797_v37, %v6559_v40  ;;  %v7112_v34 = vadd.f32 %v7066_v11, %v6834_v61  ;;  %v17389_v43 = vpop.f32.mrf.mxu1  ;;  %v20040_v49 = vld [vmem:[#allocation35_spill] sm:$0xff] }
 0x72b   : > { %12705 = vmatmul.msk.f32.gmra.mxu2 %vm472_vm1, %v17393_v36  ;;  %12803 = vmatmul.msk.f32.gmra.mxu1 %vm472_vm1, %v20039_v46  ;;  %v17411_v36 = vld [vmem:[#allocation3 + $0xdc] sm:$0xff] }
 0x72c   : > { %v17391_v19 = vadd.f32 %v7344_v35, %v7112_v34  ;;  %12736 = vmatmul.msk.f32.gmra.mxu3 %vm472_vm1, %v20040_v49  ;;  %20042 = vst [vmem:[#allocation59_spill] sm:$0xff] %v17411_v36  ;;  %v20043_v49 = vld [vmem:[#allocation40_spill] sm:$0xff] }
 0x72f   : > { %v7347_v26 = vpop.f32.mrf.mxu0 }
 0x731   : > { %v6800_v61 = vpop.f32.mrf.mxu2  ;;  %v7069_v35 = vpop.f32.mrf.mxu3 }
 0x732   : > { %12770 = vmatmul.msk.f32.gmra.mxu0 %vm472_vm1, %v17401_v53  ;;  %v6838_v40 = vadd.f32 %v6800_v61, %v6560_v32  ;;  %v7113_v37 = vadd.f32 %v7069_v35, %v6835_v1  ;;  %v17407_v11 = vpop.f32.mrf.mxu1  ;;  %v20044_v53 = vld [vmem:[#allocation94_spill] sm:$0xff] }
 0x733   : > { %12706 = vmatmul.msk.f32.gmra.mxu2 %vm472_vm1, %v17411_v36  ;;  %12804 = vmatmul.msk.f32.gmra.mxu1 %vm472_vm1, %v20043_v49  ;;  %v17429_v36 = vld [vmem:[#allocation3 + $0xe4] sm:$0xff] }
 0x734   : > { %v17409_v34 = vadd.f32 %v7347_v26, %v7113_v37  ;;  %12737 = vmatmul.msk.f32.gmra.mxu3 %vm472_vm1, %v20044_v53  ;;  %20045 = vst [vmem:[#allocation103_spill] sm:$0xff] %v17429_v36  ;;  %v20046_v53 = vld [vmem:[#allocation108_spill] sm:$0xff] }
 0x737   : > { %v7350_v46 = vpop.f32.mrf.mxu0 }
 0x739   : > { %v6803_v1 = vpop.f32.mrf.mxu2  ;;  %v7072_v26 = vpop.f32.mrf.mxu3 }
 0x73a   : > { %12771 = vmatmul.msk.f32.gmra.mxu0 %vm472_vm1, %v17419_v33  ;;  %v6839_v32 = vadd.f32 %v6803_v1, %v6561_v56  ;;  %v7114_v61 = vadd.f32 %v7072_v26, %v6836_v2  ;;  %v17425_v35 = vpop.f32.mrf.mxu1 }
 0x73b   : > { %12707 = vmatmul.msk.f32.gmra.mxu2 %vm472_vm1, %v17429_v36  ;;  %12805 = vmatmul.msk.f32.gmra.mxu1 %vm472_vm1, %v16892_v47  ;;  %v17447_v36 = vld [vmem:[#allocation3 + $0xf4] sm:$0xff] }
 0x73c   : > { %v17427_v37 = vadd.f32 %v7350_v46, %v7114_v61  ;;  %12738 = vmatmul.msk.f32.gmra.mxu3 %vm472_vm1, %v20046_v53  ;;  %20047 = vst [vmem:[#allocation99_spill] sm:$0xff] %v17447_v36  ;;  %v20048_v53 = vld [vmem:[#allocation109_spill] sm:$0xff] }
 0x73f   : > { %v7353_v49 = vpop.f32.mrf.mxu0 }
 0x741   : > { %v6806_v2 = vpop.f32.mrf.mxu2  ;;  %v7075_v46 = vpop.f32.mrf.mxu3 }
 0x742   : > { %12772 = vmatmul.msk.f32.gmra.mxu0 %vm472_vm1, %v17437_v42  ;;  %v6840_v56 = vadd.f32 %v6806_v2, %v6562_v13  ;;  %v7115_v1 = vadd.f32 %v7075_v46, %v6837_v39  ;;  %v17443_v26 = vpop.f32.mrf.mxu1 }
 0x743   : > { %12708 = vmatmul.msk.f32.gmra.mxu2 %vm472_vm1, %v17447_v36  ;;  %12806 = vmatmul.msk.f32.gmra.mxu1 %vm472_vm1, %v16909_v51  ;;  %v17465_v36 = vld [vmem:[#allocation3 + $0xfc] sm:$0xff] }
 0x744   : > { %v17445_v61 = vadd.f32 %v7353_v49, %v7115_v1  ;;  %12739 = vmatmul.msk.f32.gmra.mxu3 %vm472_vm1, %v20048_v53  ;;  %20050 = vst [vmem:[#allocation102_spill] sm:$0xff] %v17465_v36  ;;  %v20051_v53 = vld [vmem:[#allocation81_spill] sm:$0xff] }
 0x747   : > { %v7356_v47 = vpop.f32.mrf.mxu0 }
 0x749   : > { %v7825_v39 = vpop.f32.mrf.mxu2  ;;  %v7078_v49 = vpop.f32.mrf.mxu3 }
 0x74a   : > { %12773 = vmatmul.msk.f32.gmra.mxu0 %vm472_vm1, %v17455_v20  ;;  %v7921_v13 = vadd.f32 %v7825_v39, %v7643_v17  ;;  %v7116_v2 = vadd.f32 %v7078_v49, %v6838_v40  ;;  %v17461_v46 = vpop.f32.mrf.mxu1  ;;  %v20052_v20 = vld [vmem:[#allocation110_spill] sm:$0xff] }
 0x74b   : > { %12709 = vmatmul.msk.f32.gmra.mxu2 %vm472_vm1, %v17465_v36  ;;  %12807 = vmatmul.msk.f32.gmra.mxu1 %vm472_vm1, %v20051_v53  ;;  %v17483_v36 = vld [vmem:[#allocation3 + $0x10c] sm:$0xff] }
 0x74c   : > { %v17463_v1 = vadd.f32 %v7356_v47, %v7116_v2  ;;  %12740 = vmatmul.msk.f32.gmra.mxu3 %vm472_vm1, %v20052_v20  ;;  %20054 = vst [vmem:[#allocation27_spill] sm:$0xff] %v17483_v36  ;;  %v20055_v20 = vld [vmem:[#allocation105_spill] sm:$0xff] }
 0x74f   : > { %v7359_v51 = vpop.f32.mrf.mxu0 }
 0x751   : > { %v7828_v40 = vpop.f32.mrf.mxu2  ;;  %v7081_v47 = vpop.f32.mrf.mxu3 }
 0x752   : > { %12774 = vmatmul.msk.f32.gmra.mxu0 %vm472_vm1, %v17473_v38  ;;  %v7922_v17 = vadd.f32 %v7828_v40, %v7644_v4  ;;  %v7117_v39 = vadd.f32 %v7081_v47, %v6839_v32  ;;  %v17479_v49 = vpop.f32.mrf.mxu1  ;;  %v17519_v38 = vld [vmem:[#allocation3 + $0x124] sm:$0xff] }
 0x753   : > { %12710 = vmatmul.msk.f32.gmra.mxu2 %vm472_vm1, %v17483_v36  ;;  %12808 = vmatmul.msk.f32.gmra.mxu1 %vm472_vm1, %v16943_v29  ;;  %v17501_v36 = vld [vmem:[#allocation3 + $0x114] sm:$0xff]  ;;  %20064 = vst [vmem:[#allocation94_spill] sm:$0xff] %v17519_v38 }
 0x754   : > { %v17481_v2 = vadd.f32 %v7359_v51, %v7117_v39  ;;  %12741 = vmatmul.msk.f32.gmra.mxu3 %vm472_vm1, %v20055_v20  ;;  %20057 = vst [vmem:[#allocation86_spill] sm:$0xff] %v17501_v36  ;;  %v20058_v20 = vld [vmem:[#allocation41_spill] sm:$0xff] }
 0x757   : > { %v7362_v53 = vpop.f32.mrf.mxu0 }
 0x759   : > { %v7831_v32 = vpop.f32.mrf.mxu2  ;;  %v7084_v51 = vpop.f32.mrf.mxu3 }
 0x75a   : > { %12775 = vmatmul.msk.f32.gmra.mxu0 %vm472_vm1, %v17491_v31  ;;  %v7923_v4 = vadd.f32 %v7831_v32, %v7645_v30  ;;  %v7118_v40 = vadd.f32 %v7084_v51, %v6840_v56  ;;  %v17497_v47 = vpop.f32.mrf.mxu1  ;;  %v20059_v31 = vld [vmem:[#allocation111_spill] sm:$0xff]  ;;  %v7646_v56 = vadd.f32 %v20061_v6, %v17002_v7 }
 0x75b   : > { %12711 = vmatmul.msk.f32.gmra.mxu2 %vm472_vm1, %v17501_v36  ;;  %12809 = vmatmul.msk.f32.gmra.mxu1 %vm472_vm1, %v20058_v20  ;;  %v17527_v7 = vld [vmem:[#allocation3 + $0x111] sm:$0xff] }
 0x75c   : > { %v17499_v39 = vadd.f32 %v7362_v53, %v7118_v40  ;;  %12742 = vmatmul.msk.f32.gmra.mxu3 %vm472_vm1, %v20059_v31  ;;  %v20065_v31 = vld [vmem:[#allocation49_spill] sm:$0xff]  ;;  %20067 = vst [vmem:[#allocation108_spill] sm:$0xff] %v17527_v7 }
 0x75f   : > { %v8382_v29 = vpop.f32.mrf.mxu0 }
 0x761   : > { %v7834_v53 = vpop.f32.mrf.mxu2  ;;  %v8104_v30 = vpop.f32.mrf.mxu3 }
 0x762   : > { %12776 = vmatmul.msk.f32.gmra.mxu0 %vm472_vm1, %v17509_v0  ;;  %v7924_v32 = vadd.f32 %v7834_v53, %v7646_v56  ;;  %v8200_v51 = vadd.f32 %v8104_v30, %v7921_v13  ;;  %v17515_v40 = vpop.f32.mrf.mxu1  ;;  %v20066_v0 = vld [vmem:[#allocation112_spill] sm:$0xff]  ;;  %v20068_v13 = vld [vmem:[#allocation54_spill] sm:$0xff] }
 0x763   : > { %20062 = vst [vmem:[#allocation35_spill] sm:$0xff] %v17515_v40  ;;  %12712 = vmatmul.msk.f32.gmra.mxu2 %vm472_vm1, %v17519_v38  ;;  %12810 = vmatmul.msk.f32.gmra.mxu1 %vm472_vm1, %v20065_v31 }
 0x764   : > { %v17517_v36 = vadd.f32 %v8382_v29, %v8200_v51  ;;  %12743 = vmatmul.msk.f32.gmra.mxu3 %vm472_vm1, %v20066_v0  ;;  %v20069_v29 = vld [vmem:[#allocation55_spill] sm:$0xff]  ;;  %v20072_v0 = vld [vmem:[#allocation114_spill] sm:$0xff] }
 0x765   : > { %v7647_v6 = vadd.f32 %v20069_v29, %v20068_v13  ;;  %v17545_v13 = vld [vmem:[#allocation3 + $0x121] sm:$0xff] }
 0x766   : > { %20063 = vst [vmem:[#allocation40_spill] sm:$0xff] %v17517_v36  ;;  %v17537_v36 = vld [vmem:[#allocation3 + $0x12c] sm:$0xff] }
 0x767   : > { %v8385_v20 = vpop.f32.mrf.mxu0  ;;  %20071 = vst [vmem:[#allocation81_spill] sm:$0xff] %v17537_v36 }
 0x768   : > { %20074 = vst [vmem:[#allocation110_spill] sm:$0xff] %v17545_v13 }
 0x769   : > { %v7837_v56 = vpop.f32.mrf.mxu2  ;;  %v8107_v53 = vpop.f32.mrf.mxu3 }
 0x76a   : > { %12777 = vmatmul.msk.f32.gmra.mxu0 %vm472_vm1, %v17527_v7  ;;  %v7925_v30 = vadd.f32 %v7837_v56, %v7647_v6  ;;  %v8201_v51 = vadd.f32 %v8107_v53, %v7922_v17  ;;  %v17533_v40 = vpop.f32.mrf.mxu1  ;;  %v20073_v7 = vld [vmem:[#allocation44_spill] sm:$0xff]  ;;  %v20075_v17 = vld [vmem:[#allocation46_spill] sm:$0xff] }
 0x76b   : > { %20070 = vst [vmem:[#allocation109_spill] sm:$0xff] %v17533_v40  ;;  %12713 = vmatmul.msk.f32.gmra.mxu2 %vm472_vm1, %v17537_v36  ;;  %12811 = vmatmul.msk.f32.gmra.mxu1 %vm472_vm1, %v20072_v0  ;;  %v17555_v40 = vld [vmem:[#allocation3 + $0x13c] sm:$0xff] }
 0x76c   : > { %v17535_v38 = vadd.f32 %v8385_v20, %v8201_v51  ;;  %12744 = vmatmul.msk.f32.gmra.mxu3 %vm472_vm1, %v20073_v7  ;;  %v7648_v20 = vadd.f32 %v20075_v17, %v17036_v21  ;;  %20076 = vst [vmem:[#allocation105_spill] sm:$0xff] %v17555_v40  ;;  %v20077_v7 = vld [vmem:[#allocation116_spill] sm:$0xff]  ;;  %v17563_v21 = vld [vmem:[#allocation3 + $0x129] sm:$0xff] }
 0x76d   : > { %20079 = vst [vmem:[#allocation41_spill] sm:$0xff] %v17563_v21 }
 0x76f   : > { %v8388_v31 = vpop.f32.mrf.mxu0 }
 0x771   : > { %v7840_v29 = vpop.f32.mrf.mxu2  ;;  %v8110_v6 = vpop.f32.mrf.mxu3 }
 0x772   : > { %12778 = vmatmul.msk.f32.gmra.mxu0 %vm472_vm1, %v17545_v13  ;;  %v7926_v56 = vadd.f32 %v7840_v29, %v7648_v20  ;;  %v8202_v53 = vadd.f32 %v8110_v6, %v7923_v4  ;;  %v17551_v51 = vpop.f32.mrf.mxu1  ;;  %v20078_v13 = vld [vmem:[#allocation32_spill] sm:$0xff]  ;;  %v7649_v4 = vadd.f32 %v17051_v44, %v17053_v28  ;;  %v7650_v44 = vadd.f32 %v17068_v58, %v17070_v12  ;;  %v20090_v12 = vld [vmem:[#allocation69_spill] sm:$0xff] }
 0x773   : > { %12714 = vmatmul.msk.f32.gmra.mxu2 %vm472_vm1, %v17555_v40  ;;  %12812 = vmatmul.msk.f32.gmra.mxu1 %vm472_vm1, %v20077_v7  ;;  %v17573_v40 = vld [vmem:[#allocation3 + $0x144] sm:$0xff]  ;;  %v17581_v28 = vld [vmem:[#allocation3 + $0x139] sm:$0xff] }
 0x774   : > { %v17553_v36 = vadd.f32 %v8388_v31, %v8202_v53  ;;  %12745 = vmatmul.msk.f32.gmra.mxu3 %vm472_vm1, %v20078_v13  ;;  %20080 = vst [vmem:[#allocation111_spill] sm:$0xff] %v17573_v40  ;;  %v20081_v13 = vld [vmem:[#allocation61_spill] sm:$0xff] }
 0x775   : > { %20083 = vst [vmem:[#allocation118_spill] sm:$0xff] %v17581_v28  ;;  %v17599_v58 = vld [vmem:[#allocation3 + $0x141] sm:$0xff] }
 0x776   : > { %20089 = vst [vmem:[#allocation55_spill] sm:$0xff] %v17599_v58 }
 0x777   : > { %v8391_v0 = vpop.f32.mrf.mxu0 }
 0x779   : > { %v7843_v31 = vpop.f32.mrf.mxu2  ;;  %v8113_v17 = vpop.f32.mrf.mxu3 }
 0x77a   : > { %12779 = vmatmul.msk.f32.gmra.mxu0 %vm472_vm1, %v17563_v21  ;;  %v7927_v20 = vadd.f32 %v7843_v31, %v7649_v4  ;;  %v8203_v29 = vadd.f32 %v8113_v17, %v7924_v32  ;;  %v17569_v6 = vpop.f32.mrf.mxu1  ;;  %v20082_v21 = vld [vmem:[#allocation113_spill] sm:$0xff] }
 0x77b   : > { %12715 = vmatmul.msk.f32.gmra.mxu2 %vm472_vm1, %v17573_v40  ;;  %12813 = vmatmul.msk.f32.gmra.mxu1 %vm472_vm1, %v20081_v13  ;;  %v17591_v40 = vld [vmem:[#allocation3 + $0x154] sm:$0xff] }
 0x77c   : > { %v17571_v53 = vadd.f32 %v8391_v0, %v8203_v29  ;;  %12746 = vmatmul.msk.f32.gmra.mxu3 %vm472_vm1, %v20082_v21  ;;  %20086 = vst [vmem:[#allocation54_spill] sm:$0xff] %v17591_v40  ;;  %v20087_v21 = vld [vmem:[#allocation52_spill] sm:$0xff] }
 0x77f   : > { %v8394_v7 = vpop.f32.mrf.mxu0 }
 0x781   : > { %v7846_v32 = vpop.f32.mrf.mxu2  ;;  %v8116_v0 = vpop.f32.mrf.mxu3 }
 0x782   : > { %12780 = vmatmul.msk.f32.gmra.mxu0 %vm472_vm1, %v17581_v28  ;;  %v7928_v4 = vadd.f32 %v7846_v32, %v7650_v44  ;;  %v8204_v31 = vadd.f32 %v8116_v0, %v7925_v30  ;;  %v17587_v17 = vpop.f32.mrf.mxu1  ;;  %v20088_v28 = vld [vmem:[#allocation115_spill] sm:$0xff]  ;;  %v20091_v30 = vld [vmem:[#allocation66_spill] sm:$0xff] }
 0x783   : > { %20084 = vst [vmem:[#allocation49_spill] sm:$0xff] %v17587_v17  ;;  %12716 = vmatmul.msk.f32.gmra.mxu2 %vm472_vm1, %v17591_v40  ;;  %12814 = vmatmul.msk.f32.gmra.mxu1 %vm472_vm1, %v20087_v21 }
 0x784   : > { %v17589_v29 = vadd.f32 %v8394_v7, %v8204_v31  ;;  %12747 = vmatmul.msk.f32.gmra.mxu3 %vm472_vm1, %v20088_v28  ;;  %v7651_v7 = vadd.f32 %v20091_v30, %v20090_v12  ;;  %v20095_v28 = vld [vmem:[#allocation62_spill] sm:$0xff] }
 0x785   : > { %v17617_v12 = vld [vmem:[#allocation3 + $0x151] sm:$0xff] }
 0x786   : > { %20085 = vst [vmem:[#allocation112_spill] sm:$0xff] %v17589_v29  ;;  %v17609_v29 = vld [vmem:[#allocation3 + $0x15c] sm:$0xff] }
 0x787   : > { %v8397_v13 = vpop.f32.mrf.mxu0  ;;  %20094 = vst [vmem:[#allocation46_spill] sm:$0xff] %v17609_v29 }
 0x788   : > { %20097 = vst [vmem:[#allocation116_spill] sm:$0xff] %v17617_v12 }
 0x789   : > { %v7849_v44 = vpop.f32.mrf.mxu2  ;;  %v8119_v32 = vpop.f32.mrf.mxu3 }
 0x78a   : > { %12781 = vmatmul.msk.f32.gmra.mxu0 %vm472_vm1, %v17599_v58  ;;  %v7929_v0 = vadd.f32 %v7849_v44, %v7651_v7  ;;  %v8205_v31 = vadd.f32 %v8119_v32, %v7926_v56  ;;  %v17605_v17 = vpop.f32.mrf.mxu1  ;;  %v20096_v58 = vld [vmem:[#allocation117_spill] sm:$0xff]  ;;  %v20098_v56 = vld [vmem:[#allocation80_spill] sm:$0xff] }
 0x78b   : > { %20092 = vst [vmem:[#allocation114_spill] sm:$0xff] %v17605_v17  ;;  %12717 = vmatmul.msk.f32.gmra.mxu2 %vm472_vm1, %v17609_v29  ;;  %12815 = vmatmul.msk.f32.gmra.mxu1 %vm472_vm1, %v20095_v28 }
 0x78c   : > { %v17607_v40 = vadd.f32 %v8397_v13, %v8205_v31  ;;  %12748 = vmatmul.msk.f32.gmra.mxu3 %vm472_vm1, %v20096_v58  ;;  %v20099_v13 = vld [vmem:[#allocation77_spill] sm:$0xff] }
 0x78d   : > { %v7652_v30 = vadd.f32 %v20099_v13, %v20098_v56  ;;  %v20101_v58 = vld [vmem:[#allocation57_spill] sm:$0xff]  ;;  %v17635_v56 = vld [vmem:[#allocation3 + $0x159] sm:$0xff] }
 0x78e   : > { %20093 = vst [vmem:[#allocation44_spill] sm:$0xff] %v17607_v40  ;;  %v17627_v40 = vld [vmem:[#allocation3 + $0x16c] sm:$0xff] }
 0x78f   : > { %v8400_v21 = vpop.f32.mrf.mxu0  ;;  %20100 = vst [vmem:[#allocation32_spill] sm:$0xff] %v17627_v40 }
 0x790   : > { %20103 = vst [vmem:[#allocation61_spill] sm:$0xff] %v17635_v56 }
 0x791   : > { %v7852_v7 = vpop.f32.mrf.mxu2  ;;  %v8122_v44 = vpop.f32.mrf.mxu3 }
 0x792   : > { %12782 = vmatmul.msk.f32.gmra.mxu0 %vm472_vm1, %v17617_v12  ;;  %v7930_v32 = vadd.f32 %v7852_v7, %v7652_v30  ;;  %v8206_v31 = vadd.f32 %v8122_v44, %v7927_v20  ;;  %v17623_v17 = vpop.f32.mrf.mxu1  ;;  %v20102_v12 = vld [vmem:[#allocation119_spill] sm:$0xff]  ;;  %v7653_v20 = vadd.f32 %v17119_v9, %v17121_v23  ;;  %v17653_v9 = vld [vmem:[#allocation3 + $0x169] sm:$0xff] }
 0x793   : > { %12718 = vmatmul.msk.f32.gmra.mxu2 %vm472_vm1, %v17627_v40  ;;  %12816 = vmatmul.msk.f32.gmra.mxu1 %vm472_vm1, %v20101_v58  ;;  %v17645_v40 = vld [vmem:[#allocation3 + $0x174] sm:$0xff]  ;;  %20108 = vst [vmem:[#allocation115_spill] sm:$0xff] %v17653_v9  ;;  %v20109_v23 = vld [vmem:[#allocation9_spill] sm:$0xff] }
 0x794   : > { %v17625_v29 = vadd.f32 %v8400_v21, %v8206_v31  ;;  %12749 = vmatmul.msk.f32.gmra.mxu3 %vm472_vm1, %v20102_v12  ;;  %20105 = vst [vmem:[#allocation52_spill] sm:$0xff] %v17645_v40  ;;  %v20106_v12 = vld [vmem:[#allocation72_spill] sm:$0xff] }
 0x797   : > { %v8403_v28 = vpop.f32.mrf.mxu0 }
 0x799   : > { %v7855_v21 = vpop.f32.mrf.mxu2  ;;  %v8125_v13 = vpop.f32.mrf.mxu3 }
 0x79a   : > { %12783 = vmatmul.msk.f32.gmra.mxu0 %vm472_vm1, %v17635_v56  ;;  %v7931_v30 = vadd.f32 %v7855_v21, %v7653_v20  ;;  %v8207_v7 = vadd.f32 %v8125_v13, %v7928_v4  ;;  %v17641_v44 = vpop.f32.mrf.mxu1  ;;  %v20107_v56 = vld [vmem:[#allocation60_spill] sm:$0xff]  ;;  %v7654_v4 = vadd.f32 %v20109_v23, %v17138_v3  ;;  %v17671_v3 = vld [vmem:[#allocation3 + $0x171] sm:$0xff] }
 0x79b   : > { %20104 = vst [vmem:[#allocation113_spill] sm:$0xff] %v17641_v44  ;;  %12719 = vmatmul.msk.f32.gmra.mxu2 %vm472_vm1, %v17645_v40  ;;  %12817 = vmatmul.msk.f32.gmra.mxu1 %vm472_vm1, %v20106_v12  ;;  %v17663_v44 = vld [vmem:[#allocation3 + $0x184] sm:$0xff] }
 0x79c   : > { %v17643_v31 = vadd.f32 %v8403_v28, %v8207_v7  ;;  %12750 = vmatmul.msk.f32.gmra.mxu3 %vm472_vm1, %v20107_v56  ;;  %20111 = vst [vmem:[#allocation66_spill] sm:$0xff] %v17663_v44  ;;  %v20112_v56 = vld [vmem:[#allocation91_spill] sm:$0xff] }
 0x79d   : > { %20114 = vst [vmem:[#allocation62_spill] sm:$0xff] %v17671_v3 }
 0x79f   : > { %v8406_v58 = vpop.f32.mrf.mxu0 }
 0x7a1   : > { %v7858_v28 = vpop.f32.mrf.mxu2  ;;  %v8128_v20 = vpop.f32.mrf.mxu3 }
 0x7a2   : > { %12784 = vmatmul.msk.f32.gmra.mxu0 %vm472_vm1, %v17653_v9  ;;  %v7932_v21 = vadd.f32 %v7858_v28, %v7654_v4  ;;  %v8208_v13 = vadd.f32 %v8128_v20, %v7929_v0  ;;  %v17659_v7 = vpop.f32.mrf.mxu1  ;;  %v20113_v9 = vld [vmem:[#allocation68_spill] sm:$0xff]  ;;  %v20115_v0 = vld [vmem:[#allocation79_spill] sm:$0xff] }
 0x7a3   : > { %20110 = vst [vmem:[#allocation69_spill] sm:$0xff] %v17659_v7  ;;  %12720 = vmatmul.msk.f32.gmra.mxu2 %vm472_vm1, %v17663_v44  ;;  %12818 = vmatmul.msk.f32.gmra.mxu1 %vm472_vm1, %v20112_v56  ;;  %v17681_v7 = vld [vmem:[#allocation3 + $0x18c] sm:$0xff] }
 0x7a4   : > { %v17661_v40 = vadd.f32 %v8406_v58, %v8208_v13  ;;  %12751 = vmatmul.msk.f32.gmra.mxu3 %vm472_vm1, %v20113_v9  ;;  %v7655_v58 = vadd.f32 %v20115_v0, %v17156_v59  ;;  %20117 = vst [vmem:[#allocation80_spill] sm:$0xff] %v17681_v7  ;;  %v20118_v9 = vld [vmem:[#allocation75_spill] sm:$0xff]  ;;  %v17689_v59 = vld [vmem:[#allocation3 + $0x181] sm:$0xff] }
 0x7a5   : > { %20120 = vst [vmem:[#allocation77_spill] sm:$0xff] %v17689_v59 }
 0x7a7   : > { %v8409_v12 = vpop.f32.mrf.mxu0 }
 0x7a9   : > { %v7861_v23 = vpop.f32.mrf.mxu2  ;;  %v8131_v4 = vpop.f32.mrf.mxu3 }
 0x7aa   : > { %12785 = vmatmul.msk.f32.gmra.mxu0 %vm472_vm1, %v17671_v3  ;;  %v7933_v28 = vadd.f32 %v7861_v23, %v7655_v58  ;;  %v8209_v20 = vadd.f32 %v8131_v4, %v7930_v32  ;;  %v17677_v13 = vpop.f32.mrf.mxu1  ;;  %v20119_v3 = vld [vmem:[#allocation63_spill] sm:$0xff]  ;;  %v20121_v32 = vld [vmem:[#allocation92_spill] sm:$0xff] }
 0x7ab   : > { %20116 = vst [vmem:[#allocation117_spill] sm:$0xff] %v17677_v13  ;;  %12721 = vmatmul.msk.f32.gmra.mxu2 %vm472_vm1, %v17681_v7  ;;  %12819 = vmatmul.msk.f32.gmra.mxu1 %vm472_vm1, %v20118_v9  ;;  %v17699_v13 = vld [vmem:[#allocation3 + $0x19c] sm:$0xff] }
 0x7ac   : > { %v17679_v44 = vadd.f32 %v8409_v12, %v8209_v20  ;;  %12752 = vmatmul.msk.f32.gmra.mxu3 %vm472_vm1, %v20119_v3  ;;  %v7656_v12 = vadd.f32 %v20121_v32, %v17174_v55  ;;  %20122 = vst [vmem:[#allocation57_spill] sm:$0xff] %v17699_v13  ;;  %v8536_v3 = vld [vmem:[#allocation3 + $0x182] sm:$0xff] }
 0x7ad   : > { %v17706_v55 = vld [vmem:[#allocation3 + $0x189] sm:$0xff] }
 0x7ae   : > { %20124 = vst [vmem:[#allocation119_spill] sm:$0xff] %v17706_v55 }
 0x7af   : > { %v8412_v56 = vpop.f32.mrf.mxu0 }
 0x7b1   : > { %v7864_v0 = vpop.f32.mrf.mxu2  ;;  %v8134_v58 = vpop.f32.mrf.mxu3 }
 0x7b2   : > { %12786 = vmatmul.msk.f32.gmra.mxu0 %vm472_vm1, %v17689_v59  ;;  %v7934_v23 = vadd.f32 %v7864_v0, %v7656_v12  ;;  %v8210_v4 = vadd.f32 %v8134_v58, %v7931_v30  ;;  %v17695_v20 = vpop.f32.mrf.mxu1  ;;  %v20123_v59 = vld [vmem:[#allocation74_spill] sm:$0xff]  ;;  %v7657_v30 = vadd.f32 %v17197_v16, %v17199_v24  ;;  %v20129_v16 = vld [vmem:[#allocation20_spill] sm:$0xff]  ;;  %v20130_v24 = vld [vmem:[#allocation95_spill] sm:$0xff] }
 0x7b3   : > { %12722 = vmatmul.msk.f32.gmra.mxu2 %vm472_vm1, %v17699_v13  ;;  %12820 = vmatmul.msk.f32.gmra.mxu1 %vm472_vm1, %v8536_v3  ;;  %v17716_v13 = vld [vmem:[#allocation3 + $0x1a4] sm:$0xff] }
 0x7b4   : > { %v17697_v7 = vadd.f32 %v8412_v56, %v8210_v4  ;;  %12753 = vmatmul.msk.f32.gmra.mxu3 %vm472_vm1, %v20123_v59  ;;  %20127 = vst [vmem:[#allocation9_spill] sm:$0xff] %v17716_v13  ;;  %v8537_v59 = vld [vmem:[#allocation3 + $0x18a] sm:$0xff] }
 0x7b7   : > { %v8415_v9 = vpop.f32.mrf.mxu0 }
 0x7b9   : > { %v7867_v56 = vpop.f32.mrf.mxu2  ;;  %v8137_v32 = vpop.f32.mrf.mxu3 }
 0x7ba   : > { %12787 = vmatmul.msk.f32.gmra.mxu0 %vm472_vm1, %v17706_v55  ;;  %v7935_v12 = vadd.f32 %v7867_v56, %v7657_v30  ;;  %v8211_v0 = vadd.f32 %v8137_v32, %v7932_v21  ;;  %v17712_v58 = vpop.f32.mrf.mxu1  ;;  %v20128_v55 = vld [vmem:[#allocation84_spill] sm:$0xff]  ;;  %v7658_v21 = vadd.f32 %v20130_v24, %v17218_v62  ;;  %v20134_v62 = vld [vmem:[#allocation85_spill] sm:$0xff] }
 0x7bb   : > { %20125 = vst [vmem:[#allocation72_spill] sm:$0xff] %v17712_v58  ;;  %12723 = vmatmul.msk.f32.gmra.mxu2 %vm472_vm1, %v17716_v13  ;;  %12821 = vmatmul.msk.f32.gmra.mxu1 %vm472_vm1, %v8537_v59  ;;  %v12962_v13 = vld [vmem:[%s19194_s9 + $0x58] sm:$0xf]  ;;  %v20135_v24 = vld [vmem:[#allocation97_spill] sm:$0xff] }
 0x7bc   : > { %v17714_v4 = vadd.f32 %v8415_v9, %v8211_v0  ;;  %12754 = vmatmul.msk.f32.gmra.mxu3 %vm472_vm1, %v20128_v55  ;;  %v8788_v55 = vld [vmem:[#allocation3 + $0x4b] sm:$0xff]  ;;  %12963 = vmatpush.msk.msrb.mxu2 %vm634_vm0, %v12962_v13 }
 0x7be   : > { %20126 = vst [vmem:[#allocation60_spill] sm:$0xff] %v17714_v4  ;;  %v8789_v4 = vld [vmem:[#allocation3 + $0x53] sm:$0xff] }
 0x7bf   : > { %v8418_v3 = vpop.f32.mrf.mxu0 }
 0x7c1   : > { %v7870_v9 = vpop.f32.mrf.mxu2  ;;  %v8140_v30 = vpop.f32.mrf.mxu3 }
 0x7c2   : > { %12788 = vmatmul.msk.f32.gmra.mxu0 %vm472_vm1, %v20129_v16  ;;  %v7936_v56 = vadd.f32 %v7870_v9, %v7658_v21  ;;  %v8212_v32 = vadd.f32 %v8140_v30, %v7933_v28  ;;  %v17727_v0 = vpop.f32.mrf.mxu1  ;;  %v20133_v16 = vld [vmem:[#allocation93_spill] sm:$0xff]  ;;  %v12996_v28 = vld [vmem:[%s19194_s9 + $0x5c] sm:$0xf] }
 0x7c3   : > { %20131 = vst [vmem:[#allocation91_spill] sm:$0xff] %v17727_v0  ;;  %12828 = vmatmul.msk.f32.vlgmr.msra.gmra.mxu2 %vm472_vm1, %v8788_v55  ;;  %12822 = vmatmul.msk.f32.gmra.mxu1 %vm472_vm1, %v20133_v16  ;;  %v17750_v16 = vld [vmem:[#allocation3 + $0x1b0] sm:$0xff] }
 0x7c4   : > { %v17732_v59 = vadd.f32 %v8418_v3, %v8212_v32  ;;  %12755 = vmatmul.msk.f32.gmra.mxu3 %vm472_vm1, %v20134_v62  ;;  %v20136_v3 = vld [vmem:[#allocation33_spill] sm:$0xff]  ;;  %20138 = vst [vmem:[#allocation75_spill] sm:$0xff] %v17750_v16 }
 0x7c5   : > { %12997 = vmatpush.msk.msrb.mxu3 %vm634_vm0, %v12996_v28  ;;  %v7659_v13 = vadd.f32 %v20136_v3, %v17232_v25  ;;  %v20140_v28 = vld [vmem:[#allocation23_spill] sm:$0xff]  ;;  %v13030_v25 = vld [vmem:[%s19194_s9 + $0x60] sm:$0xf] }
 0x7c6   : > { %20132 = vst [vmem:[#allocation68_spill] sm:$0xff] %v17732_v59  ;;  %v17754_v59 = vld [vmem:[#allocation3 + $0x1b1] sm:$0xff]  ;;  %13031 = vmatpush.msk.msrb.mxu0 %vm634_vm0, %v13030_v25 }
 0x7c7   : > { %v8421_v58 = vpop.f32.mrf.mxu0  ;;  %20139 = vst [vmem:[#allocation63_spill] sm:$0xff] %v17754_v59 }
 0x7c9   : > { %v7873_v21 = vpop.f32.mrf.mxu2  ;;  %v8143_v9 = vpop.f32.mrf.mxu3 }
 0x7ca   : > { %12789 = vmatmul.msk.f32.gmra.mxu0 %vm472_vm1, %v20135_v24  ;;  %v7937_v30 = vadd.f32 %v7873_v21, %v7659_v13  ;;  %v8213_v32 = vadd.f32 %v8143_v9, %v7934_v23  ;;  %v17748_v55 = vpop.f32.mrf.mxu1  ;;  %v11381_v23 = vld [vmem:[%s19196_s11] sm:$0xf]  ;;  %v8540_v9 = vld [vmem:[#allocation3 + $0x1b2] sm:$0xff] }
 0x7cb   : > { %20137 = vst [vmem:[#allocation79_spill] sm:$0xff] %v17748_v55  ;;  %12829 = vmatmul.msk.f32.gmra.mxu2 %vm472_vm1, %v8789_v4  ;;  %12823 = vmatmul.msk.f32.gmra.mxu1 %vm472_vm1, %v20140_v28  ;;  %v17781_v55 = vld [vmem:[#allocation3 + $0x63] sm:$0xff] }
 0x7cc   : > { %v17752_v62 = vadd.f32 %v8421_v58, %v8213_v32  ;;  %12756 = vmatmul.msk.f32.gmra.mxu3 %vm472_vm1, %v17750_v16  ;;  %v7660_v58 = vadd.f32 %v17245_v18, %v17247_v8  ;;  %13064 = vmatpush.msk.msrb.mxu1 %vm634_vm0, %v11381_v23  ;;  %v17775_v32 = vld [vmem:[#allocation3 + $0x1b8] sm:$0xff]  ;;  %20141 = vst [vmem:[#allocation92_spill] sm:$0xff] %v17781_v55 }
 0x7cd   : > { %v7661_v18 = vadd.f32 %v17263_v50, %v17265_v63  ;;  %v9345_v50 = vld [vmem:[#allocation3 + $0x60] sm:$0xff]  ;;  %v7662_v63 = vadd.f32 %v17281_v41, %v17283_v15  ;;  %v7663_v41 = vadd.f32 %v17299_v60, %v17301_v10  ;;  %v7664_v60 = vadd.f32 %v17317_v48, %v17319_v52 }
 0x7ce   : > { %v7665_v48 = vadd.f32 %v17335_v54, %v17337_v5  ;;  %v7666_v54 = vadd.f32 %v17353_v14, %v17355_v45  ;;  %v7667_v14 = vadd.f32 %v17371_v27, %v17373_v57  ;;  %v7668_v27 = vadd.f32 %v17389_v43, %v17391_v19 }
 0x7cf   : > { %v8424_v0 = vpop.f32.mrf.mxu0  ;;  %v7669_v43 = vadd.f32 %v17407_v11, %v17409_v34  ;;  %v7670_v11 = vadd.f32 %v17425_v35, %v17427_v37  ;;  %v7671_v35 = vadd.f32 %v17443_v26, %v17445_v61  ;;  %v7672_v26 = vadd.f32 %v17461_v46, %v17463_v1 }
 0x7d0   : > { %v7673_v46 = vadd.f32 %v17479_v49, %v17481_v2  ;;  %v7674_v49 = vadd.f32 %v17497_v47, %v17499_v39  ;;  %v20167_v47 = vld [vmem:[#allocation40_spill] sm:$0xff]  ;;  %v20168_v39 = vld [vmem:[#allocation35_spill] sm:$0xff] }
 0x7d1   : > { %v7876_v4 = vpop.f32.mrf.mxu2  ;;  %v8146_v24 = vpop.f32.mrf.mxu3 }
 0x7d2   : > { %12790 = vmatmul.msk.f32.gmra.mxu0 %vm472_vm1, %v17754_v59  ;;  %v7938_v3 = vadd.f32 %v7876_v4, %v7660_v58  ;;  %v8214_v13 = vadd.f32 %v8146_v24, %v7935_v12  ;;  %v17773_v21 = vpop.f32.mrf.mxu1  ;;  %v17779_v59 = vld [vmem:[#allocation3 + $0x1b9] sm:$0xff] }
 0x7d3   : > { %12830 = vmatmul.msk.f32.gmra.mxu2 %vm472_vm1, %v17781_v55  ;;  %12824 = vmatmul.msk.f32.gmra.mxu1 %vm472_vm1, %v8540_v9  ;;  %v8541_v58 = vld [vmem:[#allocation3 + $0x1ba] sm:$0xff] }
 0x7d4   : > { %v17777_v28 = vadd.f32 %v8424_v0, %v8214_v13  ;;  %12757 = vmatmul.msk.f32.gmra.mxu3 %vm472_vm1, %v17775_v32  ;;  %v17796_v13 = vld [vmem:[#allocation3 + $0x6b] sm:$0xff]  ;;  %v20143_v9 = vld [vmem:[#allocation8_spill] sm:$0xff] }
 0x7d5   : > { %20142 = vst [vmem:[#allocation74_spill] sm:$0xff] %v17796_v13  ;;  %v8792_v55 = vld [vmem:[#allocation3 + $0x7b] sm:$0xff] }
 0x7d7   : > { %v8427_v16 = vpop.f32.mrf.mxu0 }
 0x7d9   : > { %v7879_v8 = vpop.f32.mrf.mxu2  ;;  %v8149_v12 = vpop.f32.mrf.mxu3 }
 0x7da   : > { %12791 = vmatmul.msk.f32.gmra.mxu0 %vm472_vm1, %v17779_v59  ;;  %v7939_v0 = vadd.f32 %v7879_v8, %v7661_v18  ;;  %v8215_v25 = vadd.f32 %v8149_v12, %v7936_v56  ;;  %v17792_v23 = vpop.f32.mrf.mxu1 }
 0x7db   : > { %12831 = vmatmul.msk.f32.gmra.mxu2 %vm472_vm1, %v17796_v13  ;;  %12825 = vmatmul.msk.f32.gmra.mxu1 %vm472_vm1, %v8541_v58  ;;  %v20144_v58 = vld [vmem:[#allocation11_spill] sm:$0xff] }
 0x7dc   : > { %v17794_v4 = vadd.f32 %v8427_v16, %v8215_v25  ;;  %12862 = vmatmul.msk.f32.vlgmr.msra.gmra.mxu3 %vm472_vm1, %v20143_v9  ;;  %v9346_v9 = vld [vmem:[#allocation3 + $0x68] sm:$0xff] }
 0x7df   : > { %v8430_v24 = vpop.f32.mrf.mxu0 }
 0x7e1   : > { %v7882_v56 = vpop.f32.mrf.mxu2  ;;  %v8152_v16 = vpop.f32.mrf.mxu3 }
 0x7e2   : > { %12896 = vmatmul.msk.f32.vlgmr.msra.gmra.mxu0 %vm472_vm1, %v9345_v50  ;;  %v7940_v18 = vadd.f32 %v7882_v56, %v7662_v63  ;;  %v8216_v8 = vadd.f32 %v8152_v16, %v7937_v30  ;;  %v17806_v12 = vpop.f32.mrf.mxu1  ;;  %v8793_v16 = vld [vmem:[#allocation3 + $0x83] sm:$0xff] }
 0x7e3   : > { %12832 = vmatmul.msk.f32.gmra.mxu2 %vm472_vm1, %v8792_v55  ;;  %12930 = vmatmul.msk.f32.vlgmr.msra.gmra.mxu1 %vm472_vm1, %v17257_v22  ;;  %v20145_v22 = vld [vmem:[#allocation48_spill] sm:$0xff] }
 0x7e4   : > { %v17808_v25 = vadd.f32 %v8430_v24, %v8216_v8  ;;  %12863 = vmatmul.msk.f32.gmra.mxu3 %vm472_vm1, %v20144_v58  ;;  %v20146_v8 = vld [vmem:[#allocation17_spill] sm:$0xff]  ;;  %v9347_v58 = vld [vmem:[#allocation3 + $0x78] sm:$0xff] }
 0x7e7   : > { %v8433_v13 = vpop.f32.mrf.mxu0 }
 0x7e9   : > { %v7885_v15 = vpop.f32.mrf.mxu2  ;;  %v8155_v30 = vpop.f32.mrf.mxu3 }
 0x7ea   : > { %12897 = vmatmul.msk.f32.gmra.mxu0 %vm472_vm1, %v9346_v9  ;;  %v7941_v24 = vadd.f32 %v7885_v15, %v7663_v41  ;;  %v8217_v50 = vadd.f32 %v8155_v30, %v7938_v3  ;;  %v17818_v63 = vpop.f32.mrf.mxu1 }
 0x7eb   : > { %12833 = vmatmul.msk.f32.gmra.mxu2 %vm472_vm1, %v8793_v16  ;;  %12931 = vmatmul.msk.f32.gmra.mxu1 %vm472_vm1, %v20145_v22  ;;  %v20147_v16 = vld [vmem:[#allocation10_spill] sm:$0xff] }
 0x7ec   : > { %v17820_v56 = vadd.f32 %v8433_v13, %v8217_v50  ;;  %12864 = vmatmul.msk.f32.gmra.mxu3 %vm472_vm1, %v20146_v8  ;;  %v8794_v50 = vld [vmem:[#allocation3 + $0x93] sm:$0xff]  ;;  %v9348_v8 = vld [vmem:[#allocation3 + $0x80] sm:$0xff] }
 0x7ed   : > { %v20148_v22 = vld [vmem:[#allocation38_spill] sm:$0xff] }
 0x7ef   : > { %v8436_v55 = vpop.f32.mrf.mxu0 }
 0x7f1   : > { %v7888_v10 = vpop.f32.mrf.mxu2  ;;  %v8158_v3 = vpop.f32.mrf.mxu3 }
 0x7f2   : > { %12898 = vmatmul.msk.f32.gmra.mxu0 %vm472_vm1, %v9347_v58  ;;  %v7942_v13 = vadd.f32 %v7888_v10, %v7664_v60  ;;  %v8218_v9 = vadd.f32 %v8158_v3, %v7939_v0  ;;  %v17830_v41 = vpop.f32.mrf.mxu1 }
 0x7f3   : > { %12834 = vmatmul.msk.f32.gmra.mxu2 %vm472_vm1, %v8794_v50  ;;  %12932 = vmatmul.msk.f32.gmra.mxu1 %vm472_vm1, %v20147_v16  ;;  %v20149_v50 = vld [vmem:[#allocation100_spill] sm:$0xff]  ;;  %v20150_v16 = vld [vmem:[#allocation13_spill] sm:$0xff] }
 0x7f4   : > { %v17832_v15 = vadd.f32 %v8436_v55, %v8218_v9  ;;  %12865 = vmatmul.msk.f32.gmra.mxu3 %vm472_vm1, %v20148_v22  ;;  %v8795_v9 = vld [vmem:[#allocation3 + $0x9b] sm:$0xff]  ;;  %v9349_v22 = vld [vmem:[#allocation3 + $0x90] sm:$0xff] }
 0x7f7   : > { %v8439_v30 = vpop.f32.mrf.mxu0 }
 0x7f9   : > { %v7891_v52 = vpop.f32.mrf.mxu2  ;;  %v8161_v0 = vpop.f32.mrf.mxu3 }
 0x7fa   : > { %12899 = vmatmul.msk.f32.gmra.mxu0 %vm472_vm1, %v9348_v8  ;;  %v7943_v55 = vadd.f32 %v7891_v52, %v7665_v48  ;;  %v8219_v58 = vadd.f32 %v8161_v0, %v7940_v18  ;;  %v17842_v60 = vpop.f32.mrf.mxu1 }
 0x7fb   : > { %12835 = vmatmul.msk.f32.gmra.mxu2 %vm472_vm1, %v8795_v9  ;;  %12933 = vmatmul.msk.f32.gmra.mxu1 %vm472_vm1, %v20149_v50  ;;  %v20151_v9 = vld [vmem:[#allocation65_spill] sm:$0xff] }
 0x7fc   : > { %v17844_v10 = vadd.f32 %v8439_v30, %v8219_v58  ;;  %12866 = vmatmul.msk.f32.gmra.mxu3 %vm472_vm1, %v20150_v16  ;;  %v8796_v58 = vld [vmem:[#allocation3 + $0xab] sm:$0xff]  ;;  %v9350_v16 = vld [vmem:[#allocation3 + $0x98] sm:$0xff] }
 0x7fd   : > { %v20152_v50 = vld [vmem:[#allocation53_spill] sm:$0xff] }
 0x7ff   : > { %v8442_v3 = vpop.f32.mrf.mxu0 }
 0x801   : > { %v7894_v5 = vpop.f32.mrf.mxu2  ;;  %v8164_v18 = vpop.f32.mrf.mxu3 }
 0x802   : > { %12900 = vmatmul.msk.f32.gmra.mxu0 %vm472_vm1, %v9349_v22  ;;  %v7944_v30 = vadd.f32 %v7894_v5, %v7666_v54  ;;  %v8220_v8 = vadd.f32 %v8164_v18, %v7941_v24  ;;  %v17854_v48 = vpop.f32.mrf.mxu1 }
 0x803   : > { %12836 = vmatmul.msk.f32.gmra.mxu2 %vm472_vm1, %v8796_v58  ;;  %12934 = vmatmul.msk.f32.gmra.mxu1 %vm472_vm1, %v20151_v9  ;;  %v20153_v58 = vld [vmem:[#allocation88_spill] sm:$0xff]  ;;  %v20154_v9 = vld [vmem:[#allocation90_spill] sm:$0xff] }
 0x804   : > { %v17856_v52 = vadd.f32 %v8442_v3, %v8220_v8  ;;  %12867 = vmatmul.msk.f32.gmra.mxu3 %vm472_vm1, %v20152_v50  ;;  %v8797_v8 = vld [vmem:[#allocation3 + $0xb3] sm:$0xff]  ;;  %v9351_v50 = vld [vmem:[#allocation3 + $0xa8] sm:$0xff] }
 0x807   : > { %v8445_v0 = vpop.f32.mrf.mxu0 }
 0x809   : > { %v7897_v45 = vpop.f32.mrf.mxu2  ;;  %v8167_v24 = vpop.f32.mrf.mxu3 }
 0x80a   : > { %12901 = vmatmul.msk.f32.gmra.mxu0 %vm472_vm1, %v9350_v16  ;;  %v7945_v3 = vadd.f32 %v7897_v45, %v7667_v14  ;;  %v8221_v22 = vadd.f32 %v8167_v24, %v7942_v13  ;;  %v17866_v54 = vpop.f32.mrf.mxu1 }
 0x80b   : > { %12837 = vmatmul.msk.f32.gmra.mxu2 %vm472_vm1, %v8797_v8  ;;  %12935 = vmatmul.msk.f32.gmra.mxu1 %vm472_vm1, %v20153_v58  ;;  %v20155_v8 = vld [vmem:[#allocation98_spill] sm:$0xff] }
 0x80c   : > { %v17868_v5 = vadd.f32 %v8445_v0, %v8221_v22  ;;  %12868 = vmatmul.msk.f32.gmra.mxu3 %vm472_vm1, %v20154_v9  ;;  %v8798_v22 = vld [vmem:[#allocation3 + $0xc3] sm:$0xff]  ;;  %v20156_v58 = vld [vmem:[#allocation82_spill] sm:$0xff] }
 0x80d   : > { %v9352_v9 = vld [vmem:[#allocation3 + $0xb0] sm:$0xff] }
 0x80f   : > { %v8448_v18 = vpop.f32.mrf.mxu0 }
 0x811   : > { %v7900_v57 = vpop.f32.mrf.mxu2  ;;  %v8170_v13 = vpop.f32.mrf.mxu3 }
 0x812   : > { %12902 = vmatmul.msk.f32.gmra.mxu0 %vm472_vm1, %v9351_v50  ;;  %v7946_v0 = vadd.f32 %v7900_v57, %v7668_v27  ;;  %v8222_v16 = vadd.f32 %v8170_v13, %v7943_v55  ;;  %v17878_v14 = vpop.f32.mrf.mxu1 }
 0x813   : > { %12838 = vmatmul.msk.f32.gmra.mxu2 %vm472_vm1, %v8798_v22  ;;  %12936 = vmatmul.msk.f32.gmra.mxu1 %vm472_vm1, %v20155_v8  ;;  %v20157_v22 = vld [vmem:[#allocation76_spill] sm:$0xff] }
 0x814   : > { %v17880_v45 = vadd.f32 %v8448_v18, %v8222_v16  ;;  %12869 = vmatmul.msk.f32.gmra.mxu3 %vm472_vm1, %v20156_v58  ;;  %v8799_v16 = vld [vmem:[#allocation3 + $0xcb] sm:$0xff]  ;;  %v20158_v8 = vld [vmem:[#allocation104_spill] sm:$0xff] }
 0x815   : > { %v9353_v58 = vld [vmem:[#allocation3 + $0xc0] sm:$0xff] }
 0x817   : > { %v8451_v24 = vpop.f32.mrf.mxu0 }
 0x819   : > { %v7903_v19 = vpop.f32.mrf.mxu2  ;;  %v8173_v55 = vpop.f32.mrf.mxu3 }
 0x81a   : > { %12903 = vmatmul.msk.f32.gmra.mxu0 %vm472_vm1, %v9352_v9  ;;  %v7947_v18 = vadd.f32 %v7903_v19, %v7669_v43  ;;  %v8223_v50 = vadd.f32 %v8173_v55, %v7944_v30  ;;  %v17890_v27 = vpop.f32.mrf.mxu1 }
 0x81b   : > { %12839 = vmatmul.msk.f32.gmra.mxu2 %vm472_vm1, %v8799_v16  ;;  %12937 = vmatmul.msk.f32.gmra.mxu1 %vm472_vm1, %v20157_v22  ;;  %v20159_v16 = vld [vmem:[#allocation106_spill] sm:$0xff]  ;;  %v20160_v22 = vld [vmem:[#allocation71_spill] sm:$0xff] }
 0x81c   : > { %v17892_v57 = vadd.f32 %v8451_v24, %v8223_v50  ;;  %12870 = vmatmul.msk.f32.gmra.mxu3 %vm472_vm1, %v20158_v8  ;;  %v8800_v50 = vld [vmem:[#allocation3 + $0xdb] sm:$0xff]  ;;  %v9354_v8 = vld [vmem:[#allocation3 + $0xc8] sm:$0xff] }
 0x81f   : > { %v8454_v13 = vpop.f32.mrf.mxu0 }
 0x821   : > { %v7906_v34 = vpop.f32.mrf.mxu2  ;;  %v8176_v30 = vpop.f32.mrf.mxu3 }
 0x822   : > { %12904 = vmatmul.msk.f32.gmra.mxu0 %vm472_vm1, %v9353_v58  ;;  %v7948_v24 = vadd.f32 %v7906_v34, %v7670_v11  ;;  %v8224_v9 = vadd.f32 %v8176_v30, %v7945_v3  ;;  %v17902_v43 = vpop.f32.mrf.mxu1 }
 0x823   : > { %12840 = vmatmul.msk.f32.gmra.mxu2 %vm472_vm1, %v8800_v50  ;;  %12938 = vmatmul.msk.f32.gmra.mxu1 %vm472_vm1, %v20159_v16  ;;  %v20161_v50 = vld [vmem:[#allocation28_spill] sm:$0xff]  ;;  %v9355_v16 = vld [vmem:[#allocation3 + $0xd8] sm:$0xff] }
 0x824   : > { %v17904_v19 = vadd.f32 %v8454_v13, %v8224_v9  ;;  %12871 = vmatmul.msk.f32.gmra.mxu3 %vm472_vm1, %v20160_v22  ;;  %v8801_v9 = vld [vmem:[#allocation3 + $0xe3] sm:$0xff] }
 0x827   : > { %v8457_v55 = vpop.f32.mrf.mxu0 }
 0x829   : > { %v7909_v37 = vpop.f32.mrf.mxu2  ;;  %v8179_v3 = vpop.f32.mrf.mxu3 }
 0x82a   : > { %12905 = vmatmul.msk.f32.gmra.mxu0 %vm472_vm1, %v9354_v8  ;;  %v7949_v13 = vadd.f32 %v7909_v37, %v7671_v35  ;;  %v8225_v58 = vadd.f32 %v8179_v3, %v7946_v0  ;;  %v17914_v11 = vpop.f32.mrf.mxu1  ;;  %v8802_v3 = vld [vmem:[#allocation3 + $0xf3] sm:$0xff] }
 0x82b   : > { %12841 = vmatmul.msk.f32.gmra.mxu2 %vm472_vm1, %v8801_v9  ;;  %12939 = vmatmul.msk.f32.gmra.mxu1 %vm472_vm1, %v17419_v33  ;;  %v20162_v33 = vld [vmem:[#allocation43_spill] sm:$0xff] }
 0x82c   : > { %v17916_v34 = vadd.f32 %v8457_v55, %v8225_v58  ;;  %12872 = vmatmul.msk.f32.gmra.mxu3 %vm472_vm1, %v20161_v50  ;;  %v9356_v58 = vld [vmem:[#allocation3 + $0xe0] sm:$0xff] }
 0x82f   : > { %v8460_v30 = vpop.f32.mrf.mxu0 }
 0x831   : > { %v7912_v61 = vpop.f32.mrf.mxu2  ;;  %v8182_v0 = vpop.f32.mrf.mxu3 }
 0x832   : > { %12906 = vmatmul.msk.f32.gmra.mxu0 %vm472_vm1, %v9355_v16  ;;  %v7950_v55 = vadd.f32 %v7912_v61, %v7672_v26  ;;  %v8226_v22 = vadd.f32 %v8182_v0, %v7947_v18  ;;  %v17926_v8 = vpop.f32.mrf.mxu1  ;;  %v8803_v61 = vld [vmem:[#allocation3 + $0xfb] sm:$0xff] }
 0x833   : > { %12842 = vmatmul.msk.f32.gmra.mxu2 %vm472_vm1, %v8802_v3  ;;  %12940 = vmatmul.msk.f32.gmra.mxu1 %vm472_vm1, %v17437_v42  ;;  %v20163_v42 = vld [vmem:[#allocation30_spill] sm:$0xff]  ;;  %v20164_v0 = vld [vmem:[#allocation59_spill] sm:$0xff] }
 0x834   : > { %v17928_v35 = vadd.f32 %v8460_v30, %v8226_v22  ;;  %12873 = vmatmul.msk.f32.gmra.mxu3 %vm472_vm1, %v20162_v33  ;;  %v9357_v22 = vld [vmem:[#allocation3 + $0xf0] sm:$0xff] }
 0x837   : > { %v8463_v37 = vpop.f32.mrf.mxu0 }
 0x839   : > { %v7915_v1 = vpop.f32.mrf.mxu2  ;;  %v8185_v18 = vpop.f32.mrf.mxu3 }
 0x83a   : > { %12907 = vmatmul.msk.f32.gmra.mxu0 %vm472_vm1, %v9356_v58  ;;  %v7951_v30 = vadd.f32 %v7915_v1, %v7673_v46  ;;  %v8227_v9 = vadd.f32 %v8185_v18, %v7948_v24  ;;  %v17938_v50 = vpop.f32.mrf.mxu1  ;;  %v8804_v1 = vld [vmem:[#allocation3 + $0x10b] sm:$0xff] }
 0x83b   : > { %12843 = vmatmul.msk.f32.gmra.mxu2 %vm472_vm1, %v8803_v61  ;;  %12941 = vmatmul.msk.f32.gmra.mxu1 %vm472_vm1, %v20163_v42  ;;  %v20165_v18 = vld [vmem:[#allocation70_spill] sm:$0xff]  ;;  %v9358_v61 = vld [vmem:[#allocation3 + $0xf8] sm:$0xff] }
 0x83c   : > { %v17940_v16 = vadd.f32 %v8463_v37, %v8227_v9  ;;  %12874 = vmatmul.msk.f32.gmra.mxu3 %vm472_vm1, %v20164_v0  ;;  %v20166_v9 = vld [vmem:[#allocation103_spill] sm:$0xff] }
 0x83f   : > { %v8466_v26 = vpop.f32.mrf.mxu0 }
 0x841   : > { %v7918_v2 = vpop.f32.mrf.mxu2  ;;  %v8188_v24 = vpop.f32.mrf.mxu3 }
 0x842   : > { %12908 = vmatmul.msk.f32.gmra.mxu0 %vm472_vm1, %v9357_v22  ;;  %v7952_v37 = vadd.f32 %v7918_v2, %v7674_v49  ;;  %v8228_v3 = vadd.f32 %v8188_v24, %v7949_v13  ;;  %v17950_v33 = vpop.f32.mrf.mxu1  ;;  %v8756_v13 = vadd.f32 %v20168_v39, %v20167_v47 }
 0x843   : > { %12844 = vmatmul.msk.f32.gmra.mxu2 %vm472_vm1, %v8804_v1  ;;  %12942 = vmatmul.msk.f32.gmra.mxu1 %vm472_vm1, %v20165_v18  ;;  %v20169_v1 = vld [vmem:[#allocation107_spill] sm:$0xff] }
 0x844   : > { %v17952_v58 = vadd.f32 %v8466_v26, %v8228_v3  ;;  %12875 = vmatmul.msk.f32.gmra.mxu3 %vm472_vm1, %v20166_v9  ;;  %v8805_v3 = vld [vmem:[#allocation3 + $0x113] sm:$0xff]  ;;  %v9359_v9 = vld [vmem:[#allocation3 + $0x108] sm:$0xff] }
 0x845   : > { %v20170_v18 = vld [vmem:[#allocation99_spill] sm:$0xff] }
 0x847   : > { %v8469_v46 = vpop.f32.mrf.mxu0 }
 0x849   : > { %v8938_v42 = vpop.f32.mrf.mxu2  ;;  %v8191_v0 = vpop.f32.mrf.mxu3 }
 0x84a   : > { %12909 = vmatmul.msk.f32.gmra.mxu0 %vm472_vm1, %v9358_v61  ;;  %v9034_v26 = vadd.f32 %v8938_v42, %v8756_v13  ;;  %v8229_v22 = vadd.f32 %v8191_v0, %v7950_v55  ;;  %v17962_v49 = vpop.f32.mrf.mxu1  ;;  %v20171_v61 = vld [vmem:[#allocation109_spill] sm:$0xff] }
 0x84b   : > { %12845 = vmatmul.msk.f32.gmra.mxu2 %vm472_vm1, %v8805_v3  ;;  %12943 = vmatmul.msk.f32.gmra.mxu1 %vm472_vm1, %v20169_v1  ;;  %v8757_v55 = vadd.f32 %v20171_v61, %v17535_v38  ;;  %v8806_v3 = vld [vmem:[#allocation3 + $0x123] sm:$0xff]  ;;  %v8758_v38 = vadd.f32 %v17551_v51, %v17553_v36  ;;  %v8759_v36 = vadd.f32 %v17569_v6, %v17571_v53 }
 0x84c   : > { %v17964_v2 = vadd.f32 %v8469_v46, %v8229_v22  ;;  %12876 = vmatmul.msk.f32.gmra.mxu3 %vm472_vm1, %v20170_v18  ;;  %v20172_v1 = vld [vmem:[#allocation101_spill] sm:$0xff]  ;;  %v20173_v18 = vld [vmem:[#allocation102_spill] sm:$0xff]  ;;  %v20180_v6 = vld [vmem:[#allocation112_spill] sm:$0xff] }
 0x84d   : > { %v20181_v53 = vld [vmem:[#allocation49_spill] sm:$0xff] }
 0x84f   : > { %v8472_v24 = vpop.f32.mrf.mxu0 }
 0x851   : > { %v8941_v47 = vpop.f32.mrf.mxu2  ;;  %v8194_v39 = vpop.f32.mrf.mxu3 }
 0x852   : > { %12910 = vmatmul.msk.f32.gmra.mxu0 %vm472_vm1, %v9359_v9  ;;  %v9035_v46 = vadd.f32 %v8941_v47, %v8757_v55  ;;  %v8230_v13 = vadd.f32 %v8194_v39, %v7951_v30  ;;  %v17974_v42 = vpop.f32.mrf.mxu1  ;;  %v9360_v9 = vld [vmem:[#allocation3 + $0x110] sm:$0xff] }
 0x853   : > { %12846 = vmatmul.msk.f32.gmra.mxu2 %vm472_vm1, %v8806_v3  ;;  %12944 = vmatmul.msk.f32.gmra.mxu1 %vm472_vm1, %v20172_v1  ;;  %v8807_v3 = vld [vmem:[#allocation3 + $0x12b] sm:$0xff]  ;;  %v20174_v1 = vld [vmem:[#allocation108_spill] sm:$0xff] }
 0x854   : > { %v17976_v0 = vadd.f32 %v8472_v24, %v8230_v13  ;;  %12877 = vmatmul.msk.f32.gmra.mxu3 %vm472_vm1, %v20173_v18  ;;  %v20175_v18 = vld [vmem:[#allocation27_spill] sm:$0xff] }
 0x857   : > { %v8475_v22 = vpop.f32.mrf.mxu0 }
 0x859   : > { %v8944_v30 = vpop.f32.mrf.mxu2  ;;  %v8197_v61 = vpop.f32.mrf.mxu3 }
 0x85a   : > { %12911 = vmatmul.msk.f32.gmra.mxu0 %vm472_vm1, %v9360_v9  ;;  %v9036_v24 = vadd.f32 %v8944_v30, %v8758_v38  ;;  %v8231_v55 = vadd.f32 %v8197_v61, %v7952_v37  ;;  %v17986_v47 = vpop.f32.mrf.mxu1  ;;  %v9361_v9 = vld [vmem:[#allocation3 + $0x120] sm:$0xff] }
 0x85b   : > { %12847 = vmatmul.msk.f32.gmra.mxu2 %vm472_vm1, %v8807_v3  ;;  %12945 = vmatmul.msk.f32.gmra.mxu1 %vm472_vm1, %v20174_v1  ;;  %v8808_v3 = vld [vmem:[#allocation3 + $0x13b] sm:$0xff]  ;;  %v20178_v1 = vld [vmem:[#allocation110_spill] sm:$0xff] }
 0x85c   : > { %v17988_v39 = vadd.f32 %v8475_v22, %v8231_v55  ;;  %12878 = vmatmul.msk.f32.gmra.mxu3 %vm472_vm1, %v20175_v18  ;;  %v20179_v18 = vld [vmem:[#allocation86_spill] sm:$0xff] }
 0x85f   : > { %v9495_v13 = vpop.f32.mrf.mxu0 }
 0x861   : > { %v8947_v51 = vpop.f32.mrf.mxu2  ;;  %v9216_v37 = vpop.f32.mrf.mxu3 }
 0x862   : > { %12912 = vmatmul.msk.f32.gmra.mxu0 %vm472_vm1, %v9361_v9  ;;  %v9037_v22 = vadd.f32 %v8947_v51, %v8759_v36  ;;  %v9312_v38 = vadd.f32 %v9216_v37, %v9034_v26  ;;  %v17998_v30 = vpop.f32.mrf.mxu1  ;;  %v9362_v9 = vld [vmem:[#allocation3 + $0x128] sm:$0xff]  ;;  %v8760_v26 = vadd.f32 %v20181_v53, %v20180_v6  ;;  %v20186_v6 = vld [vmem:[#allocation44_spill] sm:$0xff]  ;;  %v20187_v53 = vld [vmem:[#allocation114_spill] sm:$0xff] }
 0x863   : > { %20176 = vst [vmem:[#allocation84_spill] sm:$0xff] %v17998_v30  ;;  %12848 = vmatmul.msk.f32.gmra.mxu2 %vm472_vm1, %v8808_v3  ;;  %12946 = vmatmul.msk.f32.gmra.mxu1 %vm472_vm1, %v20178_v1  ;;  %v20184_v1 = vld [vmem:[#allocation41_spill] sm:$0xff] }
 0x864   : > { %v18000_v61 = vadd.f32 %v9495_v13, %v9312_v38  ;;  %12879 = vmatmul.msk.f32.gmra.mxu3 %vm472_vm1, %v20179_v18  ;;  %v20185_v18 = vld [vmem:[#allocation94_spill] sm:$0xff] }
 0x866   : > { %20177 = vst [vmem:[#allocation20_spill] sm:$0xff] %v18000_v61  ;;  %v8809_v61 = vld [vmem:[#allocation3 + $0x143] sm:$0xff] }
 0x867   : > { %v9498_v55 = vpop.f32.mrf.mxu0 }
 0x869   : > { %v8950_v36 = vpop.f32.mrf.mxu2  ;;  %v9219_v51 = vpop.f32.mrf.mxu3 }
 0x86a   : > { %12913 = vmatmul.msk.f32.gmra.mxu0 %vm472_vm1, %v9362_v9  ;;  %v9038_v13 = vadd.f32 %v8950_v36, %v8760_v26  ;;  %v9313_v37 = vadd.f32 %v9219_v51, %v9035_v46  ;;  %v18010_v38 = vpop.f32.mrf.mxu1  ;;  %v9363_v9 = vld [vmem:[#allocation3 + $0x138] sm:$0xff]  ;;  %v8761_v46 = vadd.f32 %v20187_v53, %v20186_v6 }
 0x86b   : > { %20182 = vst [vmem:[#allocation95_spill] sm:$0xff] %v18010_v38  ;;  %12849 = vmatmul.msk.f32.gmra.mxu2 %vm472_vm1, %v8809_v61  ;;  %12947 = vmatmul.msk.f32.gmra.mxu1 %vm472_vm1, %v20184_v1  ;;  %v20188_v1 = vld [vmem:[#allocation118_spill] sm:$0xff] }
 0x86c   : > { %v18012_v30 = vadd.f32 %v9498_v55, %v9313_v37  ;;  %12880 = vmatmul.msk.f32.gmra.mxu3 %vm472_vm1, %v20185_v18  ;;  %v20189_v18 = vld [vmem:[#allocation81_spill] sm:$0xff] }
 0x86e   : > { %20183 = vst [vmem:[#allocation93_spill] sm:$0xff] %v18012_v30  ;;  %v8810_v30 = vld [vmem:[#allocation3 + $0x153] sm:$0xff] }
 0x86f   : > { %v9501_v3 = vpop.f32.mrf.mxu0 }
 0x871   : > { %v8953_v26 = vpop.f32.mrf.mxu2  ;;  %v9222_v36 = vpop.f32.mrf.mxu3 }
 0x872   : > { %12914 = vmatmul.msk.f32.gmra.mxu0 %vm472_vm1, %v9363_v9  ;;  %v9039_v55 = vadd.f32 %v8953_v26, %v8761_v46  ;;  %v9314_v51 = vadd.f32 %v9222_v36, %v9036_v24  ;;  %v18022_v37 = vpop.f32.mrf.mxu1  ;;  %v9364_v9 = vld [vmem:[#allocation3 + $0x140] sm:$0xff]  ;;  %v8762_v24 = vadd.f32 %v17623_v17, %v17625_v29  ;;  %v20193_v17 = vld [vmem:[#allocation113_spill] sm:$0xff] }
 0x873   : > { %12850 = vmatmul.msk.f32.gmra.mxu2 %vm472_vm1, %v8810_v30  ;;  %12948 = vmatmul.msk.f32.gmra.mxu1 %vm472_vm1, %v20188_v1  ;;  %v20191_v1 = vld [vmem:[#allocation55_spill] sm:$0xff]  ;;  %v8763_v29 = vadd.f32 %v20193_v17, %v17643_v31  ;;  %v20197_v31 = vld [vmem:[#allocation69_spill] sm:$0xff] }
 0x874   : > { %v18024_v38 = vadd.f32 %v9501_v3, %v9314_v51  ;;  %12881 = vmatmul.msk.f32.gmra.mxu3 %vm472_vm1, %v20189_v18  ;;  %v8811_v51 = vld [vmem:[#allocation3 + $0x15b] sm:$0xff]  ;;  %v20192_v18 = vld [vmem:[#allocation105_spill] sm:$0xff] }
 0x877   : > { %v9504_v61 = vpop.f32.mrf.mxu0 }
 0x879   : > { %v8956_v6 = vpop.f32.mrf.mxu2  ;;  %v9225_v53 = vpop.f32.mrf.mxu3 }
 0x87a   : > { %12915 = vmatmul.msk.f32.gmra.mxu0 %vm472_vm1, %v9364_v9  ;;  %v9040_v3 = vadd.f32 %v8956_v6, %v8762_v24  ;;  %v9315_v46 = vadd.f32 %v9225_v53, %v9037_v22  ;;  %v18034_v26 = vpop.f32.mrf.mxu1  ;;  %v9365_v9 = vld [vmem:[#allocation3 + $0x150] sm:$0xff] }
 0x87b   : > { %20190 = vst [vmem:[#allocation85_spill] sm:$0xff] %v18034_v26  ;;  %12851 = vmatmul.msk.f32.gmra.mxu2 %vm472_vm1, %v8811_v51  ;;  %12949 = vmatmul.msk.f32.gmra.mxu1 %vm472_vm1, %v20191_v1  ;;  %v8812_v26 = vld [vmem:[#allocation3 + $0x16b] sm:$0xff]  ;;  %v20195_v1 = vld [vmem:[#allocation116_spill] sm:$0xff] }
 0x87c   : > { %v18036_v36 = vadd.f32 %v9504_v61, %v9315_v46  ;;  %12882 = vmatmul.msk.f32.gmra.mxu3 %vm472_vm1, %v20192_v18  ;;  %v20196_v18 = vld [vmem:[#allocation111_spill] sm:$0xff] }
 0x87f   : > { %v9507_v30 = vpop.f32.mrf.mxu0 }
 0x881   : > { %v8959_v22 = vpop.f32.mrf.mxu2  ;;  %v9228_v24 = vpop.f32.mrf.mxu3 }
 0x882   : > { %12916 = vmatmul.msk.f32.gmra.mxu0 %vm472_vm1, %v9365_v9  ;;  %v9041_v61 = vadd.f32 %v8959_v22, %v8763_v29  ;;  %v9316_v6 = vadd.f32 %v9228_v24, %v9038_v13  ;;  %v18046_v53 = vpop.f32.mrf.mxu1  ;;  %v9366_v9 = vld [vmem:[#allocation3 + $0x158] sm:$0xff]  ;;  %v8764_v13 = vadd.f32 %v20197_v31, %v17661_v40  ;;  %v20201_v40 = vld [vmem:[#allocation117_spill] sm:$0xff] }
 0x883   : > { %20194 = vst [vmem:[#allocation97_spill] sm:$0xff] %v18046_v53  ;;  %12852 = vmatmul.msk.f32.gmra.mxu2 %vm472_vm1, %v8812_v26  ;;  %12950 = vmatmul.msk.f32.gmra.mxu1 %vm472_vm1, %v20195_v1  ;;  %v8813_v53 = vld [vmem:[#allocation3 + $0x173] sm:$0xff]  ;;  %v20199_v1 = vld [vmem:[#allocation61_spill] sm:$0xff] }
 0x884   : > { %v18048_v46 = vadd.f32 %v9507_v30, %v9316_v6  ;;  %12883 = vmatmul.msk.f32.gmra.mxu3 %vm472_vm1, %v20196_v18  ;;  %v20200_v18 = vld [vmem:[#allocation54_spill] sm:$0xff] }
 0x887   : > { %v9510_v51 = vpop.f32.mrf.mxu0 }
 0x889   : > { %v8962_v17 = vpop.f32.mrf.mxu2  ;;  %v9231_v29 = vpop.f32.mrf.mxu3 }
 0x88a   : > { %12917 = vmatmul.msk.f32.gmra.mxu0 %vm472_vm1, %v9366_v9  ;;  %v9042_v30 = vadd.f32 %v8962_v17, %v8764_v13  ;;  %v9317_v22 = vadd.f32 %v9231_v29, %v9039_v55  ;;  %v18058_v24 = vpop.f32.mrf.mxu1  ;;  %v9367_v9 = vld [vmem:[#allocation3 + $0x168] sm:$0xff]  ;;  %v8765_v55 = vadd.f32 %v20201_v40, %v17679_v44  ;;  %v8766_v44 = vadd.f32 %v17695_v20, %v17697_v7  ;;  %v20208_v7 = vld [vmem:[#allocation60_spill] sm:$0xff] }
 0x88b   : > { %20198 = vst [vmem:[#allocation33_spill] sm:$0xff] %v18058_v24  ;;  %12853 = vmatmul.msk.f32.gmra.mxu2 %vm472_vm1, %v8813_v53  ;;  %12951 = vmatmul.msk.f32.gmra.mxu1 %vm472_vm1, %v20199_v1  ;;  %v8814_v24 = vld [vmem:[#allocation3 + $0x183] sm:$0xff]  ;;  %v20202_v1 = vld [vmem:[#allocation115_spill] sm:$0xff] }
 0x88c   : > { %v18060_v6 = vadd.f32 %v9510_v51, %v9317_v22  ;;  %12884 = vmatmul.msk.f32.gmra.mxu3 %vm472_vm1, %v20200_v18  ;;  %v20203_v18 = vld [vmem:[#allocation46_spill] sm:$0xff]  ;;  %v20209_v20 = vld [vmem:[#allocation72_spill] sm:$0xff] }
 0x88f   : > { %v9513_v26 = vpop.f32.mrf.mxu0 }
 0x891   : > { %v8965_v31 = vpop.f32.mrf.mxu2  ;;  %v9234_v13 = vpop.f32.mrf.mxu3 }
 0x892   : > { %12918 = vmatmul.msk.f32.gmra.mxu0 %vm472_vm1, %v9367_v9  ;;  %v9043_v51 = vadd.f32 %v8965_v31, %v8765_v55  ;;  %v9318_v17 = vadd.f32 %v9234_v13, %v9040_v3  ;;  %v18070_v29 = vpop.f32.mrf.mxu1  ;;  %v9368_v9 = vld [vmem:[#allocation3 + $0x170] sm:$0xff] }
 0x893   : > { %12854 = vmatmul.msk.f32.gmra.mxu2 %vm472_vm1, %v8814_v24  ;;  %12952 = vmatmul.msk.f32.gmra.mxu1 %vm472_vm1, %v20202_v1  ;;  %v20206_v1 = vld [vmem:[#allocation62_spill] sm:$0xff] }
 0x894   : > { %v18072_v22 = vadd.f32 %v9513_v26, %v9318_v17  ;;  %12885 = vmatmul.msk.f32.gmra.mxu3 %vm472_vm1, %v20203_v18  ;;  %v8815_v17 = vld [vmem:[#allocation3 + $0x18b] sm:$0xff]  ;;  %v20207_v18 = vld [vmem:[#allocation32_spill] sm:$0xff] }
 0x897   : > { %v9516_v53 = vpop.f32.mrf.mxu0 }
 0x899   : > { %v8968_v3 = vpop.f32.mrf.mxu2  ;;  %v9237_v40 = vpop.f32.mrf.mxu3 }
 0x89a   : > { %12919 = vmatmul.msk.f32.gmra.mxu0 %vm472_vm1, %v9368_v9  ;;  %v9044_v26 = vadd.f32 %v8968_v3, %v8766_v44  ;;  %v9319_v55 = vadd.f32 %v9237_v40, %v9041_v61  ;;  %v18082_v31 = vpop.f32.mrf.mxu1  ;;  %v9369_v9 = vld [vmem:[#allocation3 + $0x180] sm:$0xff]  ;;  %v8767_v61 = vadd.f32 %v20209_v20, %v20208_v7  ;;  %v20215_v20 = vld [vmem:[#allocation91_spill] sm:$0xff] }
 0x89b   : > { %20204 = vst [vmem:[#allocation23_spill] sm:$0xff] %v18082_v31  ;;  %12855 = vmatmul.msk.f32.gmra.mxu2 %vm472_vm1, %v8815_v17  ;;  %12953 = vmatmul.msk.f32.gmra.mxu1 %vm472_vm1, %v20206_v1  ;;  %v20212_v1 = vld [vmem:[#allocation77_spill] sm:$0xff]  ;;  %v20214_v7 = vld [vmem:[#allocation68_spill] sm:$0xff] }
 0x89c   : > { %v18084_v13 = vadd.f32 %v9516_v53, %v9319_v55  ;;  %12886 = vmatmul.msk.f32.gmra.mxu3 %vm472_vm1, %v20207_v18  ;;  %v20213_v18 = vld [vmem:[#allocation52_spill] sm:$0xff] }
 0x89e   : > { %20205 = vst [vmem:[#allocation8_spill] sm:$0xff] %v18084_v13  ;;  %v8816_v13 = vld [vmem:[#allocation3 + $0x19b] sm:$0xff] }
 0x89f   : > { %v9519_v24 = vpop.f32.mrf.mxu0 }
 0x8a1   : > { %v8971_v44 = vpop.f32.mrf.mxu2  ;;  %v9240_v3 = vpop.f32.mrf.mxu3 }
 0x8a2   : > { %12920 = vmatmul.msk.f32.gmra.mxu0 %vm472_vm1, %v9369_v9  ;;  %v9045_v53 = vadd.f32 %v8971_v44, %v8767_v61  ;;  %v9320_v40 = vadd.f32 %v9240_v3, %v9042_v30  ;;  %v18094_v55 = vpop.f32.mrf.mxu1  ;;  %v9370_v9 = vld [vmem:[#allocation3 + $0x188] sm:$0xff]  ;;  %v8768_v30 = vadd.f32 %v20215_v20, %v20214_v7  ;;  %v20219_v7 = vld [vmem:[#allocation79_spill] sm:$0xff] }
 0x8a3   : > { %20210 = vst [vmem:[#allocation11_spill] sm:$0xff] %v18094_v55  ;;  %12856 = vmatmul.msk.f32.gmra.mxu2 %vm472_vm1, %v8816_v13  ;;  %12954 = vmatmul.msk.f32.gmra.mxu1 %vm472_vm1, %v20212_v1  ;;  %v20217_v1 = vld [vmem:[#allocation119_spill] sm:$0xff] }
 0x8a4   : > { %v18096_v31 = vadd.f32 %v9519_v24, %v9320_v40  ;;  %12887 = vmatmul.msk.f32.gmra.mxu3 %vm472_vm1, %v20213_v18  ;;  %v20218_v18 = vld [vmem:[#allocation66_spill] sm:$0xff] }
 0x8a6   : > { %20211 = vst [vmem:[#allocation48_spill] sm:$0xff] %v18096_v31  ;;  %v8817_v31 = vld [vmem:[#allocation3 + $0x1a3] sm:$0xff] }
 0x8a7   : > { %v9522_v17 = vpop.f32.mrf.mxu0 }
 0x8a9   : > { %v8974_v61 = vpop.f32.mrf.mxu2  ;;  %v9243_v44 = vpop.f32.mrf.mxu3 }
 0x8aa   : > { %12921 = vmatmul.msk.f32.gmra.mxu0 %vm472_vm1, %v9370_v9  ;;  %v9046_v24 = vadd.f32 %v8974_v61, %v8768_v30  ;;  %v9321_v3 = vadd.f32 %v9243_v44, %v9043_v51  ;;  %v18106_v40 = vpop.f32.mrf.mxu1  ;;  %v9371_v9 = vld [vmem:[#allocation3 + $0x198] sm:$0xff]  ;;  %v8769_v51 = vadd.f32 %v20219_v7, %v17752_v62  ;;  %v8770_v62 = vadd.f32 %v17773_v21, %v17777_v28 }
 0x8ab   : > { %20216 = vst [vmem:[#allocation17_spill] sm:$0xff] %v18106_v40  ;;  %12857 = vmatmul.msk.f32.gmra.mxu2 %vm472_vm1, %v8817_v31  ;;  %12955 = vmatmul.msk.f32.gmra.mxu1 %vm472_vm1, %v20217_v1  ;;  %v9649_v1 = vld [vmem:[#allocation3 + $0x199] sm:$0xff]  ;;  %v8771_v21 = vadd.f32 %v17792_v23, %v17794_v4  ;;  %v8772_v23 = vadd.f32 %v17806_v12, %v17808_v25 }
 0x8ac   : > { %v18108_v55 = vadd.f32 %v9522_v17, %v9321_v3  ;;  %12888 = vmatmul.msk.f32.gmra.mxu3 %vm472_vm1, %v20218_v18  ;;  %v8818_v3 = vld [vmem:[#allocation3 + $0x1b3] sm:$0xff]  ;;  %v20222_v18 = vld [vmem:[#allocation80_spill] sm:$0xff]  ;;  %v8773_v25 = vadd.f32 %v17818_v63, %v17820_v56 }
 0x8ad   : > { %v10996_v12 = vld [vmem:[#allocation4 + $0x1b] sm:$0xff] }
 0x8ae   : > { %v10836_v63 = vld [vmem:[#allocation4 + $0x3a] sm:$0xff] }
 0x8af   : > { %v9525_v13 = vpop.f32.mrf.mxu0  ;;  %v10869_v56 = vld [vmem:[#allocation4 + $0x21] sm:$0xff] }
 0x8b1   : > { %v8977_v20 = vpop.f32.mrf.mxu2  ;;  %v9246_v30 = vpop.f32.mrf.mxu3 }
 0x8b2   : > { %12922 = vmatmul.msk.f32.gmra.mxu0 %vm472_vm1, %v9371_v9  ;;  %v9047_v17 = vadd.f32 %v8977_v20, %v8769_v51  ;;  %v9322_v61 = vadd.f32 %v9246_v30, %v9044_v26  ;;  %v18118_v44 = vpop.f32.mrf.mxu1  ;;  %v9372_v9 = vld [vmem:[#allocation3 + $0x1a0] sm:$0xff] }
 0x8b3   : > { %20220 = vst [vmem:[#allocation10_spill] sm:$0xff] %v18118_v44  ;;  %12858 = vmatmul.msk.f32.gmra.mxu2 %vm472_vm1, %v8818_v3  ;;  %12956 = vmatmul.msk.f32.gmra.mxu1 %vm472_vm1, %v9649_v1  ;;  %v8819_v30 = vld [vmem:[#allocation3 + $0x1bb] sm:$0xff] }
 0x8b4   : > { %v18120_v31 = vadd.f32 %v9525_v13, %v9322_v61  ;;  %12889 = vmatmul.msk.f32.gmra.mxu3 %vm472_vm1, %v20222_v18  ;;  %v9650_v1 = vld [vmem:[#allocation3 + $0x1a1] sm:$0xff] }
 0x8b5   : > { %v20225_v18 = vld [vmem:[#allocation57_spill] sm:$0xff] }
 0x8b6   : > { %20221 = vst [vmem:[#allocation38_spill] sm:$0xff] %v18120_v31 }
 0x8b7   : > { %v9528_v40 = vpop.f32.mrf.mxu0 }
 0x8b9   : > { %v8980_v26 = vpop.f32.mrf.mxu2  ;;  %v9249_v7 = vpop.f32.mrf.mxu3 }
 0x8ba   : > { %12923 = vmatmul.msk.f32.gmra.mxu0 %vm472_vm1, %v9372_v9  ;;  %v9048_v51 = vadd.f32 %v8980_v26, %v8770_v62  ;;  %v9323_v13 = vadd.f32 %v9249_v7, %v9045_v53  ;;  %v18129_v20 = vpop.f32.mrf.mxu1  ;;  %v20226_v9 = vld [vmem:[#allocation75_spill] sm:$0xff] }
 0x8bb   : > { %20223 = vst [vmem:[#allocation100_spill] sm:$0xff] %v18129_v20  ;;  %12859 = vmatmul.msk.f32.gmra.mxu2 %vm472_vm1, %v8819_v30  ;;  %12957 = vmatmul.msk.f32.gmra.mxu1 %vm472_vm1, %v9650_v1  ;;  %v9901_v30 = vld [vmem:[#allocation3 + $0x62] sm:$0xff] }
 0x8bc   : > { %v18131_v61 = vadd.f32 %v9528_v40, %v9323_v13  ;;  %12890 = vmatmul.msk.f32.gmra.mxu3 %vm472_vm1, %v20225_v18  ;;  %v20229_v1 = vld [vmem:[#allocation9_spill] sm:$0xff]  ;;  %v20230_v18 = vld [vmem:[#allocation63_spill] sm:$0xff] }
 0x8be   : > { %20224 = vst [vmem:[#allocation13_spill] sm:$0xff] %v18131_v61  ;;  %v11124_v61 = vld [vmem:[#allocation4 + $0x33] sm:$0xff] }
 0x8bf   : > { %v9531_v3 = vpop.f32.mrf.mxu0 }
 0x8c1   : > { %v8983_v28 = vpop.f32.mrf.mxu2  ;;  %v9252_v53 = vpop.f32.mrf.mxu3 }
 0x8c2   : > { %12924 = vmatmul.msk.f32.gmra.mxu0 %vm472_vm1, %v20226_v9  ;;  %v18141_v62 = vadd.f32 %v8983_v28, %v8771_v21  ;;  %v9324_v40 = vadd.f32 %v9252_v53, %v9046_v24  ;;  %v18143_v26 = vpop.f32.mrf.mxu1  ;;  %v9096_v28 = vld [vmem:[#allocation3 + $0x1b4] sm:$0xff]  ;;  %v9375_v53 = vld [vmem:[#allocation3 + $0x1c8] sm:$0xff] }
 0x8c3   : > { %20227 = vst [vmem:[#allocation65_spill] sm:$0xff] %v18143_v26  ;;  %12964 = vmatmul.msk.f32.vlgmr.msrb.gmra.mxu2 %vm472_vm1, %v9901_v30  ;;  %12958 = vmatmul.msk.f32.gmra.mxu1 %vm472_vm1, %v20230_v18  ;;  %v10835_v18 = vld [vmem:[#allocation4 + $0x32] sm:$0xff] }
 0x8c4   : > { %v18145_v7 = vadd.f32 %v9531_v3, %v9324_v40  ;;  %12891 = vmatmul.msk.f32.gmra.mxu3 %vm472_vm1, %v20229_v1  ;;  %v9902_v40 = vld [vmem:[#allocation3 + $0x6a] sm:$0xff]  ;;  %v10868_v26 = vld [vmem:[#allocation4 + $0x19] sm:$0xff] }
 0x8c6   : > { %20228 = vst [vmem:[#allocation53_spill] sm:$0xff] %v18145_v7  ;;  %v10932_v7 = vld [vmem:[#allocation4 + $0x1a] sm:$0xff] }
 0x8c7   : > { %v9534_v13 = vpop.f32.mrf.mxu0 }
 0x8c9   : > { %v8986_v4 = vpop.f32.mrf.mxu2  ;;  %v9255_v24 = vpop.f32.mrf.mxu3 }
 0x8ca   : > { %12925 = vmatmul.msk.f32.gmra.mxu0 %vm472_vm1, %v17775_v32  ;;  %v18156_v3 = vadd.f32 %v8986_v4, %v8772_v23  ;;  %v9325_v9 = vadd.f32 %v9255_v24, %v9047_v17  ;;  %v18158_v21 = vpop.f32.mrf.mxu1  ;;  %v10900_v32 = vmax.f32 %v10835_v18, %v10868_v26  ;;  %v11060_v23 = vld [vmem:[#allocation4 + $0x31] sm:$0xff]  ;;  %v9097_v26 = vld [vmem:[#allocation3 + $0x1bc] sm:$0xff] }
 0x8cb   : > { %20231 = vst [vmem:[#allocation88_spill] sm:$0xff] %v18158_v21  ;;  %12965 = vmatmul.msk.f32.gmra.mxu2 %vm472_vm1, %v9902_v40  ;;  %12959 = vmatmul.msk.f32.gmra.mxu1 %vm472_vm1, %v17779_v59  ;;  %v9903_v21 = vld [vmem:[#allocation3 + $0x7a] sm:$0xff]  ;;  %v9653_v59 = vld [vmem:[#allocation3 + $0x1c9] sm:$0xff] }
 0x8cc   : > { %v18160_v30 = vadd.f32 %v9534_v13, %v9325_v9  ;;  %12892 = vmatmul.msk.f32.gmra.mxu3 %vm472_vm1, %v9096_v28  ;;  %v10964_v17 = vmax.f32 %v10900_v32, %v10932_v7  ;;  %v10933_v7 = vld [vmem:[#allocation4 + $0x22] sm:$0xff]  ;;  %v10901_v32 = vmax.f32 %v10836_v63, %v10869_v56  ;;  %v9654_v56 = vld [vmem:[#allocation3 + $0x1d1] sm:$0xff] }
 0x8ce   : > { %20232 = vst [vmem:[#allocation90_spill] sm:$0xff] %v18160_v30  ;;  %v11028_v9 = vmax.f32 %v10964_v17, %v10996_v12  ;;  %v9376_v30 = vld [vmem:[#allocation3 + $0x1d0] sm:$0xff]  ;;  %v10997_v12 = vld [vmem:[#allocation4 + $0x23] sm:$0xff]  ;;  %v10965_v17 = vmax.f32 %v10901_v32, %v10933_v7 }
 0x8cf   : > { %v9537_v1 = vpop.f32.mrf.mxu0  ;;  %v20235_v32 = vld [vmem:[#allocation92_spill] sm:$0xff] }
 0x8d0   : > { %v11092_v20 = vmax.f32 %v11028_v9, %v11060_v23 }
 0x8d1   : > { %v8989_v13 = vpop.f32.mrf.mxu2  ;;  %v9258_v4 = vpop.f32.mrf.mxu3 }
 0x8d2   : > { %12926 = vmatmul.msk.f32.gmra.mxu0 %vm472_vm1, %v9375_v53  ;;  %v18169_v24 = vadd.f32 %v8989_v13, %v8773_v25  ;;  %v9326_v40 = vadd.f32 %v9258_v4, %v9048_v51  ;;  %v18171_v28 = vpop.f32.mrf.mxu1  ;;  %v11156_v51 = vmax.f32 %v11092_v20, %v11124_v61  ;;  %v18179_v25 = vld [vmem:[#allocation4 + $0x49] sm:$0xff]  ;;  %v11061_v4 = vld [vmem:[#allocation4 + $0x39] sm:$0xff] }
 0x8d3   : > { %20233 = vst [vmem:[#allocation98_spill] sm:$0xff] %v18171_v28  ;;  %12966 = vmatmul.msk.f32.gmra.mxu2 %vm472_vm1, %v9903_v21  ;;  %12960 = vmatmul.msk.f32.gmra.mxu1 %vm472_vm1, %v9653_v59  ;;  %v11029_v21 = vmax.f32 %v10965_v17, %v10997_v12  ;;  %v18200_v17 = vld [vmem:[#allocation4 + $0x51] sm:$0xff] }
 0x8d4   : > { %v18173_v53 = vadd.f32 %v9537_v1, %v9326_v40  ;;  %12893 = vmatmul.msk.f32.gmra.mxu3 %vm472_vm1, %v9097_v26  ;;  %v8774_v1 = vadd.f32 %v17830_v41, %v17832_v15  ;;  %v11221_v59 = vmax.f32 %v11156_v51, %v18179_v25  ;;  %v9904_v15 = vld [vmem:[#allocation3 + $0x82] sm:$0xff] }
 0x8d5   : > { %v11093_v28 = vmax.f32 %v11029_v21, %v11061_v4 }
 0x8d6   : > { %20234 = vst [vmem:[#allocation82_spill] sm:$0xff] %v18173_v53  ;;  %v11125_v53 = vld [vmem:[#allocation4 + $0x3b] sm:$0xff] }
 0x8d7   : > { %v9540_v44 = vpop.f32.mrf.mxu0  ;;  %v11157_v12 = vmax.f32 %v11093_v28, %v11125_v53 }
 0x8d9   : > { %v8992_v13 = vpop.f32.mrf.mxu2  ;;  %v9261_v9 = vpop.f32.mrf.mxu3 }
 0x8da   : > { %12927 = vmatmul.msk.f32.gmra.mxu0 %vm472_vm1, %v9376_v30  ;;  %v18183_v40 = vadd.f32 %v8992_v13, %v8774_v1  ;;  %v9327_v26 = vadd.f32 %v9261_v9, %v18141_v62  ;;  %v18187_v20 = vpop.f32.mrf.mxu1  ;;  %v18189_v30 = vld [vmem:[#allocation4 + $0x4a] sm:$0xff] }
 0x8db   : > { %v10902_v7 = vmax.f32 %v18189_v30, %v11060_v23  ;;  %12967 = vmatmul.msk.f32.gmra.mxu2 %vm472_vm1, %v9904_v15  ;;  %v10457_v62 = vld [vmem:[#allocation3 + $0x64] sm:$0xff]  ;;  %12961 = vmatmul.msk.f32.gmra.mxu1 %vm472_vm1, %v9654_v56  ;;  %v11285_v51 = vmax.f32 %v11221_v59, %v18189_v30  ;;  %v8775_v23 = vadd.f32 %v17842_v60, %v17844_v10  ;;  %v9905_v60 = vld [vmem:[#allocation3 + $0x92] sm:$0xff] }
 0x8dc   : > { %v18191_v31 = vadd.f32 %v9540_v44, %v9327_v26  ;;  %12998 = vmatmul.msk.f32.vlgmr.msrb.gmra.mxu3 %vm472_vm1, %v20235_v32  ;;  %v11317_v44 = vld [vmem:[#allocation4 + $0x4b] sm:$0xff]  ;;  %v11222_v59 = vmax.f32 %v11157_v12, %v18200_v17 }
 0x8dd   : > { %v10966_v1 = vmax.f32 %v10902_v7, %v10835_v18  ;;  %v11349_v56 = vmax.f32 %v11285_v51, %v11317_v44  ;;  %v18211_v7 = vld [vmem:[#allocation4 + $0x52] sm:$0xff] }
 0x8de   : > { %v10903_v10 = vmax.f32 %v18211_v7, %v11061_v4  ;;  %v11286_v51 = vmax.f32 %v11222_v59, %v18211_v7  ;;  %v8776_v4 = vadd.f32 %v17854_v48, %v17856_v52  ;;  %v9906_v52 = vld [vmem:[#allocation3 + $0x9a] sm:$0xff] }
 0x8df   : > { %v9543_v41 = vpop.f32.mrf.mxu0  ;;  %v11030_v9 = vmax.f32 %v10966_v1, %v11124_v61  ;;  %v20236_v61 = vld [vmem:[#allocation74_spill] sm:$0xff] }
 0x8e0   : > { %v10967_v1 = vmax.f32 %v10903_v10, %v10836_v63  ;;  %v18236_v10 = vld [vmem:[#allocation4 + $0x62] sm:$0xff] }
 0x8e1   : > { %v8995_v13 = vpop.f32.mrf.mxu2  ;;  %v9264_v21 = vpop.f32.mrf.mxu3  ;;  %v11094_v18 = vmax.f32 %v11030_v9, %v18179_v25 }
 0x8e2   : > { %13032 = vmatmul.msk.f32.vlgmr.msrb.gmra.mxu0 %vm472_vm1, %v10457_v62  ;;  %v18204_v26 = vadd.f32 %v8995_v13, %v8775_v23  ;;  %v9328_v15 = vadd.f32 %v9264_v21, %v18156_v3  ;;  %v18209_v28 = vpop.f32.mrf.mxu1  ;;  %v10458_v3 = vld [vmem:[#allocation3 + $0x6c] sm:$0xff]  ;;  %v18224_v23 = vld [vmem:[#allocation4 + $0x61] sm:$0xff]  ;;  %v11031_v9 = vmax.f32 %v10967_v1, %v11125_v53  ;;  %v10904_v53 = vmax.f32 %v18236_v10, %v18179_v25 }
 0x8e3   : > { %12968 = vmatmul.msk.f32.gmra.mxu2 %vm472_vm1, %v9905_v60  ;;  %13065 = vmatmul.msk.f32.vlgmr.msrb.gmra.mxu1 %vm472_vm1, %v11349_v56  ;;  %v11158_v12 = vmax.f32 %v11094_v18, %v11317_v44  ;;  %v18249_v1 = vld [vmem:[#allocation4 + $0x63] sm:$0xff]  ;;  %v8777_v25 = vadd.f32 %v17866_v54, %v17868_v5 }
 0x8e4   : > { %v18213_v32 = vadd.f32 %v9543_v41, %v9328_v15  ;;  %12999 = vmatmul.msk.f32.gmra.mxu3 %vm472_vm1, %v20236_v61  ;;  %v18222_v41 = vld [vmem:[#allocation4 + $0x53] sm:$0xff]  ;;  %v11095_v18 = vmax.f32 %v11031_v9, %v18200_v17  ;;  %v9907_v5 = vld [vmem:[#allocation3 + $0xaa] sm:$0xff] }
 0x8e5   : > { %v11350_v59 = vmax.f32 %v11286_v51, %v18222_v41  ;;  %v11223_v63 = vmax.f32 %v11158_v12, %v18224_v23 }
 0x8e6   : > { %v11159_v12 = vmax.f32 %v11095_v18, %v18222_v41 }
 0x8e7   : > { %v9546_v62 = vpop.f32.mrf.mxu0  ;;  %v11287_v51 = vmax.f32 %v11223_v63, %v18236_v10 }
 0x8e9   : > { %v8998_v13 = vpop.f32.mrf.mxu2  ;;  %v9267_v21 = vpop.f32.mrf.mxu3  ;;  %v11351_v63 = vmax.f32 %v11287_v51, %v18249_v1 }
 0x8ea   : > { %13033 = vmatmul.msk.f32.gmra.mxu0 %vm472_vm1, %v10458_v3  ;;  %v18228_v15 = vadd.f32 %v8998_v13, %v8776_v4  ;;  %v9329_v56 = vadd.f32 %v9267_v21, %v18169_v24  ;;  %v18234_v60 = vpop.f32.mrf.mxu1  ;;  %v13184_v24 = vld [vmem:[#allocation3 + $0x7b] sm:$0xff]  ;;  %v18251_v4 = vld [vmem:[#allocation4 + $0x69] sm:$0xff] }
 0x8eb   : > { %12969 = vmatmul.msk.f32.gmra.mxu2 %vm472_vm1, %v9906_v52  ;;  %v10459_v3 = vld [vmem:[#allocation3 + $0x7c] sm:$0xff]  ;;  %13066 = vmatmul.msk.f32.gmra.mxu1 %vm472_vm1, %v11350_v59 }
 0x8ec   : > { %v18238_v61 = vadd.f32 %v9546_v62, %v9329_v56  ;;  %13000 = vmatmul.msk.f32.gmra.mxu3 %vm472_vm1, %v13184_v24  ;;  %v10968_v62 = vmax.f32 %v10904_v53, %v18189_v30  ;;  %v11224_v30 = vmax.f32 %v11159_v12, %v18251_v4  ;;  %v18263_v53 = vld [vmem:[#allocation4 + $0x6a] sm:$0xff] }
 0x8ee   : > { %v11032_v9 = vmax.f32 %v10968_v62, %v11317_v44  ;;  %v10905_v44 = vmax.f32 %v18263_v53, %v18200_v17  ;;  %v11288_v51 = vmax.f32 %v11224_v30, %v18263_v53  ;;  %v18276_v62 = vld [vmem:[#allocation4 + $0x6b] sm:$0xff]  ;;  %v8778_v17 = vadd.f32 %v17878_v14, %v17880_v45 }
 0x8ef   : > { %v9549_v48 = vpop.f32.mrf.mxu0  ;;  %v9908_v45 = vld [vmem:[#allocation3 + $0xb2] sm:$0xff] }
 0x8f0   : > { %v11096_v18 = vmax.f32 %v11032_v9, %v18224_v23  ;;  %v11352_v30 = vmax.f32 %v11288_v51, %v18276_v62 }
 0x8f1   : > { %v9001_v13 = vpop.f32.mrf.mxu2  ;;  %v9270_v21 = vpop.f32.mrf.mxu3 }
 0x8f2   : > { %13034 = vmatmul.msk.f32.gmra.mxu0 %vm472_vm1, %v10459_v3  ;;  %v18255_v56 = vadd.f32 %v9001_v13, %v8777_v25  ;;  %v9330_v59 = vadd.f32 %v9270_v21, %v18183_v40  ;;  %v18261_v52 = vpop.f32.mrf.mxu1  ;;  %v13185_v40 = vld [vmem:[#allocation3 + $0x83] sm:$0xff]  ;;  %v11160_v12 = vmax.f32 %v11096_v18, %v18249_v1  ;;  %v18278_v25 = vld [vmem:[#allocation4 + $0x79] sm:$0xff] }
 0x8f3   : > { %12970 = vmatmul.msk.f32.gmra.mxu2 %vm472_vm1, %v9907_v5  ;;  %v10460_v3 = vld [vmem:[#allocation3 + $0x84] sm:$0xff]  ;;  %13067 = vmatmul.msk.f32.gmra.mxu1 %vm472_vm1, %v11351_v63 }
 0x8f4   : > { %v18265_v24 = vadd.f32 %v9549_v48, %v9330_v59  ;;  %13001 = vmatmul.msk.f32.gmra.mxu3 %vm472_vm1, %v13185_v40  ;;  %v10969_v48 = vmax.f32 %v10905_v44, %v18211_v7  ;;  %v11225_v7 = vmax.f32 %v11160_v12, %v18278_v25  ;;  %v18291_v44 = vld [vmem:[#allocation4 + $0x7a] sm:$0xff] }
 0x8f6   : > { %v11033_v9 = vmax.f32 %v10969_v48, %v18222_v41  ;;  %v10906_v41 = vmax.f32 %v18291_v44, %v18224_v23  ;;  %v11289_v51 = vmax.f32 %v11225_v7, %v18291_v44  ;;  %v18304_v48 = vld [vmem:[#allocation4 + $0x7b] sm:$0xff]  ;;  %v8779_v23 = vadd.f32 %v17890_v27, %v17892_v57 }
 0x8f7   : > { %v9552_v54 = vpop.f32.mrf.mxu0  ;;  %v9909_v57 = vld [vmem:[#allocation3 + $0xc2] sm:$0xff] }
 0x8f8   : > { %v11097_v18 = vmax.f32 %v11033_v9, %v18251_v4  ;;  %v11353_v7 = vmax.f32 %v11289_v51, %v18304_v48 }
 0x8f9   : > { %v9004_v13 = vpop.f32.mrf.mxu2  ;;  %v9273_v21 = vpop.f32.mrf.mxu3 }
 0x8fa   : > { %13035 = vmatmul.msk.f32.gmra.mxu0 %vm472_vm1, %v10460_v3  ;;  %v18283_v59 = vadd.f32 %v9004_v13, %v8778_v17  ;;  %v9331_v63 = vadd.f32 %v9273_v21, %v18204_v26  ;;  %v18289_v5 = vpop.f32.mrf.mxu1  ;;  %v10183_v3 = vld [vmem:[#allocation3 + $0x93] sm:$0xff]  ;;  %v11161_v12 = vmax.f32 %v11097_v18, %v18276_v62  ;;  %v18306_v17 = vld [vmem:[#allocation4 + $0x81] sm:$0xff] }
 0x8fb   : > { %12971 = vmatmul.msk.f32.gmra.mxu2 %vm472_vm1, %v9908_v45  ;;  %v10461_v26 = vld [vmem:[#allocation3 + $0x94] sm:$0xff]  ;;  %13068 = vmatmul.msk.f32.gmra.mxu1 %vm472_vm1, %v11352_v30 }
 0x8fc   : > { %v18293_v40 = vadd.f32 %v9552_v54, %v9331_v63  ;;  %13002 = vmatmul.msk.f32.gmra.mxu3 %vm472_vm1, %v10183_v3  ;;  %v10970_v54 = vmax.f32 %v10906_v41, %v18236_v10  ;;  %v11226_v10 = vmax.f32 %v11161_v12, %v18306_v17  ;;  %v18319_v41 = vld [vmem:[#allocation4 + $0x82] sm:$0xff] }
 0x8fe   : > { %v11034_v9 = vmax.f32 %v10970_v54, %v18249_v1  ;;  %v10907_v1 = vmax.f32 %v18319_v41, %v18251_v4  ;;  %v11290_v51 = vmax.f32 %v11226_v10, %v18319_v41  ;;  %v18332_v54 = vld [vmem:[#allocation4 + $0x83] sm:$0xff]  ;;  %v8780_v4 = vadd.f32 %v17902_v43, %v17904_v19 }
 0x8ff   : > { %v9555_v14 = vpop.f32.mrf.mxu0  ;;  %v9910_v19 = vld [vmem:[#allocation3 + $0xca] sm:$0xff] }
 0x900   : > { %v11098_v18 = vmax.f32 %v11034_v9, %v18278_v25  ;;  %v11354_v10 = vmax.f32 %v11290_v51, %v18332_v54 }
 0x901   : > { %v9007_v13 = vpop.f32.mrf.mxu2  ;;  %v9276_v21 = vpop.f32.mrf.mxu3 }
 0x902   : > { %13036 = vmatmul.msk.f32.gmra.mxu0 %vm472_vm1, %v10461_v26  ;;  %v18311_v63 = vadd.f32 %v9007_v13, %v8779_v23  ;;  %v9332_v30 = vadd.f32 %v9276_v21, %v18228_v15  ;;  %v18317_v45 = vpop.f32.mrf.mxu1  ;;  %v10184_v26 = vld [vmem:[#allocation3 + $0x9b] sm:$0xff]  ;;  %v11162_v12 = vmax.f32 %v11098_v18, %v18304_v48  ;;  %v18334_v23 = vld [vmem:[#allocation4 + $0x91] sm:$0xff] }
 0x903   : > { %12972 = vmatmul.msk.f32.gmra.mxu2 %vm472_vm1, %v9909_v57  ;;  %v10462_v15 = vld [vmem:[#allocation3 + $0x9c] sm:$0xff]  ;;  %13069 = vmatmul.msk.f32.gmra.mxu1 %vm472_vm1, %v11353_v7 }
 0x904   : > { %v18321_v3 = vadd.f32 %v9555_v14, %v9332_v30  ;;  %13003 = vmatmul.msk.f32.gmra.mxu3 %vm472_vm1, %v10184_v26  ;;  %v10971_v14 = vmax.f32 %v10907_v1, %v18263_v53  ;;  %v11227_v53 = vmax.f32 %v11162_v12, %v18334_v23  ;;  %v18347_v1 = vld [vmem:[#allocation4 + $0x92] sm:$0xff] }
 0x906   : > { %v11035_v9 = vmax.f32 %v10971_v14, %v18276_v62  ;;  %v10908_v62 = vmax.f32 %v18347_v1, %v18278_v25  ;;  %v11291_v51 = vmax.f32 %v11227_v53, %v18347_v1  ;;  %v18360_v14 = vld [vmem:[#allocation4 + $0x93] sm:$0xff]  ;;  %v8781_v25 = vadd.f32 %v17914_v11, %v17916_v34 }
 0x907   : > { %v9558_v27 = vpop.f32.mrf.mxu0  ;;  %v9911_v34 = vld [vmem:[#allocation3 + $0xda] sm:$0xff] }
 0x908   : > { %v11099_v18 = vmax.f32 %v11035_v9, %v18306_v17  ;;  %v11355_v53 = vmax.f32 %v11291_v51, %v18360_v14 }
 0x909   : > { %v9010_v13 = vpop.f32.mrf.mxu2  ;;  %v9279_v21 = vpop.f32.mrf.mxu3 }
 0x90a   : > { %13037 = vmatmul.msk.f32.gmra.mxu0 %vm472_vm1, %v10462_v15  ;;  %v18339_v30 = vadd.f32 %v9010_v13, %v8780_v4  ;;  %v9333_v7 = vadd.f32 %v9279_v21, %v18255_v56  ;;  %v18345_v57 = vpop.f32.mrf.mxu1  ;;  %v10185_v15 = vld [vmem:[#allocation3 + $0xab] sm:$0xff]  ;;  %v11163_v12 = vmax.f32 %v11099_v18, %v18332_v54  ;;  %v18362_v4 = vld [vmem:[#allocation4 + $0x99] sm:$0xff] }
 0x90b   : > { %12973 = vmatmul.msk.f32.gmra.mxu2 %vm472_vm1, %v9910_v19  ;;  %v10463_v56 = vld [vmem:[#allocation3 + $0xac] sm:$0xff]  ;;  %13070 = vmatmul.msk.f32.gmra.mxu1 %vm472_vm1, %v11354_v10 }
 0x90c   : > { %v18349_v26 = vadd.f32 %v9558_v27, %v9333_v7  ;;  %13004 = vmatmul.msk.f32.gmra.mxu3 %vm472_vm1, %v10185_v15  ;;  %v10972_v27 = vmax.f32 %v10908_v62, %v18291_v44  ;;  %v11228_v44 = vmax.f32 %v11163_v12, %v18362_v4  ;;  %v18375_v62 = vld [vmem:[#allocation4 + $0x9a] sm:$0xff] }
 0x90e   : > { %v11036_v9 = vmax.f32 %v10972_v27, %v18304_v48  ;;  %v10909_v48 = vmax.f32 %v18375_v62, %v18306_v17  ;;  %v11292_v51 = vmax.f32 %v11228_v44, %v18375_v62  ;;  %v18388_v27 = vld [vmem:[#allocation4 + $0x9b] sm:$0xff]  ;;  %v8782_v17 = vadd.f32 %v17926_v8, %v17928_v35 }
 0x90f   : > { %v9561_v43 = vpop.f32.mrf.mxu0  ;;  %v9912_v35 = vld [vmem:[#allocation3 + $0xe2] sm:$0xff] }
 0x910   : > { %v11100_v18 = vmax.f32 %v11036_v9, %v18334_v23  ;;  %v11356_v44 = vmax.f32 %v11292_v51, %v18388_v27 }
 0x911   : > { %v9013_v13 = vpop.f32.mrf.mxu2  ;;  %v9282_v21 = vpop.f32.mrf.mxu3 }
 0x912   : > { %13038 = vmatmul.msk.f32.gmra.mxu0 %vm472_vm1, %v10463_v56  ;;  %v18367_v7 = vadd.f32 %v9013_v13, %v8781_v25  ;;  %v9334_v10 = vadd.f32 %v9282_v21, %v18283_v59  ;;  %v18373_v19 = vpop.f32.mrf.mxu1  ;;  %v10186_v56 = vld [vmem:[#allocation3 + $0xb3] sm:$0xff]  ;;  %v11164_v12 = vmax.f32 %v11100_v18, %v18360_v14  ;;  %v18390_v25 = vld [vmem:[#allocation4 + $0xa9] sm:$0xff] }
 0x913   : > { %12974 = vmatmul.msk.f32.gmra.mxu2 %vm472_vm1, %v9911_v34  ;;  %v10464_v59 = vld [vmem:[#allocation3 + $0xb4] sm:$0xff]  ;;  %13071 = vmatmul.msk.f32.gmra.mxu1 %vm472_vm1, %v11355_v53 }
 0x914   : > { %v18377_v15 = vadd.f32 %v9561_v43, %v9334_v10  ;;  %13005 = vmatmul.msk.f32.gmra.mxu3 %vm472_vm1, %v10186_v56  ;;  %v10973_v43 = vmax.f32 %v10909_v48, %v18319_v41  ;;  %v11229_v41 = vmax.f32 %v11164_v12, %v18390_v25  ;;  %v18403_v48 = vld [vmem:[#allocation4 + $0xaa] sm:$0xff] }
 0x916   : > { %v11037_v9 = vmax.f32 %v10973_v43, %v18332_v54  ;;  %v10910_v54 = vmax.f32 %v18403_v48, %v18334_v23  ;;  %v11293_v51 = vmax.f32 %v11229_v41, %v18403_v48  ;;  %v18416_v43 = vld [vmem:[#allocation4 + $0xab] sm:$0xff]  ;;  %v8783_v23 = vadd.f32 %v17938_v50, %v17940_v16 }
 0x917   : > { %v9564_v11 = vpop.f32.mrf.mxu0  ;;  %v9913_v16 = vld [vmem:[#allocation3 + $0xf2] sm:$0xff] }
 0x918   : > { %v11101_v18 = vmax.f32 %v11037_v9, %v18362_v4  ;;  %v11357_v41 = vmax.f32 %v11293_v51, %v18416_v43 }
 0x919   : > { %v9016_v13 = vpop.f32.mrf.mxu2  ;;  %v9285_v21 = vpop.f32.mrf.mxu3 }
 0x91a   : > { %13039 = vmatmul.msk.f32.gmra.mxu0 %vm472_vm1, %v10464_v59  ;;  %v18395_v10 = vadd.f32 %v9016_v13, %v8782_v17  ;;  %v9335_v53 = vadd.f32 %v9285_v21, %v18311_v63  ;;  %v18401_v34 = vpop.f32.mrf.mxu1  ;;  %v10187_v59 = vld [vmem:[#allocation3 + $0xc3] sm:$0xff]  ;;  %v11165_v12 = vmax.f32 %v11101_v18, %v18388_v27  ;;  %v18418_v17 = vld [vmem:[#allocation4 + $0xb1] sm:$0xff] }
 0x91b   : > { %12975 = vmatmul.msk.f32.gmra.mxu2 %vm472_vm1, %v9912_v35  ;;  %v10465_v63 = vld [vmem:[#allocation3 + $0xc4] sm:$0xff]  ;;  %13072 = vmatmul.msk.f32.gmra.mxu1 %vm472_vm1, %v11356_v44 }
 0x91c   : > { %v18405_v56 = vadd.f32 %v9564_v11, %v9335_v53  ;;  %13006 = vmatmul.msk.f32.gmra.mxu3 %vm472_vm1, %v10187_v59  ;;  %v10974_v11 = vmax.f32 %v10910_v54, %v18347_v1  ;;  %v11230_v1 = vmax.f32 %v11165_v12, %v18418_v17  ;;  %v18431_v54 = vld [vmem:[#allocation4 + $0xb2] sm:$0xff] }
 0x91e   : > { %v11038_v9 = vmax.f32 %v10974_v11, %v18360_v14  ;;  %v10911_v14 = vmax.f32 %v18431_v54, %v18362_v4  ;;  %v11294_v51 = vmax.f32 %v11230_v1, %v18431_v54  ;;  %v18444_v11 = vld [vmem:[#allocation4 + $0xb3] sm:$0xff]  ;;  %v8784_v4 = vadd.f32 %v17950_v33, %v17952_v58 }
 0x91f   : > { %v9567_v8 = vpop.f32.mrf.mxu0  ;;  %v9914_v58 = vld [vmem:[#allocation3 + $0xfa] sm:$0xff] }
 0x920   : > { %v11102_v18 = vmax.f32 %v11038_v9, %v18390_v25  ;;  %v11358_v1 = vmax.f32 %v11294_v51, %v18444_v11 }
 0x921   : > { %v9019_v13 = vpop.f32.mrf.mxu2  ;;  %v9288_v21 = vpop.f32.mrf.mxu3 }
 0x922   : > { %13040 = vmatmul.msk.f32.gmra.mxu0 %vm472_vm1, %v10465_v63  ;;  %v18423_v53 = vadd.f32 %v9019_v13, %v8783_v23  ;;  %v9336_v44 = vadd.f32 %v9288_v21, %v18339_v30  ;;  %v18429_v35 = vpop.f32.mrf.mxu1  ;;  %v10188_v63 = vld [vmem:[#allocation3 + $0xcb] sm:$0xff]  ;;  %v11166_v12 = vmax.f32 %v11102_v18, %v18416_v43  ;;  %v18446_v23 = vld [vmem:[#allocation4 + $0xc1] sm:$0xff] }
 0x923   : > { %12976 = vmatmul.msk.f32.gmra.mxu2 %vm472_vm1, %v9913_v16  ;;  %v10466_v30 = vld [vmem:[#allocation3 + $0xcc] sm:$0xff]  ;;  %13073 = vmatmul.msk.f32.gmra.mxu1 %vm472_vm1, %v11357_v41 }
 0x924   : > { %v18433_v59 = vadd.f32 %v9567_v8, %v9336_v44  ;;  %13007 = vmatmul.msk.f32.gmra.mxu3 %vm472_vm1, %v10188_v63  ;;  %v10975_v8 = vmax.f32 %v10911_v14, %v18375_v62  ;;  %v11231_v62 = vmax.f32 %v11166_v12, %v18446_v23  ;;  %v18459_v14 = vld [vmem:[#allocation4 + $0xc2] sm:$0xff] }
 0x926   : > { %v11039_v9 = vmax.f32 %v10975_v8, %v18388_v27  ;;  %v10912_v27 = vmax.f32 %v18459_v14, %v18390_v25  ;;  %v11295_v51 = vmax.f32 %v11231_v62, %v18459_v14  ;;  %v18472_v8 = vld [vmem:[#allocation4 + $0xc3] sm:$0xff]  ;;  %v8785_v25 = vadd.f32 %v17962_v49, %v17964_v2 }
 0x927   : > { %v9570_v50 = vpop.f32.mrf.mxu0  ;;  %v9915_v2 = vld [vmem:[#allocation3 + $0x10a] sm:$0xff] }
 0x928   : > { %v11103_v18 = vmax.f32 %v11039_v9, %v18418_v17  ;;  %v11359_v62 = vmax.f32 %v11295_v51, %v18472_v8 }
 0x929   : > { %v9022_v13 = vpop.f32.mrf.mxu2  ;;  %v9291_v21 = vpop.f32.mrf.mxu3 }
 0x92a   : > { %13041 = vmatmul.msk.f32.gmra.mxu0 %vm472_vm1, %v10466_v30  ;;  %v18451_v44 = vadd.f32 %v9022_v13, %v8784_v4  ;;  %v9337_v41 = vadd.f32 %v9291_v21, %v18367_v7  ;;  %v18457_v16 = vpop.f32.mrf.mxu1  ;;  %v10189_v30 = vld [vmem:[#allocation3 + $0xdb] sm:$0xff]  ;;  %v11167_v12 = vmax.f32 %v11103_v18, %v18444_v11  ;;  %v18474_v4 = vld [vmem:[#allocation4 + $0xc9] sm:$0xff] }
 0x92b   : > { %20237 = vst [vmem:[#allocation76_spill] sm:$0xff] %v18457_v16  ;;  %12977 = vmatmul.msk.f32.gmra.mxu2 %vm472_vm1, %v9914_v58  ;;  %v10467_v7 = vld [vmem:[#allocation3 + $0xdc] sm:$0xff]  ;;  %13074 = vmatmul.msk.f32.gmra.mxu1 %vm472_vm1, %v11358_v1 }
 0x92c   : > { %v18461_v63 = vadd.f32 %v9570_v50, %v9337_v41  ;;  %13008 = vmatmul.msk.f32.gmra.mxu3 %vm472_vm1, %v10189_v30  ;;  %v10976_v50 = vmax.f32 %v10912_v27, %v18403_v48  ;;  %v11232_v48 = vmax.f32 %v11167_v12, %v18474_v4  ;;  %v18487_v27 = vld [vmem:[#allocation4 + $0xca] sm:$0xff] }
 0x92e   : > { %v11040_v9 = vmax.f32 %v10976_v50, %v18416_v43  ;;  %v10913_v43 = vmax.f32 %v18487_v27, %v18418_v17  ;;  %v11296_v51 = vmax.f32 %v11232_v48, %v18487_v27  ;;  %v18500_v50 = vld [vmem:[#allocation4 + $0xcb] sm:$0xff]  ;;  %v8786_v17 = vadd.f32 %v17974_v42, %v17976_v0 }
 0x92f   : > { %v9573_v33 = vpop.f32.mrf.mxu0  ;;  %v9916_v0 = vld [vmem:[#allocation3 + $0x112] sm:$0xff] }
 0x930   : > { %v11104_v18 = vmax.f32 %v11040_v9, %v18446_v23  ;;  %v11360_v48 = vmax.f32 %v11296_v51, %v18500_v50 }
 0x931   : > { %v9025_v13 = vpop.f32.mrf.mxu2  ;;  %v9294_v21 = vpop.f32.mrf.mxu3 }
 0x932   : > { %13042 = vmatmul.msk.f32.gmra.mxu0 %vm472_vm1, %v10467_v7  ;;  %v18479_v41 = vadd.f32 %v9025_v13, %v8785_v25  ;;  %v9338_v1 = vadd.f32 %v9294_v21, %v18395_v10  ;;  %v18485_v58 = vpop.f32.mrf.mxu1  ;;  %v10190_v7 = vld [vmem:[#allocation3 + $0xe3] sm:$0xff]  ;;  %v11168_v12 = vmax.f32 %v11104_v18, %v18472_v8  ;;  %v18502_v25 = vld [vmem:[#allocation4 + $0xd9] sm:$0xff] }
 0x933   : > { %20238 = vst [vmem:[#allocation104_spill] sm:$0xff] %v18485_v58  ;;  %12978 = vmatmul.msk.f32.gmra.mxu2 %vm472_vm1, %v9915_v2  ;;  %v10468_v10 = vld [vmem:[#allocation3 + $0xe4] sm:$0xff]  ;;  %13075 = vmatmul.msk.f32.gmra.mxu1 %vm472_vm1, %v11359_v62 }
 0x934   : > { %v18489_v30 = vadd.f32 %v9573_v33, %v9338_v1  ;;  %13009 = vmatmul.msk.f32.gmra.mxu3 %vm472_vm1, %v10190_v7  ;;  %v10977_v33 = vmax.f32 %v10913_v43, %v18431_v54  ;;  %v11233_v54 = vmax.f32 %v11168_v12, %v18502_v25  ;;  %v18515_v43 = vld [vmem:[#allocation4 + $0xda] sm:$0xff]  ;;  %v10196_v58 = vld [vmem:[#allocation3 + $0x12b] sm:$0xff] }
 0x936   : > { %20239 = vst [vmem:[#allocation106_spill] sm:$0xff] %v18489_v30  ;;  %v11041_v9 = vmax.f32 %v10977_v33, %v18444_v11  ;;  %v10914_v11 = vmax.f32 %v18515_v43, %v18446_v23  ;;  %v11297_v51 = vmax.f32 %v11233_v54, %v18515_v43  ;;  %v18528_v33 = vld [vmem:[#allocation4 + $0xdb] sm:$0xff]  ;;  %v8787_v23 = vadd.f32 %v17986_v47, %v17988_v39 }
 0x937   : > { %v9576_v49 = vpop.f32.mrf.mxu0  ;;  %v9917_v47 = vld [vmem:[#allocation3 + $0x122] sm:$0xff] }
 0x938   : > { %v11105_v18 = vmax.f32 %v11041_v9, %v18474_v4  ;;  %v11361_v54 = vmax.f32 %v11297_v51, %v18528_v33  ;;  %v10192_v39 = vld [vmem:[#allocation3 + $0xfb] sm:$0xff] }
 0x939   : > { %v9028_v13 = vpop.f32.mrf.mxu2  ;;  %v9297_v21 = vpop.f32.mrf.mxu3 }
 0x93a   : > { %13043 = vmatmul.msk.f32.gmra.mxu0 %vm472_vm1, %v10468_v10  ;;  %v18507_v1 = vadd.f32 %v9028_v13, %v8786_v17  ;;  %v9339_v62 = vadd.f32 %v9297_v21, %v18423_v53  ;;  %v18513_v2 = vpop.f32.mrf.mxu1  ;;  %v10191_v10 = vld [vmem:[#allocation3 + $0xf3] sm:$0xff]  ;;  %v11169_v12 = vmax.f32 %v11105_v18, %v18500_v50  ;;  %v18530_v17 = vld [vmem:[#allocation4 + $0xe1] sm:$0xff] }
 0x93b   : > { %20240 = vst [vmem:[#allocation71_spill] sm:$0xff] %v18513_v2  ;;  %12979 = vmatmul.msk.f32.gmra.mxu2 %vm472_vm1, %v9916_v0  ;;  %v10469_v53 = vld [vmem:[#allocation3 + $0xf4] sm:$0xff]  ;;  %13076 = vmatmul.msk.f32.gmra.mxu1 %vm472_vm1, %v11360_v48 }
 0x93c   : > { %v18517_v7 = vadd.f32 %v9576_v49, %v9339_v62  ;;  %13010 = vmatmul.msk.f32.gmra.mxu3 %vm472_vm1, %v10191_v10  ;;  %v10978_v49 = vmax.f32 %v10914_v11, %v18459_v14  ;;  %v11234_v14 = vmax.f32 %v11169_v12, %v18530_v17  ;;  %v18541_v11 = vld [vmem:[#allocation4 + $0xe2] sm:$0xff] }
 0x93d   : > { %v18551_v12 = vld [vmem:[#allocation4 + $0xe3] sm:$0xff] }
 0x93e   : > { %20241 = vst [vmem:[#allocation28_spill] sm:$0xff] %v18517_v7  ;;  %v11042_v9 = vmax.f32 %v10978_v49, %v18472_v8  ;;  %v10470_v8 = vld [vmem:[#allocation3 + $0xfc] sm:$0xff] }
 0x93f   : > { %v9579_v42 = vpop.f32.mrf.mxu0  ;;  %v10195_v7 = vld [vmem:[#allocation3 + $0x123] sm:$0xff] }
 0x940   : > { %v11106_v18 = vmax.f32 %v11042_v9, %v18502_v25 }
 0x941   : > { %v9031_v13 = vpop.f32.mrf.mxu2  ;;  %v9300_v21 = vpop.f32.mrf.mxu3 }
 0x942   : > { %13044 = vmatmul.msk.f32.gmra.mxu0 %vm472_vm1, %v10469_v53  ;;  %v18535_v62 = vadd.f32 %v9031_v13, %v8787_v23  ;;  %v9340_v48 = vadd.f32 %v9300_v21, %v18451_v44  ;;  %v9857_v0 = vpop.f32.mrf.mxu1  ;;  %v11298_v44 = vmax.f32 %v11234_v14, %v18541_v11  ;;  %v11170_v51 = vmax.f32 %v11106_v18, %v18528_v33 }
 0x943   : > { %12980 = vmatmul.msk.f32.gmra.mxu2 %vm472_vm1, %v9917_v47  ;;  %13077 = vmatmul.msk.f32.gmra.mxu1 %vm472_vm1, %v11361_v54  ;;  %v10915_v13 = vmax.f32 %v18541_v11, %v18474_v4  ;;  %v10471_v4 = vld [vmem:[#allocation3 + $0x10c] sm:$0xff] }
 0x944   : > { %v9619_v53 = vadd.f32 %v9579_v42, %v9340_v48  ;;  %13011 = vmatmul.msk.f32.gmra.mxu3 %vm472_vm1, %v10192_v39  ;;  %v18553_v42 = vld [vmem:[#allocation4 + $0xf1] sm:$0xff]  ;;  %v11362_v48 = vmax.f32 %v11298_v44, %v18551_v12 }
 0x945   : > { %v11235_v54 = vmax.f32 %v11170_v51, %v18553_v42  ;;  %v10979_v14 = vmax.f32 %v10915_v13, %v18487_v27 }
 0x946   : > { %v18545_v49 = vadd.f32 %v9857_v0, %v9619_v53  ;;  %v18563_v0 = vld [vmem:[#allocation4 + $0xf2] sm:$0xff] }
 0x947   : > { %v9582_v10 = vpop.f32.mrf.mxu0  ;;  %v11043_v39 = vmax.f32 %v10979_v14, %v18500_v50  ;;  %v11299_v27 = vmax.f32 %v11235_v54, %v18563_v0  ;;  %v18576_v50 = vld [vmem:[#allocation4 + $0xf9] sm:$0xff] }
 0x948   : > { %20242 = vst [vmem:[#allocation43_spill] sm:$0xff] %v18545_v49  ;;  %v10193_v49 = vld [vmem:[#allocation3 + $0x10b] sm:$0xff] }
 0x949   : > { %v18555_v23 = vpop.f32.mrf.mxu2  ;;  %v9303_v9 = vpop.f32.mrf.mxu3  ;;  %v11107_v44 = vmax.f32 %v11043_v39, %v18530_v17 }
 0x94a   : > { %13045 = vmatmul.msk.f32.gmra.mxu0 %vm472_vm1, %v10470_v8  ;;  %v9341_v21 = vadd.f32 %v9303_v9, %v18479_v41  ;;  %v9860_v18 = vpop.f32.mrf.mxu1  ;;  %v9918_v8 = vld [vmem:[#allocation3 + $0x12a] sm:$0xff] }
 0x94b   : > { %12981 = vmatmul.msk.f32.gmra.mxu2 %vm472_vm1, %v9918_v8  ;;  %13078 = vmatmul.msk.f32.gmra.mxu1 %vm472_vm1, %v11362_v48  ;;  %v11171_v51 = vmax.f32 %v11107_v44, %v18551_v12  ;;  %v9919_v44 = vld [vmem:[#allocation3 + $0x13a] sm:$0xff] }
 0x94c   : > { %v9620_v47 = vadd.f32 %v9582_v10, %v9341_v21  ;;  %13012 = vmatmul.msk.f32.gmra.mxu3 %vm472_vm1, %v10193_v49  ;;  %v18574_v10 = vld [vmem:[#allocation4 + $0xf3] sm:$0xff]  ;;  %v10916_v49 = vmax.f32 %v18563_v0, %v18502_v25 }
 0x94d   : > { %v11363_v48 = vmax.f32 %v11299_v27, %v18574_v10  ;;  %v11236_v54 = vmax.f32 %v11171_v51, %v18576_v50  ;;  %v10472_v25 = vld [vmem:[#allocation3 + $0x114] sm:$0xff] }
 0x94e   : > { %v18568_v41 = vadd.f32 %v9860_v18, %v9620_v47  ;;  %v10980_v14 = vmax.f32 %v10916_v49, %v18515_v43  ;;  %v18587_v47 = vld [vmem:[#allocation4 + $0xfa] sm:$0xff] }
 0x94f   : > { %v9585_v53 = vpop.f32.mrf.mxu0  ;;  %v11300_v43 = vmax.f32 %v11236_v54, %v18587_v47 }
 0x950   : > { %20243 = vst [vmem:[#allocation30_spill] sm:$0xff] %v18568_v41  ;;  %v10194_v41 = vld [vmem:[#allocation3 + $0x113] sm:$0xff] }
 0x951   : > { %v18579_v13 = vpop.f32.mrf.mxu2  ;;  %v9306_v9 = vpop.f32.mrf.mxu3 }
 0x952   : > { %13046 = vmatmul.msk.f32.gmra.mxu0 %vm472_vm1, %v10471_v4  ;;  %v9342_v21 = vadd.f32 %v9306_v9, %v18507_v1  ;;  %v9863_v18 = vpop.f32.mrf.mxu1  ;;  %v11044_v4 = vmax.f32 %v10980_v14, %v18528_v33  ;;  %v18600_v33 = vld [vmem:[#allocation4 + $0x109] sm:$0xff] }
 0x953   : > { %12982 = vmatmul.msk.f32.gmra.mxu2 %vm472_vm1, %v9919_v44  ;;  %13079 = vmatmul.msk.f32.gmra.mxu1 %vm472_vm1, %v11363_v48 }
 0x954   : > { %v9621_v8 = vadd.f32 %v9585_v53, %v9342_v21  ;;  %13013 = vmatmul.msk.f32.gmra.mxu3 %vm472_vm1, %v10194_v41  ;;  %v11108_v27 = vmax.f32 %v11044_v4, %v18553_v42  ;;  %v18598_v53 = vld [vmem:[#allocation4 + $0xfb] sm:$0xff]  ;;  %v10917_v41 = vmax.f32 %v18587_v47, %v18530_v17 }
 0x955   : > { %v11364_v48 = vmax.f32 %v11300_v43, %v18598_v53  ;;  %v20246_v4 = vld [vmem:[#allocation84_spill] sm:$0xff] }
 0x956   : > { %v18592_v1 = vadd.f32 %v9863_v18, %v9621_v8  ;;  %v11172_v51 = vmax.f32 %v11108_v27, %v18574_v10  ;;  %v10981_v14 = vmax.f32 %v10917_v41, %v18541_v11  ;;  %v20245_v8 = vld [vmem:[#allocation20_spill] sm:$0xff] }
 0x957   : > { %v9588_v39 = vpop.f32.mrf.mxu0  ;;  %v9869_v44 = vadd.f32 %v20246_v4, %v20245_v8  ;;  %v9920_v17 = vld [vmem:[#allocation3 + $0x142] sm:$0xff] }
 0x958   : > { %20244 = vst [vmem:[#allocation59_spill] sm:$0xff] %v18592_v1  ;;  %v11237_v54 = vmax.f32 %v11172_v51, %v18600_v33  ;;  %v11045_v2 = vmax.f32 %v10981_v14, %v18551_v12  ;;  %v10473_v43 = vld [vmem:[#allocation3 + $0x124] sm:$0xff] }
 0x959   : > { %v18603_v49 = vpop.f32.mrf.mxu2  ;;  %v9309_v9 = vpop.f32.mrf.mxu3  ;;  %v18625_v12 = vld [vmem:[#allocation4 + $0x10b] sm:$0xff] }
 0x95a   : > { %13047 = vmatmul.msk.f32.gmra.mxu0 %vm472_vm1, %v10472_v25  ;;  %v9343_v21 = vadd.f32 %v9309_v9, %v18535_v62  ;;  %v9866_v18 = vpop.f32.mrf.mxu1  ;;  %v18613_v25 = vld [vmem:[#allocation4 + $0x10a] sm:$0xff]  ;;  %v10147_v62 = vadd.f32 %v18555_v23, %v9869_v44  ;;  %v11109_v41 = vmax.f32 %v11045_v2, %v18576_v50  ;;  %v18632_v23 = vld [vmem:[%s19197_s12] ss:$0 sm:$0xff] }
 0x95b   : > { %12983 = vmatmul.msk.f32.gmra.mxu2 %vm472_vm1, %v9920_v17  ;;  %13080 = vmatmul.msk.f32.gmra.mxu1 %vm472_vm1, %v11364_v48  ;;  %v11301_v51 = vmax.f32 %v11237_v54, %v18613_v25  ;;  %v10918_v9 = vmax.f32 %v18613_v25, %v18553_v42  ;;  %v18642_v48 = vld [vmem:[%s19195_s10] ss:$0 sm:$0xff]  ;;  %v20248_v42 = vld [vmem:[#allocation93_spill] sm:$0xff] }
 0x95c   : > { %v9622_v1 = vadd.f32 %v9588_v39, %v9343_v21  ;;  %13014 = vmatmul.msk.f32.gmra.mxu3 %vm472_vm1, %v10195_v7  ;;  %v18627_v39 = vld [vmem:[#allocation4 + $0x111] sm:$0xff]  ;;  %v11173_v7 = vmax.f32 %v11109_v41, %v18598_v53 }
 0x95d   : > { %v11365_v54 = vmax.f32 %v11301_v51, %v18625_v12  ;;  %v10982_v8 = vmax.f32 %v10918_v9, %v18563_v0  ;;  %v18660_v9 = vld [vmem:[#allocation4 + $0x113] sm:$0xff] }
 0x95e   : > { %v18619_v11 = vadd.f32 %v9866_v18, %v9622_v1  ;;  %v11238_v14 = vmax.f32 %v11173_v7, %v18627_v39  ;;  %v18646_v18 = vld [vmem:[#allocation4 + $0x112] sm:$0xff] }
 0x95f   : > { %v10607_v27 = vpop.f32.mrf.mxu0 }
 0x960   : > { %20247 = vst [vmem:[#allocation70_spill] sm:$0xff] %v18619_v11  ;;  %v9921_v11 = vld [vmem:[#allocation3 + $0x152] sm:$0xff]  ;;  %v11302_v51 = vmax.f32 %v11238_v14, %v18646_v18 }
 0x961   : > { %v18635_v1 = vpop.f32.mrf.mxu2  ;;  %v10329_v2 = vpop.f32.mrf.mxu3 }
 0x962   : > { %13048 = vmatmul.msk.f32.gmra.mxu0 %vm472_vm1, %v10473_v43  ;;  %v10425_v21 = vadd.f32 %v10329_v2, %v10147_v62  ;;  %v11502_v4 = vpop.f32.mrf.mxu1  ;;  %v20249_v43 = vld [vmem:[#allocation95_spill] sm:$0xff]  ;;  %v11046_v2 = vmax.f32 %v10982_v8, %v18574_v10 }
 0x963   : > { %v9870_v41 = vadd.f32 %v20249_v43, %v20248_v42  ;;  %v11503_v62 = vadd.f32 %v18632_v23, %v11502_v4  ;;  %12984 = vmatmul.msk.f32.gmra.mxu2 %vm472_vm1, %v9921_v11  ;;  %13081 = vmatmul.msk.f32.gmra.mxu1 %vm472_vm1, %v11365_v54  ;;  %v11366_v4 = vmax.f32 %v11302_v51, %v18660_v9  ;;  %v20250_v42 = vld [vmem:[#allocation12_spill] sm:$0xff] }
 0x964   : > { %v10703_v44 = vadd.f32 %v10607_v27, %v10425_v21  ;;  %13015 = vmatmul.msk.f32.gmra.mxu3 %vm472_vm1, %v10196_v58  ;;  %v10474_v27 = vld [vmem:[#allocation3 + $0x12c] sm:$0xff]  ;;  %v11110_v10 = vmax.f32 %v11046_v2, %v18600_v33  ;;  %v18664_v21 = vld [vmem:[#allocation4 + $0x121] sm:$0xff] }
 0x965   : > { %v10148_v7 = vadd.f32 %v18579_v13, %v9870_v41  ;;  %v11598_v11 = vmax.f32 %v11503_v62, 0.0  ;;  %v10919_v13 = vmax.f32 %v18646_v18, %v18576_v50  ;;  %v18677_v62 = vld [vmem:[#allocation4 + $0x122] sm:$0xff]  ;;  %v9871_v50 = vadd.f32 %v18022_v37, %v18024_v38  ;;  %v9922_v51 = vld [vmem:[#allocation3 + $0x15a] sm:$0xff] }
 0x966   : > { %v10739_v0 = vadd.f32 %v18642_v48, %v10703_v44  ;;  %v11174_v8 = vmax.f32 %v11110_v10, %v18625_v12 }
 0x967   : > { %v10610_v17 = vpop.f32.mrf.mxu0  ;;  %v10983_v2 = vmax.f32 %v10919_v13, %v18587_v47  ;;  %v10149_v38 = vadd.f32 %v18603_v49, %v9871_v50 }
 0x968   : > { %v10771_v14 = vmax.f32 %v10739_v0, 0.0  ;;  %v11239_v41 = vmax.f32 %v11174_v8, %v18664_v21 }
 0x969   : > { %v18669_v58 = vpop.f32.mrf.mxu2  ;;  %v10332_v54 = vpop.f32.mrf.mxu3 }
 0x96a   : > { %13049 = vmatmul.msk.f32.gmra.mxu0 %vm472_vm1, %v10474_v27  ;;  %v10426_v44 = vadd.f32 %v10332_v54, %v10148_v7  ;;  %v10803_v43 = vadd.f32 %v10771_v14, %v20250_v42  ;;  %v11505_v0 = vpop.f32.mrf.mxu1  ;;  %v10197_v7 = vld [vmem:[#allocation3 + $0x13b] sm:$0xff]  ;;  %v11047_v14 = vmax.f32 %v10983_v2, %v18598_v53  ;;  %v11303_v37 = vmax.f32 %v11239_v41, %v18677_v62  ;;  %v18694_v53 = vld [vmem:[#allocation4 + $0x123] sm:$0xff]  ;;  %v20251_v41 = vld [vmem:[#allocation58_spill] sm:$0xff] }
 0x96b   : > { %v11506_v16 = vadd.f32 %v18632_v23, %v11505_v0  ;;  %12985 = vmatmul.msk.f32.gmra.mxu2 %vm472_vm1, %v9922_v51  ;;  %13082 = vmatmul.msk.f32.gmra.mxu1 %vm472_vm1, %v11366_v4  ;;  %v18697_v54 = vld [vmem:[#allocation4 + $0x129] sm:$0xff]  ;;  %v10920_v42 = vmax.f32 %v18677_v62, %v18600_v33 }
 0x96c   : > { %v10704_v27 = vadd.f32 %v10610_v17, %v10426_v44  ;;  %v11630_v10 = vadd.f32 %v11598_v11, %v10803_v43  ;;  %13016 = vmatmul.msk.f32.gmra.mxu3 %vm472_vm1, %v10197_v7  ;;  %v10475_v17 = vld [vmem:[#allocation3 + $0x13c] sm:$0xff]  ;;  %v11111_v11 = vmax.f32 %v11047_v14, %v18627_v39  ;;  %v11367_v0 = vmax.f32 %v11303_v37, %v18694_v53 }
 0x96d   : > { %v11599_v13 = vmax.f32 %v11506_v16, 0.0  ;;  %v10984_v16 = vmax.f32 %v10920_v42, %v18613_v25  ;;  %v10198_v37 = vld [vmem:[#allocation3 + $0x143] sm:$0xff]  ;;  %v18726_v42 = vld [vmem:[#allocation4 + $0x139] sm:$0xff] }
 0x96e   : > { %v10740_v47 = vadd.f32 %v18642_v48, %v10704_v27  ;;  %11663 = vst.msk [vmem:[%s18685_s23] sm:$0xff] %vm11662_vm2, %v11630_v10  ;;  %v11175_v4 = vmax.f32 %v11111_v11, %v18660_v9  ;;  %v18706_v27 = vld [vmem:[#allocation4 + $0x12a] sm:$0xff] }
 0x96f   : > { %v10613_v30 = vpop.f32.mrf.mxu0  ;;  %v20252_v10 = vld [vmem:[#allocation85_spill] sm:$0xff] }
 0x970   : > { %v10772_v8 = vmax.f32 %v10740_v47, 0.0  ;;  %v9872_v50 = vadd.f32 %v20252_v10, %v18036_v36  ;;  %v11240_v7 = vmax.f32 %v11175_v4, %v18697_v54  ;;  %v9923_v11 = vld [vmem:[#allocation3 + $0x16a] sm:$0xff] }
 0x971   : > { %v18699_v44 = vpop.f32.mrf.mxu2  ;;  %v10335_v49 = vpop.f32.mrf.mxu3  ;;  %v10476_v36 = vld [vmem:[#allocation3 + $0x144] sm:$0xff]  ;;  %v20253_v10 = vld [vmem:[#allocation14_spill] sm:$0xff] }
 0x972   : > { %13050 = vmatmul.msk.f32.gmra.mxu0 %vm472_vm1, %v10475_v17  ;;  %v10427_v43 = vadd.f32 %v10335_v49, %v10149_v38  ;;  %v10804_v2 = vadd.f32 %v10772_v8, %v20251_v41  ;;  %v11508_v51 = vpop.f32.mrf.mxu1  ;;  %v11048_v38 = vmax.f32 %v10984_v16, %v18625_v12  ;;  %v11304_v8 = vmax.f32 %v11240_v7, %v18706_v27 }
 0x973   : > { %v11509_v17 = vadd.f32 %v18632_v23, %v11508_v51  ;;  %12986 = vmatmul.msk.f32.gmra.mxu2 %vm472_vm1, %v9923_v11  ;;  %13083 = vmatmul.msk.f32.gmra.mxu1 %vm472_vm1, %v11367_v0 }
 0x974   : > { %v10705_v33 = vadd.f32 %v10613_v30, %v10427_v43  ;;  %v11631_v14 = vadd.f32 %v11599_v13, %v10804_v2  ;;  %13017 = vmatmul.msk.f32.gmra.mxu3 %vm472_vm1, %v10198_v37  ;;  %v10150_v30 = vadd.f32 %v18635_v1, %v9872_v50  ;;  %v18722_v13 = vld [vmem:[#allocation4 + $0x12b] sm:$0xff]  ;;  %v11112_v12 = vmax.f32 %v11048_v38, %v18664_v21 }
 0x975   : > { %v11600_v4 = vmax.f32 %v11509_v17, 0.0  ;;  %v10921_v2 = vmax.f32 %v18706_v27, %v18627_v39  ;;  %v11368_v0 = vmax.f32 %v11304_v8, %v18722_v13  ;;  %v20254_v37 = vld [vmem:[#allocation97_spill] sm:$0xff]  ;;  %v9924_v8 = vld [vmem:[#allocation3 + $0x172] sm:$0xff] }
 0x976   : > { %v10741_v25 = vadd.f32 %v18642_v48, %v10705_v33  ;;  %11664 = vst.msk [vmem:[%s18685_s23 + $0x8] sm:$0xff] %vm11662_vm2, %v11631_v14  ;;  %v11176_v43 = vmax.f32 %v11112_v12, %v18694_v53  ;;  %v18737_v14 = vld [vmem:[#allocation4 + $0x13a] sm:$0xff]  ;;  %v9873_v39 = vadd.f32 %v20254_v37, %v18048_v46 }
 0x977   : > { %v10616_v47 = vpop.f32.mrf.mxu0  ;;  %v10985_v7 = vmax.f32 %v10921_v2, %v18646_v18  ;;  %v10477_v18 = vld [vmem:[#allocation3 + $0x154] sm:$0xff]  ;;  %v18755_v2 = vld [vmem:[#allocation4 + $0x141] sm:$0xff] }
 0x978   : > { %v10773_v49 = vmax.f32 %v10741_v25, 0.0  ;;  %v11241_v51 = vmax.f32 %v11176_v43, %v18726_v42 }
 0x979   : > { %v18729_v41 = vpop.f32.mrf.mxu2  ;;  %v10338_v1 = vpop.f32.mrf.mxu3 }
 0x97a   : > { %13051 = vmatmul.msk.f32.gmra.mxu0 %vm472_vm1, %v10476_v36  ;;  %v10428_v16 = vadd.f32 %v10338_v1, %v10150_v30  ;;  %v10805_v50 = vadd.f32 %v10773_v49, %v20253_v10  ;;  %v11511_v33 = vpop.f32.mrf.mxu1  ;;  %v10199_v36 = vld [vmem:[#allocation3 + $0x153] sm:$0xff]  ;;  %v11049_v30 = vmax.f32 %v10985_v7, %v18660_v9  ;;  %v11305_v46 = vmax.f32 %v11241_v51, %v18737_v14  ;;  %v18752_v49 = vld [vmem:[#allocation4 + $0x13b] sm:$0xff] }
 0x97b   : > { %v11512_v25 = vadd.f32 %v18632_v23, %v11511_v33  ;;  %12987 = vmatmul.msk.f32.gmra.mxu2 %vm472_vm1, %v9924_v8  ;;  %13084 = vmatmul.msk.f32.gmra.mxu1 %vm472_vm1, %v11368_v0  ;;  %v18764_v33 = vld [vmem:[#allocation4 + $0x142] sm:$0xff] }
 0x97c   : > { %v10706_v17 = vadd.f32 %v10616_v47, %v10428_v16  ;;  %v11632_v38 = vadd.f32 %v11600_v4, %v10805_v50  ;;  %13018 = vmatmul.msk.f32.gmra.mxu3 %vm472_vm1, %v10199_v36  ;;  %v10151_v47 = vadd.f32 %v18669_v58, %v9873_v39  ;;  %v11113_v9 = vmax.f32 %v11049_v30, %v18697_v54  ;;  %v20255_v50 = vld [vmem:[#allocation19_spill] sm:$0xff] }
 0x97d   : > { %v11601_v43 = vmax.f32 %v11512_v25, 0.0  ;;  %v10922_v16 = vmax.f32 %v18737_v14, %v18664_v21  ;;  %v11369_v7 = vmax.f32 %v11305_v46, %v18752_v49 }
 0x97e   : > { %v10742_v12 = vadd.f32 %v18642_v48, %v10706_v17  ;;  %11665 = vst.msk [vmem:[%s18685_s23 + $0x10] sm:$0xff] %vm11662_vm2, %v11632_v38  ;;  %v11177_v0 = vmax.f32 %v11113_v9, %v18722_v13  ;;  %v20256_v38 = vld [vmem:[#allocation33_spill] sm:$0xff] }
 0x97f   : > { %v10619_v11 = vpop.f32.mrf.mxu0  ;;  %v10986_v17 = vmax.f32 %v10922_v16, %v18677_v62  ;;  %v9874_v37 = vadd.f32 %v20256_v38, %v18060_v6  ;;  %v10478_v6 = vld [vmem:[#allocation3 + $0x15c] sm:$0xff] }
 0x980   : > { %v10774_v4 = vmax.f32 %v10742_v12, 0.0  ;;  %v11242_v25 = vmax.f32 %v11177_v0, %v18755_v2  ;;  %v18780_v9 = vld [vmem:[#allocation4 + $0x143] sm:$0xff] }
 0x981   : > { %v18757_v1 = vpop.f32.mrf.mxu2  ;;  %v10341_v58 = vpop.f32.mrf.mxu3  ;;  %v11050_v12 = vmax.f32 %v10986_v17, %v18694_v53 }
 0x982   : > { %13052 = vmatmul.msk.f32.gmra.mxu0 %vm472_vm1, %v10477_v18  ;;  %v10429_v10 = vadd.f32 %v10341_v58, %v10151_v47  ;;  %v10806_v51 = vadd.f32 %v10774_v4, %v20255_v50  ;;  %v11514_v39 = vpop.f32.mrf.mxu1  ;;  %v9925_v18 = vld [vmem:[#allocation3 + $0x182] sm:$0xff]  ;;  %v11306_v46 = vmax.f32 %v11242_v25, %v18764_v33  ;;  %v18784_v4 = vld [vmem:[#allocation4 + $0x151] sm:$0xff] }
 0x983   : > { %v11515_v30 = vadd.f32 %v18632_v23, %v11514_v39  ;;  %v10200_v47 = vld [vmem:[#allocation3 + $0x15b] sm:$0xff]  ;;  %12988 = vmatmul.msk.f32.gmra.mxu2 %vm472_vm1, %v9925_v18  ;;  %13085 = vmatmul.msk.f32.gmra.mxu1 %vm472_vm1, %v11369_v7  ;;  %v11114_v53 = vmax.f32 %v11050_v12, %v18726_v42  ;;  %v18795_v25 = vld [vmem:[#allocation4 + $0x152] sm:$0xff]  ;;  %v9926_v18 = vld [vmem:[#allocation3 + $0x18a] sm:$0xff] }
 0x984   : > { %v10707_v21 = vadd.f32 %v10619_v11, %v10429_v10  ;;  %v11633_v8 = vadd.f32 %v11601_v43, %v10806_v51  ;;  %13019 = vmatmul.msk.f32.gmra.mxu3 %vm472_vm1, %v10200_v47  ;;  %v10152_v11 = vadd.f32 %v18699_v44, %v9874_v37  ;;  %v10923_v10 = vmax.f32 %v18764_v33, %v18697_v54  ;;  %v20257_v7 = vld [vmem:[#allocation24_spill] sm:$0xff]  ;;  %v10201_v47 = vld [vmem:[#allocation3 + $0x16b] sm:$0xff] }
 0x985   : > { %v11602_v16 = vmax.f32 %v11515_v30, 0.0  ;;  %v11178_v58 = vmax.f32 %v11114_v53, %v18752_v49  ;;  %v11370_v50 = vmax.f32 %v11306_v46, %v18780_v9  ;;  %v9875_v54 = vadd.f32 %v18070_v29, %v18072_v22  ;;  %v18810_v22 = vld [vmem:[#allocation4 + $0x153] sm:$0xff] }
 0x986   : > { %v10743_v62 = vadd.f32 %v18642_v48, %v10707_v21  ;;  %11666 = vst.msk [vmem:[%s18685_s23 + $0x18] sm:$0xff] %vm11662_vm2, %v11633_v8  ;;  %v10987_v37 = vmax.f32 %v10923_v10, %v18706_v27  ;;  %v10479_v27 = vld [vmem:[#allocation3 + $0x16c] sm:$0xff]  ;;  %v18813_v53 = vld [vmem:[#allocation4 + $0x159] sm:$0xff] }
 0x987   : > { %v10622_v36 = vpop.f32.mrf.mxu0  ;;  %v11243_v38 = vmax.f32 %v11178_v58, %v18784_v4 }
 0x988   : > { %v10775_v43 = vmax.f32 %v10743_v62, 0.0  ;;  %v11051_v46 = vmax.f32 %v10987_v37, %v18722_v13  ;;  %v20260_v37 = vld [vmem:[#allocation23_spill] sm:$0xff] }
 0x989   : > { %v18787_v0 = vpop.f32.mrf.mxu2  ;;  %v10344_v44 = vpop.f32.mrf.mxu3  ;;  %v11307_v29 = vmax.f32 %v11243_v38, %v18795_v25  ;;  %v20259_v38 = vld [vmem:[#allocation8_spill] sm:$0xff] }
 0x98a   : > { %13053 = vmatmul.msk.f32.gmra.mxu0 %vm472_vm1, %v10478_v6  ;;  %v10430_v51 = vadd.f32 %v10344_v44, %v10152_v11  ;;  %v10807_v17 = vadd.f32 %v10775_v43, %v20257_v7  ;;  %v11517_v39 = vpop.f32.mrf.mxu1  ;;  %v11115_v13 = vmax.f32 %v11051_v46, %v18755_v2  ;;  %v20258_v44 = vld [vmem:[#allocation25_spill] sm:$0xff]  ;;  %v18822_v7 = vld [vmem:[#allocation4 + $0x15a] sm:$0xff] }
 0x98b   : > { %v11518_v12 = vadd.f32 %v18632_v23, %v11517_v39  ;;  %12989 = vmatmul.msk.f32.gmra.mxu2 %vm472_vm1, %v9926_v18  ;;  %13086 = vmatmul.msk.f32.gmra.mxu1 %vm472_vm1, %v11370_v50  ;;  %v9876_v39 = vadd.f32 %v20260_v37, %v20259_v38  ;;  %v9927_v46 = vld [vmem:[#allocation3 + $0x19a] sm:$0xff] }
 0x98c   : > { %v10708_v21 = vadd.f32 %v10622_v36, %v10430_v51  ;;  %v11634_v8 = vadd.f32 %v11602_v16, %v10807_v17  ;;  %13020 = vmatmul.msk.f32.gmra.mxu3 %vm472_vm1, %v10201_v47  ;;  %v10153_v36 = vadd.f32 %v18729_v41, %v9875_v54  ;;  %v10924_v16 = vmax.f32 %v18795_v25, %v18726_v42 }
 0x98d   : > { %v11603_v11 = vmax.f32 %v11518_v12, 0.0  ;;  %v11179_v58 = vmax.f32 %v11115_v13, %v18780_v9  ;;  %v11371_v51 = vmax.f32 %v11307_v29, %v18810_v22  ;;  %v18838_v29 = vld [vmem:[#allocation4 + $0x15b] sm:$0xff]  ;;  %v18842_v13 = vld [vmem:[#allocation4 + $0x169] sm:$0xff] }
 0x98e   : > { %v10744_v62 = vadd.f32 %v18642_v48, %v10708_v21  ;;  %11667 = vst.msk [vmem:[%s18685_s23 + $0x20] sm:$0xff] %vm11662_vm2, %v11634_v8  ;;  %v10988_v17 = vmax.f32 %v10924_v16, %v18737_v14 }
 0x98f   : > { %v10625_v30 = vpop.f32.mrf.mxu0  ;;  %v11244_v8 = vmax.f32 %v11179_v58, %v18813_v53  ;;  %v10925_v58 = vmax.f32 %v18822_v7, %v18755_v2 }
 0x990   : > { %v10776_v6 = vmax.f32 %v10744_v62, 0.0  ;;  %v11052_v47 = vmax.f32 %v10988_v17, %v18752_v49  ;;  %v10202_v62 = vld [vmem:[#allocation3 + $0x173] sm:$0xff] }
 0x991   : > { %v18815_v43 = vpop.f32.mrf.mxu2  ;;  %v10347_v41 = vpop.f32.mrf.mxu3  ;;  %v10989_v38 = vmax.f32 %v10925_v58, %v18764_v33  ;;  %v10481_v33 = vld [vmem:[#allocation3 + $0x184] sm:$0xff] }
 0x992   : > { %13054 = vmatmul.msk.f32.gmra.mxu0 %vm472_vm1, %v10479_v27  ;;  %v10431_v10 = vadd.f32 %v10347_v41, %v10153_v36  ;;  %v10808_v50 = vadd.f32 %v10776_v6, %v20258_v44  ;;  %v11520_v21 = vpop.f32.mrf.mxu1  ;;  %v11308_v27 = vmax.f32 %v11244_v8, %v18822_v7  ;;  %v10480_v36 = vld [vmem:[#allocation3 + $0x174] sm:$0xff]  ;;  %v11116_v49 = vmax.f32 %v11052_v47, %v18784_v4 }
 0x993   : > { %v11521_v18 = vadd.f32 %v18632_v23, %v11520_v21  ;;  %12990 = vmatmul.msk.f32.gmra.mxu2 %vm472_vm1, %v9927_v46  ;;  %13087 = vmatmul.msk.f32.gmra.mxu1 %vm472_vm1, %v11371_v51  ;;  %v9928_v46 = vld [vmem:[#allocation3 + $0x1a2] sm:$0xff] }
 0x994   : > { %v10709_v42 = vadd.f32 %v10625_v30, %v10431_v10  ;;  %v11635_v54 = vadd.f32 %v11603_v11, %v10808_v50  ;;  %13021 = vmatmul.msk.f32.gmra.mxu3 %vm472_vm1, %v10202_v62  ;;  %v10154_v30 = vadd.f32 %v18757_v1, %v9876_v39  ;;  %v11180_v16 = vmax.f32 %v11116_v49, %v18810_v22  ;;  %v20261_v50 = vld [vmem:[#allocation21_spill] sm:$0xff] }
 0x995   : > { %v11604_v11 = vmax.f32 %v11521_v18, 0.0  ;;  %v11372_v10 = vmax.f32 %v11308_v27, %v18838_v29  ;;  %v18853_v39 = vld [vmem:[#allocation4 + $0x16a] sm:$0xff]  ;;  %v20263_v18 = vld [vmem:[#allocation11_spill] sm:$0xff]  ;;  %v11053_v27 = vmax.f32 %v10989_v38, %v18780_v9 }
 0x996   : > { %v10745_v14 = vadd.f32 %v18642_v48, %v10709_v42  ;;  %11668 = vst.msk [vmem:[%s18685_s23 + $0x28] sm:$0xff] %vm11662_vm2, %v11635_v54  ;;  %v11245_v17 = vmax.f32 %v11180_v16, %v18842_v13  ;;  %v20262_v54 = vld [vmem:[#allocation48_spill] sm:$0xff]  ;;  %v10926_v58 = vmax.f32 %v18853_v39, %v18784_v4 }
 0x997   : > { %v10628_v12 = vpop.f32.mrf.mxu0  ;;  %v9877_v2 = vadd.f32 %v20263_v18, %v20262_v54  ;;  %v10203_v62 = vld [vmem:[#allocation3 + $0x183] sm:$0xff]  ;;  %v11117_v9 = vmax.f32 %v11053_v27, %v18813_v53  ;;  %v10204_v27 = vld [vmem:[#allocation3 + $0x18b] sm:$0xff] }
 0x998   : > { %v10777_v6 = vmax.f32 %v10745_v14, 0.0  ;;  %v10990_v38 = vmax.f32 %v10926_v58, %v18795_v25 }
 0x999   : > { %v18845_v41 = vpop.f32.mrf.mxu2  ;;  %v10350_v1 = vpop.f32.mrf.mxu3 }
 0x99a   : > { %13055 = vmatmul.msk.f32.gmra.mxu0 %vm472_vm1, %v10480_v36  ;;  %v10432_v44 = vadd.f32 %v10350_v1, %v10154_v30  ;;  %v10809_v51 = vadd.f32 %v10777_v6, %v20261_v50  ;;  %v11523_v37 = vpop.f32.mrf.mxu1  ;;  %v11309_v36 = vmax.f32 %v11245_v17, %v18853_v39  ;;  %v18868_v30 = vld [vmem:[#allocation4 + $0x16b] sm:$0xff]  ;;  %v11181_v1 = vmax.f32 %v11117_v9, %v18838_v29 }
 0x99b   : > { %v11524_v47 = vadd.f32 %v18632_v23, %v11523_v37  ;;  %12991 = vmatmul.msk.f32.gmra.mxu2 %vm472_vm1, %v9928_v46  ;;  %13088 = vmatmul.msk.f32.gmra.mxu1 %vm472_vm1, %v11372_v10  ;;  %v18880_v17 = vld [vmem:[#allocation4 + $0x172] sm:$0xff] }
 0x99c   : > { %v10710_v21 = vadd.f32 %v10628_v12, %v10432_v44  ;;  %v11636_v8 = vadd.f32 %v11604_v11, %v10809_v51  ;;  %13022 = vmatmul.msk.f32.gmra.mxu3 %vm472_vm1, %v10203_v62  ;;  %v10155_v12 = vadd.f32 %v18787_v0, %v9877_v2  ;;  %v18871_v11 = vld [vmem:[#allocation4 + $0x171] sm:$0xff]  ;;  %v20264_v44 = vld [vmem:[#allocation16_spill] sm:$0xff]  ;;  %v11373_v51 = vmax.f32 %v11309_v36, %v18868_v30 }
 0x99d   : > { %v11605_v6 = vmax.f32 %v11524_v47, 0.0  ;;  %v9929_v37 = vld [vmem:[#allocation3 + $0x1b2] sm:$0xff]  ;;  %v11246_v4 = vmax.f32 %v11181_v1, %v18871_v11  ;;  %v11054_v62 = vmax.f32 %v10990_v38, %v18810_v22  ;;  %v10927_v58 = vmax.f32 %v18880_v17, %v18813_v53  ;;  %v9930_v38 = vld [vmem:[#allocation3 + $0x1ba] sm:$0xff] }
 0x99e   : > { %v10746_v14 = vadd.f32 %v18642_v48, %v10710_v21  ;;  %11669 = vst.msk [vmem:[%s18685_s23 + $0x30] sm:$0xff] %vm11662_vm2, %v11636_v8  ;;  %v20265_v21 = vld [vmem:[#allocation17_spill] sm:$0xff]  ;;  %v20268_v53 = vld [vmem:[#allocation10_spill] sm:$0xff] }
 0x99f   : > { %v10631_v42 = vpop.f32.mrf.mxu0  ;;  %v9878_v8 = vadd.f32 %v20265_v21, %v18108_v55  ;;  %v10482_v55 = vld [vmem:[#allocation3 + $0x18c] sm:$0xff]  ;;  %v11118_v22 = vmax.f32 %v11054_v62, %v18842_v13  ;;  %v18911_v21 = vld [vmem:[#allocation4 + $0x182] sm:$0xff] }
 0x9a0   : > { %v10778_v49 = vmax.f32 %v10746_v14, 0.0  ;;  %v11310_v14 = vmax.f32 %v11246_v4, %v18880_v17  ;;  %v10205_v62 = vld [vmem:[#allocation3 + $0x19b] sm:$0xff] }
 0x9a1   : > { %v18873_v16 = vpop.f32.mrf.mxu2  ;;  %v10353_v0 = vpop.f32.mrf.mxu3 }
 0x9a2   : > { %13056 = vmatmul.msk.f32.gmra.mxu0 %vm472_vm1, %v10481_v33  ;;  %v10433_v10 = vadd.f32 %v10353_v0, %v10155_v12  ;;  %v10810_v50 = vadd.f32 %v10778_v49, %v20264_v44  ;;  %v11526_v54 = vpop.f32.mrf.mxu1  ;;  %v18896_v33 = vld [vmem:[#allocation4 + $0x173] sm:$0xff]  ;;  %v18900_v12 = vld [vmem:[#allocation4 + $0x181] sm:$0xff]  ;;  %v11182_v49 = vmax.f32 %v11118_v22, %v18868_v30 }
 0x9a3   : > { %v11527_v46 = vadd.f32 %v18632_v23, %v11526_v54  ;;  %12992 = vmatmul.msk.f32.gmra.mxu2 %vm472_vm1, %v9929_v37  ;;  %13089 = vmatmul.msk.f32.gmra.mxu1 %vm472_vm1, %v11373_v51  ;;  %v11374_v0 = vmax.f32 %v11310_v14, %v18896_v33  ;;  %v10991_v51 = vmax.f32 %v10927_v58, %v18822_v7  ;;  %v10483_v7 = vld [vmem:[#allocation3 + $0x19c] sm:$0xff] }
 0x9a4   : > { %v10711_v18 = vadd.f32 %v10631_v42, %v10433_v10  ;;  %v11637_v2 = vadd.f32 %v11605_v6, %v10810_v50  ;;  %13023 = vmatmul.msk.f32.gmra.mxu3 %vm472_vm1, %v10204_v27  ;;  %v10156_v42 = vadd.f32 %v18815_v43, %v9878_v8  ;;  %v20266_v10 = vld [vmem:[#allocation15_spill] sm:$0xff]  ;;  %v11247_v50 = vmax.f32 %v11182_v49, %v18900_v12 }
 0x9a5   : > { %v11606_v9 = vmax.f32 %v11527_v46, 0.0  ;;  %v11055_v27 = vmax.f32 %v10991_v51, %v18838_v29  ;;  %v10928_v49 = vmax.f32 %v18911_v21, %v18842_v13  ;;  %v9931_v51 = vld [vmem:[#allocation3 + $0x1ca] sm:$0xff] }
 0x9a6   : > { %v10747_v25 = vadd.f32 %v18642_v48, %v10711_v18  ;;  %11670 = vst.msk [vmem:[%s18685_s23 + $0x38] sm:$0xff] %vm11662_vm2, %v11637_v2  ;;  %v20267_v18 = vld [vmem:[#allocation38_spill] sm:$0xff] }
 0x9a7   : > { %v10634_v47 = vpop.f32.mrf.mxu0  ;;  %v9879_v2 = vadd.f32 %v20268_v53, %v20267_v18  ;;  %v11119_v29 = vmax.f32 %v11055_v27, %v18871_v11  ;;  %v10206_v27 = vld [vmem:[#allocation3 + $0x1a3] sm:$0xff] }
 0x9a8   : > { %v10779_v36 = vmax.f32 %v10747_v25, 0.0  ;;  %v11311_v25 = vmax.f32 %v11247_v50, %v18911_v21  ;;  %v10992_v50 = vmax.f32 %v10928_v49, %v18853_v39 }
 0x9a9   : > { %v18903_v6 = vpop.f32.mrf.mxu2  ;;  %v10356_v43 = vpop.f32.mrf.mxu3  ;;  %v11183_v58 = vmax.f32 %v11119_v29, %v18896_v33 }
 0x9aa   : > { %13057 = vmatmul.msk.f32.gmra.mxu0 %vm472_vm1, %v10482_v55  ;;  %v10434_v1 = vadd.f32 %v10356_v43, %v10156_v42  ;;  %v10811_v44 = vadd.f32 %v10779_v36, %v20266_v10  ;;  %v11529_v37 = vpop.f32.mrf.mxu1  ;;  %v18926_v55 = vld [vmem:[#allocation4 + $0x183] sm:$0xff] }
 0x9ab   : > { %v11530_v46 = vadd.f32 %v18632_v23, %v11529_v37  ;;  %12993 = vmatmul.msk.f32.gmra.mxu2 %vm472_vm1, %v9930_v38  ;;  %13090 = vmatmul.msk.f32.gmra.mxu1 %vm472_vm1, %v11374_v0  ;;  %v18929_v36 = vld [vmem:[#allocation4 + $0x189] sm:$0xff]  ;;  %v20269_v0 = vld [vmem:[#allocation64_spill] sm:$0xff]  ;;  %v11375_v10 = vmax.f32 %v11311_v25, %v18926_v55 }
 0x9ac   : > { %v10712_v8 = vadd.f32 %v10634_v47, %v10434_v1  ;;  %v11638_v54 = vadd.f32 %v11606_v9, %v10811_v44  ;;  %13024 = vmatmul.msk.f32.gmra.mxu3 %vm472_vm1, %v10205_v62  ;;  %v10157_v47 = vadd.f32 %v18845_v41, %v9879_v2  ;;  %v18938_v44 = vld [vmem:[#allocation4 + $0x18a] sm:$0xff]  ;;  %v20271_v37 = vld [vmem:[#allocation100_spill] sm:$0xff]  ;;  %v11248_v13 = vmax.f32 %v11183_v58, %v18929_v36 }
 0x9ad   : > { %v11607_v22 = vmax.f32 %v11530_v46, 0.0  ;;  %v20270_v38 = vld [vmem:[#allocation13_spill] sm:$0xff]  ;;  %v11056_v62 = vmax.f32 %v10992_v50, %v18868_v30  ;;  %v11217_v25 = vld [vmem:[#allocation4 + $0x199] sm:$0xff] }
 0x9ae   : > { %v10748_v14 = vadd.f32 %v18642_v48, %v10712_v8  ;;  %11671 = vst.msk [vmem:[%s18685_s23 + $0x40] sm:$0xff] %vm11662_vm2, %v11638_v54  ;;  %v9880_v8 = vadd.f32 %v20271_v37, %v20270_v38  ;;  %v10207_v38 = vld [vmem:[#allocation3 + $0x1b3] sm:$0xff] }
 0x9af   : > { %v10637_v4 = vpop.f32.mrf.mxu0  ;;  %v11120_v30 = vmax.f32 %v11056_v62, %v18900_v12 }
 0x9b0   : > { %v10780_v42 = vmax.f32 %v10748_v14, 0.0  ;;  %v11312_v14 = vmax.f32 %v11248_v13, %v18938_v44 }
 0x9b1   : > { %v18931_v9 = vpop.f32.mrf.mxu2  ;;  %v10359_v41 = vpop.f32.mrf.mxu3 }
 0x9b2   : > { %13058 = vmatmul.msk.f32.gmra.mxu0 %vm472_vm1, %v10483_v7  ;;  %v10435_v43 = vadd.f32 %v10359_v41, %v10157_v47  ;;  %v10812_v1 = vadd.f32 %v10780_v42, %v20269_v0  ;;  %v11532_v54 = vpop.f32.mrf.mxu1  ;;  %v10484_v7 = vld [vmem:[#allocation3 + $0x1a4] sm:$0xff]  ;;  %v10929_v41 = vmax.f32 %v18938_v44, %v18871_v11  ;;  %v20272_v0 = vld [vmem:[#allocation18_spill] sm:$0xff] }
 0x9b3   : > { %v11533_v46 = vadd.f32 %v18632_v23, %v11532_v54  ;;  %12994 = vmatmul.msk.f32.gmra.mxu2 %vm472_vm1, %v9931_v51  ;;  %13091 = vmatmul.msk.f32.gmra.mxu1 %vm472_vm1, %v11375_v10  ;;  %v18954_v47 = vld [vmem:[#allocation4 + $0x18b] sm:$0xff] }
 0x9b4   : > { %v10713_v18 = vadd.f32 %v10637_v4, %v10435_v43  ;;  %v11639_v53 = vadd.f32 %v11607_v22, %v10812_v1  ;;  %13025 = vmatmul.msk.f32.gmra.mxu3 %vm472_vm1, %v10206_v27  ;;  %v10158_v4 = vadd.f32 %v18873_v16, %v9880_v8  ;;  %v11184_v22 = vmax.f32 %v11120_v30, %v18926_v55  ;;  %v9932_v51 = vld [vmem:[#allocation3 + $0x1d2] sm:$0xff]  ;;  %v11281_v8 = vld [vmem:[#allocation4 + $0x19a] sm:$0xff] }
 0x9b5   : > { %v11608_v42 = vmax.f32 %v11533_v46, 0.0  ;;  %v11376_v16 = vmax.f32 %v11312_v14, %v18954_v47  ;;  %v10993_v50 = vmax.f32 %v10929_v41, %v18880_v17  ;;  %v20274_v46 = vld [vmem:[#allocation65_spill] sm:$0xff]  ;;  %v10485_v27 = vld [vmem:[#allocation3 + $0x1b4] sm:$0xff] }
 0x9b6   : > { %v10749_v39 = vadd.f32 %v18642_v48, %v10713_v18  ;;  %11672 = vst.msk [vmem:[%s18685_s23 + $0x48] sm:$0xff] %vm11662_vm2, %v11639_v53  ;;  %v11249_v10 = vmax.f32 %v11184_v22, %v11217_v25  ;;  %v20273_v53 = vld [vmem:[#allocation53_spill] sm:$0xff]  ;;  %v10930_v22 = vmax.f32 %v11281_v8, %v18900_v12 }
 0x9b7   : > { %v10640_v2 = vpop.f32.mrf.mxu0  ;;  %v9881_v11 = vadd.f32 %v20274_v46, %v20273_v53  ;;  %v11057_v14 = vmax.f32 %v10993_v50, %v18896_v33  ;;  %v10208_v50 = vld [vmem:[#allocation3 + $0x1bb] sm:$0xff] }
 0x9b8   : > { %v10781_v29 = vmax.f32 %v10749_v39, 0.0 }
 0x9b9   : > { %v18959_v49 = vpop.f32.mrf.mxu2  ;;  %v10362_v58 = vpop.f32.mrf.mxu3  ;;  %v10159_v17 = vadd.f32 %v18903_v6, %v9881_v11  ;;  %v20275_v6 = vld [vmem:[#allocation22_spill] sm:$0xff]  ;;  %v10486_v11 = vld [vmem:[#allocation3 + $0x1bc] sm:$0xff] }
 0x9ba   : > { %13059 = vmatmul.msk.f32.gmra.mxu0 %vm472_vm1, %v10484_v7  ;;  %v10436_v43 = vadd.f32 %v10362_v58, %v10158_v4  ;;  %v10813_v1 = vadd.f32 %v10781_v29, %v20272_v0  ;;  %v11535_v37 = vpop.f32.mrf.mxu1  ;;  %v11345_v7 = vld [vmem:[#allocation4 + $0x19b] sm:$0xff]  ;;  %v11121_v4 = vmax.f32 %v11057_v14, %v18929_v36 }
 0x9bb   : > { %v11536_v62 = vadd.f32 %v18632_v23, %v11535_v37  ;;  %12995 = vmatmul.msk.f32.gmra.mxu2 %vm472_vm1, %v9932_v51  ;;  %13092 = vmatmul.msk.f32.gmra.mxu1 %vm472_vm1, %v11376_v16  ;;  %v11218_v29 = vld [vmem:[#allocation4 + $0x1a1] sm:$0xff]  ;;  %v20276_v51 = vld [vmem:[#allocation90_spill] sm:$0xff] }
 0x9bc   : > { %v10714_v54 = vadd.f32 %v10640_v2, %v10436_v43  ;;  %v11640_v13 = vadd.f32 %v11608_v42, %v10813_v1  ;;  %13026 = vmatmul.msk.f32.gmra.mxu3 %vm472_vm1, %v10207_v38  ;;  %v11313_v2 = vmax.f32 %v11249_v10, %v11281_v8  ;;  %v11185_v58 = vmax.f32 %v11121_v4, %v18954_v47  ;;  %v11282_v1 = vld [vmem:[#allocation4 + $0x1a2] sm:$0xff] }
 0x9bd   : > { %v11609_v33 = vmax.f32 %v11536_v62, 0.0  ;;  %v10994_v10 = vmax.f32 %v10930_v22, %v18911_v21  ;;  %v20277_v38 = vld [vmem:[#allocation88_spill] sm:$0xff] }
 0x9be   : > { %v10750_v39 = vadd.f32 %v18642_v48, %v10714_v54  ;;  %11673 = vst.msk [vmem:[%s18685_s23 + $0x50] sm:$0xff] %vm11662_vm2, %v11640_v13  ;;  %v11377_v16 = vmax.f32 %v11313_v2, %v11345_v7  ;;  %v9882_v37 = vadd.f32 %v20277_v38, %v20276_v51  ;;  %v11250_v13 = vmax.f32 %v11185_v58, %v11218_v29 }
 0x9bf   : > { %v10643_v18 = vpop.f32.mrf.mxu0  ;;  %v11058_v62 = vmax.f32 %v10994_v10, %v18926_v55  ;;  %v11283_v10 = vld [vmem:[#allocation4 + $0x1b2] sm:$0xff] }
 0x9c0   : > { %v10782_v30 = vmax.f32 %v10750_v39, 0.0  ;;  %v10160_v21 = vadd.f32 %v18931_v9, %v9882_v37  ;;  %v11346_v39 = vld [vmem:[#allocation4 + $0x1a3] sm:$0xff]  ;;  %v20280_v37 = vld [vmem:[#allocation98_spill] sm:$0xff] }
 0x9c1   : > { %v18979_v42 = vpop.f32.mrf.mxu2  ;;  %v10365_v41 = vpop.f32.mrf.mxu3 }
 0x9c2   : > { %13060 = vmatmul.msk.f32.gmra.mxu0 %vm472_vm1, %v10485_v27  ;;  %v10437_v43 = vadd.f32 %v10365_v41, %v10159_v17  ;;  %v10814_v0 = vadd.f32 %v10782_v30, %v20275_v6  ;;  %v11538_v54 = vpop.f32.mrf.mxu1  ;;  %v11314_v27 = vmax.f32 %v11250_v13, %v11282_v1  ;;  %v11219_v17 = vld [vmem:[#allocation4 + $0x1b1] sm:$0xff] }
 0x9c3   : > { %v11539_v8 = vadd.f32 %v18632_v23, %v11538_v54  ;;  %13093 = vmatmul.msk.f32.gmra.mxu1 %vm472_vm1, %v11377_v16 }
 0x9c4   : > { %v10715_v53 = vadd.f32 %v10643_v18, %v10437_v43  ;;  %v11641_v46 = vadd.f32 %v11609_v33, %v10814_v0  ;;  %13027 = vmatmul.msk.f32.gmra.mxu3 %vm472_vm1, %v10208_v50  ;;  %v11122_v18 = vmax.f32 %v11058_v62, %v11217_v25  ;;  %v10931_v33 = vmax.f32 %v11282_v1, %v18929_v36  ;;  %v20278_v43 = vld [vmem:[#allocation29_spill] sm:$0xff] }
 0x9c5   : > { %v11610_v4 = vmax.f32 %v11539_v8, 0.0  ;;  %v11378_v41 = vmax.f32 %v11314_v27, %v11346_v39  ;;  %v10209_v25 = vld [vmem:[#allocation3 + $0x1cb] sm:$0xff]  ;;  %v11220_v27 = vld [vmem:[#allocation4 + $0x1b9] sm:$0xff] }
 0x9c6   : > { %v10751_v14 = vadd.f32 %v18642_v48, %v10715_v53  ;;  %11674 = vst.msk [vmem:[%s18685_s23 + $0x58] sm:$0xff] %vm11662_vm2, %v11641_v46  ;;  %v11186_v30 = vmax.f32 %v11122_v18, %v11345_v7  ;;  %v10995_v0 = vmax.f32 %v10931_v33, %v18938_v44  ;;  %v20279_v7 = vld [vmem:[#allocation82_spill] sm:$0xff] }
 0x9c7   : > { %v10646_v12 = vpop.f32.mrf.mxu0  ;;  %v9883_v54 = vadd.f32 %v20280_v37, %v20279_v7  ;;  %v10487_v1 = vld [vmem:[#allocation3 + $0x1cc] sm:$0xff] }
 0x9c8   : > { %v10783_v2 = vmax.f32 %v10751_v14, 0.0  ;;  %v11251_v6 = vmax.f32 %v11186_v30, %v11219_v17  ;;  %v11059_v13 = vmax.f32 %v10995_v0, %v18954_v47  ;;  %v20281_v17 = vld [vmem:[#allocation26_spill] sm:$0xff] }
 0x9c9   : > { %v18996_v55 = vpop.f32.mrf.mxu2  ;;  %v10368_v22 = vpop.f32.mrf.mxu3  ;;  %v10161_v44 = vadd.f32 %v18959_v49, %v9883_v54  ;;  %v10210_v30 = vld [vmem:[#allocation3 + $0x1d3] sm:$0xff] }
 0x9ca   : > { %13061 = vmatmul.msk.f32.gmra.mxu0 %vm472_vm1, %v10486_v11  ;;  %v10438_v58 = vadd.f32 %v10368_v22, %v10160_v21  ;;  %v10815_v9 = vadd.f32 %v10783_v2, %v20278_v43  ;;  %v11541_v16 = vpop.f32.mrf.mxu1  ;;  %v11315_v46 = vmax.f32 %v11251_v6, %v11283_v10  ;;  %v11123_v8 = vmax.f32 %v11059_v13, %v11218_v29  ;;  %v11284_v22 = vld [vmem:[#allocation4 + $0x1ba] sm:$0xff] }
 0x9cb   : > { %v11542_v36 = vadd.f32 %v18632_v23, %v11541_v16  ;;  %13094 = vmatmul.msk.f32.gmra.mxu1 %vm472_vm1, %v11378_v41  ;;  %v9884_v29 = vadd.f32 %v18187_v20, %v18191_v31  ;;  %v10488_v6 = vld [vmem:[#allocation3 + $0x1d4] sm:$0xff] }
 0x9cc   : > { %v10716_v50 = vadd.f32 %v10646_v12, %v10438_v58  ;;  %v11642_v51 = vadd.f32 %v11610_v4, %v10815_v9  ;;  %13028 = vmatmul.msk.f32.gmra.mxu3 %vm472_vm1, %v10209_v25  ;;  %v11347_v12 = vld [vmem:[#allocation4 + $0x1b3] sm:$0xff]  ;;  %v11187_v21 = vmax.f32 %v11123_v8, %v11346_v39  ;;  %v11348_v16 = vld [vmem:[#allocation4 + $0x1bb] sm:$0xff] }
 0x9cd   : > { %v11611_v62 = vmax.f32 %v11542_v36, 0.0  ;;  %v11379_v4 = vmax.f32 %v11315_v46, %v11347_v12  ;;  %v10162_v39 = vadd.f32 %v18979_v42, %v9884_v29  ;;  %v9885_v42 = vadd.f32 %v18209_v28, %v18213_v32 }
 0x9ce   : > { %v10752_v53 = vadd.f32 %v18642_v48, %v10716_v50  ;;  %11675 = vst.msk [vmem:[%s18685_s23 + $0x60] sm:$0xff] %vm11662_vm2, %v11642_v51  ;;  %v11252_v33 = vmax.f32 %v11187_v21, %v11220_v27 }
 0x9cf   : > { %v10649_v38 = vpop.f32.mrf.mxu0  ;;  %v10163_v46 = vadd.f32 %v18996_v55, %v9885_v42  ;;  %v19038_v55 = vld [vmem:[%s19197_s12] ss:$0 sm:$0xff] }
 0x9d0   : > { %v10784_v11 = vmax.f32 %v10752_v53, 0.0  ;;  %v11316_v25 = vmax.f32 %v11252_v33, %v11284_v22 }
 0x9d1   : > { %v10102_v14 = vpop.f32.mrf.mxu2  ;;  %v10371_v47 = vpop.f32.mrf.mxu3 }
 0x9d2   : > { %13062 = vmatmul.msk.f32.gmra.mxu0 %vm472_vm1, %v10487_v1  ;;  %v10439_v18 = vadd.f32 %v10371_v47, %v10161_v44  ;;  %v10816_v2 = vadd.f32 %v10784_v11, %v20281_v17  ;;  %v11544_v49 = vpop.f32.mrf.mxu1  ;;  %v11380_v37 = vmax.f32 %v11316_v25, %v11348_v16  ;;  %v20283_v47 = vld [vmem:[#allocation31_spill] sm:$0xff]  ;;  %v9886_v17 = vadd.f32 %v18234_v60, %v18238_v61 }
 0x9d3   : > { %v11545_v9 = vadd.f32 %v18632_v23, %v11544_v49  ;;  %13095 = vmatmul.msk.f32.gmra.mxu1 %vm472_vm1, %v11379_v4 }
 0x9d4   : > { %v10717_v41 = vadd.f32 %v10649_v38, %v10439_v18  ;;  %v11643_v58 = vadd.f32 %v11611_v62, %v10816_v2  ;;  %13029 = vmatmul.msk.f32.gmra.mxu3 %vm472_vm1, %v10210_v30  ;;  %v20282_v38 = vld [vmem:[#allocation34_spill] sm:$0xff]  ;;  %v10164_v30 = vadd.f32 %v10102_v14, %v9886_v17  ;;  %v19051_v14 = vld [vmem:[%s19195_s10] ss:$0 sm:$0xff] }
 0x9d5   : > { %v11612_v31 = vmax.f32 %v11545_v9, 0.0 }
 0x9d6   : > { %v10753_v0 = vadd.f32 %v18642_v48, %v10717_v41  ;;  %11676 = vst.msk [vmem:[%s18685_s23 + $0x68] sm:$0xff] %vm11662_vm2, %v11643_v58 }
 0x9d7   : > { %v10652_v43 = vpop.f32.mrf.mxu0 }
 0x9d8   : > { %v10785_v10 = vmax.f32 %v10753_v0, 0.0  ;;  %v9887_v0 = vadd.f32 %v18261_v52, %v18265_v24 }
 0x9d9   : > { %v10105_v20 = vpop.f32.mrf.mxu2  ;;  %v10374_v50 = vpop.f32.mrf.mxu3 }
 0x9da   : > { %13063 = vmatmul.msk.f32.gmra.mxu0 %vm472_vm1, %v10488_v6  ;;  %v10440_v51 = vadd.f32 %v10374_v50, %v10162_v39  ;;  %v10817_v7 = vadd.f32 %v10785_v10, %v20282_v38  ;;  %v11547_v54 = vpop.f32.mrf.mxu1  ;;  %v10165_v25 = vadd.f32 %v10105_v20, %v9887_v0  ;;  %v20285_v38 = vld [vmem:[#allocation36_spill] sm:$0xff]  ;;  %v20288_v0 = vld [vmem:[#allocation42_spill] sm:$0xff] }
 0x9db   : > { %v11548_v53 = vadd.f32 %v18632_v23, %v11547_v54  ;;  %13096 = vmatmul.msk.f32.gmra.mxu1 %vm472_vm1, %v11380_v37 }
 0x9dc   : > { %v10718_v36 = vadd.f32 %v10652_v43, %v10440_v51  ;;  %v11644_v1 = vadd.f32 %v11612_v31, %v10817_v7  ;;  %v20284_v43 = vld [vmem:[#allocation39_spill] sm:$0xff] }
 0x9dd   : > { %v11613_v8 = vmax.f32 %v11548_v53, 0.0 }
 0x9de   : > { %v10754_v44 = vadd.f32 %v18642_v48, %v10718_v36  ;;  %11677 = vst.msk [vmem:[%s18685_s23 + $0x70] sm:$0xff] %vm11662_vm2, %v11644_v1  ;;  %v9888_v36 = vadd.f32 %v18289_v5, %v18293_v40  ;;  %v9889_v5 = vadd.f32 %v18317_v45, %v18321_v3  ;;  %v9890_v45 = vadd.f32 %v18345_v57, %v18349_v26 }
 0x9df   : > { %v10655_v13 = vpop.f32.mrf.mxu0  ;;  %v9891_v57 = vadd.f32 %v18373_v19, %v18377_v15  ;;  %v9892_v19 = vadd.f32 %v18401_v34, %v18405_v56  ;;  %v9893_v34 = vadd.f32 %v18429_v35, %v18433_v59  ;;  %v20292_v35 = vld [vmem:[#allocation76_spill] sm:$0xff] }
 0x9e0   : > { %v10786_v12 = vmax.f32 %v10754_v44, 0.0  ;;  %v9894_v59 = vadd.f32 %v20292_v35, %v18461_v63  ;;  %v20294_v63 = vld [vmem:[#allocation106_spill] sm:$0xff] }
 0x9e1   : > { %v10108_v11 = vpop.f32.mrf.mxu2  ;;  %v10377_v62 = vpop.f32.mrf.mxu3 }
 0x9e2   : > { %v10441_v27 = vadd.f32 %v10377_v62, %v10163_v46  ;;  %v10818_v21 = vadd.f32 %v10786_v12, %v20283_v47  ;;  %v11550_v18 = vpop.f32.mrf.mxu1  ;;  %v10166_v20 = vadd.f32 %v10108_v11, %v9888_v36 }
 0x9e3   : > { %v11551_v2 = vadd.f32 %v19038_v55, %v11550_v18 }
 0x9e4   : > { %v10719_v28 = vadd.f32 %v10655_v13, %v10441_v27  ;;  %v11645_v32 = vadd.f32 %v11613_v8, %v10818_v21  ;;  %v20286_v8 = vld [vmem:[#allocation37_spill] sm:$0xff] }
 0x9e5   : > { %v11614_v33 = vmax.f32 %v11551_v2, 0.0 }
 0x9e6   : > { %v10755_v4 = vadd.f32 %v18642_v48, %v10719_v28  ;;  %11678 = vst.msk [vmem:[%s18685_s23 + $0x78] sm:$0xff] %vm11662_vm2, %v11645_v32 }
 0x9e7   : > { %v10658_v23 = vpop.f32.mrf.mxu0 }
 0x9e8   : > { %v10787_v49 = vmax.f32 %v10755_v4, 0.0  ;;  %v20287_v4 = vld [vmem:[#allocation45_spill] sm:$0xff] }
 0x9e9   : > { %v10111_v22 = vpop.f32.mrf.mxu2  ;;  %v10380_v41 = vpop.f32.mrf.mxu3 }
 0x9ea   : > { %v10442_v58 = vadd.f32 %v10380_v41, %v10164_v30  ;;  %v10819_v60 = vadd.f32 %v10787_v49, %v20284_v43  ;;  %v11553_v61 = vpop.f32.mrf.mxu1  ;;  %v10167_v11 = vadd.f32 %v10111_v22, %v9889_v5 }
 0x9eb   : > { %v11554_v48 = vadd.f32 %v19038_v55, %v11553_v61 }
 0x9ec   : > { %v10720_v29 = vadd.f32 %v10658_v23, %v10442_v58  ;;  %v11646_v9 = vadd.f32 %v11614_v33, %v10819_v60 }
 0x9ed   : > { %v11615_v10 = vmax.f32 %v11554_v48, 0.0 }
 0x9ee   : > { %v10756_v39 = vadd.f32 %v19051_v14, %v10720_v29  ;;  %11679 = vst.msk [vmem:[%s18685_s23 + $0x80] sm:$0xff] %vm11662_vm2, %v11646_v9 }
 0x9ef   : > { %v10661_v6 = vpop.f32.mrf.mxu0 }
 0x9f0   : > { %v10788_v16 = vmax.f32 %v10756_v39, 0.0 }
 0x9f1   : > { %v10114_v31 = vpop.f32.mrf.mxu2  ;;  %v10383_v50 = vpop.f32.mrf.mxu3 }
 0x9f2   : > { %v10443_v51 = vadd.f32 %v10383_v50, %v10165_v25  ;;  %v10820_v52 = vadd.f32 %v10788_v16, %v20285_v38  ;;  %v11556_v24 = vpop.f32.mrf.mxu1  ;;  %v10168_v22 = vadd.f32 %v10114_v31, %v9890_v45 }
 0x9f3   : > { %v11557_v1 = vadd.f32 %v19038_v55, %v11556_v24 }
 0x9f4   : > { %v10721_v7 = vadd.f32 %v10661_v6, %v10443_v51  ;;  %v11647_v37 = vadd.f32 %v11615_v10, %v10820_v52 }
 0x9f5   : > { %v11616_v53 = vmax.f32 %v11557_v1, 0.0 }
 0x9f6   : > { %v10757_v13 = vadd.f32 %v19051_v14, %v10721_v7  ;;  %11680 = vst.msk [vmem:[%s18685_s23 + $0x88] sm:$0xff] %vm11662_vm2, %v11647_v37  ;;  %v20289_v37 = vld [vmem:[#allocation50_spill] sm:$0xff] }
 0x9f7   : > { %v10664_v54 = vpop.f32.mrf.mxu0 }
 0x9f8   : > { %v10789_v42 = vmax.f32 %v10757_v13, 0.0 }
 0x9f9   : > { %v10386_v44 = vpop.f32.mrf.mxu3  ;;  %v10117_v46 = vpop.f32.mrf.mxu2 }
 0x9fa   : > { %v10444_v12 = vadd.f32 %v10386_v44, %v10166_v20  ;;  %v10821_v62 = vadd.f32 %v10789_v42, %v20286_v8  ;;  %v11559_v27 = vpop.f32.mrf.mxu1  ;;  %v10169_v31 = vadd.f32 %v10117_v46, %v9891_v57  ;;  %v20295_v57 = vld [vmem:[#allocation104_spill] sm:$0xff] }
 0x9fb   : > { %v11560_v40 = vadd.f32 %v19038_v55, %v11559_v27  ;;  %v20290_v27 = vld [vmem:[#allocation47_spill] sm:$0xff] }
 0x9fc   : > { %v10722_v47 = vadd.f32 %v10664_v54, %v10444_v12  ;;  %v11648_v21 = vadd.f32 %v11616_v53, %v10821_v62 }
 0x9fd   : > { %v11617_v23 = vmax.f32 %v11560_v40, 0.0 }
 0x9fe   : > { %v10758_v28 = vadd.f32 %v19051_v14, %v10722_v47  ;;  %11681 = vst.msk [vmem:[%s18685_s23 + $0x90] sm:$0xff] %vm11662_vm2, %v11648_v21 }
 0x9ff   : > { %v10667_v18 = vpop.f32.mrf.mxu0 }
 0xa00   : > { %v10790_v32 = vmax.f32 %v10758_v28, 0.0 }
 0xa01   : > { %v10389_v17 = vpop.f32.mrf.mxu3  ;;  %v10120_v33 = vpop.f32.mrf.mxu2 }
 0xa02   : > { %v10445_v2 = vadd.f32 %v10389_v17, %v10167_v11  ;;  %v10822_v30 = vadd.f32 %v10790_v32, %v20287_v4  ;;  %v11562_v49 = vpop.f32.mrf.mxu1  ;;  %v10170_v53 = vadd.f32 %v10120_v33, %v9892_v19  ;;  %v20297_v19 = vld [vmem:[#allocation28_spill] sm:$0xff] }
 0xa03   : > { %v11563_v3 = vadd.f32 %v19038_v55, %v11562_v49 }
 0xa04   : > { %v10723_v41 = vadd.f32 %v10667_v18, %v10445_v2  ;;  %v11649_v58 = vadd.f32 %v11617_v23, %v10822_v30  ;;  %v20291_v30 = vld [vmem:[#allocation51_spill] sm:$0xff] }
 0xa05   : > { %v11618_v29 = vmax.f32 %v11563_v3, 0.0 }
 0xa06   : > { %v10759_v60 = vadd.f32 %v19051_v14, %v10723_v41  ;;  %11682 = vst.msk [vmem:[%s18685_s23 + $0x98] sm:$0xff] %vm11662_vm2, %v11649_v58 }
 0xa07   : > { %v10670_v43 = vpop.f32.mrf.mxu0 }
 0xa08   : > { %v10791_v61 = vmax.f32 %v10759_v60, 0.0 }
 0xa09   : > { %v10392_v9 = vpop.f32.mrf.mxu3  ;;  %v10123_v50 = vpop.f32.mrf.mxu2 }
 0xa0a   : > { %v10446_v6 = vadd.f32 %v10392_v9, %v10168_v22  ;;  %v10823_v48 = vadd.f32 %v10791_v61, %v20288_v0  ;;  %v11565_v39 = vpop.f32.mrf.mxu1  ;;  %v10171_v11 = vadd.f32 %v10123_v50, %v9893_v34 }
 0xa0b   : > { %v11566_v26 = vadd.f32 %v19038_v55, %v11565_v39 }
 0xa0c   : > { %v10724_v25 = vadd.f32 %v10670_v43, %v10446_v6  ;;  %v11650_v16 = vadd.f32 %v11618_v29, %v10823_v48  ;;  %v20293_v6 = vld [vmem:[#allocation56_spill] sm:$0xff] }
 0xa0d   : > { %v11619_v52 = vmax.f32 %v11566_v26, 0.0  ;;  %v9895_v26 = vadd.f32 %v20295_v57, %v20294_v63 }
 0xa0e   : > { %v10760_v51 = vadd.f32 %v19051_v14, %v10724_v25  ;;  %11683 = vst.msk [vmem:[%s18685_s23 + $0xa0] sm:$0xff] %vm11662_vm2, %v11650_v16 }
 0xa0f   : > { %v10673_v10 = vpop.f32.mrf.mxu0 }
 0xa10   : > { %v10792_v38 = vmax.f32 %v10760_v51, 0.0 }
 0xa11   : > { %v10395_v24 = vpop.f32.mrf.mxu3  ;;  %v10126_v44 = vpop.f32.mrf.mxu2 }
 0xa12   : > { %v10447_v7 = vadd.f32 %v10395_v24, %v10169_v31  ;;  %v10824_v54 = vadd.f32 %v10792_v38, %v20289_v37  ;;  %v11568_v36 = vpop.f32.mrf.mxu1  ;;  %v10172_v60 = vadd.f32 %v10126_v44, %v9894_v59  ;;  %v20296_v37 = vld [vmem:[#allocation67_spill] sm:$0xff] }
 0xa13   : > { %v11569_v15 = vadd.f32 %v19038_v55, %v11568_v36 }
 0xa14   : > { %v10725_v1 = vadd.f32 %v10673_v10, %v10447_v7  ;;  %v11651_v13 = vadd.f32 %v11619_v52, %v10824_v54 }
 0xa15   : > { %v11620_v12 = vmax.f32 %v11569_v15, 0.0  ;;  %v20298_v15 = vld [vmem:[#allocation71_spill] sm:$0xff] }
 0xa16   : > { %v10761_v42 = vadd.f32 %v19051_v14, %v10725_v1  ;;  %11684 = vst.msk [vmem:[%s18685_s23 + $0xa8] sm:$0xff] %vm11662_vm2, %v11651_v13 }
 0xa17   : > { %v10676_v20 = vpop.f32.mrf.mxu0 }
 0xa18   : > { %v10793_v46 = vmax.f32 %v10761_v42, 0.0  ;;  %v9896_v42 = vadd.f32 %v20298_v15, %v20297_v19  ;;  %v20306_v15 = vld [vmem:[#allocation70_spill] sm:$0xff] }
 0xa19   : > { %v10398_v8 = vpop.f32.mrf.mxu3  ;;  %v10129_v2 = vpop.f32.mrf.mxu2 }
 0xa1a   : > { %v10448_v62 = vadd.f32 %v10398_v8, %v10170_v53  ;;  %v10825_v47 = vadd.f32 %v10793_v46, %v20290_v27  ;;  %v11571_v21 = vpop.f32.mrf.mxu1  ;;  %v10173_v31 = vadd.f32 %v10129_v2, %v9895_v26  ;;  %v20304_v26 = vld [vmem:[#allocation59_spill] sm:$0xff] }
 0xa1b   : > { %v11572_v56 = vadd.f32 %v19038_v55, %v11571_v21  ;;  %v20299_v21 = vld [vmem:[#allocation73_spill] sm:$0xff] }
 0xa1c   : > { %v10726_v18 = vadd.f32 %v10676_v20, %v10448_v62  ;;  %v11652_v5 = vadd.f32 %v11620_v12, %v10825_v47 }
 0xa1d   : > { %v11621_v23 = vmax.f32 %v11572_v56, 0.0 }
 0xa1e   : > { %v10762_v28 = vadd.f32 %v19051_v14, %v10726_v18  ;;  %11685 = vst.msk [vmem:[%s18685_s23 + $0xb0] sm:$0xff] %vm11662_vm2, %v11652_v5 }
 0xa1f   : > { %v10679_v40 = vpop.f32.mrf.mxu0 }
 0xa20   : > { %v10794_v32 = vmax.f32 %v10762_v28, 0.0 }
 0xa21   : > { %v10401_v17 = vpop.f32.mrf.mxu3  ;;  %v10132_v39 = vpop.f32.mrf.mxu2 }
 0xa22   : > { %v10449_v4 = vadd.f32 %v10401_v17, %v10171_v11  ;;  %v10826_v49 = vadd.f32 %v10794_v32, %v20291_v30  ;;  %v11574_v33 = vpop.f32.mrf.mxu1  ;;  %v10174_v12 = vadd.f32 %v10132_v39, %v9896_v42  ;;  %v20300_v32 = vld [vmem:[#allocation43_spill] sm:$0xff] }
 0xa23   : > { %v11575_v45 = vadd.f32 %v19038_v55, %v11574_v33 }
 0xa24   : > { %v10727_v41 = vadd.f32 %v10679_v40, %v10449_v4  ;;  %v11653_v58 = vadd.f32 %v11621_v23, %v10826_v49  ;;  %v20301_v49 = vld [vmem:[#allocation78_spill] sm:$0xff] }
 0xa25   : > { %v11622_v61 = vmax.f32 %v11575_v45, 0.0 }
 0xa26   : > { %v10763_v3 = vadd.f32 %v19051_v14, %v10727_v41  ;;  %11686 = vst.msk [vmem:[%s18685_s23 + $0xb8] sm:$0xff] %vm11662_vm2, %v11653_v58 }
 0xa27   : > { %v10682_v43 = vpop.f32.mrf.mxu0 }
 0xa28   : > { %v10795_v22 = vmax.f32 %v10763_v3, 0.0 }
 0xa29   : > { %v10404_v29 = vpop.f32.mrf.mxu3  ;;  %v10135_v44 = vpop.f32.mrf.mxu2 }
 0xa2a   : > { %v10450_v9 = vadd.f32 %v10404_v29, %v10172_v60  ;;  %v10827_v0 = vadd.f32 %v10795_v22, %v20293_v6  ;;  %v11577_v48 = vpop.f32.mrf.mxu1  ;;  %v10175_v23 = vadd.f32 %v10135_v44, %v20300_v32  ;;  %v20302_v60 = vld [vmem:[#allocation30_spill] sm:$0xff] }
 0xa2b   : > { %v11578_v50 = vadd.f32 %v19038_v55, %v11577_v48 }
 0xa2c   : > { %v10728_v25 = vadd.f32 %v10682_v43, %v10450_v9  ;;  %v11654_v16 = vadd.f32 %v11622_v61, %v10827_v0  ;;  %v20303_v0 = vld [vmem:[#allocation83_spill] sm:$0xff] }
 0xa2d   : > { %v11623_v52 = vmax.f32 %v11578_v50, 0.0 }
 0xa2e   : > { %v10764_v51 = vadd.f32 %v19051_v14, %v10728_v25  ;;  %11687 = vst.msk [vmem:[%s18685_s23 + $0xc0] sm:$0xff] %vm11662_vm2, %v11654_v16 }
 0xa2f   : > { %v10685_v10 = vpop.f32.mrf.mxu0 }
 0xa30   : > { %v10796_v38 = vmax.f32 %v10764_v51, 0.0 }
 0xa31   : > { %v10407_v24 = vpop.f32.mrf.mxu3  ;;  %v10138_v17 = vpop.f32.mrf.mxu2 }
 0xa32   : > { %v10451_v7 = vadd.f32 %v10407_v24, %v10173_v31  ;;  %v10828_v54 = vadd.f32 %v10796_v38, %v20296_v37  ;;  %v11580_v36 = vpop.f32.mrf.mxu1  ;;  %v10176_v22 = vadd.f32 %v10138_v17, %v20302_v60  ;;  %v20305_v24 = vld [vmem:[#allocation87_spill] sm:$0xff] }
 0xa33   : > { %v11581_v53 = vadd.f32 %v19038_v55, %v11580_v36 }
 0xa34   : > { %v10729_v1 = vadd.f32 %v10685_v10, %v10451_v7  ;;  %v11655_v13 = vadd.f32 %v11623_v52, %v10828_v54 }
 0xa35   : > { %v11624_v62 = vmax.f32 %v11581_v53, 0.0 }
 0xa36   : > { %v10765_v46 = vadd.f32 %v19051_v14, %v10729_v1  ;;  %11688 = vst.msk [vmem:[%s18685_s23 + $0xc8] sm:$0xff] %vm11662_vm2, %v11655_v13 }
 0xa37   : > { %v10688_v20 = vpop.f32.mrf.mxu0 }
 0xa38   : > { %v10797_v8 = vmax.f32 %v10765_v46, 0.0 }
 0xa39   : > { %v10410_v27 = vpop.f32.mrf.mxu3  ;;  %v10141_v6 = vpop.f32.mrf.mxu2 }
 0xa3a   : > { %v10452_v47 = vadd.f32 %v10410_v27, %v10174_v12  ;;  %v10829_v18 = vadd.f32 %v10797_v8, %v20299_v21  ;;  %v11583_v5 = vpop.f32.mrf.mxu1  ;;  %v10177_v50 = vadd.f32 %v10141_v6, %v20304_v26  ;;  %v20307_v8 = vld [vmem:[#allocation89_spill] sm:$0xff] }
 0xa3b   : > { %v11584_v56 = vadd.f32 %v19038_v55, %v11583_v5 }
 0xa3c   : > { %v10730_v40 = vadd.f32 %v10688_v20, %v10452_v47  ;;  %v11656_v34 = vadd.f32 %v11624_v62, %v10829_v18 }
 0xa3d   : > { %v11625_v4 = vmax.f32 %v11584_v56, 0.0 }
 0xa3e   : > { %v10766_v11 = vadd.f32 %v19051_v14, %v10730_v40  ;;  %11689 = vst.msk [vmem:[%s18685_s23 + $0xd0] sm:$0xff] %vm11662_vm2, %v11656_v34 }
 0xa3f   : > { %v10691_v28 = vpop.f32.mrf.mxu0 }
 0xa40   : > { %v10798_v2 = vmax.f32 %v10766_v11, 0.0 }
 0xa41   : > { %v10413_v30 = vpop.f32.mrf.mxu3  ;;  %v10144_v54 = vpop.f32.mrf.mxu2 }
 0xa42   : > { %v10830_v33 = vadd.f32 %v10798_v2, %v20301_v49  ;;  %v10453_v41 = vadd.f32 %v10413_v30, %v10175_v23  ;;  %v11586_v58 = vpop.f32.mrf.mxu1  ;;  %v10178_v42 = vadd.f32 %v10144_v54, %v20306_v15 }
 0xa43   : > { %v11587_v59 = vadd.f32 %v19038_v55, %v11586_v58 }
 0xa44   : > { %v11657_v43 = vadd.f32 %v11625_v4, %v10830_v33  ;;  %v10731_v35 = vadd.f32 %v10691_v28, %v10453_v41  ;;  %v20308_v28 = vld [vmem:[#allocation96_spill] sm:$0xff] }
 0xa45   : > { %v11626_v29 = vmax.f32 %v11587_v59, 0.0 }
 0xa46   : > { %11690 = vst.msk [vmem:[%s18685_s23 + $0xd8] sm:$0xff] %vm11662_vm2, %v11657_v43  ;;  %v10767_v3 = vadd.f32 %v19051_v14, %v10731_v35 }
 0xa47   : > { %v10694_v45 = vpop.f32.mrf.mxu0 }
 0xa48   : > { %v10799_v61 = vmax.f32 %v10767_v3, 0.0 }
 0xa49   : > { %v10416_v9 = vpop.f32.mrf.mxu3 }
 0xa4a   : > { %v10831_v48 = vadd.f32 %v10799_v61, %v20303_v0  ;;  %v10454_v39 = vadd.f32 %v10416_v9, %v10176_v22  ;;  %v11589_v25 = vpop.f32.mrf.mxu1 }
 0xa4b   : > { %v11590_v63 = vadd.f32 %v19038_v55, %v11589_v25 }
 0xa4c   : > { %v11658_v16 = vadd.f32 %v11626_v29, %v10831_v48  ;;  %v10732_v10 = vadd.f32 %v10694_v45, %v10454_v39 }
 0xa4d   : > { %v11627_v38 = vmax.f32 %v11590_v63, 0.0 }
 0xa4e   : > { %11691 = vst.msk [vmem:[%s18685_s23 + $0xe0] sm:$0xff] %vm11662_vm2, %v11658_v16  ;;  %v10768_v57 = vadd.f32 %v19051_v14, %v10732_v10 }
 0xa4f   : > { %v10697_v51 = vpop.f32.mrf.mxu0 }
 0xa50   : > { %v10800_v31 = vmax.f32 %v10768_v57, 0.0 }
 0xa51   : > { %v10419_v52 = vpop.f32.mrf.mxu3 }
 0xa52   : > { %v10832_v7 = vadd.f32 %v10800_v31, %v20305_v24  ;;  %v10455_v37 = vadd.f32 %v10419_v52, %v10177_v50  ;;  %v11592_v36 = vpop.f32.mrf.mxu1 }
 0xa53   : > { %v11593_v20 = vadd.f32 %v19038_v55, %v11592_v36 }
 0xa54   : > { %v11659_v1 = vadd.f32 %v11627_v38, %v10832_v7  ;;  %v10733_v13 = vadd.f32 %v10697_v51, %v10455_v37 }
 0xa55   : > { %v11628_v44 = vmax.f32 %v11593_v20, 0.0 }
 0xa56   : > { %11692 = vst.msk [vmem:[%s18685_s23 + $0xe8] sm:$0xff] %vm11662_vm2, %v11659_v1  ;;  %v10769_v19 = vadd.f32 %v19051_v14, %v10733_v13 }
 0xa57   : > { %v10700_v12 = vpop.f32.mrf.mxu0 }
 0xa58   : > { %v10801_v53 = vmax.f32 %v10769_v19, 0.0 }
 0xa59   : > { %v10422_v46 = vpop.f32.mrf.mxu3 }
 0xa5a   : > { %v10833_v62 = vadd.f32 %v10801_v53, %v20307_v8  ;;  %v10456_v27 = vadd.f32 %v10422_v46, %v10178_v42  ;;  %v11595_v47 = vpop.f32.mrf.mxu1 }
 0xa5b   : > { %v11596_v5 = vadd.f32 %v19038_v55, %v11595_v47 }
 0xa5c   : > { %v11660_v21 = vadd.f32 %v11628_v44, %v10833_v62  ;;  %v10734_v18 = vadd.f32 %v10700_v12, %v10456_v27 }
 0xa5d   : > { %v11629_v56 = vmax.f32 %v11596_v5, 0.0 }
 0xa5e   : > { %11693 = vst.msk [vmem:[%s18685_s23 + $0xf0] sm:$0xff] %vm11662_vm2, %v11660_v21  ;;  %v10770_v40 = vadd.f32 %v19051_v14, %v10734_v18 }
 0xa60   : > { %v10802_v34 = vmax.f32 %v10770_v40, 0.0 }
 0xa62   : > { %v10834_v11 = vadd.f32 %v10802_v34, %v20308_v28 }
 0xa64   : > { %v11661_v32 = vadd.f32 %v11629_v56, %v10834_v11 }
 0xa66   : > { %11694 = vst.msk [vmem:[%s18685_s23 + $0xf8] sm:$0xff] %vm11662_vm2, %v11661_v32 }
 0xa67   : > { %13215 = shalt.err (!%p13212_p3)
}
 0xa68   : > { %s13254_s20 = smov 128   ;;  %s13255_s23 = smov 8  }
 0xa69   : > { %13106 = dma.vmem_to_hbm [thread:$0]  (%p13364_p5), %s11709_s15, 4096, %s11711_s29, %s11696_s16, %s13254_s20, %s13254_s20, %s13255_s23  }
 0xa6a PF: > { %p13112_p4 = scmp.ge.s32.totalorder %s13250_s28, 2  ;;  %s11725_s0 = sand.u32 1, %s13238_s25  }
 0xa6b   : > { %s11726_s1 = scalar_lea.sflag [#allocation6], %s11725_s0 }
 0xa6c   : > { %p13109_p7 = pnand %p13112_p4, %p13368_p6 }
 0xa6e   : > { %p13110_p8 = pneg %p13109_p7 }
 0xa70   : > { %13233 = dma.done.wait (%p13110_p8), %s11726_s1, 4096  }
 0xa71   : > { %13235 = vsyncadd (%p13110_p8), %s11726_s1, 4294963200  ;;  %p23_p9 = scmp.ge.s32.totalorder %s13351_s14, 4   ;;  %s20309_s25 = smov %s13242_s26 }
 0xa72   : > { %s20310_s26 = smov %s13246_s27  ;;  %s20311_s27 = smov %s13362_s17 }
 0xa73   : > { %s20312_s28 = smov %s13351_s14  ;;  %25 = sbr.rel (!%p23_p9) target bundleno = 7 (0x7), region = 150 }
 0xa78   :  { %11732 = vsyncpa [#allocation6], 1 }
 0xa79   :  { %11734 = vsyncpa [#allocation6 + $0x1], 1 }

</bundles_post_ra>
